<compile_context>
chip_gen: v6e
topology: v6e:2x2x1
jax: 0.10.0
libtpu: 0.0.40
codegen_flags: <defaults>
</compile_context>

<pallas_src>
import jax
import jax.numpy as jnp
from jax.experimental import pallas as pl
from jax.experimental.pallas import tpu as pltpu

HIDDEN = 512          # hardcoded in the PyTorch module (self.hidden_dim = 512)
HALF = HIDDEN // 2
PADDED_C = 128        # lane-dense output width (>= num_classes)
BN_EPS = 1e-5


def _leaky(t, slope):
    return jnp.where(t >= 0, t, slope * t)


# ---------------------------------------------------------------------------
# Kernel
# ---------------------------------------------------------------------------
def mnn_gnn_kernel(adj_ref, xagg_ref, xres_ref,
                   w1_ref, w2_ref, wl1_ref, wl3_ref, pp_ref,
                   out_ref, acc_ref):
    # packed-param rows: 0=b1 (BN1-folded), 1=b2, 2=bn4 scale, 3=bn4 shift,
    #                    4=bl1 (first 256 lanes), 5=bl3 (first 128 lanes)
    k = pl.program_id(1)

    @pl.when(k == 0)
    def _():
        acc_ref[...] = jnp.zeros_like(acc_ref)

    # GINConv (eps=0) aggregation, partial sum over this adjacency column block.
    # int8 tile -> f32 -> bf16 (cheap VPU work, hidden under the MXU dot).
    adj_bf16 = adj_ref[...].astype(jnp.float32).astype(jnp.bfloat16)
    acc_ref[...] += jnp.dot(adj_bf16, xagg_ref[...],
                            preferred_element_type=jnp.float32)

    @pl.when(k == pl.num_programs(1) - 1)
    def _():
        x = xres_ref[...]                                    # (tm, 512) f32
        h = x + acc_ref[...]                                 # x + sum_{j in N(i)} x_j

        # PyG MLP([H,H,H]): Linear -> BatchNorm(folded into w1/b1) -> ReLU -> Linear
        h = jnp.dot(h.astype(jnp.bfloat16), w1_ref[...],
                    preferred_element_type=jnp.float32) + pp_ref[0:1, :]
        h = jnp.maximum(h, 0.0)
        h = jnp.dot(h.astype(jnp.bfloat16), w2_ref[...],
                    preferred_element_type=jnp.float32) + pp_ref[1:2, :]

        # leaky_relu(., 0.1) applied twice, exactly as in the PyTorch forward
        h = _leaky(_leaky(h, 0.1), 0.1)
        # bn4 (eval) folded to a per-channel affine
        h = h * pp_ref[2:3, :] + pp_ref[3:4, :]
        h = _leaky(h, 0.1)

        # residual: x = feature + 0.01 * x
        h = x + 0.01 * h

        # x = leaky_relu(linear1(x), 0.1); out = linear3(x)   (lane-padded to 128)
        h = _leaky(jnp.dot(h.astype(jnp.bfloat16), wl1_ref[...],
                           preferred_element_type=jnp.float32)
                   + pp_ref[4:5, 0:HALF], 0.1)
        out_ref[...] = (jnp.dot(h.astype(jnp.bfloat16), wl3_ref[...],
                                preferred_element_type=jnp.float32)
                        + pp_ref[5:6, 0:PADDED_C])


# ---------------------------------------------------------------------------
# Host-side preparation (padding, int8 adjacency, BN folding, bf16 casts, packing)
# ---------------------------------------------------------------------------
def _round_up(v, m):
    return (v + m - 1) // m * m


def _row_tile_for_device():
    """512 where per-core VMEM is 128 MiB (v5e/v5p/v6e), 256 otherwise (v7x/unknown)."""
    try:
        kind = jax.devices()[0].device_kind.lower()
    except Exception:
        return 256
    if "v5" in kind or "v6" in kind:
        return 512
    return 256


def prepare_operands(x, edge_index, params, num_classes, n_pad):
    assert num_classes <= PADDED_C, "num_classes must be <= 128 (lane-dense output pad)"
    n = x.shape[0]
    src, dst = edge_index[0], edge_index[1]

    # dense adjacency so that (adj @ x)[i] = sum over incoming neighbors j of x[j]
    # TODO(synk): for E << N^2 a block-sparse aggregation driven by scalar-prefetched
    # per-row-block column lists (skipping all-zero blocks) would beat the dense N^2 path.
    counts = jnp.zeros((n_pad, n_pad), jnp.int32).at[dst, src].add(1)
    # eager check (this prep path is not jitted): int8 is exact up to multiplicity 127
    assert int(jnp.max(counts)) <= 127, "edge multiplicity > 127 does not fit int8 adjacency"
    adj_i8 = counts.astype(jnp.int8)

    x_pad = jnp.pad(x.astype(jnp.float32), ((0, n_pad - n), (0, 0)))

    # fold the MLP's BatchNorm (eval mode) into Linear1
    g1, be1, m1, v1 = params["bn_mlp"]
    s1 = g1 * jax.lax.rsqrt(v1 + BN_EPS)
    w1f = params["w1"] * s1[None, :]
    b1f = (params["b1"][0] - m1) * s1 + be1

    # bn4 (eval mode) as a per-channel affine
    g4, be4, m4, v4 = params["bn4"]
    s4 = g4 * jax.lax.rsqrt(v4 + BN_EPS)
    sh4 = be4 - m4 * s4

    # lane-dense final projection (pad num_classes -> 128 zero columns)
    wl3p = jnp.zeros((HALF, PADDED_C), jnp.float32).at[:, :num_classes].set(params["wl3"])
    bl3p = jnp.zeros((PADDED_C,), jnp.float32).at[:num_classes].set(params["bl3"][0])

    # pack the six small vectors into one (8, 512) f32 operand
    packed = jnp.zeros((8, HIDDEN), jnp.float32)
    packed = packed.at[0].set(b1f)
    packed = packed.at[1].set(params["b2"][0])
    packed = packed.at[2].set(s4)
    packed = packed.at[3].set(sh4)
    packed = packed.at[4, :HALF].set(params["bl1"][0])
    packed = packed.at[5, :PADDED_C].set(bl3p)

    return dict(
        adj=adj_i8,                               # int8 counts (dominant HBM stream halved)
        x_bf16=x_pad.astype(jnp.bfloat16),        # aggregation stream
        x_f32=x_pad,                              # f32 residual stream
        w1=w1f.astype(jnp.bfloat16),
        w2=params["w2"].astype(jnp.bfloat16),
        wl1=params["wl1"].astype(jnp.bfloat16),
        wl3=wl3p.astype(jnp.bfloat16),
        packed=packed,
    )


def mnn_gnn_forward(x, edge_index, params, num_classes):
    """x: [N, HIDDEN] f32, edge_index: [2, E] int32 (row 0 = src, row 1 = dst)."""
    n = x.shape[0]
    tm = tk = _row_tile_for_device()
    n_pad = _round_up(n, tm)
    if n_pad // tm < 2:
        # guarantee >= 2 row blocks: pipelining + both v7x TensorCores on the parallel axis
        n_pad = 2 * tm

    ops = prepare_operands(x, edge_index, params, num_classes, n_pad)
    grid = (n_pad // tm, n_pad // tk)

    weight_bytes = 2 * (2 * HIDDEN * HIDDEN + HIDDEN * HALF + HALF * PADDED_C)
    cost = pl.CostEstimate(
        flops=2 * n_pad * n_pad * HIDDEN
        + 2 * n_pad * (2 * HIDDEN * HIDDEN + HIDDEN * HALF + HALF * PADDED_C),
        transcendentals=0,
        bytes_accessed=n_pad * n_pad                      # int8 adjacency (dominant)
        + n_pad * HIDDEN * (2 + 4)                        # bf16 agg x + f32 residual x
        + weight_bytes + 8 * HIDDEN * 4                   # resident weights + packed params
        + n_pad * PADDED_C * 4,                           # f32 output
    )

    out = pl.pallas_call(
        mnn_gnn_kernel,
        out_shape=jax.ShapeDtypeStruct((n_pad, PADDED_C), jnp.float32),
        grid_spec=pltpu.PrefetchScalarGridSpec(
            num_scalar_prefetch=0,
            grid=grid,
            in_specs=[
                pl.BlockSpec((tm, tk), lambda i, k: (i, k)),          # adj tile (int8)
                pl.BlockSpec((tk, HIDDEN), lambda i, k: (k, 0)),      # x column block (bf16)
                pl.BlockSpec((tm, HIDDEN), lambda i, k: (i, 0)),      # residual x row tile (f32)
                pl.BlockSpec((HIDDEN, HIDDEN), lambda i, k: (0, 0)),  # w1 (BN-folded, bf16)
                pl.BlockSpec((HIDDEN, HIDDEN), lambda i, k: (0, 0)),  # w2 (bf16)
                pl.BlockSpec((HIDDEN, HALF), lambda i, k: (0, 0)),    # wl1 (bf16)
                pl.BlockSpec((HALF, PADDED_C), lambda i, k: (0, 0)),  # wl3 padded (bf16)
                pl.BlockSpec((8, HIDDEN), lambda i, k: (0, 0)),       # packed biases / BN affine
            ],
            out_specs=pl.BlockSpec((tm, PADDED_C), lambda i, k: (i, 0)),
            scratch_shapes=[pltpu.VMEM((tm, HIDDEN), jnp.float32)],   # f32 agg accumulator
        ),
        compiler_params=pltpu.CompilerParams(
            dimension_semantics=("parallel", "arbitrary"),
            vmem_limit_bytes=48 * 1024 * 1024,
        ),
        cost_estimate=cost,
    )(ops["adj"], ops["x_bf16"], ops["x_f32"], ops["w1"], ops["w2"],
      ops["wl1"], ops["wl3"], ops["packed"])
    return out[:n, :num_classes]


# ---------------------------------------------------------------------------
# Parameter init (PyTorch-default-like) and references
# ---------------------------------------------------------------------------
def _init_linear(key, fan_in, fan_out):
    k = 1.0 / jnp.sqrt(jnp.float32(fan_in))
    kw, kb = jax.random.split(key)
    w = jax.random.uniform(kw, (fan_in, fan_out), jnp.float32, -k, k)
    b = jax.random.uniform(kb, (1, fan_out), jnp.float32, -k, k)
    return w, b


def _init_bn(h):
    # rows: gamma, beta, running_mean, running_var (PyTorch defaults)
    return jnp.stack([jnp.ones((h,), jnp.float32),
                      jnp.zeros((h,), jnp.float32),
                      jnp.zeros((h,), jnp.float32),
                      jnp.ones((h,), jnp.float32)], axis=0)


def init_params(key, num_classes):
    k1, k2, k3, k4 = jax.random.split(key, 4)
    w1, b1 = _init_linear(k1, HIDDEN, HIDDEN)
    w2, b2 = _init_linear(k2, HIDDEN, HIDDEN)
    wl1, bl1 = _init_linear(k3, HIDDEN, HALF)
    wl3, bl3 = _init_linear(k4, HALF, num_classes)
    return dict(w1=w1, b1=b1, bn_mlp=_init_bn(HIDDEN),
                w2=w2, b2=b2, bn4=_init_bn(HIDDEN),
                wl1=wl1, bl1=bl1, wl3=wl3, bl3=bl3)


def reference_forward_f32(x, edge_index, p, num_classes):
    """Pure-f32 JAX reference matching the PyTorch forward (eval mode)."""
    n = x.shape[0]
    adj = jnp.zeros((n, n), jnp.float32).at[edge_index[1], edge_index[0]].add(1.0)
    h = x + adj @ x
    h = h @ p["w1"] + p["b1"]
    g, b, m, v = p["bn_mlp"]
    h = (h - m) * (g / jnp.sqrt(v + BN_EPS)) + b
    h = jnp.maximum(h, 0.0)
    h = h @ p["w2"] + p["b2"]
    h = _leaky(_leaky(h, 0.1), 0.1)
    g4, b4, m4, v4 = p["bn4"]
    h = (h - m4) * (g4 / jnp.sqrt(v4 + BN_EPS)) + b4
    h = _leaky(h, 0.1)
    h = x + 0.01 * h
    h = _leaky(h @ p["wl1"] + p["bl1"], 0.1)
    return h @ p["wl3"] + p["bl3"]


def reference_forward_matched(ops, num_classes, n):
    """Same math as the kernel (identical bf16 operands / folded BNs), plain jnp."""
    pp = ops["packed"]
    x = ops["x_f32"]
    adj_bf16 = ops["adj"].astype(jnp.float32).astype(jnp.bfloat16)
    agg = jnp.dot(adj_bf16, ops["x_bf16"], preferred_element_type=jnp.float32)
    h = x + agg
    h = jnp.dot(h.astype(jnp.bfloat16), ops["w1"],
                preferred_element_type=jnp.float32) + pp[0:1, :]
    h = jnp.maximum(h, 0.0)
    h = jnp.dot(h.astype(jnp.bfloat16), ops["w2"],
                preferred_element_type=jnp.float32) + pp[1:2, :]
    h = _leaky(_leaky(h, 0.1), 0.1)
    h = h * pp[2:3, :] + pp[3:4, :]
    h = _leaky(h, 0.1)
    h = x + 0.01 * h
    h = _leaky(jnp.dot(h.astype(jnp.bfloat16), ops["wl1"],
                       preferred_element_type=jnp.float32) + pp[4:5, :HALF], 0.1)
    out = jnp.dot(h.astype(jnp.bfloat16), ops["wl3"],
                  preferred_element_type=jnp.float32) + pp[5:6, :PADDED_C]
    return out[:n, :num_classes]


if __name__ == "__main__":
    # TODO(synk): dropout layers are treated as identity (eval mode); train-mode
    # stochastic dropout and BN batch statistics are not modeled.
    N, E, NUM_CLASSES = 256, 1024, 8

    key = jax.random.PRNGKey(0)
    kx, ks, kd, kp = jax.random.split(key, 4)
    x = jax.random.normal(kx, (N, HIDDEN), jnp.float32)
    edge_index = jnp.stack([
        jax.random.randint(ks, (E,), 0, N, jnp.int32),
        jax.random.randint(kd, (E,), 0, N, jnp.int32),
    ], axis=0)
    params = init_params(kp, NUM_CLASSES)

    out = mnn_gnn_forward(x, edge_index, params, NUM_CLASSES)
    out = jax.block_until_ready(out)
    assert out.shape == (N, NUM_CLASSES)

    # bf16-matched JAX reference (identical operands; only the K-blocked partial-sum
    # order in the aggregation may differ by a few ulps)
    tm = tk = _row_tile_for_device()
    n_pad = _round_up(N, tm)
    if n_pad // tm < 2:
        n_pad = 2 * tm
    ops = prepare_operands(x, edge_index, params, NUM_CLASSES, n_pad)
    ref_matched = reference_forward_matched(ops, NUM_CLASSES, N)
    assert jnp.allclose(out, ref_matched, rtol=1e-2, atol=1e-2), \
        "mismatch vs bf16-matched JAX reference"

    # loose sanity check vs the pure-f32 reference (bf16 matmul rounding only)
    ref_f32 = reference_forward_f32(x, edge_index, params, NUM_CLASSES)
    assert jnp.allclose(out, ref_f32, rtol=1e-1, atol=1e-1), \
        "mismatch vs f32 JAX reference beyond bf16 rounding"

    print("KERNEL_OK")
</pallas_src>

<mosaic_0001>
module attributes {stable_mosaic.version = 11 : i64} {
  func.func @mnn_gnn_kernel(%arg0: i32, %arg1: i32, %arg2: memref<256x256xi8, #tpu.memory_space<vmem>>, %arg3: memref<256x512xbf16, #tpu.memory_space<vmem>>, %arg4: memref<256x512xf32, #tpu.memory_space<vmem>>, %arg5: memref<512x512xbf16, #tpu.memory_space<vmem>>, %arg6: memref<512x512xbf16, #tpu.memory_space<vmem>>, %arg7: memref<512x256xbf16, #tpu.memory_space<vmem>>, %arg8: memref<256x128xbf16, #tpu.memory_space<vmem>>, %arg9: memref<8x512xf32, #tpu.memory_space<vmem>>, %arg10: memref<256x128xf32, #tpu.memory_space<vmem>>, %arg11: memref<256x512xf32, #tpu.memory_space<vmem>>) attributes {dimension_semantics = [#tpu.dimension_semantics<parallel>, #tpu.dimension_semantics<arbitrary>], iteration_bounds = array<i64: 2, 2>, scalar_prefetch = 0 : i64, scratch_operands = 1 : i64, tpu.core_type = #tpu.core_type<tc>, window_params = [{transform_indices = @transform_0, window_bounds = array<i64: 256, 256>}, {transform_indices = @transform_1, window_bounds = array<i64: 256, 512>}, {transform_indices = @transform_2, window_bounds = array<i64: 256, 512>}, {pipeline_mode = #tpu.pipeline_mode<synchronous>, transform_indices = @transform_3, window_bounds = array<i64: 512, 512>}, {pipeline_mode = #tpu.pipeline_mode<synchronous>, transform_indices = @transform_4, window_bounds = array<i64: 512, 512>}, {pipeline_mode = #tpu.pipeline_mode<synchronous>, transform_indices = @transform_5, window_bounds = array<i64: 512, 256>}, {pipeline_mode = #tpu.pipeline_mode<synchronous>, transform_indices = @transform_6, window_bounds = array<i64: 256, 128>}, {pipeline_mode = #tpu.pipeline_mode<synchronous>, transform_indices = @transform_7, window_bounds = array<i64: 8, 512>}, {transform_indices = @transform_8, window_bounds = array<i64: 256, 128>}]} {
    %c0_i32 = arith.constant 0 : i32
    %0 = arith.cmpi eq, %arg1, %c0_i32 : i32
    %1 = arith.extui %0 : i1 to i32
    %c0_i32_0 = arith.constant 0 : i32
    %2 = arith.cmpi ne, %1, %c0_i32_0 : i32
    scf.if %2 {
      %cst_9 = arith.constant 0.000000e+00 : f32
      %14 = vector.broadcast %cst_9 : f32 to vector<256x512xf32>
      %c0_10 = arith.constant 0 : index
      %c0_11 = arith.constant 0 : index
      %15 = vector.load %arg11[%c0_10, %c0_11] : memref<256x512xf32, #tpu.memory_space<vmem>>, vector<256x512xf32>
      tpu.vector_store %arg11[%c0_10, %c0_11], %14 {strides = array<i32>} : memref<256x512xf32, #tpu.memory_space<vmem>>, vector<256x512xf32>,
    } else {
    }
    %c0 = arith.constant 0 : index
    %c0_1 = arith.constant 0 : index
    %3 = vector.load %arg2[%c0, %c0_1] : memref<256x256xi8, #tpu.memory_space<vmem>>, vector<256x256xi8>
    %4 = arith.sitofp %3 : vector<256x256xi8> to vector<256x256xf32>
    %5 = arith.truncf %4 : vector<256x256xf32> to vector<256x256xbf16>
    %c0_2 = arith.constant 0 : index
    %c0_3 = arith.constant 0 : index
    %6 = vector.load %arg11[%c0_2, %c0_3] : memref<256x512xf32, #tpu.memory_space<vmem>>, vector<256x512xf32>
    %c0_4 = arith.constant 0 : index
    %c0_5 = arith.constant 0 : index
    %7 = vector.load %arg3[%c0_4, %c0_5] : memref<256x512xbf16, #tpu.memory_space<vmem>>, vector<256x512xbf16>
    %cst = arith.constant dense<0.000000e+00> : vector<256x512xf32>
    %8 = tpu.matmul %5, %7, %cst {dimension_numbers = #tpu.dot_dimension_numbers<[1], [0], [0], [1], [0, 0, 1, 1], [], []>} : vector<256x256xbf16>, vector<256x512xbf16>, vector<256x512xf32> -> vector<256x512xf32>
    %9 = arith.addf %6, %8 : vector<256x512xf32>
    %c0_6 = arith.constant 0 : index
    %c0_7 = arith.constant 0 : index
    %10 = vector.load %arg11[%c0_6, %c0_7] : memref<256x512xf32, #tpu.memory_space<vmem>>, vector<256x512xf32>
    tpu.vector_store %arg11[%c0_6, %c0_7], %9 {strides = array<i32>} : memref<256x512xf32, #tpu.memory_space<vmem>>, vector<256x512xf32>,
    %c1_i32 = arith.constant 1 : i32
    %11 = arith.cmpi eq, %arg1, %c1_i32 : i32
    %12 = arith.extui %11 : i1 to i32
    %c0_i32_8 = arith.constant 0 : i32
    %13 = arith.cmpi ne, %12, %c0_i32_8 : i32
    scf.if %13 {
      %c0_9 = arith.constant 0 : index
      %c0_10 = arith.constant 0 : index
      %14 = vector.load %arg4[%c0_9, %c0_10] : memref<256x512xf32, #tpu.memory_space<vmem>>, vector<256x512xf32>
      %c0_11 = arith.constant 0 : index
      %c0_12 = arith.constant 0 : index
      %15 = vector.load %arg11[%c0_11, %c0_12] : memref<256x512xf32, #tpu.memory_space<vmem>>, vector<256x512xf32>
      %16 = arith.addf %14, %15 : vector<256x512xf32>
      %17 = arith.truncf %16 : vector<256x512xf32> to vector<256x512xbf16>
      %c0_13 = arith.constant 0 : index
      %c0_14 = arith.constant 0 : index
      %18 = vector.load %arg5[%c0_13, %c0_14] : memref<512x512xbf16, #tpu.memory_space<vmem>>, vector<512x512xbf16>
      %cst_15 = arith.constant dense<0.000000e+00> : vector<256x512xf32>
      %19 = tpu.matmul %17, %18, %cst_15 {dimension_numbers = #tpu.dot_dimension_numbers<[1], [0], [0], [1], [0, 0, 1, 1], [], []>} : vector<256x512xbf16>, vector<512x512xbf16>, vector<256x512xf32> -> vector<256x512xf32>
      %c0_16 = arith.constant 0 : index
      %c0_17 = arith.constant 0 : index
      %20 = vector.load %arg9[%c0_16, %c0_17] : memref<8x512xf32, #tpu.memory_space<vmem>>, vector<1x512xf32>
      %21 = vector.broadcast %20 : vector<1x512xf32> to vector<256x512xf32>
      %22 = arith.addf %19, %21 : vector<256x512xf32>
      %cst_18 = arith.constant 0.000000e+00 : f32
      %23 = vector.broadcast %cst_18 : f32 to vector<256x512xf32>
      %24 = arith.maximumf %22, %23 : vector<256x512xf32>
      %25 = arith.truncf %24 : vector<256x512xf32> to vector<256x512xbf16>
      %c0_19 = arith.constant 0 : index
      %c0_20 = arith.constant 0 : index
      %26 = vector.load %arg6[%c0_19, %c0_20] : memref<512x512xbf16, #tpu.memory_space<vmem>>, vector<512x512xbf16>
      %cst_21 = arith.constant dense<0.000000e+00> : vector<256x512xf32>
      %27 = tpu.matmul %25, %26, %cst_21 {dimension_numbers = #tpu.dot_dimension_numbers<[1], [0], [0], [1], [0, 0, 1, 1], [], []>} : vector<256x512xbf16>, vector<512x512xbf16>, vector<256x512xf32> -> vector<256x512xf32>
      %c1 = arith.constant 1 : index
      %c0_22 = arith.constant 0 : index
      %28 = vector.load %arg9[%c1, %c0_22] : memref<8x512xf32, #tpu.memory_space<vmem>>, vector<1x512xf32>
      %29 = vector.broadcast %28 : vector<1x512xf32> to vector<256x512xf32>
      %30 = arith.addf %27, %29 : vector<256x512xf32>
      %cst_23 = arith.constant 0.000000e+00 : f32
      %31 = vector.broadcast %cst_23 : f32 to vector<256x512xf32>
      %32 = arith.cmpf oge, %30, %31 : vector<256x512xf32>
      %cst_24 = arith.constant 1.000000e-01 : f32
      %33 = vector.broadcast %cst_24 : f32 to vector<256x512xf32>
      %34 = arith.mulf %33, %30 : vector<256x512xf32>
      %35 = arith.select %32, %30, %34 : vector<256x512xi1>, vector<256x512xf32>
      %cst_25 = arith.constant 0.000000e+00 : f32
      %36 = vector.broadcast %cst_25 : f32 to vector<256x512xf32>
      %37 = arith.cmpf oge, %35, %36 : vector<256x512xf32>
      %cst_26 = arith.constant 1.000000e-01 : f32
      %38 = vector.broadcast %cst_26 : f32 to vector<256x512xf32>
      %39 = arith.mulf %38, %35 : vector<256x512xf32>
      %40 = arith.select %37, %35, %39 : vector<256x512xi1>, vector<256x512xf32>
      %c2 = arith.constant 2 : index
      %c0_27 = arith.constant 0 : index
      %41 = vector.load %arg9[%c2, %c0_27] : memref<8x512xf32, #tpu.memory_space<vmem>>, vector<1x512xf32>
      %42 = vector.broadcast %41 : vector<1x512xf32> to vector<256x512xf32>
      %43 = arith.mulf %40, %42 : vector<256x512xf32>
      %c3 = arith.constant 3 : index
      %c0_28 = arith.constant 0 : index
      %44 = vector.load %arg9[%c3, %c0_28] : memref<8x512xf32, #tpu.memory_space<vmem>>, vector<1x512xf32>
      %45 = vector.broadcast %44 : vector<1x512xf32> to vector<256x512xf32>
      %46 = arith.addf %43, %45 : vector<256x512xf32>
      %cst_29 = arith.constant 0.000000e+00 : f32
      %47 = vector.broadcast %cst_29 : f32 to vector<256x512xf32>
      %48 = arith.cmpf oge, %46, %47 : vector<256x512xf32>
      %cst_30 = arith.constant 1.000000e-01 : f32
      %49 = vector.broadcast %cst_30 : f32 to vector<256x512xf32>
      %50 = arith.mulf %49, %46 : vector<256x512xf32>
      %51 = arith.select %48, %46, %50 : vector<256x512xi1>, vector<256x512xf32>
      %cst_31 = arith.constant 0.00999999977 : f32
      %52 = vector.broadcast %cst_31 : f32 to vector<256x512xf32>
      %53 = arith.mulf %52, %51 : vector<256x512xf32>
      %54 = arith.addf %14, %53 : vector<256x512xf32>
      %55 = arith.truncf %54 : vector<256x512xf32> to vector<256x512xbf16>
      %c0_32 = arith.constant 0 : index
      %c0_33 = arith.constant 0 : index
      %56 = vector.load %arg7[%c0_32, %c0_33] : memref<512x256xbf16, #tpu.memory_space<vmem>>, vector<512x256xbf16>
      %cst_34 = arith.constant dense<0.000000e+00> : vector<256x256xf32>
      %57 = tpu.matmul %55, %56, %cst_34 {dimension_numbers = #tpu.dot_dimension_numbers<[1], [0], [0], [1], [0, 0, 1, 1], [], []>} : vector<256x512xbf16>, vector<512x256xbf16>, vector<256x256xf32> -> vector<256x256xf32>
      %c4 = arith.constant 4 : index
      %c0_35 = arith.constant 0 : index
      %58 = vector.load %arg9[%c4, %c0_35] : memref<8x512xf32, #tpu.memory_space<vmem>>, vector<1x256xf32>
      %59 = vector.broadcast %58 : vector<1x256xf32> to vector<256x256xf32>
      %60 = arith.addf %57, %59 : vector<256x256xf32>
      %cst_36 = arith.constant 0.000000e+00 : f32
      %61 = vector.broadcast %cst_36 : f32 to vector<256x256xf32>
      %62 = arith.cmpf oge, %60, %61 : vector<256x256xf32>
      %cst_37 = arith.constant 1.000000e-01 : f32
      %63 = vector.broadcast %cst_37 : f32 to vector<256x256xf32>
      %64 = arith.mulf %63, %60 : vector<256x256xf32>
      %65 = arith.select %62, %60, %64 : vector<256x256xi1>, vector<256x256xf32>
      %66 = arith.truncf %65 : vector<256x256xf32> to vector<256x256xbf16>
      %c0_38 = arith.constant 0 : index
      %c0_39 = arith.constant 0 : index
      %67 = vector.load %arg8[%c0_38, %c0_39] : memref<256x128xbf16, #tpu.memory_space<vmem>>, vector<256x128xbf16>
      %cst_40 = arith.constant dense<0.000000e+00> : vector<256x128xf32>
      %68 = tpu.matmul %66, %67, %cst_40 {dimension_numbers = #tpu.dot_dimension_numbers<[1], [0], [0], [1], [0, 0, 1, 1], [], []>} : vector<256x256xbf16>, vector<256x128xbf16>, vector<256x128xf32> -> vector<256x128xf32>
      %c5 = arith.constant 5 : index
      %c0_41 = arith.constant 0 : index
      %69 = vector.load %arg9[%c5, %c0_41] : memref<8x512xf32, #tpu.memory_space<vmem>>, vector<1x128xf32>
      %70 = vector.broadcast %69 : vector<1x128xf32> to vector<256x128xf32>
      %71 = arith.addf %68, %70 : vector<256x128xf32>
      %c0_42 = arith.constant 0 : index
      %c0_43 = arith.constant 0 : index
      %72 = vector.load %arg10[%c0_42, %c0_43] : memref<256x128xf32, #tpu.memory_space<vmem>>, vector<256x128xf32>
      tpu.vector_store %arg10[%c0_42, %c0_43], %71 {strides = array<i32>} : memref<256x128xf32, #tpu.memory_space<vmem>>, vector<256x128xf32>,
    } else {
    }
    return
  }
  func.func @transform_0(%arg0: i32, %arg1: i32) -> (i32, i32) {
    %c0_i32 = arith.constant 0 : i32
    return %arg0, %arg1 : i32, i32
  }
  func.func @transform_1(%arg0: i32, %arg1: i32) -> (i32, i32) {
    %c0_i32 = arith.constant 0 : i32
    %c0_i32_0 = arith.constant 0 : i32
    return %arg1, %c0_i32 : i32, i32
  }
  func.func @transform_2(%arg0: i32, %arg1: i32) -> (i32, i32) {
    %c0_i32 = arith.constant 0 : i32
    %c0_i32_0 = arith.constant 0 : i32
    return %arg0, %c0_i32 : i32, i32
  }
  func.func @transform_3(%arg0: i32, %arg1: i32) -> (i32, i32) {
    %c0_i32 = arith.constant 0 : i32
    %c0_i32_0 = arith.constant 0 : i32
    %c0_i32_1 = arith.constant 0 : i32
    return %c0_i32, %c0_i32_0 : i32, i32
  }
  func.func @transform_4(%arg0: i32, %arg1: i32) -> (i32, i32) {
    %c0_i32 = arith.constant 0 : i32
    %c0_i32_0 = arith.constant 0 : i32
    %c0_i32_1 = arith.constant 0 : i32
    return %c0_i32, %c0_i32_0 : i32, i32
  }
  func.func @transform_5(%arg0: i32, %arg1: i32) -> (i32, i32) {
    %c0_i32 = arith.constant 0 : i32
    %c0_i32_0 = arith.constant 0 : i32
    %c0_i32_1 = arith.constant 0 : i32
    return %c0_i32, %c0_i32_0 : i32, i32
  }
  func.func @transform_6(%arg0: i32, %arg1: i32) -> (i32, i32) {
    %c0_i32 = arith.constant 0 : i32
    %c0_i32_0 = arith.constant 0 : i32
    %c0_i32_1 = arith.constant 0 : i32
    return %c0_i32, %c0_i32_0 : i32, i32
  }
  func.func @transform_7(%arg0: i32, %arg1: i32) -> (i32, i32) {
    %c0_i32 = arith.constant 0 : i32
    %c0_i32_0 = arith.constant 0 : i32
    %c0_i32_1 = arith.constant 0 : i32
    return %c0_i32, %c0_i32_0 : i32, i32
  }
  func.func @transform_8(%arg0: i32, %arg1: i32) -> (i32, i32) {
    %c0_i32 = arith.constant 0 : i32
    %c0_i32_0 = arith.constant 0 : i32
    return %arg0, %c0_i32 : i32, i32
  }
}

</mosaic_0001>

<bundles_post_ra>
// kernel: tpu_custom_call.1
= control target key start
LH: loop header
LB: loop body
LE: loop exit
PB: predicated region body
PF: predicated region fallthrough
CT: control target
= control target key end

     0   :  { %s15182_s0 = inlined_call_operand.hbm [shape: s8[512,512], index: 0, kind: input, shape index: {}]   ;;  %s15183_s1 = inlined_call_operand.hbm [shape: bf16[512,512], index: 1, kind: input, shape index: {}]   ;;  %s15184_s2 = inlined_call_operand.hbm [shape: f32[512,512], index: 2, kind: input, shape index: {}]   ;;  %s15185_s3 = inlined_call_operand.hbm [shape: bf16[512,512], index: 3, kind: input, shape index: {}]   ;;  %s15186_s4 = inlined_call_operand.hbm [shape: bf16[512,512], index: 4, kind: input, shape index: {}]   ;;  %s15187_s5 = inlined_call_operand.hbm [shape: bf16[512,256], index: 5, kind: input, shape index: {}]   ;;  %s15188_s6 = inlined_call_operand.hbm [shape: bf16[256,128], index: 6, kind: input, shape index: {}]   ;;  %s15189_s7 = inlined_call_operand.hbm [shape: f32[8,512], index: 7, kind: input, shape index: {}]   ;;  %s15190_s8 = inlined_call_operand.hbm [shape: f32[512,128], index: 8, kind: output, shape index: {}]  }
   0x1   :  { %15257 = sst [smem:[#allocation92_spill]] %s15183_s1 }
   0x2   :  { %15258 = sst [smem:[#allocation93_spill]] %s15184_s2 }
   0x3   :  { %15259 = sst [smem:[#allocation94_spill]] %s15185_s3 }
   0x4   :  { %15260 = sst [smem:[#allocation95_spill]] %s15187_s5 }
   0x5   :  { %15261 = sst [smem:[#allocation96_spill]] %s15190_s8 }
   0x6   :  { %13 = vsyncpa [#allocation4], 0 }
   0x7   :  { %15 = vsyncpa [#allocation4 + $0x1], 0 }
   0x8   :  { %16 = vsyncpa [#allocation7], 0 }
   0x9   :  { %18 = vsyncpa [#allocation7 + $0x1], 0 }
   0xa   :  { %19 = vsyncpa [#allocation10], 0 }
   0xb   :  { %20 = vsyncpa [#allocation13], 0 }
   0xc   :  { %21 = vsyncpa [#allocation16], 0 }
   0xd   :  { %22 = vsyncpa [#allocation5], 0 }
   0xe   :  { %24 = vsyncpa [#allocation5 + $0x1], 0  ;;  %s10849_s27 = smov 0   ;;  %s10851_s28 = smov 0  }
   0xf   :  { %s10853_s29 = smov 0   ;;  %s10855_s30 = smov 0  }
  0x10   :  { %s10857_s9 = smov 0   ;;  %s10859_s10 = smov 0  }
  0x11   :  { %s10861_s11 = smov 0   ;;  %s10863_s12 = smov 0  }
  0x12   :  { %s10865_s13 = smov 0   ;;  %s10867_s14 = smov 0  }
  0x13   :  { %s10869_s15 = smov 0   ;;  %s10871_s16 = smov 0  }
  0x14   :  { %s10873_s17 = smov 0   ;;  %s10875_s18 = smov 0  }
  0x15 LB: > { %15262 = sst [smem:[#allocation25_spill]] %s10730_s27  ;;  %s10920_s19 = sadd.s32 4294967295, %s10782_s18   ;;  %s10782_s18 = sphi %s10875_s18, %s30_s18   ;;  %s10778_s17 = sphi %s10873_s17, %s15716_s17   ;;  %s10774_s16 = sphi %s10871_s16, %s15715_s16   ;;  %s10770_s15 = sphi %s10869_s15, %s15714_s15   ;;  %s10766_s14 = sphi %s10867_s14, %s15713_s14   ;;  %s10762_s13 = sphi %s10865_s13, %s15712_s13   ;;  %s10758_s12 = sphi %s10863_s12, %s15711_s12   ;;  %s10754_s11 = sphi %s10861_s11, %s15710_s11   ;;  %s10750_s10 = sphi %s10859_s10, %s15709_s10   ;;  %s10746_s9 = sphi %s10857_s9, %s15708_s9   ;;  %s10742_s30 = sphi %s10855_s30, %s15707_s30   ;;  %s10738_s29 = sphi %s10853_s29, %s15706_s29   ;;  %s10734_s28 = sphi %s10851_s28, %s15705_s28   ;;  %s10730_s27 = sphi %s10849_s27, %s15699_s27  }
  0x16   : > { %15263 = sst [smem:[#allocation26_spill]] %s10734_s28  ;;  %p8897_p0 = scmp.ge.s32.totalorder %s10782_s18, 1 }
  0x17   : > { %15264 = sst [smem:[#allocation27_spill]] %s10746_s9  ;;  %p15205_p1 = scmp.eq.s32.totalorder %s10920_s19, 0 }
  0x18   : > { %15265 = sst [smem:[#allocation28_spill]] %s10766_s14  ;;  %p258_p2 = scmp.lt.s32.totalorder %s10782_s18, 5 }
  0x19   : > { %15266 = sst [smem:[#allocation29_spill]] %s10770_s15  ;;  %s10784_s21 = smov [#allocation9]  }
  0x1a   : > { %p10925_p3 = pnand %p8897_p0, %p258_p2  ;;  %s270_s22 = sshll.u32 %s10784_s21, 4  ;;  %s271_s22 = int_to_ptr.vmem [resolvable:$true] %s270_s22 }
  0x1b   : > { %s10785_s24 = smov [#allocation12]   ;;  %s10415_s8 = scalar_lea.vmem %s271_s22, 16384 }
  0x1c   : > { %s15267_s20 = scalar_select %p10925_p3, 1, 0 }
  0x1d   : > { %p9512_p4 = pneg %p10925_p3  ;;  %s296_s25 = sshll.u32 %s10785_s24, 4  ;;  %s297_s25 = int_to_ptr.vmem [resolvable:$true] %s296_s25 }
  0x1e   : > { %15268 = sst [smem:[#allocation30_spill]] %s15267_s20  ;;  %p10416_p7 = scmp.ne.s32.totalorder %s271_s22, %s10415_s8 }
  0x1f   : > { %p10933_p5 = pnand %p9512_p4, %p15205_p1  ;;  %p10423_p10 = scmp.lt.s32.totalorder %s271_s22, %s271_s22 }
  0x20   : > { %p10424_p11 = scmp.lt.s32.totalorder %s10415_s8, %s10415_s8 }
  0x21   : > { %p10939_p6 = pneg %p10933_p5 }
  0x22   : > { %p10425_p12 = por %p10424_p11, %p10423_p10 }
  0x23   : > { %p10418_p8 = pnand %p10416_p7, %p10939_p6 }
  0x25   : > { %p10419_p9 = pneg %p10418_p8 }
  0x27   : > { %p10426_p13 = pnand %p10425_p12, %p10419_p9 }
  0x29   : > { %10429 = shalt.err (!%p10426_p13)
}
  0x2a   : > { %s15193_s21 = smov 256   ;;  %s15195_s24 = smov 16  }
  0x2b   : > { %s15271_s3 = sld [smem:[#allocation94_spill]]  ;;  %s10441_s20 = scalar_lea.vmem %s297_s25, 8192 }
  0x2c   : > { %p10442_p0 = scmp.ne.s32.totalorder %s297_s25, %s10441_s20  ;;  %p10449_p7 = scmp.lt.s32.totalorder %s297_s25, %s297_s25 }
  0x2d   : > { %p10450_p8 = scmp.lt.s32.totalorder %s10441_s20, %s10441_s20 }
  0x2e   : > { %p10444_p2 = pnand %p10442_p0, %p10939_p6 }
  0x2f   : > { %p10451_p9 = por %p10450_p8, %p10449_p7 }
  0x30   : > { %p10445_p4 = pneg %p10444_p2 }
  0x31   : > { %9515 = dma.hbm_to_vmem [thread:$0]  (!%p10933_p5), %s15271_s3, 16384, %s271_s22, [#allocation10], %s15193_s21, %s15193_s21, %s15195_s24  }
  0x32   : > { %p10452_p10 = pnand %p10451_p9, %p10445_p4 }
  0x34   : > { %10455 = shalt.err (!%p10452_p10)
}
  0x35   : > { %s10788_s8 = smov 128   ;;  %s10789_s14 = smov 8  }
  0x36   : > { %s15272_s5 = sld [smem:[#allocation95_spill]]  ;;  %s39_s22 = sadd.s32 1, %s10774_s16 }
  0x37   : > { %s42_s21 = sadd.s32 1, %s10778_s17  ;;  %p40_p11 = scmp.ge.s32.totalorder %s39_s22, 2 }
  0x38   : > { %p15206_p12 = scmp.eq.s32.totalorder %s10782_s18, 0  ;;  %s77_s24 = sadd.s32 1, %s10750_s10 }
  0x39   : > { %p84_p13 = scmp.ne.s32.totalorder %s10750_s10, %s10746_s9  ;;  %s15718_s22 = smov (%p40_p11, %s39_s22), 0 }
  0x3a   : > { %15273 = sst [smem:[#allocation31_spill]] %s15718_s22  ;;  %s15720_s21 = smov (!%p40_p11, %s42_s21), %s10778_s17 }
  0x3b   : > { %s47_s3 = ssub.s32 %s10774_s16, %s15718_s22  ;;  %p10973_p0 = por %p84_p13, %p15206_p12 }
  0x3c   : > { %9521 = dma.hbm_to_vmem [thread:$0]  (!%p10933_p5), %s15272_s5, 8192, %s297_s25, [#allocation13], %s10788_s8, %s10788_s8, %s10789_s14  }
  0x3d   : > { %p44_p2 = scmp.ge.s32.totalorder %s15720_s21, 2  ;;  %p75_p4 = scmp.eq.s32.totalorder %s47_s3, 0 }
  0x3e   : > { %p90_p7 = scmp.ne.s32.totalorder %s10746_s9, %s10742_s30  ;;  %p15204_p8 = scmp.lt.s32.totalorder %s10782_s18, 4 }
  0x3f   : > { %s15722_s21 = smov (%p44_p2, %s15720_s21), 0  ;;  %s358_s5 = sand.u32 1, %s10782_s18  }
  0x40   : > { %15275 = sst [smem:[#allocation32_spill]] %s15722_s21  ;;  %s10987_s14 = ssub.s32 %s10778_s17, %s15722_s21 }
  0x41   : > { %s10983_s8 = scalar_select %p75_p4, %s10750_s10, %s77_s24  }
  0x42   : > { %15277 = sst [smem:[#allocation34_spill]] %s10987_s14  ;;  %p10991_p9 = por %p90_p7, %p15205_p1 }
  0x43   : > { %15276 = sst [smem:[#allocation33_spill]] %s10983_s8  ;;  %s48_s20 = sor.u32 %s47_s3, %s10987_s14 }
  0x44   : > { %s15278_s15 = scalar_select %p10991_p9, 1, 0 }
  0x45   : > { %p10997_p11 = scmp.eq.s32.totalorder %s48_s20, 0  ;;  %s360_s22 = sand.u32 1, %s10750_s10  }
  0x46   : > { %15279 = sst [smem:[#allocation35_spill]] %s15278_s15  ;;  %s8909_s9 = sshll.u32 %s360_s22, 9 }
  0x47   : > { %s15280_s30 = scalar_select %p10997_p11, 1, 0 }
  0x48   : > { %s9336_s24 = sshll.u32 %s10774_s16, 13  ;;  %s15281_s1 = sld [smem:[#allocation92_spill]] }
  0x49   : > { %s362_s27 = scalar_lea.vmem [#allocation6], %s8909_s9  ;;  %p11011_p13 = pnand %p15204_p8, %p10973_p0 }
  0x4a   : > { %s370_s28 = sshll.u32 %s362_s27, 4  ;;  %s10790_s3 = smov [#allocation11]   ;;  %s371_s28 = int_to_ptr.vmem [resolvable:$true] %s370_s28 }
  0x4b   : > { %s283_s20 = sshll.u32 %s10790_s3, 4  ;;  %s11015_s14 = scalar_lea.sflag [#allocation7], %s358_s5  ;;  %s284_s20 = int_to_ptr.vmem [resolvable:$true] %s283_s20 }
  0x4c   : > { %p10458_p2 = pneg %p11011_p13  ;;  %s10469_s22 = scalar_lea.vmem %s371_s28, 8192 }
  0x4d   : > { %p10470_p4 = scmp.ne.s32.totalorder %s371_s28, %s10469_s22  ;;  %s10791_s9 = smov [#allocation6]  }
  0x4e   : > { %s369_s2 = scalar_lea.hbm %s15281_s1, %s9336_s24  ;;  %s10474_s27 = sshll.u32 %s10791_s9, 4  ;;  %s10475_s27 = int_to_ptr.vmem [resolvable:$false] %s10474_s27 }
  0x4f   : > { %p10472_p7 = pnand %p10470_p4, %p10458_p2  ;;  %s10476_s21 = scalar_lea.vmem %s10475_s27, 16384 }
  0x50   : > { %p10477_p0 = scmp.lt.s32.totalorder %s371_s28, %s10475_s27  ;;  %p10478_p8 = scmp.lt.s32.totalorder %s10476_s21, %s10469_s22 }
  0x51   : > { %p10473_p10 = pneg %p10472_p7 }
  0x52   : > { %p10479_p1 = por %p10478_p8, %p10477_p0 }
  0x54   : > { %p10480_p12 = pnand %p10479_p1, %p10473_p10 }
  0x56   : > { %10483 = shalt.err (!%p10480_p12)
}
  0x57   : > { %s15283_s25 = smov 16   ;;  %s15284_s5 = smov 256  }
  0x58   : > { %9534 = dma.hbm_to_vmem [thread:$0]  (!%p11011_p13), %s369_s2, 8192, %s371_s28, %s11015_s14, %s15284_s5, %s15284_s5, %s15283_s25  }
  0x59   : > { %s10495_s8 = scalar_lea.vmem %s284_s20, 16384  ;;  %p10503_p9 = scmp.lt.s32.totalorder %s284_s20, %s284_s20 }
  0x5a   : > { %p10496_p2 = scmp.ne.s32.totalorder %s284_s20, %s10495_s8  ;;  %p10504_p3 = scmp.lt.s32.totalorder %s10495_s8, %s10495_s8 }
  0x5c   : > { %p10498_p4 = pnand %p10496_p2, %p10939_p6  ;;  %p10505_p11 = por %p10504_p3, %p10503_p9 }
  0x5e   : > { %p10499_p7 = pneg %p10498_p4 }
  0x60   : > { %p10506_p8 = pnand %p10505_p11, %p10499_p7 }
  0x62   : > { %10509 = shalt.err (!%p10506_p8)
}
  0x63   : > { %9518 = dma.hbm_to_vmem [thread:$0]  (!%p10933_p5), %s15186_s4, 16384, %s284_s20, [#allocation10], %s15284_s5, %s15284_s5, %s15283_s25  }
  0x64   : > { %s10792_s2 = smov [#allocation14]  }
  0x65   : > { %s309_s28 = sshll.u32 %s10792_s2, 4  ;;  %s310_s28 = int_to_ptr.vmem [resolvable:$true] %s309_s28 }
  0x66   : > { %s10521_s3 = scalar_lea.vmem %s310_s28, 2048  ;;  %p10529_p9 = scmp.lt.s32.totalorder %s310_s28, %s310_s28 }
  0x67   : > { %p10522_p1 = scmp.ne.s32.totalorder %s310_s28, %s10521_s3  ;;  %p10530_p10 = scmp.lt.s32.totalorder %s10521_s3, %s10521_s3 }
  0x69   : > { %p10524_p12 = pnand %p10522_p1, %p10939_p6  ;;  %p10531_p11 = por %p10530_p10, %p10529_p9 }
  0x6b   : > { %p10525_p3 = pneg %p10524_p12 }
  0x6d   : > { %p10532_p13 = pnand %p10531_p11, %p10525_p3 }
  0x6f   : > { %10535 = shalt.err (!%p10532_p13)
}
  0x70   : > { %s10793_s22 = smov 64   ;;  %s10794_s9 = smov 4  }
  0x71   : > { %9524 = dma.hbm_to_vmem [thread:$0]  (!%p10933_p5), %s15188_s6, 2048, %s310_s28, [#allocation13], %s10793_s22, %s10793_s22, %s10794_s9  }
  0x72   : > { %s10795_s21 = smov [#allocation15]  }
  0x73   : > { %s323_s8 = sshll.u32 %s10795_s21, 4  ;;  %s324_s8 = int_to_ptr.vmem [resolvable:$true] %s323_s8 }
  0x74   : > { %s10547_s15 = scalar_lea.vmem %s324_s8, 512  ;;  %p10555_p7 = scmp.lt.s32.totalorder %s324_s8, %s324_s8 }
  0x75   : > { %p10548_p0 = scmp.ne.s32.totalorder %s324_s8, %s10547_s15  ;;  %p10556_p8 = scmp.lt.s32.totalorder %s10547_s15, %s10547_s15 }
  0x77   : > { %p10550_p2 = pnand %p10548_p0, %p10939_p6  ;;  %p10557_p1 = por %p10556_p8, %p10555_p7 }
  0x79   : > { %p10551_p4 = pneg %p10550_p2 }
  0x7b   : > { %p10558_p12 = pnand %p10557_p1, %p10551_p4 }
  0x7d   : > { %10561 = shalt.err (!%p10558_p12)
}
  0x7e   : > { %9527 = dma.hbm_to_vmem [thread:$0]  (!%p10933_p5), %s15189_s7, 512, %s324_s8, [#allocation16]  }
  0x7f   : > { %s51_s26 = sadd.s32 1, %s10762_s13  ;;  %p15285_p6 = scmp.ne.s32.totalorder %s15280_s30, 0 }
  0x80   : > { %p58_p3 = scmp.ne.s32.totalorder %s10762_s13, %s10758_s12  ;;  %p64_p9 = scmp.ne.s32.totalorder %s10758_s12, %s10754_s11 }
  0x81   : > { %s11053_s23 = scalar_select %p15285_p6, %s10762_s13, %s51_s26  }
  0x82   : > { %s334_s28 = sand.u32 1, %s10762_s13   ;;  %s8906_s3 = sshll.u32 %s10774_s16, 1 }
  0x83   : > { %p15286_p10 = scmp.eq.s32.totalorder %s10782_s18, 0  ;;  %p15287_p13 = scmp.eq.s32.totalorder %s10920_s19, 0 }
  0x84   : > { %s8904_s9 = sshll.u32 %s334_s28, 7  ;;  %s9334_s27 = sshll.u32 %s10778_s17, 5 }
  0x85   : > { %p60_p11 = por %p15286_p10, %p58_p3  ;;  %p11065_p0 = por %p15287_p13, %p64_p9 }
  0x86   : > { %s345_s20 = sadd.s32 %s9334_s27, %s8906_s3  ;;  %s338_s21 = scalar_lea.vmem [#allocation3], %s8904_s9 }
  0x87   : > { %s348_s8 = sshll.u32 %s338_s21, 4  ;;  %s8908_s30 = sshll.u32 %s345_s20, 7  ;;  %s349_s8 = int_to_ptr.vmem [resolvable:$true] %s348_s8 }
  0x88   : > { %s347_s11 = scalar_lea.hbm %s15182_s0, %s8908_s30  ;;  %p15289_p5 = scmp.lt.s32.totalorder %s10782_s18, 4 }
  0x89   : > { %s335_s26 = scalar_lea.sflag [#allocation4], %s334_s28  ;;  %s10575_s1 = scalar_lea.vmem %s349_s8, 2048 }
  0x8a   : > { %p11075_p2 = pnand %p15289_p5, %p60_p11  ;;  %p10576_p7 = scmp.ne.s32.totalorder %s349_s8, %s10575_s1 }
  0x8b   : > { %s10796_s3 = smov [#allocation3]  }
  0x8c   : > { %p10564_p4 = pneg %p11075_p2  ;;  %s10580_s9 = sshll.u32 %s10796_s3, 4  ;;  %s10581_s9 = int_to_ptr.vmem [resolvable:$false] %s10580_s9 }
  0x8d   : > { %s10582_s27 = scalar_lea.vmem %s10581_s9, 4096  ;;  %p10583_p12 = scmp.lt.s32.totalorder %s349_s8, %s10581_s9 }
  0x8e   : > { %p10578_p8 = pnand %p10576_p7, %p10564_p4  ;;  %p10584_p6 = scmp.lt.s32.totalorder %s10582_s27, %s10575_s1 }
  0x90   : > { %p10579_p1 = pneg %p10578_p8  ;;  %p10585_p3 = por %p10584_p6, %p10583_p12 }
  0x92   : > { %p10586_p9 = pnand %p10585_p3, %p10579_p1 }
  0x94   : > { %10589 = shalt.err (!%p10586_p9)
}
  0x95   : > { %s15209_s20 = smov 512   ;;  %s15291_s28 = sld [smem:[#allocation34_spill]] }
  0x96   : > { %s15292_s21 = sld [smem:[#allocation26_spill]]  ;;  %s8896_s1 = sadd.s32 4294967294, %s10782_s18  }
  0x97   : > { %s15293_s30 = sld [smem:[#allocation25_spill]]  ;;  %s103_s15 = sadd.s32 1, %s10738_s29 }
  0x98   : > { %9531 = dma.hbm_to_vmem [thread:$0]  (!%p11075_p2), %s347_s11, 2048, %s349_s8, %s335_s26, %s15209_s20, %s15284_s5, %s15283_s25  }
  0x99   : > { %p245_p5 = scmp.eq.s32.totalorder %s10920_s19, 3  ;;  %p251_p4 = scmp.eq.s32.totalorder %s8896_s1, 3 }
  0x9a   : > { %p15295_p7 = scmp.eq.s32.totalorder %s10782_s18, 0  ;;  %p15296_p1 = scmp.eq.s32.totalorder %s10920_s19, 0 }
  0x9b   : > { %p15294_p10 = scmp.eq.s32.totalorder %s15291_s28, 0  ;;  %s382_s5 = sand.u32 1, %s10738_s29  }
  0x9c   : > { %p110_p11 = scmp.ne.s32.totalorder %s10738_s29, %s15292_s21  ;;  %s9338_s8 = sshll.u32 %s10778_s17, 14 }
  0x9d   : > { %s11091_s24 = scalar_select %p15294_p10, %s10738_s29, %s103_s15  }
  0x9e   : > { %p116_p13 = scmp.ne.s32.totalorder %s15292_s21, %s15293_s30  ;;  %p112_p8 = por %p110_p11, %p15295_p7 }
  0x9f   : > { %p11106_p6 = por %p245_p5, %p110_p11  ;;  %s8913_s11 = sshll.u32 %s382_s5, 10 }
  0xa0   : > { %p11102_p12 = por %p116_p13, %p15296_p1  ;;  %p11110_p2 = por %p251_p4, %p116_p13 }
  0xa1   : > { %s15300_s27 = sld [smem:[#allocation93_spill]]  ;;  %p15301_p3 = scmp.lt.s32.totalorder %s10782_s18, 4 }
  0xa2   : > { %s384_s30 = scalar_lea.vmem [#allocation8], %s8913_s11  ;;  %s10798_s5 = smov [#allocation8]  }
  0xa3   : > { %p11121_p9 = pnand %p15301_p3, %p112_p8  ;;  %s392_s1 = sshll.u32 %s384_s30, 4  ;;  %s393_s1 = int_to_ptr.vmem [resolvable:$true] %s392_s1 }
  0xa4   : > { %s10603_s15 = scalar_lea.vmem %s393_s1, 16384  ;;  %s10608_s20 = sshll.u32 %s10798_s5, 4  ;;  %s10609_s20 = int_to_ptr.vmem [resolvable:$false] %s10608_s20 }
  0xa5   : > { %p10592_p10 = pneg %p11121_p9  ;;  %p10604_p11 = scmp.ne.s32.totalorder %s393_s1, %s10603_s15 }
  0xa6   : > { %s10610_s26 = scalar_lea.vmem %s10609_s20, 32768  ;;  %p10611_p4 = scmp.lt.s32.totalorder %s393_s1, %s10609_s20 }
  0xa7   : > { %s391_s28 = scalar_lea.hbm %s15300_s27, %s9338_s8  ;;  %p10606_p13 = pnand %p10604_p11, %p10592_p10 }
  0xa8   : > { %p10612_p7 = scmp.lt.s32.totalorder %s10610_s26, %s10603_s15 }
  0xa9   : > { %p10607_p5 = pneg %p10606_p13 }
  0xaa   : > { %p10613_p8 = por %p10612_p7, %p10611_p4 }
  0xac   : > { %p10614_p1 = pnand %p10613_p8, %p10607_p5 }
  0xae   : > { %10617 = shalt.err (!%p10614_p1)
}
  0xaf   : > { %s10799_s8 = smov 32   ;;  %s15303_s11 = smov 512  }
  0xb0   : > { %9537 = dma.hbm_to_vmem [thread:$0]  (!%p11121_p9), %s391_s28, 16384, %s393_s1, %s11015_s14, %s15303_s11, %s15303_s11, %s10799_s8  }
  0xb1   : > { %s15304_s9 = sld [smem:[#allocation30_spill]] }
  0xb7   : > { %p15305_p3 = scmp.ne.s32.totalorder %s15304_s9, 0 }
  0xb8   : > { %s406_s27 = sand.u32 (!%p15305_p3), 1, %s10758_s12  }
  0xb9   : > { %404 = sbr.rel (%p15305_p3) target bundleno = 2276 (0x8e4), region = 52  ;;  %s8918_s30 = sshll.u32 (!%p15305_p3), %s406_s27, 7 }
  0xba   : > { %s407_s5 = scalar_lea.sflag (!%p15305_p3), [#allocation4], %s406_s27  ;;  %s11135_s20 = scalar_lea.vmem (!%p15305_p3), [#allocation3], %s8918_s30 }
  0xbe   : > { %10701 = dma.done.wait (%p11065_p0), %s407_s5, 2048  }
  0xbf   : > { %10703 = vsyncadd (%p11065_p0), %s407_s5, 4294965248  ;;  %s15306_s21 = sld [smem:[#allocation27_spill]]  ;;  %s415_s26 = sand.u32 1, %s10920_s19  }
  0xc0   : > { %s15307_s15 = sld [smem:[#allocation35_spill]]  ;;  %s416_s1 = scalar_lea.sflag [#allocation7], %s415_s26 }
  0xc5   : > { %s417_s14 = sand.u32 1, %s15306_s21  }
  0xc6   : > { %s8919_s28 = sshll.u32 %s417_s14, 9  ;;  %p15308_p9 = scmp.ne.s32.totalorder %s15307_s15, 0 }
  0xc7   : > { %s11143_s8 = scalar_lea.vmem [#allocation6], %s8919_s28 }
  0xc8   : > { %10705 = dma.done.wait (%p15308_p9), %s416_s1, 8192  }
  0xc9   : > { %10707 = vsyncadd (%p15308_p9), %s416_s1, 4294959104  ;;  %s15309_s11 = sld [smem:[#allocation26_spill]] }
  0xcf   : > { %s11150_s9 = sand.u32 1, %s15309_s11  }
  0xd0   : > { %s8920_s22 = sshll.u32 %s11150_s9, 10 }
  0xd1   : > { %s11153_s27 = scalar_lea.vmem [#allocation8], %s8920_s22 }
  0xd2   : > { %10709 = dma.done.wait (%p11102_p12), %s416_s1, 16384  }
  0xd3   : > { %10711 = vsyncadd (%p11102_p12), %s416_s1, 4294950912  ;;  %p15310_p0 = scmp.eq.s32.totalorder %s10920_s19, 0 }
  0xd5   : > { %10713 = dma.done.wait (%p15310_p0), [#allocation10], 32768   ;;  %p15311_p10 = pmov %p15310_p0 }
  0xd6   : > { %p15312_p11 = pmov %p15310_p0 }
  0xd7   : > { %10715 = vsyncadd (%p15311_p10), [#allocation10], 4294934528 }
  0xd8   : > { %10717 = dma.done.wait (%p15312_p11), [#allocation13], 10240   ;;  %p15313_p13 = pmov %p15310_p0 }
  0xd9   : > { %p15314_p5 = pmov %p15310_p0 }
  0xda   : > { %10719 = vsyncadd (%p15313_p13), [#allocation13], 4294957056 }
  0xdb   : > { %10721 = dma.done.wait (%p15314_p5), [#allocation16], 512   ;;  %p15315_p4 = pmov %p15310_p0 }
  0xdc   : > { %s8926_s2 = sshll.u32 %s11150_s9, 8  ;;  %s15316_s5 = sld [smem:[#allocation28_spill]] }
  0xdd   : > { %10723 = vsyncadd (%p15315_p4), [#allocation16], 4294966784  ;;  %s11172_s30 = scalar_lea.vmem [#allocation17], %s8926_s2 }
  0xe2   : > { %p8927_p12 = scmp.ne.s32.totalorder %s15316_s5, 0 }
  0xe4   : > { %500 = sbr.rel (%p8927_p12) target bundleno = 298 (0x12a), region = 88 }
  0xe9   : > { %v10800_v0 = vmov 0.0  }
  0xea   : > { %501 = vst [vmem:[#allocation2 + $0x2b0] sm:$0xff] %v10800_v0  ;;  %502 = vst [vmem:[#allocation2 + $0x3b0] sm:$0xff] %v10800_v0 }
  0xeb   : > { %503 = vst [vmem:[#allocation2 + $0xd8] sm:$0xff] %v10800_v0  ;;  %504 = vst [vmem:[#allocation2 + $0x18] sm:$0xff] %v10800_v0 }
  0xec   : > { %505 = vst [vmem:[#allocation2 + $0x50] sm:$0xff] %v10800_v0  ;;  %506 = vst [vmem:[#allocation2 + $0x368] sm:$0xff] %v10800_v0 }
  0xed   : > { %507 = vst [vmem:[#allocation2 + $0x330] sm:$0xff] %v10800_v0  ;;  %508 = vst [vmem:[#allocation2 + $0x48] sm:$0xff] %v10800_v0 }
  0xee   : > { %509 = vst [vmem:[#allocation2 + $0x380] sm:$0xff] %v10800_v0  ;;  %510 = vst [vmem:[#allocation2 + $0x110] sm:$0xff] %v10800_v0 }
  0xef   : > { %511 = vst [vmem:[#allocation2 + $0x118] sm:$0xff] %v10800_v0  ;;  %512 = vst [vmem:[#allocation2 + $0x98] sm:$0xff] %v10800_v0 }
  0xf0   : > { %513 = vst [vmem:[#allocation2 + $0x320] sm:$0xff] %v10800_v0  ;;  %514 = vst [vmem:[#allocation2 + $0x150] sm:$0xff] %v10800_v0 }
  0xf1   : > { %515 = vst [vmem:[#allocation2 + $0x108] sm:$0xff] %v10800_v0  ;;  %516 = vst [vmem:[#allocation2 + $0x60] sm:$0xff] %v10800_v0 }
  0xf2   : > { %517 = vst [vmem:[#allocation2 + $0x2e0] sm:$0xff] %v10800_v0  ;;  %518 = vst [vmem:[#allocation2 + $0x388] sm:$0xff] %v10800_v0 }
  0xf3   : > { %519 = vst [vmem:[#allocation2 + $0x338] sm:$0xff] %v10800_v0  ;;  %520 = vst [vmem:[#allocation2 + $0x340] sm:$0xff] %v10800_v0 }
  0xf4   : > { %521 = vst [vmem:[#allocation2 + $0x80] sm:$0xff] %v10800_v0  ;;  %522 = vst [vmem:[#allocation2 + $0x1a8] sm:$0xff] %v10800_v0 }
  0xf5   : > { %523 = vst [vmem:[#allocation2 + $0x1b8] sm:$0xff] %v10800_v0  ;;  %524 = vst [vmem:[#allocation2 + $0x168] sm:$0xff] %v10800_v0 }
  0xf6   : > { %525 = vst [vmem:[#allocation2 + $0x3e8] sm:$0xff] %v10800_v0  ;;  %526 = vst [vmem:[#allocation2 + $0x2f8] sm:$0xff] %v10800_v0 }
  0xf7   : > { %527 = vst [vmem:[#allocation2 + $0x290] sm:$0xff] %v10800_v0  ;;  %528 = vst [vmem:[#allocation2 + $0x28] sm:$0xff] %v10800_v0 }
  0xf8   : > { %529 = vst [vmem:[#allocation2 + $0x138] sm:$0xff] %v10800_v0  ;;  %530 = vst [vmem:[#allocation2 + $0xc0] sm:$0xff] %v10800_v0 }
  0xf9   : > { %531 = vst [vmem:[#allocation2 + $0x1c0] sm:$0xff] %v10800_v0  ;;  %532 = vst [vmem:[#allocation2 + $0x280] sm:$0xff] %v10800_v0 }
  0xfa   : > { %533 = vst [vmem:[#allocation2 + $0x100] sm:$0xff] %v10800_v0  ;;  %534 = vst [vmem:[#allocation2 + $0x3c0] sm:$0xff] %v10800_v0 }
  0xfb   : > { %535 = vst [vmem:[#allocation2 + $0x158] sm:$0xff] %v10800_v0  ;;  %536 = vst [vmem:[#allocation2 + $0x3e0] sm:$0xff] %v10800_v0 }
  0xfc   : > { %537 = vst [vmem:[#allocation2 + $0x218] sm:$0xff] %v10800_v0  ;;  %538 = vst [vmem:[#allocation2 + $0x3f8] sm:$0xff] %v10800_v0 }
  0xfd   : > { %539 = vst [vmem:[#allocation2 + $0x8] sm:$0xff] %v10800_v0  ;;  %540 = vst [vmem:[#allocation2 + $0x128] sm:$0xff] %v10800_v0 }
  0xfe   : > { %541 = vst [vmem:[#allocation2 + $0x2a0] sm:$0xff] %v10800_v0  ;;  %542 = vst [vmem:[#allocation2 + $0x3f0] sm:$0xff] %v10800_v0 }
  0xff   : > { %543 = vst [vmem:[#allocation2 + $0xa0] sm:$0xff] %v10800_v0  ;;  %544 = vst [vmem:[#allocation2 + $0x2c0] sm:$0xff] %v10800_v0 }
 0x100   : > { %545 = vst [vmem:[#allocation2 + $0xb0] sm:$0xff] %v10800_v0  ;;  %546 = vst [vmem:[#allocation2 + $0x1e0] sm:$0xff] %v10800_v0 }
 0x101   : > { %547 = vst [vmem:[#allocation2 + $0x1f0] sm:$0xff] %v10800_v0  ;;  %548 = vst [vmem:[#allocation2 + $0x10] sm:$0xff] %v10800_v0 }
 0x102   : > { %549 = vst [vmem:[#allocation2 + $0x230] sm:$0xff] %v10800_v0  ;;  %550 = vst [vmem:[#allocation2 + $0x240] sm:$0xff] %v10800_v0 }
 0x103   : > { %551 = vst [vmem:[#allocation2 + $0x90] sm:$0xff] %v10800_v0  ;;  %552 = vst [vmem:[#allocation2 + $0x3a0] sm:$0xff] %v10800_v0 }
 0x104   : > { %553 = vst [vmem:[#allocation2 + $0x208] sm:$0xff] %v10800_v0  ;;  %554 = vst [vmem:[#allocation2 + $0xd0] sm:$0xff] %v10800_v0 }
 0x105   : > { %555 = vst [vmem:[#allocation2 + $0x88] sm:$0xff] %v10800_v0  ;;  %556 = vst [vmem:[#allocation2 + $0x2f0] sm:$0xff] %v10800_v0 }
 0x106   : > { %557 = vst [vmem:[#allocation2 + $0x358] sm:$0xff] %v10800_v0  ;;  %558 = vst [vmem:[#allocation2 + $0x268] sm:$0xff] %v10800_v0 }
 0x107   : > { %559 = vst [vmem:[#allocation2 + $0x350] sm:$0xff] %v10800_v0  ;;  %560 = vst [vmem:[#allocation2 + $0x188] sm:$0xff] %v10800_v0 }
 0x108   : > { %561 = vst [vmem:[#allocation2 + $0x1d8] sm:$0xff] %v10800_v0  ;;  %562 = vst [vmem:[#allocation2 + $0x30] sm:$0xff] %v10800_v0 }
 0x109   : > { %563 = vst [vmem:[#allocation2 + $0x140] sm:$0xff] %v10800_v0  ;;  %564 = vst [vmem:[#allocation2 + $0x2a8] sm:$0xff] %v10800_v0 }
 0x10a   : > { %565 = vst [vmem:[#allocation2 + $0x130] sm:$0xff] %v10800_v0  ;;  %566 = vst [vmem:[#allocation2 + $0x200] sm:$0xff] %v10800_v0 }
 0x10b   : > { %567 = vst [vmem:[#allocation2 + $0x318] sm:$0xff] %v10800_v0  ;;  %568 = vst [vmem:[#allocation2 + $0x220] sm:$0xff] %v10800_v0 }
 0x10c   : > { %569 = vst [vmem:[#allocation2 + $0x70] sm:$0xff] %v10800_v0  ;;  %570 = vst [vmem:[#allocation2 + $0x300] sm:$0xff] %v10800_v0 }
 0x10d   : > { %571 = vst [vmem:[#allocation2 + $0xe0] sm:$0xff] %v10800_v0  ;;  %572 = vst [vmem:[#allocation2 + $0x178] sm:$0xff] %v10800_v0 }
 0x10e   : > { %573 = vst [vmem:[#allocation2 + $0x328] sm:$0xff] %v10800_v0  ;;  %574 = vst [vmem:[#allocation2 + $0x260] sm:$0xff] %v10800_v0 }
 0x10f   : > { %575 = vst [vmem:[#allocation2 + $0x3b8] sm:$0xff] %v10800_v0  ;;  %576 = vst [vmem:[#allocation2 + $0x2b8] sm:$0xff] %v10800_v0 }
 0x110   : > { %577 = vst [vmem:[#allocation2 + $0x248] sm:$0xff] %v10800_v0  ;;  %578 = vst [vmem:[#allocation2 + $0x40] sm:$0xff] %v10800_v0 }
 0x111   : > { %579 = vst [vmem:[#allocation2 + $0x20] sm:$0xff] %v10800_v0  ;;  %580 = vst [vmem:[#allocation2 + $0xe8] sm:$0xff] %v10800_v0 }
 0x112   : > { %581 = vst [vmem:[#allocation2 + $0x288] sm:$0xff] %v10800_v0  ;;  %582 = vst [vmem:[#allocation2 + $0x3a8] sm:$0xff] %v10800_v0 }
 0x113   : > { %583 = vst [vmem:[#allocation2 + $0x3c8] sm:$0xff] %v10800_v0  ;;  %584 = vst [vmem:[#allocation2 + $0x160] sm:$0xff] %v10800_v0 }
 0x114   : > { %585 = vst [vmem:[#allocation2 + $0x2c8] sm:$0xff] %v10800_v0  ;;  %586 = vst [vmem:[#allocation2 + $0x210] sm:$0xff] %v10800_v0 }
 0x115   : > { %587 = vst [vmem:[#allocation2 + $0x3d8] sm:$0xff] %v10800_v0  ;;  %588 = vst [vmem:[#allocation2 + $0x1e8] sm:$0xff] %v10800_v0 }
 0x116   : > { %589 = vst [vmem:[#allocation2 + $0x1b0] sm:$0xff] %v10800_v0  ;;  %590 = vst [vmem:[#allocation2 + $0x1c8] sm:$0xff] %v10800_v0 }
 0x117   : > { %591 = vst [vmem:[#allocation2 + $0x2d0] sm:$0xff] %v10800_v0  ;;  %592 = vst [vmem:[#allocation2 + $0x1d0] sm:$0xff] %v10800_v0 }
 0x118   : > { %593 = vst [vmem:[#allocation2 + $0x58] sm:$0xff] %v10800_v0  ;;  %594 = vst [vmem:[#allocation2 + $0x120] sm:$0xff] %v10800_v0 }
 0x119   : > { %595 = vst [vmem:[#allocation2 + $0x198] sm:$0xff] %v10800_v0  ;;  %596 = vst [vmem:[#allocation2 + $0x2e8] sm:$0xff] %v10800_v0 }
 0x11a   : > { %597 = vst [vmem:[#allocation2 + $0x1f8] sm:$0xff] %v10800_v0  ;;  %598 = vst [vmem:[#allocation2 + $0x238] sm:$0xff] %v10800_v0 }
 0x11b   : > { %599 = vst [vmem:[#allocation2 + $0x398] sm:$0xff] %v10800_v0  ;;  %600 = vst [vmem:[#allocation2 + $0x390] sm:$0xff] %v10800_v0 }
 0x11c   : > { %601 = vst [vmem:[#allocation2 + $0x1a0] sm:$0xff] %v10800_v0  ;;  %602 = vst [vmem:[#allocation2 + $0xa8] sm:$0xff] %v10800_v0 }
 0x11d   : > { %603 = vst [vmem:[#allocation2 + $0x258] sm:$0xff] %v10800_v0  ;;  %604 = vst [vmem:[#allocation2 + $0x2d8] sm:$0xff] %v10800_v0 }
 0x11e   : > { %605 = vst [vmem:[#allocation2 + $0xf0] sm:$0xff] %v10800_v0  ;;  %606 = vst [vmem:[#allocation2 + $0x180] sm:$0xff] %v10800_v0 }
 0x11f   : > { %607 = vst [vmem:[#allocation2 + $0x170] sm:$0xff] %v10800_v0  ;;  %608 = vst [vmem:[#allocation2 + $0x3d0] sm:$0xff] %v10800_v0 }
 0x120   : > { %609 = vst [vmem:[#allocation2 + $0x250] sm:$0xff] %v10800_v0  ;;  %610 = vst [vmem:[#allocation2 + $0x378] sm:$0xff] %v10800_v0 }
 0x121   : > { %611 = vst [vmem:[#allocation2 + $0xb8] sm:$0xff] %v10800_v0  ;;  %612 = vst [vmem:[#allocation2 + $0x38] sm:$0xff] %v10800_v0 }
 0x122   : > { %613 = vst [vmem:[#allocation2 + $0x78] sm:$0xff] %v10800_v0  ;;  %614 = vst [vmem:[#allocation2 + $0x308] sm:$0xff] %v10800_v0 }
 0x123   : > { %615 = vst [vmem:[#allocation2 + $0x370] sm:$0xff] %v10800_v0  ;;  %616 = vst [vmem:[#allocation2 + $0xc8] sm:$0xff] %v10800_v0 }
 0x124   : > { %617 = vst [vmem:[#allocation2 + $0x278] sm:$0xff] %v10800_v0  ;;  %618 = vst [vmem:[#allocation2 + $0x360] sm:$0xff] %v10800_v0 }
 0x125   : > { %619 = vst [vmem:[#allocation2 + $0x228] sm:$0xff] %v10800_v0  ;;  %620 = vst [vmem:[#allocation2 + $0x348] sm:$0xff] %v10800_v0 }
 0x126   : > { %621 = vst [vmem:[#allocation2 + $0x148] sm:$0xff] %v10800_v0  ;;  %622 = vst [vmem:[#allocation2 + $0xf8] sm:$0xff] %v10800_v0 }
 0x127   : > { %623 = vst [vmem:[#allocation2 + $0x68] sm:$0xff] %v10800_v0  ;;  %624 = vst [vmem:[#allocation2] sm:$0xff] %v10800_v0 }
 0x128   : > { %625 = vst [vmem:[#allocation2 + $0x298] sm:$0xff] %v10800_v0  ;;  %626 = vst [vmem:[#allocation2 + $0x270] sm:$0xff] %v10800_v0 }
 0x129   : > { %627 = vst [vmem:[#allocation2 + $0x310] sm:$0xff] %v10800_v0  ;;  %628 = vst [vmem:[#allocation2 + $0x190] sm:$0xff] %v10800_v0 }
 0x12a PF: > { %v9682_v1 = vld [vmem:[%s11143_s8 + $0xe4] ss:$16 sps:$4 sm:$0xff]   ;;  %v9684_v2 = vld [vmem:[%s11143_s8 + $0xec] ss:$16 sps:$4 sm:$0xff]   ;;  %v9686_v3 = vld [vmem:[%s11143_s8 + $0xe0] ss:$16 sps:$4 sm:$0xff]  }
 0x12b   : > { %1189 = vmatprep.subr.bf16.mxu0 %v9682_v1  ;;  %v9687_v4 = vld [vmem:[%s11143_s8 + $0xe8] ss:$16 sps:$4 sm:$0xff]   ;;  %1382 = vmatprep.subr.bf16.mxu1 %v9684_v2  ;;  %v9688_v5 = vld [vmem:[%s11143_s8 + $0xc4] ss:$16 sps:$4 sm:$0xff]   ;;  %v9690_v6 = vld [vmem:[%s11143_s8 + $0xcc] ss:$16 sps:$4 sm:$0xff]  }
 0x12c   : > { %1190 = vmatpush1.bf16.msra.mxu0 %v9686_v3  ;;  %1383 = vmatpush1.bf16.msra.mxu1 %v9687_v4  ;;  %v9692_v7 = vld [vmem:[%s11143_s8 + $0xc0] ss:$16 sps:$4 sm:$0xff]   ;;  %v9693_v8 = vld [vmem:[%s11143_s8 + $0xc8] ss:$16 sps:$4 sm:$0xff]   ;;  %v9694_v9 = vld [vmem:[%s11143_s8 + $0xa4] ss:$16 sps:$4 sm:$0xff]  }
 0x12d   : > { %1191 = vmatprep.subr.bf16.mxu0 %v9688_v5  ;;  %1384 = vmatprep.subr.bf16.mxu1 %v9690_v6  ;;  %v9696_v10 = vld [vmem:[%s11143_s8 + $0xac] ss:$16 sps:$4 sm:$0xff]   ;;  %v9698_v11 = vld [vmem:[%s11143_s8 + $0xa0] ss:$16 sps:$4 sm:$0xff]   ;;  %v9699_v12 = vld [vmem:[%s11143_s8 + $0xa8] ss:$16 sps:$4 sm:$0xff]  }
 0x12e   : > { %v9700_v13 = vld [vmem:[%s11143_s8 + $0x84] ss:$16 sps:$4 sm:$0xff]   ;;  %v9702_v14 = vld [vmem:[%s11143_s8 + $0x8c] ss:$16 sps:$4 sm:$0xff]   ;;  %v9704_v15 = vld [vmem:[%s11143_s8 + $0x80] ss:$16 sps:$4 sm:$0xff]  }
 0x12f   : > { %v9705_v16 = vld [vmem:[%s11143_s8 + $0x88] ss:$16 sps:$4 sm:$0xff]   ;;  %v9706_v17 = vld [vmem:[%s11143_s8 + $0x64] ss:$16 sps:$4 sm:$0xff]   ;;  %v9708_v18 = vld [vmem:[%s11143_s8 + $0x6c] ss:$16 sps:$4 sm:$0xff]  }
 0x130   : > { %1192 = vmatpush1.bf16.msra.mxu0 %v9692_v7  ;;  %1385 = vmatpush1.bf16.msra.mxu1 %v9693_v8  ;;  %v9710_v19 = vld [vmem:[%s11143_s8 + $0x60] ss:$16 sps:$4 sm:$0xff]   ;;  %v9711_v20 = vld [vmem:[%s11143_s8 + $0x68] ss:$16 sps:$4 sm:$0xff]   ;;  %v9712_v21 = vld [vmem:[%s11143_s8 + $0x44] ss:$16 sps:$4 sm:$0xff]  }
 0x131   : > { %1193 = vmatprep.subr.bf16.mxu0 %v9694_v9  ;;  %1386 = vmatprep.subr.bf16.mxu1 %v9696_v10  ;;  %v9714_v22 = vld [vmem:[%s11143_s8 + $0x4c] ss:$16 sps:$4 sm:$0xff]   ;;  %v9716_v23 = vld [vmem:[%s11143_s8 + $0x40] ss:$16 sps:$4 sm:$0xff]   ;;  %v9717_v24 = vld [vmem:[%s11143_s8 + $0x48] ss:$16 sps:$4 sm:$0xff]  }
 0x132   : > { %v9718_v25 = vld [vmem:[%s11143_s8 + $0x24] ss:$16 sps:$4 sm:$0xff]   ;;  %v9720_v26 = vld [vmem:[%s11143_s8 + $0x2c] ss:$16 sps:$4 sm:$0xff]   ;;  %v9722_v27 = vld [vmem:[%s11143_s8 + $0x20] ss:$16 sps:$4 sm:$0xff]  }
 0x133   : > { %v9723_v28 = vld [vmem:[%s11143_s8 + $0x28] ss:$16 sps:$4 sm:$0xff]   ;;  %v9724_v29 = vld [vmem:[%s11143_s8 + $0x4] ss:$16 sps:$4 sm:$0xff]   ;;  %v9726_v30 = vld [vmem:[%s11143_s8 + $0xc] ss:$16 sps:$4 sm:$0xff]  }
 0x134   : > { %1194 = vmatpush1.bf16.msra.mxu0 %v9698_v11  ;;  %1387 = vmatpush1.bf16.msra.mxu1 %v9699_v12  ;;  %v9728_v31 = vld [vmem:[%s11143_s8] ss:$16 sps:$4 sm:$0xff]   ;;  %v9729_v32 = vld [vmem:[%s11143_s8 + $0x8] ss:$16 sps:$4 sm:$0xff]   ;;  %v9730_v33 = vld [vmem:[%s11143_s8 + $0x1e4] ss:$16 sps:$4 sm:$0xff]  }
 0x135   : > { %1195 = vmatprep.subr.bf16.mxu0 %v9700_v13  ;;  %1388 = vmatprep.subr.bf16.mxu1 %v9702_v14  ;;  %v9732_v34 = vld [vmem:[%s11143_s8 + $0x1ec] ss:$16 sps:$4 sm:$0xff]   ;;  %v9734_v35 = vld [vmem:[%s11143_s8 + $0x1e0] ss:$16 sps:$4 sm:$0xff]   ;;  %v9735_v36 = vld [vmem:[%s11143_s8 + $0x1e8] ss:$16 sps:$4 sm:$0xff]  }
 0x136   : > { %v9736_v37 = vld [vmem:[%s11143_s8 + $0x1c4] ss:$16 sps:$4 sm:$0xff]   ;;  %v9738_v38 = vld [vmem:[%s11143_s8 + $0x1cc] ss:$16 sps:$4 sm:$0xff]   ;;  %v9740_v39 = vld [vmem:[%s11143_s8 + $0x1c0] ss:$16 sps:$4 sm:$0xff]  }
 0x137   : > { %v9741_v40 = vld [vmem:[%s11143_s8 + $0x1c8] ss:$16 sps:$4 sm:$0xff]   ;;  %v9742_v41 = vld [vmem:[%s11143_s8 + $0x1a4] ss:$16 sps:$4 sm:$0xff]   ;;  %v9744_v42 = vld [vmem:[%s11143_s8 + $0x1ac] ss:$16 sps:$4 sm:$0xff]  }
 0x138   : > { %1196 = vmatpush1.bf16.msra.mxu0 %v9704_v15  ;;  %1389 = vmatpush1.bf16.msra.mxu1 %v9705_v16  ;;  %v9746_v43 = vld [vmem:[%s11143_s8 + $0x1a0] ss:$16 sps:$4 sm:$0xff]   ;;  %v9747_v44 = vld [vmem:[%s11143_s8 + $0x1a8] ss:$16 sps:$4 sm:$0xff]   ;;  %v9748_v45 = vld [vmem:[%s11143_s8 + $0x184] ss:$16 sps:$4 sm:$0xff]  }
 0x139   : > { %1197 = vmatprep.subr.bf16.mxu0 %v9706_v17  ;;  %1390 = vmatprep.subr.bf16.mxu1 %v9708_v18  ;;  %v9750_v46 = vld [vmem:[%s11143_s8 + $0x18c] ss:$16 sps:$4 sm:$0xff]   ;;  %v9752_v49 = vld [vmem:[%s11143_s8 + $0x180] ss:$16 sps:$4 sm:$0xff]   ;;  %v9753_v50 = vld [vmem:[%s11143_s8 + $0x188] ss:$16 sps:$4 sm:$0xff]  }
 0x13a   : > { %v630_v47 = vld [vmem:[%s11135_s20 + $0x8] sm:$0xff]  ;;  %v9754_v51 = vld [vmem:[%s11143_s8 + $0x164] ss:$16 sps:$4 sm:$0xff]   ;;  %v9758_v53 = vld [vmem:[%s11143_s8 + $0x160] ss:$16 sps:$4 sm:$0xff]   ;;  %s15317_s19 = sld [smem:[#allocation28_spill]] }
 0x13b   : > { %v646_v48 = vunpack.c.l.s8.bf16 %v630_v47  ;;  %v9756_v52 = vld [vmem:[%s11143_s8 + $0x16c] ss:$16 sps:$4 sm:$0xff]   ;;  %v9759_v54 = vld [vmem:[%s11143_s8 + $0x168] ss:$16 sps:$4 sm:$0xff]   ;;  %v9760_v55 = vld [vmem:[%s11143_s8 + $0x144] ss:$16 sps:$4 sm:$0xff]   ;;  %v648_v5 = vunpack.c.h.s8.bf16 %v630_v47 }
 0x13c   : > { %1198 = vmatpush1.bf16.msra.mxu0 %v9710_v19  ;;  %1391 = vmatpush1.bf16.msra.mxu1 %v9711_v20  ;;  %v9762_v56 = vld [vmem:[%s11143_s8 + $0x14c] ss:$16 sps:$4 sm:$0xff]   ;;  %v9764_v57 = vld [vmem:[%s11143_s8 + $0x140] ss:$16 sps:$4 sm:$0xff]   ;;  %v9765_v58 = vld [vmem:[%s11143_s8 + $0x148] ss:$16 sps:$4 sm:$0xff]  }
 0x13d   : > { %1199 = vmatprep.subr.bf16.mxu0 %v9712_v21  ;;  %1392 = vmatprep.subr.bf16.mxu1 %v9714_v22  ;;  %v9766_v59 = vld [vmem:[%s11143_s8 + $0x124] ss:$16 sps:$4 sm:$0xff]   ;;  %v9768_v60 = vld [vmem:[%s11143_s8 + $0x12c] ss:$16 sps:$4 sm:$0xff]   ;;  %v9770_v61 = vld [vmem:[%s11143_s8 + $0x120] ss:$16 sps:$4 sm:$0xff]  }
 0x13e   : > { %1221 = vmatprep.mubr.bf16.mxu0 %v646_v48  ;;  %1414 = vmatprep.mubr.bf16.mxu1 %v646_v48  ;;  %v9771_v62 = vld [vmem:[%s11143_s8 + $0x128] ss:$16 sps:$4 sm:$0xff]   ;;  %v9772_v63 = vld [vmem:[%s11143_s8 + $0x104] ss:$16 sps:$4 sm:$0xff]   ;;  %v9774_v0 = vld [vmem:[%s11143_s8 + $0x10c] ss:$16 sps:$4 sm:$0xff]  }
 0x13f   : > { %v9776_v1 = vld [vmem:[%s11143_s8 + $0x100] ss:$16 sps:$4 sm:$0xff]   ;;  %v9777_v2 = vld [vmem:[%s11143_s8 + $0x108] ss:$16 sps:$4 sm:$0xff]  }
 0x140   : > { %1200 = vmatpush1.bf16.msra.mxu0 %v9716_v23  ;;  %1393 = vmatpush1.bf16.msra.mxu1 %v9717_v24  ;;  %v629_v3 = vld [vmem:[%s11135_s20] sm:$0xff]  ;;  %v632_v6 = vld [vmem:[%s11135_s20 + $0x18] sm:$0xff]  ;;  %v631_v9 = vld [vmem:[%s11135_s20 + $0x10] sm:$0xff]  ;;  %p8992_p7 = scmp.ne.s32.totalorder %s15317_s19, 1 }
 0x141   : > { %1201 = vmatprep.subr.bf16.mxu0 %v9718_v25  ;;  %1394 = vmatprep.subr.bf16.mxu1 %v9720_v26  ;;  %v645_v4 = vunpack.c.l.s8.bf16 %v629_v3  ;;  %v647_v7 = vunpack.c.h.s8.bf16 %v629_v3  ;;  %v650_v8 = vunpack.c.l.s8.bf16 %v632_v6  ;;  %v649_v10 = vunpack.c.l.s8.bf16 %v631_v9  ;;  %v634_v12 = vld [vmem:[%s11135_s20 + $0x28] sm:$0xff]  ;;  %v633_v15 = vld [vmem:[%s11135_s20 + $0x20] sm:$0xff]  ;;  %v636_v18 = vld [vmem:[%s11135_s20 + $0x38] sm:$0xff] }
 0x142   : > { %v652_v11 = vunpack.c.h.s8.bf16 %v632_v6  ;;  %v651_v13 = vunpack.c.h.s8.bf16 %v631_v9  ;;  %v654_v14 = vunpack.c.l.s8.bf16 %v634_v12  ;;  %v653_v16 = vunpack.c.l.s8.bf16 %v633_v15  ;;  %v635_v21 = vld [vmem:[%s11135_s20 + $0x30] sm:$0xff]  ;;  %v638_v24 = vld [vmem:[%s11135_s20 + $0x48] sm:$0xff] }
 0x143   : > { %v656_v17 = vunpack.c.h.s8.bf16 %v634_v12  ;;  %v655_v19 = vunpack.c.h.s8.bf16 %v633_v15  ;;  %v658_v20 = vunpack.c.l.s8.bf16 %v636_v18  ;;  %v657_v22 = vunpack.c.l.s8.bf16 %v635_v21 }
 0x144   : > { %1202 = vmatpush1.bf16.msra.mxu0 %v9722_v27  ;;  %1395 = vmatpush1.bf16.msra.mxu1 %v9723_v28  ;;  %v660_v23 = vunpack.c.h.s8.bf16 %v636_v18  ;;  %v659_v25 = vunpack.c.h.s8.bf16 %v635_v21  ;;  %v662_v26 = vunpack.c.l.s8.bf16 %v638_v24  ;;  %v637_v27 = vld [vmem:[%s11135_s20 + $0x40] sm:$0xff] }
 0x145   : > { %1203 = vmatprep.subr.bf16.mxu0 %v9724_v29  ;;  %1396 = vmatprep.subr.bf16.mxu1 %v9726_v30  ;;  %v661_v28 = vunpack.c.l.s8.bf16 %v637_v27  ;;  %v664_v29 = vunpack.c.h.s8.bf16 %v638_v24  ;;  %v640_v30 = vld [vmem:[%s11135_s20 + $0x58] sm:$0xff] }
 0x148   : > { %1204 = vmatpush1.bf16.msra.mxu0 %v9728_v31  ;;  %1397 = vmatpush1.bf16.msra.mxu1 %v9729_v32  ;;  %v663_v31 = vunpack.c.h.s8.bf16 %v637_v27  ;;  %v666_v32 = vunpack.c.l.s8.bf16 %v640_v30 }
 0x149   : > { %1205 = vmatprep.subr.bf16.mxu0 %v9730_v33  ;;  %1398 = vmatprep.subr.bf16.mxu1 %v9732_v34  ;;  %v639_v33 = vld [vmem:[%s11135_s20 + $0x50] sm:$0xff] }
 0x14a   : > { %v665_v34 = vunpack.c.l.s8.bf16 %v639_v33 }
 0x14c   : > { %1206 = vmatpush2.bf16.msra.mxu0 %v9734_v35  ;;  %1399 = vmatpush2.bf16.msra.mxu1 %v9735_v36  ;;  %v668_v35 = vunpack.c.h.s8.bf16 %v640_v30  ;;  %v642_v36 = vld [vmem:[%s11135_s20 + $0x68] sm:$0xff] }
 0x14d   : > { %1207 = vmatprep.subr.bf16.mxu0 %v9736_v37  ;;  %1400 = vmatprep.subr.bf16.mxu1 %v9738_v38  ;;  %v667_v37 = vunpack.c.h.s8.bf16 %v639_v33  ;;  %v670_v38 = vunpack.c.l.s8.bf16 %v642_v36 }
 0x150   : > { %1208 = vmatpush2.bf16.msra.mxu0 %v9740_v39  ;;  %1401 = vmatpush2.bf16.msra.mxu1 %v9741_v40  ;;  %v641_v39 = vld [vmem:[%s11135_s20 + $0x60] sm:$0xff] }
 0x151   : > { %1209 = vmatprep.subr.bf16.mxu0 %v9742_v41  ;;  %1402 = vmatprep.subr.bf16.mxu1 %v9744_v42  ;;  %v669_v40 = vunpack.c.l.s8.bf16 %v641_v39  ;;  %v672_v41 = vunpack.c.h.s8.bf16 %v642_v36  ;;  %v644_v42 = vld [vmem:[%s11135_s20 + $0x78] sm:$0xff] }
 0x152   : > { %v676_v47 = vunpack.c.h.s8.bf16 %v644_v42 }
 0x154   : > { %1210 = vmatpush2.bf16.msra.mxu0 %v9746_v43  ;;  %1403 = vmatpush2.bf16.msra.mxu1 %v9747_v44  ;;  %v671_v43 = vunpack.c.h.s8.bf16 %v641_v39  ;;  %v674_v44 = vunpack.c.l.s8.bf16 %v644_v42 }
 0x155   : > { %1211 = vmatprep.subr.bf16.mxu0 %v9748_v45  ;;  %1404 = vmatprep.subr.bf16.mxu1 %v9750_v46  ;;  %v643_v45 = vld [vmem:[%s11135_s20 + $0x70] sm:$0xff] }
 0x156   : > { %v673_v46 = vunpack.c.l.s8.bf16 %v643_v45  ;;  %v675_v48 = vunpack.c.h.s8.bf16 %v643_v45 }
 0x158   : > { %1212 = vmatpush2.bf16.msra.mxu0 %v9752_v49  ;;  %1405 = vmatpush2.bf16.msra.mxu1 %v9753_v50  ;;  %v677_v49 = vld [vmem:[#allocation2 + $0x2b0] sm:$0xff]  ;;  %v679_v50 = vld [vmem:[#allocation2 + $0xd8] sm:$0xff] }
 0x159   : > { %1213 = vmatprep.subr.bf16.mxu0 %v9754_v51  ;;  %1406 = vmatprep.subr.bf16.mxu1 %v9756_v52 }
 0x15c   : > { %1214 = vmatpush2.bf16.msra.mxu0 %v9758_v53  ;;  %1407 = vmatpush2.bf16.msra.mxu1 %v9759_v54  ;;  %v678_v53 = vld [vmem:[#allocation2 + $0x3b0] sm:$0xff]  ;;  %v680_v54 = vld [vmem:[#allocation2 + $0x18] sm:$0xff] }
 0x15d   : > { %1215 = vmatprep.subr.bf16.mxu0 %v9760_v55  ;;  %1408 = vmatprep.subr.bf16.mxu1 %v9762_v56 }
 0x160   : > { %1216 = vmatpush2.bf16.msra.mxu0 %v9764_v57  ;;  %1409 = vmatpush2.bf16.msra.mxu1 %v9765_v58 }
 0x161   : > { %1217 = vmatprep.subr.bf16.mxu0 %v9766_v59  ;;  %1410 = vmatprep.subr.bf16.mxu1 %v9768_v60  ;;  %v681_v59 = vld [vmem:[#allocation2 + $0x50] sm:$0xff] }
 0x162   : > { %v683_v60 = vld [vmem:[#allocation2 + $0x330] sm:$0xff] }
 0x164   : > { %1218 = vmatpush2.bf16.msra.mxu0 %v9770_v61  ;;  %1411 = vmatpush2.bf16.msra.mxu1 %v9771_v62 }
 0x165   : > { %1219 = vmatprep.subr.bf16.mxu0 %v9772_v63  ;;  %1412 = vmatprep.subr.bf16.mxu1 %v9774_v0 }
 0x168   : > { %1220 = vmatpush2.bf16.msra.mxu0 %v9776_v1  ;;  %1413 = vmatpush2.bf16.msra.mxu1 %v9777_v2  ;;  %v682_v1 = vld [vmem:[#allocation2 + $0x368] sm:$0xff] }
 0x169   : > { %v684_v2 = vld [vmem:[#allocation2 + $0x48] sm:$0xff] }
 0x16b   : > { %1222 = vmatmul.mubr.bf16.vlgmr.msra.gmra.mxu0 %v645_v4  ;;  %1415 = vmatmul.mubr.bf16.vlgmr.msra.gmra.mxu1 %v645_v4 }
 0x16c   : > { %1231 = vmatprep.mubr.bf16.mxu0 %v648_v5  ;;  %1424 = vmatprep.mubr.bf16.mxu1 %v648_v5 }
 0x173   : > { %1232 = vmatmul.mubr.bf16.gmra.mxu0 %v647_v7  ;;  %1425 = vmatmul.mubr.bf16.gmra.mxu1 %v647_v7  ;;  %v685_v7 = vld [vmem:[#allocation2 + $0x380] sm:$0xff] }
 0x174   : > { %1241 = vmatprep.mubr.bf16.mxu0 %v650_v8  ;;  %1434 = vmatprep.mubr.bf16.mxu1 %v650_v8  ;;  %v687_v8 = vld [vmem:[#allocation2 + $0x118] sm:$0xff] }
 0x17b   : > { %1242 = vmatmul.mubr.bf16.gmra.mxu0 %v649_v10  ;;  %1435 = vmatmul.mubr.bf16.gmra.mxu1 %v649_v10 }
 0x17c   : > { %1251 = vmatprep.mubr.bf16.mxu0 %v652_v11  ;;  %1444 = vmatprep.mubr.bf16.mxu1 %v652_v11 }
 0x183   : > { %1252 = vmatmul.mubr.bf16.gmra.mxu0 %v651_v13  ;;  %1445 = vmatmul.mubr.bf16.gmra.mxu1 %v651_v13  ;;  %v686_v13 = vld [vmem:[#allocation2 + $0x110] sm:$0xff] }
 0x184   : > { %1261 = vmatprep.mubr.bf16.mxu0 %v654_v14  ;;  %1454 = vmatprep.mubr.bf16.mxu1 %v654_v14  ;;  %v688_v14 = vld [vmem:[#allocation2 + $0x98] sm:$0xff] }
 0x18b   : > { %1262 = vmatmul.mubr.bf16.gmra.mxu0 %v653_v16  ;;  %1455 = vmatmul.mubr.bf16.gmra.mxu1 %v653_v16 }
 0x18c   : > { %1271 = vmatprep.mubr.bf16.mxu0 %v656_v17  ;;  %1464 = vmatprep.mubr.bf16.mxu1 %v656_v17 }
 0x193   : > { %1272 = vmatmul.mubr.bf16.gmra.mxu0 %v655_v19  ;;  %1465 = vmatmul.mubr.bf16.gmra.mxu1 %v655_v19  ;;  %v689_v19 = vld [vmem:[#allocation2 + $0x320] sm:$0xff] }
 0x194   : > { %1281 = vmatprep.mubr.bf16.mxu0 %v658_v20  ;;  %1474 = vmatprep.mubr.bf16.mxu1 %v658_v20  ;;  %v691_v20 = vld [vmem:[#allocation2 + $0x108] sm:$0xff] }
 0x19b   : > { %1282 = vmatmul.mubr.bf16.gmra.mxu0 %v657_v22  ;;  %1475 = vmatmul.mubr.bf16.gmra.mxu1 %v657_v22 }
 0x19c   : > { %1291 = vmatprep.mubr.bf16.mxu0 %v660_v23  ;;  %1484 = vmatprep.mubr.bf16.mxu1 %v660_v23 }
 0x1a3   : > { %1292 = vmatmul.mubr.bf16.gmra.mxu0 %v659_v25  ;;  %1485 = vmatmul.mubr.bf16.gmra.mxu1 %v659_v25  ;;  %v690_v25 = vld [vmem:[#allocation2 + $0x150] sm:$0xff] }
 0x1a4   : > { %1301 = vmatprep.mubr.bf16.mxu0 %v662_v26  ;;  %1494 = vmatprep.mubr.bf16.mxu1 %v662_v26  ;;  %v692_v26 = vld [vmem:[#allocation2 + $0x60] sm:$0xff] }
 0x1ab   : > { %1302 = vmatmul.mubr.bf16.gmra.mxu0 %v661_v28  ;;  %1495 = vmatmul.mubr.bf16.gmra.mxu1 %v661_v28 }
 0x1ac   : > { %1311 = vmatprep.mubr.bf16.mxu0 %v664_v29  ;;  %1504 = vmatprep.mubr.bf16.mxu1 %v664_v29 }
 0x1b3   : > { %1312 = vmatmul.mubr.bf16.gmra.mxu0 %v663_v31  ;;  %1505 = vmatmul.mubr.bf16.gmra.mxu1 %v663_v31  ;;  %v693_v31 = vld [vmem:[#allocation2 + $0x2e0] sm:$0xff] }
 0x1b4   : > { %1321 = vmatprep.mubr.bf16.mxu0 %v666_v32  ;;  %1514 = vmatprep.mubr.bf16.mxu1 %v666_v32  ;;  %v695_v32 = vld [vmem:[#allocation2 + $0x338] sm:$0xff] }
 0x1bb   : > { %1322 = vmatmul.mubr.bf16.gmra.mxu0 %v665_v34  ;;  %1515 = vmatmul.mubr.bf16.gmra.mxu1 %v665_v34 }
 0x1bc   : > { %1331 = vmatprep.mubr.bf16.mxu0 %v668_v35  ;;  %1524 = vmatprep.mubr.bf16.mxu1 %v668_v35 }
 0x1c3   : > { %1332 = vmatmul.mubr.bf16.gmra.mxu0 %v667_v37  ;;  %1525 = vmatmul.mubr.bf16.gmra.mxu1 %v667_v37  ;;  %v694_v37 = vld [vmem:[#allocation2 + $0x388] sm:$0xff] }
 0x1c4   : > { %1341 = vmatprep.mubr.bf16.mxu0 %v670_v38  ;;  %1534 = vmatprep.mubr.bf16.mxu1 %v670_v38  ;;  %v696_v38 = vld [vmem:[#allocation2 + $0x340] sm:$0xff] }
 0x1cb   : > { %1342 = vmatmul.mubr.bf16.gmra.mxu0 %v669_v40  ;;  %1535 = vmatmul.mubr.bf16.gmra.mxu1 %v669_v40 }
 0x1cc   : > { %1351 = vmatprep.mubr.bf16.mxu0 %v672_v41  ;;  %1544 = vmatprep.mubr.bf16.mxu1 %v672_v41 }
 0x1d3   : > { %1352 = vmatmul.mubr.bf16.gmra.mxu0 %v671_v43  ;;  %1545 = vmatmul.mubr.bf16.gmra.mxu1 %v671_v43  ;;  %v697_v43 = vld [vmem:[#allocation2 + $0x80] sm:$0xff] }
 0x1d4   : > { %1361 = vmatprep.mubr.bf16.mxu0 %v674_v44  ;;  %1554 = vmatprep.mubr.bf16.mxu1 %v674_v44  ;;  %v699_v44 = vld [vmem:[#allocation2 + $0x1b8] sm:$0xff] }
 0x1db   : > { %1362 = vmatmul.mubr.bf16.gmra.mxu0 %v673_v46  ;;  %1555 = vmatmul.mubr.bf16.gmra.mxu1 %v673_v46 }
 0x1dc   : > { %1371 = vmatprep.mubr.bf16.mxu0 %v676_v47  ;;  %1564 = vmatprep.mubr.bf16.mxu1 %v676_v47 }
 0x1e3   : > { %1372 = vmatmul.mubr.bf16.gmra.mxu0 %v675_v48  ;;  %1565 = vmatmul.mubr.bf16.gmra.mxu1 %v675_v48 }
 0x22b   : > { %v1223_v51 = vpop.f32.mrf.mxu0  ;;  %v1416_v52 = vpop.f32.mrf.mxu1 }
 0x22c   : > { %v1575_v55 = vadd.f32 %v1223_v51, %v677_v49  ;;  %v1577_v56 = vadd.f32 %v1416_v52, %v679_v50  ;;  %v698_v49 = vld [vmem:[#allocation2 + $0x1a8] sm:$0xff] }
 0x22d   : > { %v1225_v57 = vpop.f32.mrf.mxu0  ;;  %v1418_v58 = vpop.f32.mrf.mxu1  ;;  %v700_v50 = vld [vmem:[#allocation2 + $0x168] sm:$0xff] }
 0x22e   : > { %1703 = vst [vmem:[#allocation2 + $0x2b0] sm:$0xff] %v1575_v55  ;;  %1705 = vst [vmem:[#allocation2 + $0xd8] sm:$0xff] %v1577_v56  ;;  %v1576_v61 = vadd.f32 %v1225_v57, %v678_v53  ;;  %v1578_v62 = vadd.f32 %v1418_v58, %v680_v54  ;;  %v701_v55 = vld [vmem:[#allocation2 + $0x3e8] sm:$0xff]  ;;  %v703_v56 = vld [vmem:[#allocation2 + $0x290] sm:$0xff] }
 0x22f   : > { %v1227_v63 = vpop.f32.mrf.mxu0  ;;  %v1420_v0 = vpop.f32.mrf.mxu1 }
 0x230   : > { %1704 = vst [vmem:[#allocation2 + $0x3b0] sm:$0xff] %v1576_v61  ;;  %1706 = vst [vmem:[#allocation2 + $0x18] sm:$0xff] %v1578_v62  ;;  %v1579_v3 = vadd.f32 %v1227_v63, %v681_v59  ;;  %v1581_v4 = vadd.f32 %v1420_v0, %v683_v60  ;;  %v702_v61 = vld [vmem:[#allocation2 + $0x2f8] sm:$0xff]  ;;  %v704_v62 = vld [vmem:[#allocation2 + $0x28] sm:$0xff] }
 0x231   : > { %v1229_v5 = vpop.f32.mrf.mxu0  ;;  %v1422_v6 = vpop.f32.mrf.mxu1 }
 0x232   : > { %1707 = vst [vmem:[#allocation2 + $0x50] sm:$0xff] %v1579_v3  ;;  %1709 = vst [vmem:[#allocation2 + $0x330] sm:$0xff] %v1581_v4  ;;  %v1580_v9 = vadd.f32 %v1229_v5, %v682_v1  ;;  %v1582_v10 = vadd.f32 %v1422_v6, %v684_v2  ;;  %v705_v3 = vld [vmem:[#allocation2 + $0x138] sm:$0xff]  ;;  %v707_v4 = vld [vmem:[#allocation2 + $0x1c0] sm:$0xff] }
 0x233   : > { %v1233_v11 = vpop.f32.mrf.mxu0  ;;  %v1426_v12 = vpop.f32.mrf.mxu1 }
 0x234   : > { %1708 = vst [vmem:[#allocation2 + $0x368] sm:$0xff] %v1580_v9  ;;  %1710 = vst [vmem:[#allocation2 + $0x48] sm:$0xff] %v1582_v10  ;;  %v1583_v15 = vadd.f32 %v1233_v11, %v685_v7  ;;  %v1585_v16 = vadd.f32 %v1426_v12, %v687_v8  ;;  %v706_v9 = vld [vmem:[#allocation2 + $0xc0] sm:$0xff] }
 0x235   : > { %v1235_v17 = vpop.f32.mrf.mxu0  ;;  %v1428_v18 = vpop.f32.mrf.mxu1  ;;  %v708_v10 = vld [vmem:[#allocation2 + $0x280] sm:$0xff] }
 0x236   : > { %1711 = vst [vmem:[#allocation2 + $0x380] sm:$0xff] %v1583_v15  ;;  %1713 = vst [vmem:[#allocation2 + $0x118] sm:$0xff] %v1585_v16  ;;  %v1584_v21 = vadd.f32 %v1235_v17, %v686_v13  ;;  %v1586_v22 = vadd.f32 %v1428_v18, %v688_v14  ;;  %v709_v15 = vld [vmem:[#allocation2 + $0x100] sm:$0xff]  ;;  %v711_v16 = vld [vmem:[#allocation2 + $0x158] sm:$0xff] }
 0x237   : > { %v1237_v23 = vpop.f32.mrf.mxu0  ;;  %v1430_v24 = vpop.f32.mrf.mxu1 }
 0x238   : > { %1712 = vst [vmem:[#allocation2 + $0x110] sm:$0xff] %v1584_v21  ;;  %1714 = vst [vmem:[#allocation2 + $0x98] sm:$0xff] %v1586_v22  ;;  %v1587_v27 = vadd.f32 %v1237_v23, %v689_v19  ;;  %v1589_v28 = vadd.f32 %v1430_v24, %v691_v20  ;;  %v710_v21 = vld [vmem:[#allocation2 + $0x3c0] sm:$0xff] }
 0x239   : > { %v1239_v29 = vpop.f32.mrf.mxu0  ;;  %v1432_v30 = vpop.f32.mrf.mxu1  ;;  %v712_v22 = vld [vmem:[#allocation2 + $0x3e0] sm:$0xff] }
 0x23a   : > { %1715 = vst [vmem:[#allocation2 + $0x320] sm:$0xff] %v1587_v27  ;;  %1717 = vst [vmem:[#allocation2 + $0x108] sm:$0xff] %v1589_v28  ;;  %v1588_v33 = vadd.f32 %v1239_v29, %v690_v25  ;;  %v1590_v34 = vadd.f32 %v1432_v30, %v692_v26  ;;  %v713_v27 = vld [vmem:[#allocation2 + $0x218] sm:$0xff]  ;;  %v715_v28 = vld [vmem:[#allocation2 + $0x8] sm:$0xff] }
 0x23b   : > { %v1243_v35 = vpop.f32.mrf.mxu0  ;;  %v1436_v36 = vpop.f32.mrf.mxu1 }
 0x23c   : > { %1716 = vst [vmem:[#allocation2 + $0x150] sm:$0xff] %v1588_v33  ;;  %1718 = vst [vmem:[#allocation2 + $0x60] sm:$0xff] %v1590_v34  ;;  %v1591_v39 = vadd.f32 %v1243_v35, %v693_v31  ;;  %v1593_v40 = vadd.f32 %v1436_v36, %v695_v32  ;;  %v714_v33 = vld [vmem:[#allocation2 + $0x3f8] sm:$0xff]  ;;  %v716_v34 = vld [vmem:[#allocation2 + $0x128] sm:$0xff] }
 0x23d   : > { %v1245_v41 = vpop.f32.mrf.mxu0  ;;  %v1438_v42 = vpop.f32.mrf.mxu1 }
 0x23e   : > { %1719 = vst [vmem:[#allocation2 + $0x2e0] sm:$0xff] %v1591_v39  ;;  %1721 = vst [vmem:[#allocation2 + $0x338] sm:$0xff] %v1593_v40  ;;  %v1592_v45 = vadd.f32 %v1245_v41, %v694_v37  ;;  %v1594_v46 = vadd.f32 %v1438_v42, %v696_v38  ;;  %v717_v39 = vld [vmem:[#allocation2 + $0x2a0] sm:$0xff] }
 0x23f   : > { %v1247_v47 = vpop.f32.mrf.mxu0  ;;  %v1440_v48 = vpop.f32.mrf.mxu1  ;;  %v719_v40 = vld [vmem:[#allocation2 + $0xa0] sm:$0xff] }
 0x240   : > { %1720 = vst [vmem:[#allocation2 + $0x388] sm:$0xff] %v1592_v45  ;;  %1722 = vst [vmem:[#allocation2 + $0x340] sm:$0xff] %v1594_v46  ;;  %v1595_v51 = vadd.f32 %v1247_v47, %v697_v43  ;;  %v1597_v52 = vadd.f32 %v1440_v48, %v699_v44  ;;  %v718_v45 = vld [vmem:[#allocation2 + $0x3f0] sm:$0xff]  ;;  %v720_v46 = vld [vmem:[#allocation2 + $0x2c0] sm:$0xff] }
 0x241   : > { %v1249_v53 = vpop.f32.mrf.mxu0  ;;  %v1442_v54 = vpop.f32.mrf.mxu1 }
 0x242   : > { %1723 = vst [vmem:[#allocation2 + $0x80] sm:$0xff] %v1595_v51  ;;  %1725 = vst [vmem:[#allocation2 + $0x1b8] sm:$0xff] %v1597_v52  ;;  %v1596_v57 = vadd.f32 %v1249_v53, %v698_v49  ;;  %v1598_v58 = vadd.f32 %v1442_v54, %v700_v50  ;;  %v721_v51 = vld [vmem:[#allocation2 + $0xb0] sm:$0xff] }
 0x243   : > { %v1253_v59 = vpop.f32.mrf.mxu0  ;;  %v1446_v60 = vpop.f32.mrf.mxu1  ;;  %v723_v52 = vld [vmem:[#allocation2 + $0x1f0] sm:$0xff] }
 0x244   : > { %1724 = vst [vmem:[#allocation2 + $0x1a8] sm:$0xff] %v1596_v57  ;;  %1726 = vst [vmem:[#allocation2 + $0x168] sm:$0xff] %v1598_v58  ;;  %v1599_v63 = vadd.f32 %v1253_v59, %v701_v55  ;;  %v1601_v0 = vadd.f32 %v1446_v60, %v703_v56  ;;  %v722_v57 = vld [vmem:[#allocation2 + $0x1e0] sm:$0xff]  ;;  %v724_v58 = vld [vmem:[#allocation2 + $0x10] sm:$0xff] }
 0x245   : > { %v1255_v1 = vpop.f32.mrf.mxu0  ;;  %v1448_v2 = vpop.f32.mrf.mxu1 }
 0x246   : > { %1727 = vst [vmem:[#allocation2 + $0x3e8] sm:$0xff] %v1599_v63  ;;  %1729 = vst [vmem:[#allocation2 + $0x290] sm:$0xff] %v1601_v0  ;;  %v1600_v5 = vadd.f32 %v1255_v1, %v702_v61  ;;  %v1602_v6 = vadd.f32 %v1448_v2, %v704_v62  ;;  %v725_v63 = vld [vmem:[#allocation2 + $0x230] sm:$0xff] }
 0x247   : > { %v1257_v7 = vpop.f32.mrf.mxu0  ;;  %v1450_v8 = vpop.f32.mrf.mxu1  ;;  %v727_v0 = vld [vmem:[#allocation2 + $0x90] sm:$0xff] }
 0x248   : > { %1728 = vst [vmem:[#allocation2 + $0x2f8] sm:$0xff] %v1600_v5  ;;  %1730 = vst [vmem:[#allocation2 + $0x28] sm:$0xff] %v1602_v6  ;;  %v1603_v11 = vadd.f32 %v1257_v7, %v705_v3  ;;  %v1605_v12 = vadd.f32 %v1450_v8, %v707_v4  ;;  %v726_v5 = vld [vmem:[#allocation2 + $0x240] sm:$0xff] }
 0x249   : > { %v1259_v13 = vpop.f32.mrf.mxu0  ;;  %v1452_v14 = vpop.f32.mrf.mxu1  ;;  %v728_v6 = vld [vmem:[#allocation2 + $0x3a0] sm:$0xff] }
 0x24a   : > { %1731 = vst [vmem:[#allocation2 + $0x138] sm:$0xff] %v1603_v11  ;;  %1733 = vst [vmem:[#allocation2 + $0x1c0] sm:$0xff] %v1605_v12  ;;  %v1604_v17 = vadd.f32 %v1259_v13, %v706_v9  ;;  %v1606_v18 = vadd.f32 %v1452_v14, %v708_v10  ;;  %v729_v11 = vld [vmem:[#allocation2 + $0x208] sm:$0xff] }
 0x24b   : > { %v1263_v19 = vpop.f32.mrf.mxu0  ;;  %v1456_v20 = vpop.f32.mrf.mxu1  ;;  %v731_v12 = vld [vmem:[#allocation2 + $0x88] sm:$0xff] }
 0x24c   : > { %1732 = vst [vmem:[#allocation2 + $0xc0] sm:$0xff] %v1604_v17  ;;  %1734 = vst [vmem:[#allocation2 + $0x280] sm:$0xff] %v1606_v18  ;;  %v1607_v23 = vadd.f32 %v1263_v19, %v709_v15  ;;  %v1609_v24 = vadd.f32 %v1456_v20, %v711_v16  ;;  %v730_v17 = vld [vmem:[#allocation2 + $0xd0] sm:$0xff] }
 0x24d   : > { %v1265_v25 = vpop.f32.mrf.mxu0  ;;  %v1458_v26 = vpop.f32.mrf.mxu1  ;;  %v732_v18 = vld [vmem:[#allocation2 + $0x2f0] sm:$0xff] }
 0x24e   : > { %1735 = vst [vmem:[#allocation2 + $0x100] sm:$0xff] %v1607_v23  ;;  %1737 = vst [vmem:[#allocation2 + $0x158] sm:$0xff] %v1609_v24  ;;  %v1608_v29 = vadd.f32 %v1265_v25, %v710_v21  ;;  %v1610_v30 = vadd.f32 %v1458_v26, %v712_v22  ;;  %v733_v23 = vld [vmem:[#allocation2 + $0x358] sm:$0xff]  ;;  %v735_v24 = vld [vmem:[#allocation2 + $0x350] sm:$0xff] }
 0x24f   : > { %v1267_v31 = vpop.f32.mrf.mxu0  ;;  %v1460_v32 = vpop.f32.mrf.mxu1 }
 0x250   : > { %1736 = vst [vmem:[#allocation2 + $0x3c0] sm:$0xff] %v1608_v29  ;;  %1738 = vst [vmem:[#allocation2 + $0x3e0] sm:$0xff] %v1610_v30  ;;  %v1611_v35 = vadd.f32 %v1267_v31, %v713_v27  ;;  %v1613_v36 = vadd.f32 %v1460_v32, %v715_v28  ;;  %v734_v29 = vld [vmem:[#allocation2 + $0x268] sm:$0xff] }
 0x251   : > { %v1269_v37 = vpop.f32.mrf.mxu0  ;;  %v1462_v38 = vpop.f32.mrf.mxu1  ;;  %v736_v30 = vld [vmem:[#allocation2 + $0x188] sm:$0xff] }
 0x252   : > { %1739 = vst [vmem:[#allocation2 + $0x218] sm:$0xff] %v1611_v35  ;;  %1741 = vst [vmem:[#allocation2 + $0x8] sm:$0xff] %v1613_v36  ;;  %v1612_v41 = vadd.f32 %v1269_v37, %v714_v33  ;;  %v1614_v42 = vadd.f32 %v1462_v38, %v716_v34  ;;  %v737_v35 = vld [vmem:[#allocation2 + $0x1d8] sm:$0xff]  ;;  %v739_v36 = vld [vmem:[#allocation2 + $0x140] sm:$0xff] }
 0x253   : > { %v1273_v43 = vpop.f32.mrf.mxu0  ;;  %v1466_v44 = vpop.f32.mrf.mxu1 }
 0x254   : > { %1740 = vst [vmem:[#allocation2 + $0x3f8] sm:$0xff] %v1612_v41  ;;  %1742 = vst [vmem:[#allocation2 + $0x128] sm:$0xff] %v1614_v42  ;;  %v1615_v47 = vadd.f32 %v1273_v43, %v717_v39  ;;  %v1617_v48 = vadd.f32 %v1466_v44, %v719_v40  ;;  %v738_v41 = vld [vmem:[#allocation2 + $0x30] sm:$0xff]  ;;  %v740_v42 = vld [vmem:[#allocation2 + $0x2a8] sm:$0xff] }
 0x255   : > { %v1275_v49 = vpop.f32.mrf.mxu0  ;;  %v1468_v50 = vpop.f32.mrf.mxu1 }
 0x256   : > { %1743 = vst [vmem:[#allocation2 + $0x2a0] sm:$0xff] %v1615_v47  ;;  %1745 = vst [vmem:[#allocation2 + $0xa0] sm:$0xff] %v1617_v48  ;;  %v1616_v53 = vadd.f32 %v1275_v49, %v718_v45  ;;  %v1618_v54 = vadd.f32 %v1468_v50, %v720_v46  ;;  %v741_v47 = vld [vmem:[#allocation2 + $0x130] sm:$0xff]  ;;  %v743_v48 = vld [vmem:[#allocation2 + $0x318] sm:$0xff] }
 0x257   : > { %v1277_v55 = vpop.f32.mrf.mxu0  ;;  %v1470_v56 = vpop.f32.mrf.mxu1 }
 0x258   : > { %1744 = vst [vmem:[#allocation2 + $0x3f0] sm:$0xff] %v1616_v53  ;;  %1746 = vst [vmem:[#allocation2 + $0x2c0] sm:$0xff] %v1618_v54  ;;  %v1619_v59 = vadd.f32 %v1277_v55, %v721_v51  ;;  %v1621_v60 = vadd.f32 %v1470_v56, %v723_v52  ;;  %v742_v53 = vld [vmem:[#allocation2 + $0x200] sm:$0xff] }
 0x259   : > { %v1279_v61 = vpop.f32.mrf.mxu0  ;;  %v1472_v62 = vpop.f32.mrf.mxu1  ;;  %v744_v54 = vld [vmem:[#allocation2 + $0x220] sm:$0xff] }
 0x25a   : > { %1747 = vst [vmem:[#allocation2 + $0xb0] sm:$0xff] %v1619_v59  ;;  %1749 = vst [vmem:[#allocation2 + $0x1f0] sm:$0xff] %v1621_v60  ;;  %v1620_v1 = vadd.f32 %v1279_v61, %v722_v57  ;;  %v1622_v2 = vadd.f32 %v1472_v62, %v724_v58  ;;  %v745_v59 = vld [vmem:[#allocation2 + $0x70] sm:$0xff]  ;;  %v747_v60 = vld [vmem:[#allocation2 + $0xe0] sm:$0xff] }
 0x25b   : > { %v1283_v3 = vpop.f32.mrf.mxu0  ;;  %v1476_v4 = vpop.f32.mrf.mxu1 }
 0x25c   : > { %1748 = vst [vmem:[#allocation2 + $0x1e0] sm:$0xff] %v1620_v1  ;;  %1750 = vst [vmem:[#allocation2 + $0x10] sm:$0xff] %v1622_v2  ;;  %v1623_v7 = vadd.f32 %v1283_v3, %v725_v63  ;;  %v1625_v8 = vadd.f32 %v1476_v4, %v727_v0  ;;  %v746_v1 = vld [vmem:[#allocation2 + $0x300] sm:$0xff]  ;;  %v748_v2 = vld [vmem:[#allocation2 + $0x178] sm:$0xff] }
 0x25d   : > { %v1285_v9 = vpop.f32.mrf.mxu0  ;;  %v1478_v10 = vpop.f32.mrf.mxu1 }
 0x25e   : > { %1751 = vst [vmem:[#allocation2 + $0x230] sm:$0xff] %v1623_v7  ;;  %1753 = vst [vmem:[#allocation2 + $0x90] sm:$0xff] %v1625_v8  ;;  %v1624_v13 = vadd.f32 %v1285_v9, %v726_v5  ;;  %v1626_v14 = vadd.f32 %v1478_v10, %v728_v6  ;;  %v749_v7 = vld [vmem:[#allocation2 + $0x328] sm:$0xff]  ;;  %v751_v8 = vld [vmem:[#allocation2 + $0x3b8] sm:$0xff] }
 0x25f   : > { %v1287_v15 = vpop.f32.mrf.mxu0  ;;  %v1480_v16 = vpop.f32.mrf.mxu1 }
 0x260   : > { %1752 = vst [vmem:[#allocation2 + $0x240] sm:$0xff] %v1624_v13  ;;  %1754 = vst [vmem:[#allocation2 + $0x3a0] sm:$0xff] %v1626_v14  ;;  %v1627_v19 = vadd.f32 %v1287_v15, %v729_v11  ;;  %v1629_v20 = vadd.f32 %v1480_v16, %v731_v12  ;;  %v750_v13 = vld [vmem:[#allocation2 + $0x260] sm:$0xff]  ;;  %v752_v14 = vld [vmem:[#allocation2 + $0x2b8] sm:$0xff] }
 0x261   : > { %v1289_v21 = vpop.f32.mrf.mxu0  ;;  %v1482_v22 = vpop.f32.mrf.mxu1 }
 0x262   : > { %1755 = vst [vmem:[#allocation2 + $0x208] sm:$0xff] %v1627_v19  ;;  %1757 = vst [vmem:[#allocation2 + $0x88] sm:$0xff] %v1629_v20  ;;  %v1628_v25 = vadd.f32 %v1289_v21, %v730_v17  ;;  %v1630_v26 = vadd.f32 %v1482_v22, %v732_v18  ;;  %v753_v19 = vld [vmem:[#allocation2 + $0x248] sm:$0xff]  ;;  %v755_v20 = vld [vmem:[#allocation2 + $0x20] sm:$0xff] }
 0x263   : > { %v1293_v27 = vpop.f32.mrf.mxu0  ;;  %v1486_v28 = vpop.f32.mrf.mxu1 }
 0x264   : > { %1756 = vst [vmem:[#allocation2 + $0xd0] sm:$0xff] %v1628_v25  ;;  %1758 = vst [vmem:[#allocation2 + $0x2f0] sm:$0xff] %v1630_v26  ;;  %v1631_v31 = vadd.f32 %v1293_v27, %v733_v23  ;;  %v1633_v32 = vadd.f32 %v1486_v28, %v735_v24  ;;  %v754_v25 = vld [vmem:[#allocation2 + $0x40] sm:$0xff]  ;;  %v756_v26 = vld [vmem:[#allocation2 + $0xe8] sm:$0xff] }
 0x265   : > { %v1295_v33 = vpop.f32.mrf.mxu0  ;;  %v1488_v34 = vpop.f32.mrf.mxu1 }
 0x266   : > { %1759 = vst [vmem:[#allocation2 + $0x358] sm:$0xff] %v1631_v31  ;;  %1761 = vst [vmem:[#allocation2 + $0x350] sm:$0xff] %v1633_v32  ;;  %v1632_v37 = vadd.f32 %v1295_v33, %v734_v29  ;;  %v1634_v38 = vadd.f32 %v1488_v34, %v736_v30  ;;  %v757_v31 = vld [vmem:[#allocation2 + $0x288] sm:$0xff] }
 0x267   : > { %v1297_v39 = vpop.f32.mrf.mxu0  ;;  %v1490_v40 = vpop.f32.mrf.mxu1  ;;  %v759_v32 = vld [vmem:[#allocation2 + $0x3c8] sm:$0xff] }
 0x268   : > { %1760 = vst [vmem:[#allocation2 + $0x268] sm:$0xff] %v1632_v37  ;;  %1762 = vst [vmem:[#allocation2 + $0x188] sm:$0xff] %v1634_v38  ;;  %v1635_v43 = vadd.f32 %v1297_v39, %v737_v35  ;;  %v1637_v44 = vadd.f32 %v1490_v40, %v739_v36  ;;  %v758_v37 = vld [vmem:[#allocation2 + $0x3a8] sm:$0xff]  ;;  %v760_v38 = vld [vmem:[#allocation2 + $0x160] sm:$0xff] }
 0x269   : > { %v1299_v45 = vpop.f32.mrf.mxu0  ;;  %v1492_v46 = vpop.f32.mrf.mxu1 }
 0x26a   : > { %1763 = vst [vmem:[#allocation2 + $0x1d8] sm:$0xff] %v1635_v43  ;;  %1765 = vst [vmem:[#allocation2 + $0x140] sm:$0xff] %v1637_v44  ;;  %v1636_v49 = vadd.f32 %v1299_v45, %v738_v41  ;;  %v1638_v50 = vadd.f32 %v1492_v46, %v740_v42  ;;  %v761_v43 = vld [vmem:[#allocation2 + $0x2c8] sm:$0xff]  ;;  %v763_v44 = vld [vmem:[#allocation2 + $0x3d8] sm:$0xff] }
 0x26b   : > { %v1303_v51 = vpop.f32.mrf.mxu0  ;;  %v1496_v52 = vpop.f32.mrf.mxu1 }
 0x26c   : > { %1764 = vst [vmem:[#allocation2 + $0x30] sm:$0xff] %v1636_v49  ;;  %1766 = vst [vmem:[#allocation2 + $0x2a8] sm:$0xff] %v1638_v50  ;;  %v1639_v55 = vadd.f32 %v1303_v51, %v741_v47  ;;  %v1641_v56 = vadd.f32 %v1496_v52, %v743_v48  ;;  %v762_v49 = vld [vmem:[#allocation2 + $0x210] sm:$0xff]  ;;  %v764_v50 = vld [vmem:[#allocation2 + $0x1e8] sm:$0xff] }
 0x26d   : > { %v1305_v57 = vpop.f32.mrf.mxu0  ;;  %v1498_v58 = vpop.f32.mrf.mxu1 }
 0x26e   : > { %1767 = vst [vmem:[#allocation2 + $0x130] sm:$0xff] %v1639_v55  ;;  %1769 = vst [vmem:[#allocation2 + $0x318] sm:$0xff] %v1641_v56  ;;  %v1640_v61 = vadd.f32 %v1305_v57, %v742_v53  ;;  %v1642_v62 = vadd.f32 %v1498_v58, %v744_v54  ;;  %v765_v55 = vld [vmem:[#allocation2 + $0x1b0] sm:$0xff] }
 0x26f   : > { %v1307_v63 = vpop.f32.mrf.mxu0  ;;  %v1500_v0 = vpop.f32.mrf.mxu1  ;;  %v767_v56 = vld [vmem:[#allocation2 + $0x2d0] sm:$0xff] }
 0x270   : > { %1768 = vst [vmem:[#allocation2 + $0x200] sm:$0xff] %v1640_v61  ;;  %1770 = vst [vmem:[#allocation2 + $0x220] sm:$0xff] %v1642_v62  ;;  %v1643_v3 = vadd.f32 %v1307_v63, %v745_v59  ;;  %v1645_v4 = vadd.f32 %v1500_v0, %v747_v60  ;;  %v766_v61 = vld [vmem:[#allocation2 + $0x1c8] sm:$0xff]  ;;  %v768_v62 = vld [vmem:[#allocation2 + $0x1d0] sm:$0xff] }
 0x271   : > { %v1309_v5 = vpop.f32.mrf.mxu0  ;;  %v1502_v6 = vpop.f32.mrf.mxu1 }
 0x272   : > { %1771 = vst [vmem:[#allocation2 + $0x70] sm:$0xff] %v1643_v3  ;;  %1773 = vst [vmem:[#allocation2 + $0xe0] sm:$0xff] %v1645_v4  ;;  %v1644_v9 = vadd.f32 %v1309_v5, %v746_v1  ;;  %v1646_v10 = vadd.f32 %v1502_v6, %v748_v2  ;;  %v769_v3 = vld [vmem:[#allocation2 + $0x58] sm:$0xff] }
 0x273   : > { %v1313_v11 = vpop.f32.mrf.mxu0  ;;  %v1506_v12 = vpop.f32.mrf.mxu1  ;;  %v771_v4 = vld [vmem:[#allocation2 + $0x198] sm:$0xff] }
 0x274   : > { %1772 = vst [vmem:[#allocation2 + $0x300] sm:$0xff] %v1644_v9  ;;  %1774 = vst [vmem:[#allocation2 + $0x178] sm:$0xff] %v1646_v10  ;;  %v1647_v15 = vadd.f32 %v1313_v11, %v749_v7  ;;  %v1649_v16 = vadd.f32 %v1506_v12, %v751_v8  ;;  %v770_v9 = vld [vmem:[#allocation2 + $0x120] sm:$0xff]  ;;  %v772_v10 = vld [vmem:[#allocation2 + $0x2e8] sm:$0xff] }
 0x275   : > { %v1315_v17 = vpop.f32.mrf.mxu0  ;;  %v1508_v18 = vpop.f32.mrf.mxu1 }
 0x276   : > { %1775 = vst [vmem:[#allocation2 + $0x328] sm:$0xff] %v1647_v15  ;;  %1777 = vst [vmem:[#allocation2 + $0x3b8] sm:$0xff] %v1649_v16  ;;  %v1648_v21 = vadd.f32 %v1315_v17, %v750_v13  ;;  %v1650_v22 = vadd.f32 %v1508_v18, %v752_v14  ;;  %v773_v15 = vld [vmem:[#allocation2 + $0x1f8] sm:$0xff] }
 0x277   : > { %v1317_v23 = vpop.f32.mrf.mxu0  ;;  %v1510_v24 = vpop.f32.mrf.mxu1  ;;  %v775_v16 = vld [vmem:[#allocation2 + $0x398] sm:$0xff] }
 0x278   : > { %1776 = vst [vmem:[#allocation2 + $0x260] sm:$0xff] %v1648_v21  ;;  %1778 = vst [vmem:[#allocation2 + $0x2b8] sm:$0xff] %v1650_v22  ;;  %v1651_v27 = vadd.f32 %v1317_v23, %v753_v19  ;;  %v1653_v28 = vadd.f32 %v1510_v24, %v755_v20  ;;  %v774_v21 = vld [vmem:[#allocation2 + $0x238] sm:$0xff]  ;;  %v776_v22 = vld [vmem:[#allocation2 + $0x390] sm:$0xff] }
 0x279   : > { %v1319_v29 = vpop.f32.mrf.mxu0  ;;  %v1512_v30 = vpop.f32.mrf.mxu1 }
 0x27a   : > { %1779 = vst [vmem:[#allocation2 + $0x248] sm:$0xff] %v1651_v27  ;;  %1781 = vst [vmem:[#allocation2 + $0x20] sm:$0xff] %v1653_v28  ;;  %v1652_v33 = vadd.f32 %v1319_v29, %v754_v25  ;;  %v1654_v34 = vadd.f32 %v1512_v30, %v756_v26  ;;  %v777_v27 = vld [vmem:[#allocation2 + $0x1a0] sm:$0xff]  ;;  %v779_v28 = vld [vmem:[#allocation2 + $0x258] sm:$0xff] }
 0x27b   : > { %v1323_v35 = vpop.f32.mrf.mxu0  ;;  %v1516_v36 = vpop.f32.mrf.mxu1 }
 0x27c   : > { %1780 = vst [vmem:[#allocation2 + $0x40] sm:$0xff] %v1652_v33  ;;  %1782 = vst [vmem:[#allocation2 + $0xe8] sm:$0xff] %v1654_v34  ;;  %v1655_v39 = vadd.f32 %v1323_v35, %v757_v31  ;;  %v1657_v40 = vadd.f32 %v1516_v36, %v759_v32  ;;  %v778_v33 = vld [vmem:[#allocation2 + $0xa8] sm:$0xff]  ;;  %v780_v34 = vld [vmem:[#allocation2 + $0x2d8] sm:$0xff] }
 0x27d   : > { %v1325_v41 = vpop.f32.mrf.mxu0  ;;  %v1518_v42 = vpop.f32.mrf.mxu1 }
 0x27e   : > { %1783 = vst [vmem:[#allocation2 + $0x288] sm:$0xff] %v1655_v39  ;;  %1785 = vst [vmem:[#allocation2 + $0x3c8] sm:$0xff] %v1657_v40  ;;  %v1656_v45 = vadd.f32 %v1325_v41, %v758_v37  ;;  %v1658_v46 = vadd.f32 %v1518_v42, %v760_v38  ;;  %v781_v39 = vld [vmem:[#allocation2 + $0xf0] sm:$0xff] }
 0x27f   : > { %v1327_v47 = vpop.f32.mrf.mxu0  ;;  %v1520_v48 = vpop.f32.mrf.mxu1  ;;  %v783_v40 = vld [vmem:[#allocation2 + $0x170] sm:$0xff] }
 0x280   : > { %1784 = vst [vmem:[#allocation2 + $0x3a8] sm:$0xff] %v1656_v45  ;;  %1786 = vst [vmem:[#allocation2 + $0x160] sm:$0xff] %v1658_v46  ;;  %v1659_v51 = vadd.f32 %v1327_v47, %v761_v43  ;;  %v1661_v52 = vadd.f32 %v1520_v48, %v763_v44  ;;  %v782_v45 = vld [vmem:[#allocation2 + $0x180] sm:$0xff]  ;;  %v784_v46 = vld [vmem:[#allocation2 + $0x3d0] sm:$0xff] }
 0x281   : > { %v1329_v53 = vpop.f32.mrf.mxu0  ;;  %v1522_v54 = vpop.f32.mrf.mxu1 }
 0x282   : > { %1787 = vst [vmem:[#allocation2 + $0x2c8] sm:$0xff] %v1659_v51  ;;  %1789 = vst [vmem:[#allocation2 + $0x3d8] sm:$0xff] %v1661_v52  ;;  %v1660_v57 = vadd.f32 %v1329_v53, %v762_v49  ;;  %v1662_v58 = vadd.f32 %v1522_v54, %v764_v50  ;;  %v785_v51 = vld [vmem:[#allocation2 + $0x250] sm:$0xff]  ;;  %v787_v52 = vld [vmem:[#allocation2 + $0xb8] sm:$0xff] }
 0x283   : > { %v1333_v59 = vpop.f32.mrf.mxu0  ;;  %v1526_v60 = vpop.f32.mrf.mxu1 }
 0x284   : > { %1788 = vst [vmem:[#allocation2 + $0x210] sm:$0xff] %v1660_v57  ;;  %1790 = vst [vmem:[#allocation2 + $0x1e8] sm:$0xff] %v1662_v58  ;;  %v1663_v63 = vadd.f32 %v1333_v59, %v765_v55  ;;  %v1665_v0 = vadd.f32 %v1526_v60, %v767_v56  ;;  %v786_v57 = vld [vmem:[#allocation2 + $0x378] sm:$0xff] }
 0x285   : > { %v1335_v1 = vpop.f32.mrf.mxu0  ;;  %v1528_v2 = vpop.f32.mrf.mxu1  ;;  %v788_v58 = vld [vmem:[#allocation2 + $0x38] sm:$0xff] }
 0x286   : > { %1791 = vst [vmem:[#allocation2 + $0x1b0] sm:$0xff] %v1663_v63  ;;  %1793 = vst [vmem:[#allocation2 + $0x2d0] sm:$0xff] %v1665_v0  ;;  %v1664_v5 = vadd.f32 %v1335_v1, %v766_v61  ;;  %v1666_v6 = vadd.f32 %v1528_v2, %v768_v62  ;;  %v789_v63 = vld [vmem:[#allocation2 + $0x78] sm:$0xff]  ;;  %v791_v0 = vld [vmem:[#allocation2 + $0x370] sm:$0xff] }
 0x287   : > { %v1337_v7 = vpop.f32.mrf.mxu0  ;;  %v1530_v8 = vpop.f32.mrf.mxu1 }
 0x288   : > { %1792 = vst [vmem:[#allocation2 + $0x1c8] sm:$0xff] %v1664_v5  ;;  %1794 = vst [vmem:[#allocation2 + $0x1d0] sm:$0xff] %v1666_v6  ;;  %v1667_v11 = vadd.f32 %v1337_v7, %v769_v3  ;;  %v1669_v12 = vadd.f32 %v1530_v8, %v771_v4  ;;  %v790_v5 = vld [vmem:[#allocation2 + $0x308] sm:$0xff] }
 0x289   : > { %v1339_v13 = vpop.f32.mrf.mxu0  ;;  %v1532_v14 = vpop.f32.mrf.mxu1  ;;  %v792_v6 = vld [vmem:[#allocation2 + $0xc8] sm:$0xff] }
 0x28a   : > { %1795 = vst [vmem:[#allocation2 + $0x58] sm:$0xff] %v1667_v11  ;;  %1797 = vst [vmem:[#allocation2 + $0x198] sm:$0xff] %v1669_v12  ;;  %v1668_v17 = vadd.f32 %v1339_v13, %v770_v9  ;;  %v1670_v18 = vadd.f32 %v1532_v14, %v772_v10  ;;  %v793_v11 = vld [vmem:[#allocation2 + $0x278] sm:$0xff]  ;;  %v795_v12 = vld [vmem:[#allocation2 + $0x228] sm:$0xff] }
 0x28b   : > { %v1343_v19 = vpop.f32.mrf.mxu0  ;;  %v1536_v20 = vpop.f32.mrf.mxu1 }
 0x28c   : > { %1796 = vst [vmem:[#allocation2 + $0x120] sm:$0xff] %v1668_v17  ;;  %1798 = vst [vmem:[#allocation2 + $0x2e8] sm:$0xff] %v1670_v18  ;;  %v1671_v23 = vadd.f32 %v1343_v19, %v773_v15  ;;  %v1673_v24 = vadd.f32 %v1536_v20, %v775_v16  ;;  %v794_v17 = vld [vmem:[#allocation2 + $0x360] sm:$0xff]  ;;  %v796_v18 = vld [vmem:[#allocation2 + $0x348] sm:$0xff] }
 0x28d   : > { %v1345_v25 = vpop.f32.mrf.mxu0  ;;  %v1538_v26 = vpop.f32.mrf.mxu1 }
 0x28e   : > { %1799 = vst [vmem:[#allocation2 + $0x1f8] sm:$0xff] %v1671_v23  ;;  %1801 = vst [vmem:[#allocation2 + $0x398] sm:$0xff] %v1673_v24  ;;  %v1672_v29 = vadd.f32 %v1345_v25, %v774_v21  ;;  %v1674_v30 = vadd.f32 %v1538_v26, %v776_v22  ;;  %v797_v23 = vld [vmem:[#allocation2 + $0x148] sm:$0xff] }
 0x28f   : > { %v1347_v31 = vpop.f32.mrf.mxu0  ;;  %v1540_v32 = vpop.f32.mrf.mxu1  ;;  %v799_v24 = vld [vmem:[#allocation2 + $0x68] sm:$0xff] }
 0x290   : > { %1800 = vst [vmem:[#allocation2 + $0x238] sm:$0xff] %v1672_v29  ;;  %1802 = vst [vmem:[#allocation2 + $0x390] sm:$0xff] %v1674_v30  ;;  %v1675_v35 = vadd.f32 %v1347_v31, %v777_v27  ;;  %v1677_v36 = vadd.f32 %v1540_v32, %v779_v28  ;;  %v798_v29 = vld [vmem:[#allocation2 + $0xf8] sm:$0xff]  ;;  %v800_v30 = vld [vmem:[#allocation2] sm:$0xff] }
 0x291   : > { %v1349_v37 = vpop.f32.mrf.mxu0  ;;  %v1542_v38 = vpop.f32.mrf.mxu1 }
 0x292   : > { %1803 = vst [vmem:[#allocation2 + $0x1a0] sm:$0xff] %v1675_v35  ;;  %1805 = vst [vmem:[#allocation2 + $0x258] sm:$0xff] %v1677_v36  ;;  %v1676_v41 = vadd.f32 %v1349_v37, %v778_v33  ;;  %v1678_v42 = vadd.f32 %v1542_v38, %v780_v34  ;;  %v801_v35 = vld [vmem:[#allocation2 + $0x298] sm:$0xff]  ;;  %v803_v36 = vld [vmem:[#allocation2 + $0x310] sm:$0xff] }
 0x293   : > { %v1353_v43 = vpop.f32.mrf.mxu0  ;;  %v1546_v44 = vpop.f32.mrf.mxu1 }
 0x294   : > { %1804 = vst [vmem:[#allocation2 + $0xa8] sm:$0xff] %v1676_v41  ;;  %1806 = vst [vmem:[#allocation2 + $0x2d8] sm:$0xff] %v1678_v42  ;;  %v1679_v47 = vadd.f32 %v1353_v43, %v781_v39  ;;  %v1681_v48 = vadd.f32 %v1546_v44, %v783_v40  ;;  %v802_v41 = vld [vmem:[#allocation2 + $0x270] sm:$0xff] }
 0x295   : > { %v1355_v49 = vpop.f32.mrf.mxu0  ;;  %v1548_v50 = vpop.f32.mrf.mxu1  ;;  %v804_v42 = vld [vmem:[#allocation2 + $0x190] sm:$0xff] }
 0x296   : > { %1807 = vst [vmem:[#allocation2 + $0xf0] sm:$0xff] %v1679_v47  ;;  %1809 = vst [vmem:[#allocation2 + $0x170] sm:$0xff] %v1681_v48  ;;  %v1680_v53 = vadd.f32 %v1355_v49, %v782_v45  ;;  %v1682_v54 = vadd.f32 %v1548_v50, %v784_v46 }
 0x297   : > { %v1357_v55 = vpop.f32.mrf.mxu0  ;;  %v1550_v56 = vpop.f32.mrf.mxu1 }
 0x298   : > { %1808 = vst [vmem:[#allocation2 + $0x180] sm:$0xff] %v1680_v53  ;;  %1810 = vst [vmem:[#allocation2 + $0x3d0] sm:$0xff] %v1682_v54  ;;  %v1683_v59 = vadd.f32 %v1357_v55, %v785_v51  ;;  %v1685_v60 = vadd.f32 %v1550_v56, %v787_v52 }
 0x299   : > { %v1359_v61 = vpop.f32.mrf.mxu0  ;;  %v1552_v62 = vpop.f32.mrf.mxu1 }
 0x29a   : > { %1811 = vst [vmem:[#allocation2 + $0x250] sm:$0xff] %v1683_v59  ;;  %1813 = vst [vmem:[#allocation2 + $0xb8] sm:$0xff] %v1685_v60  ;;  %v1684_v1 = vadd.f32 %v1359_v61, %v786_v57  ;;  %v1686_v2 = vadd.f32 %v1552_v62, %v788_v58 }
 0x29b   : > { %v1363_v3 = vpop.f32.mrf.mxu0  ;;  %v1556_v4 = vpop.f32.mrf.mxu1 }
 0x29c   : > { %1812 = vst [vmem:[#allocation2 + $0x378] sm:$0xff] %v1684_v1  ;;  %1814 = vst [vmem:[#allocation2 + $0x38] sm:$0xff] %v1686_v2  ;;  %v1687_v7 = vadd.f32 %v1363_v3, %v789_v63  ;;  %v1689_v8 = vadd.f32 %v1556_v4, %v791_v0 }
 0x29d   : > { %v1365_v9 = vpop.f32.mrf.mxu0  ;;  %v1558_v10 = vpop.f32.mrf.mxu1 }
 0x29e   : > { %1815 = vst [vmem:[#allocation2 + $0x78] sm:$0xff] %v1687_v7  ;;  %1817 = vst [vmem:[#allocation2 + $0x370] sm:$0xff] %v1689_v8  ;;  %v1688_v13 = vadd.f32 %v1365_v9, %v790_v5  ;;  %v1690_v14 = vadd.f32 %v1558_v10, %v792_v6 }
 0x29f   : > { %v1367_v15 = vpop.f32.mrf.mxu0  ;;  %v1560_v16 = vpop.f32.mrf.mxu1 }
 0x2a0   : > { %1816 = vst [vmem:[#allocation2 + $0x308] sm:$0xff] %v1688_v13  ;;  %1818 = vst [vmem:[#allocation2 + $0xc8] sm:$0xff] %v1690_v14  ;;  %v1691_v19 = vadd.f32 %v1367_v15, %v793_v11  ;;  %v1693_v20 = vadd.f32 %v1560_v16, %v795_v12 }
 0x2a1   : > { %v1369_v21 = vpop.f32.mrf.mxu0  ;;  %v1562_v22 = vpop.f32.mrf.mxu1 }
 0x2a2   : > { %1819 = vst [vmem:[#allocation2 + $0x278] sm:$0xff] %v1691_v19  ;;  %1821 = vst [vmem:[#allocation2 + $0x228] sm:$0xff] %v1693_v20  ;;  %v1692_v25 = vadd.f32 %v1369_v21, %v794_v17  ;;  %v1694_v26 = vadd.f32 %v1562_v22, %v796_v18 }
 0x2a3   : > { %v1373_v27 = vpop.f32.mrf.mxu0  ;;  %v1566_v28 = vpop.f32.mrf.mxu1 }
 0x2a4   : > { %1820 = vst [vmem:[#allocation2 + $0x360] sm:$0xff] %v1692_v25  ;;  %1822 = vst [vmem:[#allocation2 + $0x348] sm:$0xff] %v1694_v26  ;;  %v1695_v31 = vadd.f32 %v1373_v27, %v797_v23  ;;  %v1697_v32 = vadd.f32 %v1566_v28, %v799_v24 }
 0x2a5   : > { %v1375_v33 = vpop.f32.mrf.mxu0  ;;  %v1568_v34 = vpop.f32.mrf.mxu1 }
 0x2a6   : > { %1823 = vst [vmem:[#allocation2 + $0x148] sm:$0xff] %v1695_v31  ;;  %1825 = vst [vmem:[#allocation2 + $0x68] sm:$0xff] %v1697_v32  ;;  %v1696_v37 = vadd.f32 %v1375_v33, %v798_v29  ;;  %v1698_v38 = vadd.f32 %v1568_v34, %v800_v30 }
 0x2a7   : > { %v1377_v39 = vpop.f32.mrf.mxu0  ;;  %v1570_v40 = vpop.f32.mrf.mxu1 }
 0x2a8   : > { %1824 = vst [vmem:[#allocation2 + $0xf8] sm:$0xff] %v1696_v37  ;;  %1826 = vst [vmem:[#allocation2] sm:$0xff] %v1698_v38  ;;  %v1699_v43 = vadd.f32 %v1377_v39, %v801_v35  ;;  %v1701_v44 = vadd.f32 %v1570_v40, %v803_v36  ;;  %1834 = sbr.rel (%p8992_p7) target bundleno = 2251 (0x8cb), region = 92 }
 0x2a9   : > { %v1379_v45 = vpop.f32.mrf.mxu0  ;;  %v1572_v46 = vpop.f32.mrf.mxu1 }
 0x2aa   : > { %1827 = vst [vmem:[#allocation2 + $0x298] sm:$0xff] %v1699_v43  ;;  %1829 = vst [vmem:[#allocation2 + $0x310] sm:$0xff] %v1701_v44  ;;  %v1700_v47 = vadd.f32 %v1379_v45, %v802_v41  ;;  %v1702_v48 = vadd.f32 %v1572_v46, %v804_v42 }
 0x2ac   : > { %1828 = vst [vmem:[#allocation2 + $0x270] sm:$0xff] %v1700_v47  ;;  %1830 = vst [vmem:[#allocation2 + $0x190] sm:$0xff] %v1702_v48 }
 0x2ad   : > { %v9778_v49 = vld [vmem:[#allocation9 + $0xe4] ss:$16 sps:$4 sm:$0xff]   ;;  %v9780_v50 = vld [vmem:[#allocation9 + $0xe0] ss:$16 sps:$4 sm:$0xff]   ;;  %v1900_v62 = vld [vmem:[%s11153_s27 + $0x208] sm:$0xff] }
 0x2ae   : > { %9452 = vmatprep.subr.bf16.mxu1 %v9778_v49  ;;  %v9781_v51 = vld [vmem:[#allocation9 + $0xc4] ss:$16 sps:$4 sm:$0xff]   ;;  %3073 = vmatprep.subr.bf16.mxu0 %v9778_v49  ;;  %v9783_v52 = vld [vmem:[#allocation9 + $0xc0] ss:$16 sps:$4 sm:$0xff]   ;;  %v1904_v63 = vld [vmem:[%s11153_s27 + $0x228] sm:$0xff] }
 0x2af   : > { %9468 = vmatpush1.bf16.msra.mxu1 %v9780_v50  ;;  %3074 = vmatpush1.bf16.msra.mxu0 %v9780_v50  ;;  %v9784_v53 = vld [vmem:[#allocation9 + $0xa4] ss:$16 sps:$4 sm:$0xff]   ;;  %v9786_v54 = vld [vmem:[#allocation9 + $0xa0] ss:$16 sps:$4 sm:$0xff]   ;;  %v1908_v27 = vld [vmem:[%s11153_s27 + $0x248] sm:$0xff] }
 0x2b0   : > { %9453 = vmatprep.subr.bf16.mxu1 %v9781_v51  ;;  %3075 = vmatprep.subr.bf16.mxu0 %v9781_v51  ;;  %v9787_v55 = vld [vmem:[#allocation9 + $0x84] ss:$16 sps:$4 sm:$0xff]   ;;  %v9789_v56 = vld [vmem:[#allocation9 + $0x80] ss:$16 sps:$4 sm:$0xff]   ;;  %v1912_v28 = vld [vmem:[%s11153_s27 + $0x268] sm:$0xff] }
 0x2b1   : > { %v9790_v57 = vld [vmem:[#allocation9 + $0x64] ss:$16 sps:$4 sm:$0xff]   ;;  %v9792_v58 = vld [vmem:[#allocation9 + $0x60] ss:$16 sps:$4 sm:$0xff]   ;;  %v2035_v40 = vld [vmem:[#allocation2 + $0x328] sm:$0xff] }
 0x2b2   : > { %v9793_v59 = vld [vmem:[#allocation9 + $0x44] ss:$16 sps:$4 sm:$0xff]   ;;  %v9795_v60 = vld [vmem:[#allocation9 + $0x40] ss:$16 sps:$4 sm:$0xff]   ;;  %v2039_v41 = vld [vmem:[#allocation2 + $0x248] sm:$0xff] }
 0x2b3   : > { %9469 = vmatpush1.bf16.msra.mxu1 %v9783_v52  ;;  %3076 = vmatpush1.bf16.msra.mxu0 %v9783_v52  ;;  %v9796_v61 = vld [vmem:[#allocation9 + $0x24] ss:$16 sps:$4 sm:$0xff]   ;;  %v9798_v2 = vld [vmem:[#allocation9 + $0x20] ss:$16 sps:$4 sm:$0xff]   ;;  %v1916_v44 = vld [vmem:[%s11153_s27 + $0x288] sm:$0xff] }
 0x2b4   : > { %9454 = vmatprep.subr.bf16.mxu1 %v9784_v53  ;;  %3077 = vmatprep.subr.bf16.mxu0 %v9784_v53  ;;  %v2028_v0 = vld [vmem:[#allocation2 + $0x200] sm:$0xff]  ;;  %v2027_v25 = vld [vmem:[#allocation2 + $0x130] sm:$0xff]  ;;  %v1920_v45 = vld [vmem:[%s11153_s27 + $0x2a8] sm:$0xff] }
 0x2b5   : > { %v2032_v1 = vld [vmem:[#allocation2 + $0x300] sm:$0xff]  ;;  %v2156_v3 = vadd.f32 %v2028_v0, %v1900_v62  ;;  %v2031_v26 = vld [vmem:[#allocation2 + $0x70] sm:$0xff]  ;;  %v2044_v47 = vld [vmem:[#allocation2 + $0x3a8] sm:$0xff] }
 0x2b6   : > { %v2160_v4 = vadd.f32 %v2032_v1, %v1904_v63  ;;  %v9799_v5 = vld [vmem:[#allocation9 + $0x4] ss:$16 sps:$4 sm:$0xff]   ;;  %v9801_v7 = vld [vmem:[#allocation9] ss:$16 sps:$4 sm:$0xff]   ;;  %v1836_v49 = vld [vmem:[%s11153_s27 + $0x8] sm:$0xff] }
 0x2b7   : > { %9470 = vmatpush1.bf16.msra.mxu1 %v9786_v54  ;;  %3078 = vmatpush1.bf16.msra.mxu0 %v9786_v54  ;;  %v9802_v8 = vld [vmem:[#allocation9 + $0x1e4] ss:$16 sps:$4 sm:$0xff]   ;;  %v9804_v9 = vld [vmem:[#allocation9 + $0x1e0] ss:$16 sps:$4 sm:$0xff]   ;;  %v1840_v50 = vld [vmem:[%s11153_s27 + $0x28] sm:$0xff] }
 0x2b8   : > { %9455 = vmatprep.subr.bf16.mxu1 %v9787_v55  ;;  %3079 = vmatprep.subr.bf16.mxu0 %v9787_v55  ;;  %v11386_v6 = vpack.c.bf16 %v2160_v4, %v2156_v3  ;;  %v9805_v10 = vld [vmem:[#allocation9 + $0x1c4] ss:$16 sps:$4 sm:$0xff]   ;;  %v9807_v11 = vld [vmem:[#allocation9 + $0x1c0] ss:$16 sps:$4 sm:$0xff]   ;;  %v1968_v52 = vld [vmem:[#allocation2 + $0x368] sm:$0xff] }
 0x2b9   : > { %v9808_v12 = vld [vmem:[#allocation9 + $0x1a4] ss:$16 sps:$4 sm:$0xff]   ;;  %v9810_v13 = vld [vmem:[#allocation9 + $0x1a0] ss:$16 sps:$4 sm:$0xff]  }
 0x2ba   : > { %3185 = vmatprep.mubr.bf16.mxu1 %v11386_v6  ;;  %v9811_v14 = vld [vmem:[#allocation9 + $0x184] ss:$16 sps:$4 sm:$0xff]   ;;  %v9813_v15 = vld [vmem:[#allocation9 + $0x180] ss:$16 sps:$4 sm:$0xff]  }
 0x2bb   : > { %9471 = vmatpush1.bf16.msra.mxu1 %v9789_v56  ;;  %3080 = vmatpush1.bf16.msra.mxu0 %v9789_v56  ;;  %v9814_v16 = vld [vmem:[#allocation9 + $0x164] ss:$16 sps:$4 sm:$0xff]   ;;  %v9816_v17 = vld [vmem:[#allocation9 + $0x160] ss:$16 sps:$4 sm:$0xff]  }
 0x2bc   : > { %9456 = vmatprep.subr.bf16.mxu1 %v9790_v57  ;;  %3081 = vmatprep.subr.bf16.mxu0 %v9790_v57  ;;  %v9817_v18 = vld [vmem:[#allocation9 + $0x144] ss:$16 sps:$4 sm:$0xff]   ;;  %v9819_v19 = vld [vmem:[#allocation9 + $0x140] ss:$16 sps:$4 sm:$0xff]  }
 0x2bd   : > { %v9820_v20 = vld [vmem:[#allocation9 + $0x124] ss:$16 sps:$4 sm:$0xff]   ;;  %v9822_v21 = vld [vmem:[#allocation9 + $0x120] ss:$16 sps:$4 sm:$0xff]  }
 0x2be   : > { %v1899_v22 = vld [vmem:[%s11153_s27 + $0x200] sm:$0xff]  ;;  %v2048_v48 = vld [vmem:[#allocation2 + $0x210] sm:$0xff] }
 0x2bf   : > { %9472 = vmatpush1.bf16.msra.mxu1 %v9792_v58  ;;  %3082 = vmatpush1.bf16.msra.mxu0 %v9792_v58  ;;  %v9823_v23 = vld [vmem:[#allocation9 + $0x104] ss:$16 sps:$4 sm:$0xff]   ;;  %v2155_v31 = vadd.f32 %v2027_v25, %v1899_v22  ;;  %v9825_v33 = vld [vmem:[#allocation9 + $0x100] ss:$16 sps:$4 sm:$0xff]   ;;  %v2172_v58 = vadd.f32 %v2044_v47, %v1916_v44  ;;  %v2176_v63 = vadd.f32 %v2048_v48, %v1920_v45  ;;  %v1852_v44 = vld [vmem:[%s11153_s27 + $0x88] sm:$0xff] }
 0x2c0   : > { %9457 = vmatprep.subr.bf16.mxu1 %v9793_v59  ;;  %3083 = vmatprep.subr.bf16.mxu0 %v9793_v59  ;;  %v1903_v24 = vld [vmem:[%s11153_s27 + $0x220] sm:$0xff]  ;;  %v1964_v51 = vld [vmem:[#allocation2 + $0x3b0] sm:$0xff]  ;;  %v2096_v59 = vadd.f32 %v1968_v52, %v1840_v50  ;;  %v1856_v45 = vld [vmem:[%s11153_s27 + $0xa8] sm:$0xff] }
 0x2c1   : > { %v2036_v29 = vld [vmem:[#allocation2 + $0x260] sm:$0xff]  ;;  %v2159_v32 = vadd.f32 %v2031_v26, %v1903_v24  ;;  %v2092_v53 = vadd.f32 %v1964_v51, %v1836_v49  ;;  %v1932_v49 = vld [vmem:[%s11153_s27 + $0x308] sm:$0xff]  ;;  %v2060_v51 = vld [vmem:[#allocation2 + $0x238] sm:$0xff] }
 0x2c2   : > { %v2040_v30 = vld [vmem:[#allocation2 + $0x40] sm:$0xff]  ;;  %v2164_v34 = vadd.f32 %v2036_v29, %v1908_v27  ;;  %v1936_v50 = vld [vmem:[%s11153_s27 + $0x328] sm:$0xff] }
 0x2c3   : > { %9473 = vmatpush1.bf16.msra.mxu1 %v9795_v60  ;;  %3084 = vmatpush1.bf16.msra.mxu0 %v9795_v60  ;;  %v2168_v35 = vadd.f32 %v2040_v30, %v1912_v28  ;;  %v9828_v36 = vld [vmem:[#allocation9 + $0x2e4] ss:$16 sps:$4 sm:$0xff]   ;;  %v9826_v37 = vld [vmem:[#allocation9 + $0x2e0] ss:$16 sps:$4 sm:$0xff]   ;;  %v11395_v42 = vpack.c.bf16 %v2159_v32, %v2155_v31  ;;  %v11407_v3 = vpack.c.bf16 %v2096_v59, %v2092_v53  ;;  %v1980_v52 = vld [vmem:[#allocation2 + $0x388] sm:$0xff] }
 0x2c4   : > { %9458 = vmatprep.subr.bf16.mxu1 %v9796_v61  ;;  %3085 = vmatprep.subr.bf16.mxu0 %v9796_v61  ;;  %v1907_v38 = vld [vmem:[%s11153_s27 + $0x240] sm:$0xff]  ;;  %v1963_v60 = vld [vmem:[#allocation2 + $0x2b0] sm:$0xff]  ;;  %v1984_v53 = vld [vmem:[#allocation2 + $0x1a8] sm:$0xff] }
 0x2c5   : > { %v1911_v39 = vld [vmem:[%s11153_s27 + $0x260] sm:$0xff]  ;;  %v11399_v46 = vpack.c.bf16 %v2168_v35, %v2164_v34  ;;  %v2163_v56 = vadd.f32 %v2035_v40, %v1907_v38  ;;  %v1967_v61 = vld [vmem:[#allocation2 + $0x50] sm:$0xff]  ;;  %3105 = vmatprep.mubr.bf16.mxu0 %v11407_v3 }
 0x2c6   : > { %v9831_v43 = vld [vmem:[#allocation9 + $0x2c4] ss:$16 sps:$4 sm:$0xff]   ;;  %v2167_v57 = vadd.f32 %v2039_v41, %v1911_v39  ;;  %v9829_v62 = vld [vmem:[#allocation9 + $0x2c0] ss:$16 sps:$4 sm:$0xff]  }
 0x2c7   : > { %9474 = vmatpush1.bf16.msra.mxu1 %v9798_v2  ;;  %3086 = vmatpush1.bf16.msra.mxu0 %v9798_v2  ;;  %v1835_v54 = vld [vmem:[%s11153_s27] sm:$0xff]  ;;  %v2051_v41 = vld [vmem:[#allocation2 + $0x1b0] sm:$0xff] }
 0x2c8   : > { %9459 = vmatprep.subr.bf16.mxu1 %v9799_v5  ;;  %3087 = vmatprep.subr.bf16.mxu0 %v9799_v5  ;;  %v1839_v55 = vld [vmem:[%s11153_s27 + $0x20] sm:$0xff]  ;;  %v2091_v0 = vadd.f32 %v1963_v60, %v1835_v54 }
 0x2c9   : > { %v2095_v1 = vadd.f32 %v1967_v61, %v1839_v55  ;;  %v9834_v2 = vld [vmem:[#allocation9 + $0x2a4] ss:$16 sps:$4 sm:$0xff]   ;;  %v9832_v4 = vld [vmem:[#allocation9 + $0x2a0] ss:$16 sps:$4 sm:$0xff]   ;;  %v2064_v61 = vld [vmem:[#allocation2 + $0xa8] sm:$0xff] }
 0x2ca   : > { %v1915_v5 = vld [vmem:[%s11153_s27 + $0x280] sm:$0xff] }
 0x2cb   : > { %9475 = vmatpush1.bf16.msra.mxu1 %v9801_v7  ;;  %3088 = vmatpush1.bf16.msra.mxu0 %v9801_v7  ;;  %v1919_v7 = vld [vmem:[%s11153_s27 + $0x2a0] sm:$0xff] }
 0x2cc   : > { %9460 = vmatprep.subr.bf16.mxu1 %v9802_v8  ;;  %3089 = vmatprep.subr.bf16.mxu0 %v9802_v8  ;;  %v2043_v8 = vld [vmem:[#allocation2 + $0x288] sm:$0xff]  ;;  %v1843_v24 = vld [vmem:[%s11153_s27 + $0x40] sm:$0xff] }
 0x2cd   : > { %v1847_v25 = vld [vmem:[%s11153_s27 + $0x60] sm:$0xff]  ;;  %v2171_v29 = vadd.f32 %v2043_v8, %v1915_v5  ;;  %v9880_v5 = vld [vmem:[#allocation9 + $0xe8] ss:$16 sps:$4 sm:$0xff]  }
 0x2ce   : > { %v1971_v26 = vld [vmem:[#allocation2 + $0x380] sm:$0xff] }
 0x2cf   : > { %9476 = vmatpush2.bf16.msra.mxu1 %v9804_v9  ;;  %3090 = vmatpush2.bf16.msra.mxu0 %v9804_v9  ;;  %v2047_v9 = vld [vmem:[#allocation2 + $0x2c8] sm:$0xff]  ;;  %v1975_v27 = vld [vmem:[#allocation2 + $0x320] sm:$0xff]  ;;  %v2099_v28 = vadd.f32 %v1971_v26, %v1843_v24 }
 0x2d0   : > { %9461 = vmatprep.subr.bf16.mxu1 %v9805_v10  ;;  %3091 = vmatprep.subr.bf16.mxu0 %v9805_v10  ;;  %v11411_v10 = vpack.c.bf16 %v2095_v1, %v2091_v0  ;;  %v2175_v30 = vadd.f32 %v2047_v9, %v1919_v7  ;;  %v2103_v32 = vadd.f32 %v1975_v27, %v1847_v25  ;;  %v9838_v38 = vld [vmem:[#allocation9 + $0x260] ss:$16 sps:$4 sm:$0xff]   ;;  %v9843_v48 = vld [vmem:[#allocation9 + $0x244] ss:$16 sps:$4 sm:$0xff]   ;;  %v9882_v1 = vld [vmem:[#allocation9 + $0xec] ss:$16 sps:$4 sm:$0xff]  }
 0x2d1   : > { %v1923_v39 = vld [vmem:[%s11153_s27 + $0x2c0] sm:$0xff]  ;;  %v2188_v9 = vadd.f32 %v2060_v51, %v1932_v49  ;;  %v2072_v25 = vld [vmem:[#allocation2 + $0x378] sm:$0xff] }
 0x2d2   : > { %v1927_v40 = vld [vmem:[%s11153_s27 + $0x2e0] sm:$0xff]  ;;  %v11436_v47 = vpack.c.bf16 %v2175_v30, %v2171_v29  ;;  %v9886_v26 = vld [vmem:[#allocation9 + $0xc8] ss:$16 sps:$4 sm:$0xff]   ;;  %v9888_v27 = vld [vmem:[#allocation9 + $0xcc] ss:$16 sps:$4 sm:$0xff]  }
 0x2d3   : > { %9477 = vmatpush2.bf16.msra.mxu1 %v9807_v11  ;;  %3092 = vmatpush2.bf16.msra.mxu0 %v9807_v11  ;;  %v11413_v11 = vpack.c.bf16 %v2167_v57, %v2163_v56  ;;  %v1851_v54 = vld [vmem:[%s11153_s27 + $0x80] sm:$0xff]  ;;  %v2108_v56 = vadd.f32 %v1980_v52, %v1852_v44  ;;  %v2112_v57 = vadd.f32 %v1984_v53, %v1856_v45  ;;  %v1864_v30 = vld [vmem:[%s11153_s27 + $0xe8] sm:$0xff] }
 0x2d4   : > { %9462 = vmatprep.subr.bf16.mxu1 %v9808_v12  ;;  %3093 = vmatprep.subr.bf16.mxu0 %v9808_v12  ;;  %v9837_v12 = vld [vmem:[#allocation9 + $0x284] ss:$16 sps:$4 sm:$0xff]   ;;  %v9841_v7 = vld [vmem:[#allocation9 + $0x240] ss:$16 sps:$4 sm:$0xff]   ;;  %v9889_v49 = vld [vmem:[#allocation9 + $0xa8] ss:$16 sps:$4 sm:$0xff]  }
 0x2d5   : > { %v1979_v59 = vld [vmem:[#allocation2 + $0x2e0] sm:$0xff]  ;;  %v11445_v0 = vpack.c.bf16 %v2112_v57, %v2108_v56  ;;  %v2067_v57 = vld [vmem:[#allocation2 + $0xf0] sm:$0xff] }
 0x2d6   : > { %v1983_v60 = vld [vmem:[#allocation2 + $0x80] sm:$0xff] }
 0x2d7   : > { %9478 = vmatpush2.bf16.msra.mxu1 %v9810_v13  ;;  %3094 = vmatpush2.bf16.msra.mxu0 %v9810_v13  ;;  %v1924_v13 = vld [vmem:[%s11153_s27 + $0x2c8] sm:$0xff]  ;;  %v9846_v8 = vld [vmem:[#allocation9 + $0x224] ss:$16 sps:$4 sm:$0xff]   ;;  %v9847_v51 = vld [vmem:[#allocation9 + $0x200] ss:$16 sps:$4 sm:$0xff]  }
 0x2d8   : > { %9463 = vmatprep.subr.bf16.mxu1 %v9811_v14  ;;  %3095 = vmatprep.subr.bf16.mxu0 %v9811_v14  ;;  %v1928_v14 = vld [vmem:[%s11153_s27 + $0x2e8] sm:$0xff]  ;;  %v2068_v24 = vld [vmem:[#allocation2 + $0x180] sm:$0xff] }
 0x2d9   : > { %v1939_v56 = vld [vmem:[%s11153_s27 + $0x340] sm:$0xff] }
 0x2db   : > { %9479 = vmatpush2.bf16.msra.mxu1 %v9813_v15  ;;  %3096 = vmatpush2.bf16.msra.mxu0 %v9813_v15  ;;  %v2052_v15 = vld [vmem:[#allocation2 + $0x1c8] sm:$0xff] }
 0x2dc   : > { %9464 = vmatprep.subr.bf16.mxu1 %v9814_v16  ;;  %3097 = vmatprep.subr.bf16.mxu0 %v9814_v16  ;;  %v2056_v16 = vld [vmem:[#allocation2 + $0x120] sm:$0xff]  ;;  %v2180_v34 = vadd.f32 %v2052_v15, %v1924_v13  ;;  %v2059_v15 = vld [vmem:[#allocation2 + $0x1f8] sm:$0xff] }
 0x2dd   : > { %v2184_v35 = vadd.f32 %v2056_v16, %v1928_v14  ;;  %v1931_v14 = vld [vmem:[%s11153_s27 + $0x300] sm:$0xff] }
 0x2de   : > { %v9844_v16 = vld [vmem:[#allocation9 + $0x220] ss:$16 sps:$4 sm:$0xff]  }
 0x2df   : > { %9480 = vmatpush2.bf16.msra.mxu1 %v9816_v17  ;;  %3098 = vmatpush2.bf16.msra.mxu0 %v9816_v17  ;;  %v1844_v17 = vld [vmem:[%s11153_s27 + $0x48] sm:$0xff]  ;;  %v11441_v55 = vpack.c.bf16 %v2184_v35, %v2180_v34 }
 0x2e0   : > { %9465 = vmatprep.subr.bf16.mxu1 %v9817_v18  ;;  %3099 = vmatprep.subr.bf16.mxu0 %v9817_v18  ;;  %v11419_v18 = vpack.c.bf16 %v2176_v63, %v2172_v58  ;;  %v1855_v58 = vld [vmem:[%s11153_s27 + $0xa0] sm:$0xff] }
 0x2e1   : > { %v2111_v63 = vadd.f32 %v1983_v60, %v1855_v58  ;;  %v1943_v60 = vld [vmem:[%s11153_s27 + $0x360] sm:$0xff] }
 0x2e3   : > { %9481 = vmatpush2.bf16.msra.mxu1 %v9819_v19  ;;  %3100 = vmatpush2.bf16.msra.mxu0 %v9819_v19  ;;  %v1848_v19 = vld [vmem:[%s11153_s27 + $0x68] sm:$0xff] }
 0x2e4   : > { %9466 = vmatprep.subr.bf16.mxu1 %v9820_v20  ;;  %3101 = vmatprep.subr.bf16.mxu0 %v9820_v20  ;;  %v1972_v20 = vld [vmem:[#allocation2 + $0x110] sm:$0xff] }
 0x2e5   : > { %v2100_v22 = vadd.f32 %v1972_v20, %v1844_v17  ;;  %v1935_v17 = vld [vmem:[%s11153_s27 + $0x320] sm:$0xff] }
 0x2e7   : > { %9482 = vmatpush2.bf16.msra.mxu1 %v9822_v21  ;;  %3102 = vmatpush2.bf16.msra.mxu0 %v9822_v21  ;;  %v1976_v21 = vld [vmem:[#allocation2 + $0x150] sm:$0xff] }
 0x2e8   : > { %9467 = vmatprep.subr.bf16.mxu1 %v9823_v23  ;;  %3103 = vmatprep.subr.bf16.mxu0 %v9823_v23  ;;  %v2104_v23 = vadd.f32 %v1976_v21, %v1848_v19  ;;  %v2063_v19 = vld [vmem:[#allocation2 + $0x1a0] sm:$0xff] }
 0x2e9   : > { %v9849_v21 = vld [vmem:[#allocation9 + $0x204] ss:$16 sps:$4 sm:$0xff]   ;;  %v2191_v44 = vadd.f32 %v2063_v19, %v1935_v17  ;;  %v2195_v17 = vadd.f32 %v2067_v57, %v1939_v56  ;;  %v2000_v19 = vld [vmem:[#allocation2 + $0x3f8] sm:$0xff] }
 0x2ea   : > { %v11426_v31 = vpack.c.bf16 %v2104_v23, %v2100_v22  ;;  %v1940_v22 = vld [vmem:[%s11153_s27 + $0x348] sm:$0xff]  ;;  %v2088_v56 = vld [vmem:[#allocation2 + $0x270] sm:$0xff] }
 0x2eb   : > { %9483 = vmatpush2.bf16.msra.mxu1 %v9825_v33  ;;  %3104 = vmatpush2.bf16.msra.mxu0 %v9825_v33  ;;  %v9835_v33 = vld [vmem:[#allocation9 + $0x280] ss:$16 sps:$4 sm:$0xff]   ;;  %v1944_v23 = vld [vmem:[%s11153_s27 + $0x368] sm:$0xff]  ;;  %v2196_v52 = vadd.f32 %v2068_v24, %v1940_v22 }
 0x2ec   : > { %3266 = vmatprep.subr.bf16.mxu1 %v9828_v36  ;;  %v9840_v36 = vld [vmem:[#allocation9 + $0x264] ss:$16 sps:$4 sm:$0xff]   ;;  %3459 = vmatprep.subr.bf16.mxu0 %v9882_v1  ;;  %v2200_v53 = vadd.f32 %v2072_v25, %v1944_v23  ;;  %v9904_v57 = vld [vmem:[#allocation9 + $0x48] ss:$16 sps:$4 sm:$0xff]  }
 0x2ed   : > { %v9855_v1 = vld [vmem:[#allocation9 + $0x3c4] ss:$16 sps:$4 sm:$0xff]  }
 0x2ee   : > { %3186 = vmatmul.mubr.bf16.vlgmr.msra.gmra.mxu1 %v11395_v42  ;;  %3106 = vmatmul.mubr.bf16.vlgmr.msra.gmra.mxu0 %v11411_v10  ;;  %v1867_v22 = vld [vmem:[%s11153_s27 + $0x100] sm:$0xff] }
 0x2ef   : > { %3267 = vmatpush1.bf16.msra.mxu1 %v9826_v37  ;;  %3195 = vmatprep.mubr.bf16.mxu1 %v11399_v46  ;;  %v11430_v37 = vpack.c.bf16 %v2103_v32, %v2099_v28  ;;  %v1860_v28 = vld [vmem:[%s11153_s27 + $0xc8] sm:$0xff]  ;;  %v1988_v32 = vld [vmem:[#allocation2 + $0x2f8] sm:$0xff]  ;;  %v1871_v23 = vld [vmem:[%s11153_s27 + $0x120] sm:$0xff] }
 0x2f0   : > { %3268 = vmatprep.subr.bf16.mxu1 %v9831_v43  ;;  %3115 = vmatprep.mubr.bf16.mxu0 %v11426_v31  ;;  %v2055_v43 = vld [vmem:[#allocation2 + $0x58] sm:$0xff]  ;;  %v2116_v34 = vadd.f32 %v1988_v32, %v1860_v28 }
 0x2f1   : > { %3460 = vmatpush1.bf16.msra.mxu0 %v9880_v5  ;;  %v2080_v5 = vld [vmem:[#allocation2 + $0x360] sm:$0xff]  ;;  %v1999_v28 = vld [vmem:[#allocation2 + $0x218] sm:$0xff] }
 0x2f2   : > { %3461 = vmatprep.subr.bf16.mxu0 %v9888_v27  ;;  %v1995_v27 = vld [vmem:[#allocation2 + $0x100] sm:$0xff] }
 0x2f3   : > { %3269 = vmatpush1.bf16.msra.mxu1 %v9829_v62  ;;  %v2107_v62 = vadd.f32 %v1979_v59, %v1851_v54  ;;  %v9852_v54 = vld [vmem:[#allocation9 + $0x3e4] ss:$16 sps:$4 sm:$0xff]   ;;  %v9850_v59 = vld [vmem:[#allocation9 + $0x3e0] ss:$16 sps:$4 sm:$0xff]   ;;  %v2123_v32 = vadd.f32 %v1995_v27, %v1867_v22 }
 0x2f4   : > { %3270 = vmatprep.subr.bf16.mxu1 %v9834_v2  ;;  %v2179_v2 = vadd.f32 %v2051_v41, %v1923_v39  ;;  %v1987_v39 = vld [vmem:[#allocation2 + $0x3e8] sm:$0xff]  ;;  %v1991_v41 = vld [vmem:[#allocation2 + $0x138] sm:$0xff] }
 0x2f5   : > { %v11449_v13 = vpack.c.bf16 %v2111_v63, %v2107_v62  ;;  %3462 = vmatpush1.bf16.msra.mxu0 %v9886_v26  ;;  %v1948_v62 = vld [vmem:[%s11153_s27 + $0x388] sm:$0xff] }
 0x2f6   : > { %3196 = vmatmul.mubr.bf16.gmra.mxu1 %v11413_v11  ;;  %3116 = vmatmul.mubr.bf16.gmra.mxu0 %v11430_v37 }
 0x2f7   : > { %3271 = vmatpush1.bf16.msra.mxu1 %v9832_v4  ;;  %3205 = vmatprep.mubr.bf16.mxu1 %v11419_v18  ;;  %v2183_v4 = vadd.f32 %v2055_v43, %v1927_v40  ;;  %v2187_v40 = vadd.f32 %v2059_v15, %v1931_v14  ;;  %v1872_v14 = vld [vmem:[%s11153_s27 + $0x128] sm:$0xff]  ;;  %v1996_v15 = vld [vmem:[#allocation2 + $0x3c0] sm:$0xff] }
 0x2f8   : > { %3272 = vmatprep.subr.bf16.mxu1 %v9837_v12  ;;  %v2192_v12 = vadd.f32 %v2064_v61, %v1936_v50  ;;  %3125 = vmatprep.mubr.bf16.mxu0 %v11445_v0  ;;  %v9891_v50 = vld [vmem:[#allocation9 + $0xac] ss:$16 sps:$4 sm:$0xff]   ;;  %v2071_v61 = vld [vmem:[#allocation2 + $0x250] sm:$0xff]  ;;  %v2128_v26 = vadd.f32 %v2000_v19, %v1872_v14 }
 0x2f9   : > { %v11454_v20 = vpack.c.bf16 %v2183_v4, %v2179_v2  ;;  %3463 = vmatprep.subr.bf16.mxu0 %v9891_v50  ;;  %v11475_v63 = vpack.c.bf16 %v2191_v44, %v2187_v40  ;;  %v1952_v2 = vld [vmem:[%s11153_s27 + $0x3a8] sm:$0xff]  ;;  %v2199_v24 = vadd.f32 %v2071_v61, %v1943_v60  ;;  %v1947_v40 = vld [vmem:[%s11153_s27 + $0x380] sm:$0xff]  ;;  %v2079_v44 = vld [vmem:[#allocation2 + $0x278] sm:$0xff] }
 0x2fa   : > { %v11459_v29 = vpack.c.bf16 %v2192_v12, %v2188_v9  ;;  %v2076_v4 = vld [vmem:[#allocation2 + $0x308] sm:$0xff]  ;;  %3464 = vmatpush1.bf16.msra.mxu0 %v9889_v49  ;;  %v9861_v50 = vld [vmem:[#allocation9 + $0x384] ss:$16 sps:$4 sm:$0xff]  }
 0x2fb   : > { %3273 = vmatpush1.bf16.msra.mxu1 %v9835_v33  ;;  %v1992_v33 = vld [vmem:[#allocation2 + $0xc0] sm:$0xff]  ;;  %v9897_v9 = vld [vmem:[#allocation9 + $0x8c] ss:$16 sps:$4 sm:$0xff]   ;;  %v2204_v25 = vadd.f32 %v2076_v4, %v1948_v62  ;;  %v11493_v49 = vpack.c.bf16 %v2199_v24, %v2195_v17  ;;  %v2007_v19 = vld [vmem:[#allocation2 + $0xb0] sm:$0xff] }
 0x2fc   : > { %3274 = vmatprep.subr.bf16.mxu1 %v9840_v36  ;;  %v2120_v35 = vadd.f32 %v1992_v33, %v1864_v30  ;;  %v1859_v36 = vld [vmem:[%s11153_s27 + $0xc0] sm:$0xff]  ;;  %v1868_v12 = vld [vmem:[%s11153_s27 + $0x108] sm:$0xff]  ;;  %3465 = vmatprep.subr.bf16.mxu0 %v9897_v9  ;;  %v2208_v30 = vadd.f32 %v2080_v5, %v1952_v2  ;;  %v2127_v33 = vadd.f32 %v1999_v28, %v1871_v23  ;;  %v2004_v5 = vld [vmem:[#allocation2 + $0x3f0] sm:$0xff] }
 0x2fd   : > { %v2115_v43 = vadd.f32 %v1987_v39, %v1859_v36  ;;  %v9858_v36 = vld [vmem:[#allocation9 + $0x3a4] ss:$16 sps:$4 sm:$0xff]   ;;  %v9856_v39 = vld [vmem:[#allocation9 + $0x3a0] ss:$16 sps:$4 sm:$0xff]   ;;  %v9906_v60 = vld [vmem:[#allocation9 + $0x4c] ss:$16 sps:$4 sm:$0xff]  }
 0x2fe   : > { %3206 = vmatmul.mubr.bf16.gmra.mxu1 %v11436_v47  ;;  %3126 = vmatmul.mubr.bf16.gmra.mxu0 %v11449_v13  ;;  %v11466_v45 = vpack.c.bf16 %v2120_v35, %v2116_v34  ;;  %v9898_v34 = vld [vmem:[#allocation9 + $0x68] ss:$16 sps:$4 sm:$0xff]   ;;  %v9900_v35 = vld [vmem:[#allocation9 + $0x6c] ss:$16 sps:$4 sm:$0xff]   ;;  %v1875_v9 = vld [vmem:[%s11153_s27 + $0x140] sm:$0xff] }
 0x2ff   : > { %3275 = vmatpush1.bf16.msra.mxu1 %v9838_v38  ;;  %3215 = vmatprep.mubr.bf16.mxu1 %v11441_v55  ;;  %v1863_v38 = vld [vmem:[%s11153_s27 + $0xe0] sm:$0xff]  ;;  %v1876_v61 = vld [vmem:[%s11153_s27 + $0x148] sm:$0xff] }
 0x300   : > { %3276 = vmatprep.subr.bf16.mxu1 %v9843_v48  ;;  %v2119_v48 = vadd.f32 %v1991_v41, %v1863_v38  ;;  %3135 = vmatprep.mubr.bf16.mxu0 %v11466_v45  ;;  %v1951_v41 = vld [vmem:[%s11153_s27 + $0x3a0] sm:$0xff]  ;;  %v1880_v62 = vld [vmem:[%s11153_s27 + $0x168] sm:$0xff]  ;;  %v2132_v14 = vadd.f32 %v2004_v5, %v1876_v61 }
 0x301   : > { %v2207_v2 = vadd.f32 %v2079_v44, %v1951_v41  ;;  %v2003_v17 = vld [vmem:[#allocation2 + $0x2a0] sm:$0xff]  ;;  %v9909_v28 = vld [vmem:[#allocation9 + $0x2c] ss:$16 sps:$4 sm:$0xff]  }
 0x302   : > { %v11471_v58 = vpack.c.bf16 %v2119_v48, %v2115_v43  ;;  %v2075_v43 = vld [vmem:[#allocation2 + $0x78] sm:$0xff]  ;;  %v11491_v48 = vpack.c.bf16 %v2127_v33, %v2123_v32  ;;  %v2131_v22 = vadd.f32 %v2003_v17, %v1875_v9  ;;  %v9862_v24 = vld [vmem:[#allocation9 + $0x360] ss:$16 sps:$4 sm:$0xff]   ;;  %v9867_v32 = vld [vmem:[#allocation9 + $0x344] ss:$16 sps:$4 sm:$0xff]  }
 0x303   : > { %3277 = vmatpush1.bf16.msra.mxu1 %v9841_v7  ;;  %v11478_v7 = vpack.c.bf16 %v2200_v53, %v2196_v52  ;;  %v1960_v52 = vld [vmem:[%s11153_s27 + $0x3e8] sm:$0xff]  ;;  %v11498_v53 = vpack.c.bf16 %v2208_v30, %v2204_v25  ;;  %v1955_v25 = vld [vmem:[%s11153_s27 + $0x3c0] sm:$0xff]  ;;  %v1842_v41 = vld [vmem:[%s11153_s27 + $0x38] sm:$0xff] }
 0x304   : > { %3278 = vmatprep.subr.bf16.mxu1 %v9846_v8  ;;  %v9895_v8 = vld [vmem:[#allocation9 + $0x88] ss:$16 sps:$4 sm:$0xff]   ;;  %v1887_v9 = vld [vmem:[%s11153_s27 + $0x1a0] sm:$0xff] }
 0x305   : > { %3466 = vmatpush1.bf16.msra.mxu0 %v9895_v8  ;;  %v2008_v8 = vld [vmem:[#allocation2 + $0x1e0] sm:$0xff]  ;;  %v2083_v33 = vld [vmem:[#allocation2 + $0x148] sm:$0xff] }
 0x306   : > { %3216 = vmatmul.mubr.bf16.gmra.mxu1 %v11454_v20  ;;  %3136 = vmatmul.mubr.bf16.gmra.mxu0 %v11471_v58  ;;  %v1970_v44 = vld [vmem:[#allocation2 + $0x48] sm:$0xff] }
 0x307   : > { %3279 = vmatpush1.bf16.msra.mxu1 %v9844_v16  ;;  %3225 = vmatprep.mubr.bf16.mxu1 %v11459_v29  ;;  %v9853_v16 = vld [vmem:[#allocation9 + $0x3c0] ss:$16 sps:$4 sm:$0xff]   ;;  %v2098_v61 = vadd.f32 %v1970_v44, %v1842_v41 }
 0x308   : > { %3280 = vmatprep.subr.bf16.mxu1 %v9849_v21  ;;  %v2124_v21 = vadd.f32 %v1996_v15, %v1868_v12  ;;  %3467 = vmatprep.subr.bf16.mxu0 %v9900_v35  ;;  %v2216_v12 = vadd.f32 %v2088_v56, %v1960_v52  ;;  %v2136_v15 = vadd.f32 %v2008_v8, %v1880_v62  ;;  %v9913_v56 = vld [vmem:[#allocation9 + $0x8] ss:$16 sps:$4 sm:$0xff]   ;;  %v1883_v8 = vld [vmem:[%s11153_s27 + $0x180] sm:$0xff] }
 0x309   : > { %3468 = vmatpush1.bf16.msra.mxu0 %v9898_v34  ;;  %v2087_v34 = vld [vmem:[#allocation2 + $0x298] sm:$0xff]  ;;  %v1888_v62 = vld [vmem:[%s11153_s27 + $0x1a8] sm:$0xff]  ;;  %v9871_v44 = vld [vmem:[#allocation9 + $0x300] ss:$16 sps:$4 sm:$0xff]  }
 0x30a   : > { %v11487_v38 = vpack.c.bf16 %v2128_v26, %v2124_v21  ;;  %v9864_v21 = vld [vmem:[#allocation9 + $0x364] ss:$16 sps:$4 sm:$0xff]   ;;  %3469 = vmatprep.subr.bf16.mxu0 %v9906_v60  ;;  %v11509_v27 = vpack.c.bf16 %v2136_v15, %v2132_v14  ;;  %v9868_v14 = vld [vmem:[#allocation9 + $0x320] ss:$16 sps:$4 sm:$0xff]  }
 0x30b   : > { %3281 = vmatpush1.bf16.msra.mxu1 %v9847_v51  ;;  %v1956_v51 = vld [vmem:[%s11153_s27 + $0x3c8] sm:$0xff]  ;;  %v1959_v26 = vld [vmem:[%s11153_s27 + $0x3e0] sm:$0xff]  ;;  %v1837_v15 = vld [vmem:[%s11153_s27 + $0x10] sm:$0xff] }
 0x30c   : > { %3282 = vmatprep.subr.bf16.mxu1 %v9852_v54  ;;  %3145 = vmatprep.mubr.bf16.mxu0 %v11487_v38  ;;  %v2084_v54 = vld [vmem:[#allocation2 + $0xf8] sm:$0xff]  ;;  %v2215_v52 = vadd.f32 %v2087_v34, %v1959_v26 }
 0x30d   : > { %v2212_v4 = vadd.f32 %v2084_v54, %v1956_v51  ;;  %3470 = vmatpush1.bf16.msra.mxu0 %v9904_v57  ;;  %v2211_v51 = vadd.f32 %v2083_v33, %v1955_v25  ;;  %v9870_v54 = vld [vmem:[#allocation9 + $0x324] ss:$16 sps:$4 sm:$0xff]   ;;  %v9915_v57 = vld [vmem:[#allocation9 + $0xc] ss:$16 sps:$4 sm:$0xff]  }
 0x30e   : > { %3226 = vmatmul.mubr.bf16.gmra.mxu1 %v11475_v63  ;;  %3146 = vmatmul.mubr.bf16.gmra.mxu0 %v11491_v48  ;;  %v9918_v26 = vld [vmem:[#allocation9 + $0x1ec] ss:$16 sps:$4 sm:$0xff]  }
 0x30f   : > { %3283 = vmatpush2.bf16.msra.mxu1 %v9850_v59  ;;  %3235 = vmatprep.mubr.bf16.mxu1 %v11478_v7  ;;  %v9859_v59 = vld [vmem:[#allocation9 + $0x380] ss:$16 sps:$4 sm:$0xff]   ;;  %v1846_v33 = vld [vmem:[%s11153_s27 + $0x58] sm:$0xff] }
 0x310   : > { %3284 = vmatprep.subr.bf16.mxu1 %v9855_v1  ;;  %v2203_v1 = vadd.f32 %v2075_v43, %v1947_v40  ;;  %v1838_v40 = vld [vmem:[%s11153_s27 + $0x18] sm:$0xff]  ;;  %3155 = vmatprep.mubr.bf16.mxu0 %v11509_v27 }
 0x311   : > { %v1966_v43 = vld [vmem:[#allocation2 + $0x18] sm:$0xff]  ;;  %3471 = vmatprep.subr.bf16.mxu0 %v9909_v28 }
 0x312   : > { %v11511_v30 = vpack.c.bf16 %v2207_v2, %v2203_v1  ;;  %v2094_v60 = vadd.f32 %v1966_v43, %v1838_v40  ;;  %v2012_v1 = vld [vmem:[#allocation2 + $0x240] sm:$0xff]  ;;  %v2016_v2 = vld [vmem:[#allocation2 + $0xd0] sm:$0xff]  ;;  %v1850_v34 = vld [vmem:[%s11153_s27 + $0x78] sm:$0xff] }
 0x313   : > { %3285 = vmatpush2.bf16.msra.mxu1 %v9853_v16  ;;  %v1879_v16 = vld [vmem:[%s11153_s27 + $0x160] sm:$0xff]  ;;  %v2144_v5 = vadd.f32 %v2016_v2, %v1888_v62  ;;  %v9916_v43 = vld [vmem:[#allocation9 + $0x1e8] ss:$16 sps:$4 sm:$0xff]   ;;  %v1845_v2 = vld [vmem:[%s11153_s27 + $0x50] sm:$0xff] }
 0x314   : > { %3286 = vmatprep.subr.bf16.mxu1 %v9858_v36  ;;  %v2135_v23 = vadd.f32 %v2007_v19, %v1879_v16  ;;  %v9907_v36 = vld [vmem:[#allocation9 + $0x28] ss:$16 sps:$4 sm:$0xff]   ;;  %v11528_v19 = vpack.c.bf16 %v2215_v52, %v2211_v51  ;;  %v11533_v28 = vpack.c.bf16 %v2098_v61, %v2094_v60  ;;  %v1978_v40 = vld [vmem:[#allocation2 + $0x60] sm:$0xff]  ;;  %v9876_v52 = vld [vmem:[#allocation9 + $0x2ec] ss:$16 sps:$4 sm:$0xff]  }
 0x315   : > { %3472 = vmatpush1.bf16.msra.mxu0 %v9907_v36  ;;  %v2015_v16 = vld [vmem:[#allocation2 + $0x208] sm:$0xff]  ;;  %v1974_v36 = vld [vmem:[#allocation2 + $0x98] sm:$0xff] }
 0x316   : > { %3236 = vmatmul.mubr.bf16.gmra.mxu1 %v11493_v49  ;;  %v11513_v35 = vpack.c.bf16 %v2135_v23, %v2131_v22  ;;  %3473 = vmatprep.subr.bf16.mxu0 %v9915_v57  ;;  %v1841_v22 = vld [vmem:[%s11153_s27 + $0x30] sm:$0xff]  ;;  %v1965_v23 = vld [vmem:[#allocation2 + $0xd8] sm:$0xff]  ;;  %v2143_v25 = vadd.f32 %v2015_v16, %v1887_v9  ;;  %v1892_v60 = vld [vmem:[%s11153_s27 + $0x1c8] sm:$0xff] }
 0x317   : > { %3287 = vmatpush2.bf16.msra.mxu1 %v9856_v39  ;;  %3245 = vmatprep.mubr.bf16.mxu1 %v11498_v53  ;;  %v11515_v39 = vpack.c.bf16 %v2216_v12, %v2212_v4  ;;  %v2011_v12 = vld [vmem:[#allocation2 + $0x230] sm:$0xff]  ;;  %v9922_v57 = vld [vmem:[#allocation9 + $0x1c8] ss:$16 sps:$4 sm:$0xff]  }
 0x318   : > { %3288 = vmatprep.subr.bf16.mxu1 %v9861_v50  ;;  %3156 = vmatmul.mubr.bf16.gmra.mxu0 %v11513_v35  ;;  %v9865_v50 = vld [vmem:[#allocation9 + $0x340] ss:$16 sps:$4 sm:$0xff]   ;;  %v2139_v17 = vadd.f32 %v2011_v12, %v1883_v8  ;;  %v1896_v61 = vld [vmem:[%s11153_s27 + $0x1e8] sm:$0xff] }
 0x319   : > { %3474 = vmatpush1.bf16.msra.mxu0 %v9913_v56  ;;  %v2106_v56 = vadd.f32 %v1978_v40, %v1850_v34  ;;  %v2020_v62 = vld [vmem:[#allocation2 + $0x268] sm:$0xff]  ;;  %v2024_v9 = vld [vmem:[#allocation2 + $0x30] sm:$0xff]  ;;  %v1982_v40 = vld [vmem:[#allocation2 + $0x340] sm:$0xff] }
 0x31a   : > { %v11538_v41 = vpack.c.bf16 %v2143_v25, %v2139_v17  ;;  %3475 = vmatprep.subr.bf16.mxu0 %v9918_v26  ;;  %v1977_v8 = vld [vmem:[#allocation2 + $0x108] sm:$0xff]  ;;  %v2148_v12 = vadd.f32 %v2020_v62, %v1892_v60  ;;  %v1854_v26 = vld [vmem:[%s11153_s27 + $0x98] sm:$0xff]  ;;  %v1853_v62 = vld [vmem:[%s11153_s27 + $0x90] sm:$0xff] }
 0x31b   : > { %3289 = vmatpush2.bf16.msra.mxu1 %v9859_v59  ;;  %v1884_v59 = vld [vmem:[%s11153_s27 + $0x188] sm:$0xff] }
 0x31c   : > { %3290 = vmatprep.subr.bf16.mxu1 %v9864_v21  ;;  %v2140_v4 = vadd.f32 %v2012_v1, %v1884_v59  ;;  %v9873_v21 = vld [vmem:[#allocation9 + $0x304] ss:$16 sps:$4 sm:$0xff]   ;;  %v9924_v59 = vld [vmem:[#allocation9 + $0x1cc] ss:$16 sps:$4 sm:$0xff]   ;;  %v9874_v1 = vld [vmem:[#allocation9 + $0x2e8] ss:$16 sps:$4 sm:$0xff]  }
 0x31d   : > { %3476 = vmatpush2.bf16.msra.mxu0 %v9916_v43  ;;  %v9879_v17 = vld [vmem:[#allocation9 + $0x2cc] ss:$16 sps:$4 sm:$0xff]  }
 0x31e   : > { %3246 = vmatmul.mubr.bf16.gmra.mxu1 %v11511_v30  ;;  %3477 = vmatprep.subr.bf16.mxu0 %v9924_v59  ;;  %v9927_v34 = vld [vmem:[#allocation9 + $0x1ac] ss:$16 sps:$4 sm:$0xff]  }
 0x31f   : > { %3291 = vmatpush2.bf16.msra.mxu1 %v9862_v24  ;;  %3255 = vmatprep.mubr.bf16.mxu1 %v11515_v39  ;;  %v11531_v24 = vpack.c.bf16 %v2144_v5, %v2140_v4  ;;  %v1849_v4 = vld [vmem:[%s11153_s27 + $0x70] sm:$0xff]  ;;  %v1973_v5 = vld [vmem:[#allocation2 + $0x118] sm:$0xff]  ;;  %v1986_v43 = vld [vmem:[#allocation2 + $0x168] sm:$0xff] }
 0x320   : > { %3292 = vmatprep.subr.bf16.mxu1 %v9867_v32  ;;  %v1969_v32 = vld [vmem:[#allocation2 + $0x330] sm:$0xff]  ;;  %v9885_v60 = vld [vmem:[#allocation9 + $0x2ac] ss:$16 sps:$4 sm:$0xff]  }
 0x321   : > { %3165 = vmatprep.mubr.bf16.mxu0 %v11531_v24  ;;  %v2097_v51 = vadd.f32 %v1969_v32, %v1841_v22  ;;  %v2019_v22 = vld [vmem:[#allocation2 + $0x358] sm:$0xff]  ;;  %3478 = vmatpush2.bf16.msra.mxu0 %v9922_v57 }
 0x322   : > { %3166 = vmatmul.mubr.bf16.gmra.mxu0 %v11538_v41  ;;  %3479 = vmatprep.subr.bf16.mxu0 %v9927_v34 }
 0x323   : > { %3293 = vmatpush2.bf16.msra.mxu1 %v9865_v50  ;;  %v2093_v50 = vadd.f32 %v1965_v23, %v1837_v15  ;;  %v1895_v15 = vld [vmem:[%s11153_s27 + $0x1e0] sm:$0xff]  ;;  %v2023_v23 = vld [vmem:[#allocation2 + $0x1d8] sm:$0xff] }
 0x324   : > { %3294 = vmatprep.subr.bf16.mxu1 %v9870_v54  ;;  %v2102_v54 = vadd.f32 %v1974_v36, %v1846_v33  ;;  %v2151_v33 = vadd.f32 %v2023_v23, %v1895_v15  ;;  %v1858_v36 = vld [vmem:[%s11153_s27 + $0xb8] sm:$0xff] }
 0x325   : > { %v11549_v16 = vpack.c.bf16 %v2097_v51, %v2093_v50  ;;  %v9925_v51 = vld [vmem:[#allocation9 + $0x1a8] ss:$16 sps:$4 sm:$0xff]   ;;  %v2114_v57 = vadd.f32 %v1986_v43, %v1858_v36  ;;  %v9894_v23 = vld [vmem:[#allocation9 + $0x28c] ss:$16 sps:$4 sm:$0xff]  }
 0x326   : > { %3256 = vmatmul.mubr.bf16.gmra.mxu1 %v11528_v19  ;;  %v11551_v25 = vpack.c.bf16 %v2106_v56, %v2102_v54  ;;  %v2105_v54 = vadd.f32 %v1977_v8, %v1849_v4  ;;  %v2110_v56 = vadd.f32 %v1982_v40, %v1854_v26  ;;  %3480 = vmatpush2.bf16.msra.mxu0 %v9925_v51  ;;  %v9936_v8 = vld [vmem:[#allocation9 + $0x16c] ss:$16 sps:$4 sm:$0xff]   ;;  %v9892_v36 = vld [vmem:[#allocation9 + $0x288] ss:$16 sps:$4 sm:$0xff]   ;;  %v1861_v51 = vld [vmem:[%s11153_s27 + $0xd0] sm:$0xff] }
 0x327   : > { %3295 = vmatpush2.bf16.msra.mxu1 %v9868_v14  ;;  %3298 = vmatprep.mubr.bf16.mxu1 %v11533_v28  ;;  %v1891_v14 = vld [vmem:[%s11153_s27 + $0x1c0] sm:$0xff]  ;;  %v1862_v15 = vld [vmem:[%s11153_s27 + $0xd8] sm:$0xff] }
 0x328   : > { %3296 = vmatprep.subr.bf16.mxu1 %v9873_v21  ;;  %v2152_v21 = vadd.f32 %v2024_v9, %v1896_v61  ;;  %v2147_v32 = vadd.f32 %v2019_v22, %v1891_v14  ;;  %v9931_v61 = vld [vmem:[#allocation9 + $0x188] ss:$16 sps:$4 sm:$0xff]   ;;  %v1857_v9 = vld [vmem:[%s11153_s27 + $0xb0] sm:$0xff]  ;;  %v1994_v22 = vld [vmem:[#allocation2 + $0x280] sm:$0xff] }
 0x329   : > { %v9883_v14 = vld [vmem:[#allocation9 + $0x2a8] ss:$16 sps:$4 sm:$0xff]   ;;  %v9942_v40 = vld [vmem:[#allocation9 + $0x14c] ss:$16 sps:$4 sm:$0xff]  }
 0x32a   : > { %v11555_v59 = vpack.c.bf16 %v2152_v21, %v2148_v12  ;;  %v11557_v50 = vpack.c.bf16 %v2151_v33, %v2147_v32  ;;  %v11568_v12 = vpack.c.bf16 %v2114_v57, %v2110_v56  ;;  %v1990_v21 = vld [vmem:[#allocation2 + $0x28] sm:$0xff] }
 0x32b   : > { %3297 = vmatpush2.bf16.msra.mxu1 %v9871_v44  ;;  %v2101_v44 = vadd.f32 %v1973_v5, %v1845_v2  ;;  %v9933_v2 = vld [vmem:[#allocation9 + $0x18c] ss:$16 sps:$4 sm:$0xff]   ;;  %v2118_v33 = vadd.f32 %v1990_v21, %v1862_v15  ;;  %v9940_v56 = vld [vmem:[#allocation9 + $0x148] ss:$16 sps:$4 sm:$0xff]  }
 0x32c   : > { %3652 = vmatprep.subr.bf16.mxu1 %v9876_v52  ;;  %3175 = vmatprep.mubr.bf16.mxu0 %v11555_v59  ;;  %v9877_v52 = vld [vmem:[#allocation9 + $0x2c8] ss:$16 sps:$4 sm:$0xff]   ;;  %v9903_v43 = vld [vmem:[#allocation9 + $0x26c] ss:$16 sps:$4 sm:$0xff]  }
 0x32d   : > { %3176 = vmatmul.mubr.bf16.gmra.mxu0 %v11557_v50  ;;  %v11566_v4 = vpack.c.bf16 %v2105_v54, %v2101_v44  ;;  %v1985_v5 = vld [vmem:[#allocation2 + $0x1b8] sm:$0xff]  ;;  %3481 = vmatprep.subr.bf16.mxu0 %v9933_v2  ;;  %v1865_v44 = vld [vmem:[%s11153_s27 + $0xf0] sm:$0xff]  ;;  %v1998_v2 = vld [vmem:[#allocation2 + $0x3e0] sm:$0xff] }
 0x32e   : > { %3299 = vmatmul.mubr.bf16.vlgmr.msra.gmra.mxu1 %v11549_v16  ;;  %3491 = vmatprep.mubr.bf16.mxu0 %v11407_v3  ;;  %v9934_v3 = vld [vmem:[#allocation9 + $0x168] ss:$16 sps:$4 sm:$0xff]   ;;  %v2113_v32 = vadd.f32 %v1985_v5, %v1857_v9  ;;  %v1989_v54 = vld [vmem:[#allocation2 + $0x290] sm:$0xff]  ;;  %v9951_v21 = vld [vmem:[#allocation9 + $0x10c] ss:$16 sps:$4 sm:$0xff]  }
 0x32f   : > { %3653 = vmatpush1.bf16.msra.mxu1 %v9874_v1  ;;  %3308 = vmatprep.mubr.bf16.mxu1 %v11551_v25  ;;  %v1981_v1 = vld [vmem:[#allocation2 + $0x338] sm:$0xff]  ;;  %v2117_v15 = vadd.f32 %v1989_v54, %v1861_v51 }
 0x330   : > { %3654 = vmatprep.subr.bf16.mxu1 %v9879_v17  ;;  %v1866_v17 = vld [vmem:[%s11153_s27 + $0xf8] sm:$0xff]  ;;  %3482 = vmatpush2.bf16.msra.mxu0 %v9931_v61  ;;  %v2109_v26 = vadd.f32 %v1981_v1, %v1853_v62  ;;  %v2002_v1 = vld [vmem:[#allocation2 + $0x128] sm:$0xff] }
 0x331   : > { %3483 = vmatprep.subr.bf16.mxu0 %v9936_v8  ;;  %v2122_v34 = vadd.f32 %v1994_v22, %v1866_v17  ;;  %v1874_v61 = vld [vmem:[%s11153_s27 + $0x138] sm:$0xff] }
 0x332   : > { %v11576_v57 = vpack.c.bf16 %v2113_v32, %v2109_v26  ;;  %v9945_v62 = vld [vmem:[#allocation9 + $0x12c] ss:$16 sps:$4 sm:$0xff]   ;;  %v9901_v5 = vld [vmem:[#allocation9 + $0x268] ss:$16 sps:$4 sm:$0xff]   ;;  %v1869_v32 = vld [vmem:[%s11153_s27 + $0x110] sm:$0xff] }
 0x333   : > { %3655 = vmatpush1.bf16.msra.mxu1 %v9877_v52  ;;  %v1993_v52 = vld [vmem:[#allocation2 + $0x1c0] sm:$0xff]  ;;  %v11580_v9 = vpack.c.bf16 %v2122_v34, %v2118_v33  ;;  %v9912_v8 = vld [vmem:[#allocation9 + $0x24c] ss:$16 sps:$4 sm:$0xff]   ;;  %v9949_v33 = vld [vmem:[#allocation9 + $0x108] ss:$16 sps:$4 sm:$0xff]  }
 0x334   : > { %3656 = vmatprep.subr.bf16.mxu1 %v9885_v60  ;;  %3484 = vmatpush2.bf16.msra.mxu0 %v9934_v3  ;;  %v1870_v60 = vld [vmem:[%s11153_s27 + $0x118] sm:$0xff]  ;;  %v2121_v17 = vadd.f32 %v1993_v52, %v1865_v44 }
 0x335   : > { %3485 = vmatprep.subr.bf16.mxu0 %v9942_v40  ;;  %v2126_v22 = vadd.f32 %v1998_v2, %v1870_v60  ;;  %v9910_v3 = vld [vmem:[#allocation9 + $0x248] ss:$16 sps:$4 sm:$0xff]   ;;  %v9921_v26 = vld [vmem:[#allocation9 + $0x22c] ss:$16 sps:$4 sm:$0xff]   ;;  %v2010_v60 = vld [vmem:[#allocation2 + $0x10] sm:$0xff] }
 0x336   : > { %3309 = vmatmul.mubr.bf16.gmra.mxu1 %v11566_v4  ;;  %v11585_v34 = vpack.c.bf16 %v2121_v17, %v2117_v15  ;;  %v1997_v40 = vld [vmem:[#allocation2 + $0x158] sm:$0xff]  ;;  %v1877_v15 = vld [vmem:[%s11153_s27 + $0x150] sm:$0xff] }
 0x337   : > { %3318 = vmatprep.mubr.bf16.mxu1 %v11568_v12  ;;  %3657 = vmatpush1.bf16.msra.mxu1 %v9883_v14  ;;  %v9943_v14 = vld [vmem:[#allocation9 + $0x128] ss:$16 sps:$4 sm:$0xff]  }
 0x338   : > { %3658 = vmatprep.subr.bf16.mxu1 %v9894_v23  ;;  %3486 = vmatpush2.bf16.msra.mxu0 %v9940_v56  ;;  %v2130_v23 = vadd.f32 %v2002_v1, %v1874_v61  ;;  %v1878_v44 = vld [vmem:[%s11153_s27 + $0x158] sm:$0xff]  ;;  %v2006_v56 = vld [vmem:[#allocation2 + $0x2c0] sm:$0xff] }
 0x339   : > { %3487 = vmatprep.subr.bf16.mxu0 %v9945_v62  ;;  %v1882_v54 = vld [vmem:[%s11153_s27 + $0x178] sm:$0xff]  ;;  %v2125_v62 = vadd.f32 %v1997_v40, %v1869_v32  ;;  %v2134_v1 = vadd.f32 %v2006_v56, %v1878_v44  ;;  %v2018_v40 = vld [vmem:[#allocation2 + $0x2f0] sm:$0xff] }
 0x33a   : > { %v11588_v51 = vpack.c.bf16 %v2130_v23, %v2126_v22  ;;  %v9919_v52 = vld [vmem:[#allocation9 + $0x228] ss:$16 sps:$4 sm:$0xff]   ;;  %v9930_v61 = vld [vmem:[#allocation9 + $0x20c] ss:$16 sps:$4 sm:$0xff]   ;;  %v2005_v22 = vld [vmem:[#allocation2 + $0xa0] sm:$0xff] }
 0x33b   : > { %3659 = vmatpush1.bf16.msra.mxu1 %v9892_v36  ;;  %v1873_v36 = vld [vmem:[%s11153_s27 + $0x130] sm:$0xff]  ;;  %v1890_v32 = vld [vmem:[%s11153_s27 + $0x1b8] sm:$0xff] }
 0x33c   : > { %3660 = vmatprep.subr.bf16.mxu1 %v9903_v43  ;;  %3488 = vmatpush2.bf16.msra.mxu0 %v9943_v14  ;;  %v2001_v43 = vld [vmem:[#allocation2 + $0x8] sm:$0xff]  ;;  %v2009_v23 = vld [vmem:[#allocation2 + $0x1f0] sm:$0xff] }
 0x33d   : > { %3489 = vmatprep.subr.bf16.mxu0 %v9951_v21  ;;  %v2129_v2 = vadd.f32 %v2001_v43, %v1873_v36  ;;  %v9939_v14 = vld [vmem:[#allocation9 + $0x3ec] ss:$16 sps:$4 sm:$0xff]   ;;  %v1881_v21 = vld [vmem:[%s11153_s27 + $0x170] sm:$0xff]  ;;  %v2014_v36 = vld [vmem:[#allocation2 + $0x3a0] sm:$0xff] }
 0x33e   : > { %3319 = vmatmul.mubr.bf16.gmra.mxu1 %v11576_v57  ;;  %v2137_v43 = vadd.f32 %v2009_v23, %v1881_v21  ;;  %v9954_v56 = vld [vmem:[#allocation9 + $0x3ac] ss:$16 sps:$4 sm:$0xff]  }
 0x33f   : > { %3328 = vmatprep.mubr.bf16.mxu1 %v11580_v9  ;;  %3661 = vmatpush1.bf16.msra.mxu1 %v9901_v5  ;;  %v2138_v5 = vadd.f32 %v2010_v60, %v1882_v54  ;;  %v11597_v17 = vpack.c.bf16 %v2129_v2, %v2125_v62  ;;  %v2146_v54 = vadd.f32 %v2018_v40, %v1890_v32  ;;  %v1885_v60 = vld [vmem:[%s11153_s27 + $0x190] sm:$0xff]  ;;  %v2022_v21 = vld [vmem:[#allocation2 + $0x188] sm:$0xff] }
 0x340   : > { %3662 = vmatprep.subr.bf16.mxu1 %v9912_v8  ;;  %3490 = vmatpush2.bf16.msra.mxu0 %v9949_v33  ;;  %v9928_v8 = vld [vmem:[#allocation9 + $0x208] ss:$16 sps:$4 sm:$0xff]   ;;  %v1889_v62 = vld [vmem:[%s11153_s27 + $0x1b0] sm:$0xff] }
 0x341   : > { %v9937_v33 = vld [vmem:[#allocation9 + $0x3e8] ss:$16 sps:$4 sm:$0xff]   ;;  %v2013_v2 = vld [vmem:[#allocation2 + $0x90] sm:$0xff] }
 0x342   : > { %v9970_v40 = vld [vmem:[#allocation11 + $0xe0] ss:$16 sps:$4 sm:$0xff]  }
 0x343   : > { %3663 = vmatpush1.bf16.msra.mxu1 %v9910_v3  ;;  %3492 = vmatmul.mubr.bf16.vlgmr.msra.gmra.mxu0 %v11411_v10  ;;  %v11600_v3 = vpack.c.bf16 %v2138_v5, %v2134_v1  ;;  %v9948_v10 = vld [vmem:[#allocation9 + $0x3cc] ss:$16 sps:$4 sm:$0xff]  }
 0x344   : > { %3664 = vmatprep.subr.bf16.mxu1 %v9921_v26  ;;  %3501 = vmatprep.mubr.bf16.mxu0 %v11426_v31  ;;  %v1886_v26 = vld [vmem:[%s11153_s27 + $0x198] sm:$0xff]  ;;  %v2133_v31 = vadd.f32 %v2005_v22, %v1877_v15  ;;  %v2017_v1 = vld [vmem:[#allocation2 + $0x88] sm:$0xff] }
 0x345   : > { %v2142_v44 = vadd.f32 %v2014_v36, %v1886_v26  ;;  %v9952_v15 = vld [vmem:[#allocation9 + $0x3a8] ss:$16 sps:$4 sm:$0xff]   ;;  %v2145_v23 = vadd.f32 %v2017_v1, %v1889_v62  ;;  %v9960_v36 = vld [vmem:[#allocation9 + $0x36c] ss:$16 sps:$4 sm:$0xff]  }
 0x346   : > { %3329 = vmatmul.mubr.bf16.gmra.mxu1 %v11585_v34  ;;  %v2026_v22 = vld [vmem:[#allocation2 + $0x2a8] sm:$0xff]  ;;  %v1906_v62 = vld [vmem:[%s11153_s27 + $0x238] sm:$0xff] }
 0x347   : > { %3338 = vmatprep.mubr.bf16.mxu1 %v11588_v51  ;;  %3665 = vmatpush1.bf16.msra.mxu1 %v9919_v52  ;;  %v9946_v52 = vld [vmem:[#allocation9 + $0x3c8] ss:$16 sps:$4 sm:$0xff]   ;;  %v11612_v5 = vpack.c.bf16 %v2146_v54, %v2142_v44  ;;  %v2021_v44 = vld [vmem:[#allocation2 + $0x350] sm:$0xff]  ;;  %v2025_v54 = vld [vmem:[#allocation2 + $0x140] sm:$0xff] }
 0x348   : > { %3666 = vmatprep.subr.bf16.mxu1 %v9930_v61  ;;  %v11609_v61 = vpack.c.bf16 %v2137_v43, %v2133_v31  ;;  %v9955_v26 = vld [vmem:[#allocation9 + $0x388] ss:$16 sps:$4 sm:$0xff]   ;;  %v1893_v31 = vld [vmem:[%s11153_s27 + $0x1d0] sm:$0xff] }
 0x349   : > { %v1897_v43 = vld [vmem:[%s11153_s27 + $0x1f0] sm:$0xff]  ;;  %v2034_v1 = vld [vmem:[#allocation2 + $0x178] sm:$0xff] }
 0x34b   : > { %3667 = vmatpush1.bf16.msra.mxu1 %v9928_v8  ;;  %3502 = vmatmul.mubr.bf16.gmra.mxu0 %v11430_v37  ;;  %v1894_v8 = vld [vmem:[%s11153_s27 + $0x1d8] sm:$0xff] }
 0x34c   : > { %3668 = vmatprep.subr.bf16.mxu1 %v9939_v14  ;;  %3511 = vmatprep.mubr.bf16.mxu0 %v11445_v0  ;;  %v1898_v14 = vld [vmem:[%s11153_s27 + $0x1f8] sm:$0xff]  ;;  %v2141_v0 = vadd.f32 %v2013_v2, %v1885_v60  ;;  %v2150_v32 = vadd.f32 %v2022_v21, %v1894_v8  ;;  %v2030_v2 = vld [vmem:[#allocation2 + $0x220] sm:$0xff]  ;;  %v2153_v21 = vadd.f32 %v2025_v54, %v1897_v43 }
 0x34d   : > { %v9957_v37 = vld [vmem:[#allocation9 + $0x38c] ss:$16 sps:$4 sm:$0xff]  }
 0x34e   : > { %3339 = vmatmul.mubr.bf16.gmra.mxu1 %v11597_v17  ;;  %v1902_v60 = vld [vmem:[%s11153_s27 + $0x218] sm:$0xff] }
 0x34f   : > { %3348 = vmatprep.mubr.bf16.mxu1 %v11600_v3  ;;  %3669 = vmatpush2.bf16.msra.mxu1 %v9937_v33  ;;  %v2154_v33 = vadd.f32 %v2026_v22, %v1898_v14  ;;  %v9958_v14 = vld [vmem:[#allocation9 + $0x368] ss:$16 sps:$4 sm:$0xff]   ;;  %v9978_v22 = vld [vmem:[#allocation11 + $0xa4] ss:$16 sps:$4 sm:$0xff]  }
 0x350   : > { %3670 = vmatprep.subr.bf16.mxu1 %v9948_v10  ;;  %v9972_v10 = vld [vmem:[#allocation11 + $0xe4] ss:$16 sps:$4 sm:$0xff]   ;;  %v1910_v43 = vld [vmem:[%s11153_s27 + $0x258] sm:$0xff] }
 0x351   : > { %4828 = vmatprep.subr.bf16.mxu0 %v9972_v10  ;;  %v11626_v8 = vpack.c.bf16 %v2154_v33, %v2150_v32  ;;  %v1901_v32 = vld [vmem:[%s11153_s27 + $0x210] sm:$0xff]  ;;  %v2038_v54 = vld [vmem:[#allocation2 + $0x2b8] sm:$0xff] }
 0x352   : > { %4829 = vmatpush1.bf16.msra.mxu0 %v9970_v40  ;;  %v1905_v33 = vld [vmem:[%s11153_s27 + $0x230] sm:$0xff]  ;;  %v2033_v40 = vld [vmem:[#allocation2 + $0xe0] sm:$0xff] }
 0x353   : > { %3671 = vmatpush2.bf16.msra.mxu1 %v9946_v52  ;;  %3512 = vmatmul.mubr.bf16.gmra.mxu0 %v11449_v13  ;;  %v9975_v52 = vld [vmem:[#allocation11 + $0xc4] ss:$16 sps:$4 sm:$0xff]   ;;  %v9963_v13 = vld [vmem:[#allocation9 + $0x34c] ss:$16 sps:$4 sm:$0xff]   ;;  %v9976_v10 = vld [vmem:[#allocation11 + $0xa0] ss:$16 sps:$4 sm:$0xff]  }
 0x354   : > { %3672 = vmatprep.subr.bf16.mxu1 %v9954_v56  ;;  %3521 = vmatprep.mubr.bf16.mxu0 %v11466_v45  ;;  %v11622_v56 = vpack.c.bf16 %v2145_v23, %v2141_v0  ;;  %v2149_v45 = vadd.f32 %v2021_v44, %v1893_v31  ;;  %v2162_v0 = vadd.f32 %v2034_v1, %v1906_v62  ;;  %v9961_v23 = vld [vmem:[#allocation9 + $0x348] ss:$16 sps:$4 sm:$0xff]  }
 0x355   : > { %4830 = vmatprep.subr.bf16.mxu0 %v9975_v52  ;;  %v1914_v44 = vld [vmem:[%s11153_s27 + $0x278] sm:$0xff]  ;;  %v2042_v52 = vld [vmem:[#allocation2 + $0xe8] sm:$0xff] }
 0x356   : > { %3349 = vmatmul.mubr.bf16.gmra.mxu1 %v11609_v61  ;;  %v11634_v31 = vpack.c.bf16 %v2153_v21, %v2149_v45  ;;  %v9967_v1 = vld [vmem:[#allocation9 + $0x308] ss:$16 sps:$4 sm:$0xff]   ;;  %v2166_v45 = vadd.f32 %v2038_v54, %v1910_v43  ;;  %v2170_v21 = vadd.f32 %v2042_v52, %v1914_v44  ;;  %v9987_v43 = vld [vmem:[#allocation11 + $0x44] ss:$16 sps:$4 sm:$0xff]  }
 0x357   : > { %3358 = vmatprep.mubr.bf16.mxu1 %v11612_v5  ;;  %3673 = vmatpush2.bf16.msra.mxu1 %v9952_v15  ;;  %v9973_v15 = vld [vmem:[#allocation11 + $0xc0] ss:$16 sps:$4 sm:$0xff]   ;;  %v9990_v52 = vld [vmem:[#allocation11 + $0x24] ss:$16 sps:$4 sm:$0xff]  }
 0x358   : > { %3674 = vmatprep.subr.bf16.mxu1 %v9957_v37  ;;  %v2158_v37 = vadd.f32 %v2030_v2, %v1902_v60  ;;  %4831 = vmatpush1.bf16.msra.mxu0 %v9973_v15  ;;  %v9981_v60 = vld [vmem:[#allocation11 + $0x84] ss:$16 sps:$4 sm:$0xff]   ;;  %v9969_v2 = vld [vmem:[#allocation9 + $0x30c] ss:$16 sps:$4 sm:$0xff]   ;;  %v11650_v44 = vpack.c.bf16 %v2170_v21, %v2166_v45 }
 0x359   : > { %4832 = vmatprep.subr.bf16.mxu0 %v9978_v22  ;;  %v9984_v15 = vld [vmem:[#allocation11 + $0x64] ss:$16 sps:$4 sm:$0xff]   ;;  %v9982_v22 = vld [vmem:[#allocation11 + $0x60] ss:$16 sps:$4 sm:$0xff]   ;;  %v1926_v45 = vld [vmem:[%s11153_s27 + $0x2d8] sm:$0xff] }
 0x35a   : > { %v11638_v62 = vpack.c.bf16 %v2162_v0, %v2158_v37  ;;  %v1909_v37 = vld [vmem:[%s11153_s27 + $0x250] sm:$0xff]  ;;  %v1930_v21 = vld [vmem:[%s11153_s27 + $0x2f8] sm:$0xff] }
 0x35b   : > { %3675 = vmatpush2.bf16.msra.mxu1 %v9955_v26  ;;  %3522 = vmatmul.mubr.bf16.gmra.mxu0 %v11471_v58  ;;  %v9966_v26 = vld [vmem:[#allocation9 + $0x32c] ss:$16 sps:$4 sm:$0xff]   ;;  %v9964_v58 = vld [vmem:[#allocation9 + $0x328] ss:$16 sps:$4 sm:$0xff]   ;;  %v1913_v0 = vld [vmem:[%s11153_s27 + $0x270] sm:$0xff] }
 0x35c   : > { %3676 = vmatprep.subr.bf16.mxu1 %v9960_v36  ;;  %v2029_v36 = vld [vmem:[#allocation2 + $0x318] sm:$0xff]  ;;  %3531 = vmatprep.mubr.bf16.mxu0 %v11487_v38  ;;  %v9979_v38 = vld [vmem:[#allocation11 + $0x80] ss:$16 sps:$4 sm:$0xff]  }
 0x35d   : > { %4833 = vmatpush1.bf16.msra.mxu0 %v9976_v10  ;;  %v2050_v10 = vld [vmem:[#allocation2 + $0x1e8] sm:$0xff] }
 0x35e   : > { %3359 = vmatmul.mubr.bf16.gmra.mxu1 %v11622_v56  ;;  %4834 = vmatprep.subr.bf16.mxu0 %v9981_v60 }
 0x35f   : > { %3368 = vmatprep.mubr.bf16.mxu1 %v11626_v8  ;;  %3677 = vmatpush2.bf16.msra.mxu1 %v9958_v14  ;;  %v2157_v14 = vadd.f32 %v2029_v36, %v1901_v32  ;;  %v1922_v36 = vld [vmem:[%s11153_s27 + $0x2b8] sm:$0xff] }
 0x360   : > { %3678 = vmatprep.subr.bf16.mxu1 %v9963_v13  ;;  %v2161_v13 = vadd.f32 %v2033_v40, %v1905_v33  ;;  %v1918_v33 = vld [vmem:[%s11153_s27 + $0x298] sm:$0xff]  ;;  %v2046_v40 = vld [vmem:[#allocation2 + $0x160] sm:$0xff] }
 0x361   : > { %4835 = vmatpush1.bf16.msra.mxu0 %v9979_v38  ;;  %v2174_v60 = vadd.f32 %v2046_v40, %v1918_v33  ;;  %v1917_v38 = vld [vmem:[%s11153_s27 + $0x290] sm:$0xff] }
 0x362   : > { %v11646_v32 = vpack.c.bf16 %v2161_v13, %v2157_v14  ;;  %4836 = vmatprep.subr.bf16.mxu0 %v9984_v15  ;;  %v1921_v14 = vld [vmem:[%s11153_s27 + $0x2b0] sm:$0xff]  ;;  %v2049_v13 = vld [vmem:[#allocation2 + $0x3d8] sm:$0xff] }
 0x363   : > { %3679 = vmatpush2.bf16.msra.mxu1 %v9961_v23  ;;  %3532 = vmatmul.mubr.bf16.gmra.mxu0 %v11491_v48  ;;  %v2037_v23 = vld [vmem:[#allocation2 + $0x3b8] sm:$0xff]  ;;  %v9985_v48 = vld [vmem:[#allocation11 + $0x40] ss:$16 sps:$4 sm:$0xff]   ;;  %v2177_v33 = vadd.f32 %v2049_v13, %v1921_v14  ;;  %v10002_v13 = vld [vmem:[#allocation11 + $0x1a4] ss:$16 sps:$4 sm:$0xff]  }
 0x364   : > { %3680 = vmatprep.subr.bf16.mxu1 %v9966_v26  ;;  %v2041_v26 = vld [vmem:[#allocation2 + $0x20] sm:$0xff]  ;;  %3541 = vmatprep.mubr.bf16.mxu0 %v11509_v27  ;;  %v2165_v54 = vadd.f32 %v2037_v23, %v1909_v37  ;;  %v2058_v37 = vld [vmem:[#allocation2 + $0x2e8] sm:$0xff]  ;;  %v2066_v14 = vld [vmem:[#allocation2 + $0x2d8] sm:$0xff] }
 0x365   : > { %4837 = vmatpush1.bf16.msra.mxu0 %v9982_v22  ;;  %v2169_v27 = vadd.f32 %v2041_v26, %v1913_v0  ;;  %v2054_v22 = vld [vmem:[#allocation2 + $0x1d0] sm:$0xff]  ;;  %v2186_v40 = vadd.f32 %v2058_v37, %v1930_v21 }
 0x366   : > { %3369 = vmatmul.mubr.bf16.gmra.mxu1 %v11634_v31  ;;  %4838 = vmatprep.subr.bf16.mxu0 %v9987_v43  ;;  %v9993_v0 = vld [vmem:[#allocation11 + $0x4] ss:$16 sps:$4 sm:$0xff]   ;;  %v10000_v37 = vld [vmem:[#allocation11 + $0x1a0] ss:$16 sps:$4 sm:$0xff]  }
 0x367   : > { %3378 = vmatprep.mubr.bf16.mxu1 %v11638_v62  ;;  %3681 = vmatpush2.bf16.msra.mxu1 %v9964_v58  ;;  %v2178_v58 = vadd.f32 %v2050_v10, %v1922_v36  ;;  %v11658_v15 = vpack.c.bf16 %v2169_v27, %v2165_v54  ;;  %v2182_v36 = vadd.f32 %v2054_v22, %v1926_v45  ;;  %v9994_v10 = vld [vmem:[#allocation11 + $0x1e0] ss:$16 sps:$4 sm:$0xff]   ;;  %v9999_v43 = vld [vmem:[#allocation11 + $0x1c4] ss:$16 sps:$4 sm:$0xff]  }
 0x368   : > { %3682 = vmatprep.subr.bf16.mxu1 %v9969_v2  ;;  %v9988_v2 = vld [vmem:[#allocation11 + $0x20] ss:$16 sps:$4 sm:$0xff]  }
 0x369   : > { %4839 = vmatpush1.bf16.msra.mxu0 %v9985_v48  ;;  %v11662_v23 = vpack.c.bf16 %v2178_v58, %v2174_v60  ;;  %v1925_v48 = vld [vmem:[%s11153_s27 + $0x2d0] sm:$0xff]  ;;  %v1934_v58 = vld [vmem:[%s11153_s27 + $0x318] sm:$0xff] }
 0x36a   : > { %4840 = vmatprep.subr.bf16.mxu0 %v9990_v52  ;;  %v1929_v54 = vld [vmem:[%s11153_s27 + $0x2f0] sm:$0xff]  ;;  %v2057_v52 = vld [vmem:[#allocation2 + $0x198] sm:$0xff] }
 0x36b   : > { %3683 = vmatpush2.bf16.msra.mxu1 %v9967_v1  ;;  %3542 = vmatmul.mubr.bf16.gmra.mxu0 %v11513_v35  ;;  %v2045_v1 = vld [vmem:[#allocation2 + $0x3c8] sm:$0xff]  ;;  %v9991_v35 = vld [vmem:[#allocation11] ss:$16 sps:$4 sm:$0xff]   ;;  %v2185_v21 = vadd.f32 %v2057_v52, %v1929_v54  ;;  %v2074_v54 = vld [vmem:[#allocation2 + $0x38] sm:$0xff] }
 0x36c   : > { %3551 = vmatprep.mubr.bf16.mxu0 %v11531_v24  ;;  %v2173_v26 = vadd.f32 %v2045_v1, %v1917_v38  ;;  %v9996_v24 = vld [vmem:[#allocation11 + $0x1e4] ss:$16 sps:$4 sm:$0xff]   ;;  %v11674_v1 = vpack.c.bf16 %v2186_v40, %v2182_v36  ;;  %v2065_v36 = vld [vmem:[#allocation2 + $0x258] sm:$0xff] }
 0x36d   : > { %4841 = vmatpush1.bf16.msra.mxu0 %v9988_v2  ;;  %v2053_v27 = vld [vmem:[#allocation2 + $0x2d0] sm:$0xff]  ;;  %v1938_v2 = vld [vmem:[%s11153_s27 + $0x338] sm:$0xff] }
 0x36e   : > { %3379 = vmatmul.mubr.bf16.gmra.mxu1 %v11646_v32  ;;  %4842 = vmatprep.subr.bf16.mxu0 %v9993_v0  ;;  %v11670_v60 = vpack.c.bf16 %v2177_v33, %v2173_v26  ;;  %v2062_v38 = vld [vmem:[#allocation2 + $0x390] sm:$0xff]  ;;  %v2181_v45 = vadd.f32 %v2053_v27, %v1925_v48  ;;  %v2194_v22 = vadd.f32 %v2066_v14, %v1938_v2 }
 0x36f   : > { %3388 = vmatprep.mubr.bf16.mxu1 %v11650_v44  ;;  %v10020_v0 = vld [vmem:[#allocation11 + $0x2e4] ss:$16 sps:$4 sm:$0xff]   ;;  %v10006_v14 = vld [vmem:[#allocation11 + $0x160] ss:$16 sps:$4 sm:$0xff]  }
 0x370   : > { %v1933_v26 = vld [vmem:[%s11153_s27 + $0x310] sm:$0xff]  ;;  %v11682_v40 = vpack.c.bf16 %v2185_v21, %v2181_v45  ;;  %5021 = vmatprep.subr.bf16.mxu1 %v10020_v0  ;;  %v1954_v0 = vld [vmem:[%s11153_s27 + $0x3b8] sm:$0xff] }
 0x371   : > { %4843 = vmatpush1.bf16.msra.mxu0 %v9991_v35  ;;  %v10005_v35 = vld [vmem:[#allocation11 + $0x184] ss:$16 sps:$4 sm:$0xff]  }
 0x372   : > { %4844 = vmatprep.subr.bf16.mxu0 %v9996_v24  ;;  %v1937_v33 = vld [vmem:[%s11153_s27 + $0x330] sm:$0xff]  ;;  %v2061_v24 = vld [vmem:[#allocation2 + $0x398] sm:$0xff] }
 0x373   : > { %3552 = vmatmul.mubr.bf16.gmra.mxu0 %v11538_v41  ;;  %v9997_v41 = vld [vmem:[#allocation11 + $0x1c0] ss:$16 sps:$4 sm:$0xff]   ;;  %v10008_v52 = vld [vmem:[#allocation11 + $0x164] ss:$16 sps:$4 sm:$0xff]  }
 0x374   : > { %3561 = vmatprep.mubr.bf16.mxu0 %v11555_v59  ;;  %v2190_v59 = vadd.f32 %v2062_v38, %v1934_v58  ;;  %v2070_v48 = vld [vmem:[#allocation2 + $0x3d0] sm:$0xff]  ;;  %v2189_v58 = vadd.f32 %v2061_v24, %v1933_v26  ;;  %v2082_v26 = vld [vmem:[#allocation2 + $0x348] sm:$0xff] }
 0x375   : > { %4845 = vmatpush2.bf16.msra.mxu0 %v9994_v10  ;;  %v1942_v10 = vld [vmem:[%s11153_s27 + $0x358] sm:$0xff]  ;;  %v1945_v45 = vld [vmem:[%s11153_s27 + $0x370] sm:$0xff] }
 0x376   : > { %3389 = vmatmul.mubr.bf16.gmra.mxu1 %v11658_v15  ;;  %4846 = vmatprep.subr.bf16.mxu0 %v9999_v43  ;;  %v1946_v43 = vld [vmem:[%s11153_s27 + $0x378] sm:$0xff]  ;;  %v11686_v27 = vpack.c.bf16 %v2194_v22, %v2190_v59  ;;  %v2198_v2 = vadd.f32 %v2070_v48, %v1942_v10  ;;  %v2069_v21 = vld [vmem:[#allocation2 + $0x170] sm:$0xff] }
 0x377   : > { %3398 = vmatprep.mubr.bf16.mxu1 %v11662_v23  ;;  %v2202_v38 = vadd.f32 %v2074_v54, %v1946_v43  ;;  %v2073_v59 = vld [vmem:[#allocation2 + $0xb8] sm:$0xff]  ;;  %v10014_v24 = vld [vmem:[#allocation11 + $0x124] ss:$16 sps:$4 sm:$0xff]   ;;  %v2210_v43 = vadd.f32 %v2082_v26, %v1954_v0  ;;  %v10012_v48 = vld [vmem:[#allocation11 + $0x120] ss:$16 sps:$4 sm:$0xff]  }
 0x378   : > { %v10017_v54 = vld [vmem:[#allocation11 + $0x104] ss:$16 sps:$4 sm:$0xff]   ;;  %v2085_v26 = vld [vmem:[#allocation2 + $0x68] sm:$0xff] }
 0x379   : > { %4847 = vmatpush2.bf16.msra.mxu0 %v9997_v41  ;;  %v10011_v41 = vld [vmem:[#allocation11 + $0x144] ss:$16 sps:$4 sm:$0xff]  }
 0x37a   : > { %4848 = vmatprep.subr.bf16.mxu0 %v10002_v13  ;;  %v1941_v13 = vld [vmem:[%s11153_s27 + $0x350] sm:$0xff] }
 0x37b   : > { %3562 = vmatmul.mubr.bf16.gmra.mxu0 %v11557_v50  ;;  %v10003_v50 = vld [vmem:[#allocation11 + $0x180] ss:$16 sps:$4 sm:$0xff]  }
 0x37c   : > { %3571 = vmatprep.mubr.bf16.mxu0 %v11386_v6  ;;  %v2193_v6 = vadd.f32 %v2065_v36, %v1937_v33  ;;  %v11698_v33 = vpack.c.bf16 %v2202_v38, %v2198_v2  ;;  %v2197_v36 = vadd.f32 %v2069_v21, %v1941_v13  ;;  %v1958_v38 = vld [vmem:[%s11153_s27 + $0x3d8] sm:$0xff]  ;;  %v2090_v13 = vld [vmem:[#allocation2 + $0x190] sm:$0xff] }
 0x37d   : > { %4849 = vmatpush2.bf16.msra.mxu0 %v10000_v37  ;;  %v1950_v37 = vld [vmem:[%s11153_s27 + $0x398] sm:$0xff]  ;;  %v1957_v0 = vld [vmem:[%s11153_s27 + $0x3d0] sm:$0xff] }
 0x37e   : > { %3399 = vmatmul.mubr.bf16.gmra.mxu1 %v11670_v60  ;;  %4850 = vmatprep.subr.bf16.mxu0 %v10005_v35  ;;  %v11694_v22 = vpack.c.bf16 %v2193_v6, %v2189_v58  ;;  %v2078_v35 = vld [vmem:[#allocation2 + $0xc8] sm:$0xff]  ;;  %v2077_v58 = vld [vmem:[#allocation2 + $0x370] sm:$0xff] }
 0x37f   : > { %3408 = vmatprep.mubr.bf16.mxu1 %v11674_v1  ;;  %v2206_v10 = vadd.f32 %v2078_v35, %v1950_v37  ;;  %v2081_v6 = vld [vmem:[#allocation2 + $0x228] sm:$0xff]  ;;  %v1961_v35 = vld [vmem:[%s11153_s27 + $0x3f0] sm:$0xff] }
 0x381   : > { %4851 = vmatpush2.bf16.msra.mxu0 %v10003_v50  ;;  %v1949_v50 = vld [vmem:[%s11153_s27 + $0x390] sm:$0xff] }
 0x382   : > { %4852 = vmatprep.subr.bf16.mxu0 %v10008_v52  ;;  %v1953_v52 = vld [vmem:[%s11153_s27 + $0x3b0] sm:$0xff]  ;;  %v2205_v21 = vadd.f32 %v2077_v58, %v1949_v50 }
 0x383   : > { %3572 = vmatmul.mubr.bf16.gmra.mxu0 %v11395_v42  ;;  %v10009_v42 = vld [vmem:[#allocation11 + $0x140] ss:$16 sps:$4 sm:$0xff]  }
 0x384   : > { %3581 = vmatprep.mubr.bf16.mxu0 %v11399_v46  ;;  %v2201_v46 = vadd.f32 %v2073_v59, %v1945_v45  ;;  %v11710_v45 = vpack.c.bf16 %v2210_v43, %v2206_v10  ;;  %v2209_v59 = vadd.f32 %v2081_v6, %v1953_v52  ;;  %v10023_v43 = vld [vmem:[#allocation11 + $0x2c4] ss:$16 sps:$4 sm:$0xff]  }
 0x385   : > { %4853 = vmatpush2.bf16.msra.mxu0 %v10006_v14  ;;  %v1962_v14 = vld [vmem:[%s11153_s27 + $0x3f8] sm:$0xff]  ;;  %v10032_v6 = vld [vmem:[#allocation11 + $0x264] ss:$16 sps:$4 sm:$0xff]  }
 0x386   : > { %3409 = vmatmul.mubr.bf16.gmra.mxu1 %v11682_v40  ;;  %4854 = vmatprep.subr.bf16.mxu0 %v10011_v41  ;;  %v11706_v2 = vpack.c.bf16 %v2201_v46, %v2197_v36  ;;  %v2086_v41 = vld [vmem:[#allocation2] sm:$0xff]  ;;  %v2218_v37 = vadd.f32 %v2090_v13, %v1962_v14  ;;  %v2213_v46 = vadd.f32 %v2085_v26, %v1957_v0 }
 0x387   : > { %3418 = vmatprep.mubr.bf16.mxu1 %v11686_v27 }
 0x389   : > { %4855 = vmatpush2.bf16.msra.mxu0 %v10009_v42  ;;  %v2089_v42 = vld [vmem:[#allocation2 + $0x310] sm:$0xff] }
 0x38a   : > { %4856 = vmatprep.subr.bf16.mxu0 %v10014_v24  ;;  %v11718_v24 = vpack.c.bf16 %v2209_v59, %v2205_v21  ;;  %v2217_v10 = vadd.f32 %v2089_v42, %v1961_v35  ;;  %v10033_v59 = vld [vmem:[#allocation11 + $0x240] ss:$16 sps:$4 sm:$0xff]  }
 0x38b   : > { %3582 = vmatmul.mubr.bf16.gmra.mxu0 %v11413_v11  ;;  %v10015_v11 = vld [vmem:[#allocation11 + $0x100] ss:$16 sps:$4 sm:$0xff]  }
 0x38c   : > { %3591 = vmatprep.mubr.bf16.mxu0 %v11419_v18  ;;  %v2214_v18 = vadd.f32 %v2086_v41, %v1958_v38  ;;  %v10047_v41 = vld [vmem:[#allocation11 + $0xec] ss:$16 sps:$4 sm:$0xff]  }
 0x38d   : > { %4857 = vmatpush2.bf16.msra.mxu0 %v10012_v48 }
 0x38e   : > { %3419 = vmatmul.mubr.bf16.gmra.mxu1 %v11694_v22  ;;  %4858 = vmatprep.subr.bf16.mxu0 %v10017_v54  ;;  %v11720_v36 = vpack.c.bf16 %v2218_v37, %v2214_v18  ;;  %v10038_v37 = vld [vmem:[#allocation11 + $0x224] ss:$16 sps:$4 sm:$0xff]  }
 0x38f   : > { %3428 = vmatprep.mubr.bf16.mxu1 %v11698_v33 }
 0x391   : > { %4859 = vmatpush2.bf16.msra.mxu0 %v10015_v11  ;;  %v10035_v11 = vld [vmem:[#allocation11 + $0x244] ss:$16 sps:$4 sm:$0xff]  }
 0x392   : > { %5214 = vmatprep.subr.bf16.mxu0 %v10047_v41 }
 0x393   : > { %3592 = vmatmul.mubr.bf16.gmra.mxu0 %v11436_v47  ;;  %v11726_v47 = vpack.c.bf16 %v2217_v10, %v2213_v46 }
 0x394   : > { %3601 = vmatprep.mubr.bf16.mxu0 %v11441_v55  ;;  %v10018_v55 = vld [vmem:[#allocation11 + $0x2e0] ss:$16 sps:$4 sm:$0xff]  }
 0x396   : > { %3429 = vmatmul.mubr.bf16.gmra.mxu1 %v11706_v2 }
 0x397   : > { %3438 = vmatprep.mubr.bf16.mxu1 %v11710_v45 }
 0x39b   : > { %3602 = vmatmul.mubr.bf16.gmra.mxu0 %v11454_v20  ;;  %v10021_v20 = vld [vmem:[#allocation11 + $0x2c0] ss:$16 sps:$4 sm:$0xff]  }
 0x39c   : > { %3611 = vmatprep.mubr.bf16.mxu0 %v11459_v29  ;;  %v10026_v29 = vld [vmem:[#allocation11 + $0x2a4] ss:$16 sps:$4 sm:$0xff]  }
 0x39e   : > { %3439 = vmatmul.mubr.bf16.gmra.mxu1 %v11718_v24 }
 0x39f   : > { %3448 = vmatprep.mubr.bf16.mxu1 %v11720_v36 }
 0x3a3   : > { %3612 = vmatmul.mubr.bf16.gmra.mxu0 %v11475_v63 }
 0x3a4   : > { %3621 = vmatprep.mubr.bf16.mxu0 %v11478_v7 }
 0x3a6   : > { %3449 = vmatmul.mubr.bf16.gmra.mxu1 %v11726_v47 }
 0x3a7   : > { %3684 = vmatprep.mubr.bf16.mxu1 %v11533_v28  ;;  %v10024_v28 = vld [vmem:[#allocation11 + $0x2a0] ss:$16 sps:$4 sm:$0xff]  }
 0x3ab   : > { %3622 = vmatmul.mubr.bf16.gmra.mxu0 %v11493_v49 }
 0x3ac   : > { %3631 = vmatprep.mubr.bf16.mxu0 %v11498_v53  ;;  %v10027_v53 = vld [vmem:[#allocation11 + $0x280] ss:$16 sps:$4 sm:$0xff]  }
 0x3ae   : > { %v11732_v48 = vpop.f32.mrf.mxu1  ;;  %3685 = vmatmul.mubr.bf16.vlgmr.msra.gmra.mxu1 %v11549_v16  ;;  %v11742_v7 = vpop.f32.mrf.mxu0  ;;  %v10029_v16 = vld [vmem:[#allocation11 + $0x284] ss:$16 sps:$4 sm:$0xff]  }
 0x3af   : > { %3694 = vmatprep.mubr.bf16.mxu1 %v11551_v25  ;;  %5022 = vmatpush1.bf16.msra.mxu1 %v10018_v55  ;;  %v10039_v55 = vld [vmem:[#allocation11 + $0x200] ss:$16 sps:$4 sm:$0xff]  }
 0x3b0   : > { %v11736_v54 = vpop.f32.mrf.mxu1  ;;  %5023 = vmatprep.subr.bf16.mxu1 %v10023_v43  ;;  %v11746_v25 = vpop.f32.mrf.mxu0 }
 0x3b2   : > { %v11740_v63 = vpop.f32.mrf.mxu1  ;;  %v11752_v49 = vpop.f32.mrf.mxu0 }
 0x3b3   : > { %5024 = vmatpush1.bf16.msra.mxu1 %v10021_v20  ;;  %3632 = vmatmul.mubr.bf16.gmra.mxu0 %v11511_v30  ;;  %v10044_v20 = vld [vmem:[#allocation11 + $0x3e4] ss:$16 sps:$4 sm:$0xff]  }
 0x3b4   : > { %v11744_v50 = vpop.f32.mrf.mxu1  ;;  %5025 = vmatprep.subr.bf16.mxu1 %v10026_v29  ;;  %v11757_v38 = vpop.f32.mrf.mxu0  ;;  %3641 = vmatprep.mubr.bf16.mxu0 %v11515_v39 }
 0x3b6   : > { %v11748_v52 = vpop.f32.mrf.mxu1  ;;  %3695 = vmatmul.mubr.bf16.gmra.mxu1 %v11566_v4  ;;  %v11762_v4 = vpop.f32.mrf.mxu0 }
 0x3b7   : > { %3704 = vmatprep.mubr.bf16.mxu1 %v11568_v12  ;;  %5026 = vmatpush1.bf16.msra.mxu1 %v10024_v28  ;;  %v10030_v12 = vld [vmem:[#allocation11 + $0x260] ss:$16 sps:$4 sm:$0xff]  }
 0x3b8   : > { %v11754_v58 = vpop.f32.mrf.mxu1  ;;  %5027 = vmatprep.subr.bf16.mxu1 %v10029_v16  ;;  %v11766_v21 = vpop.f32.mrf.mxu0 }
 0x3b9   : > { %15318 = vst [vmem:[#allocation36_spill] sm:$0xff] %v11754_v58 }
 0x3ba   : > { %v11760_v14 = vpop.f32.mrf.mxu1  ;;  %v11772_v39 = vpop.f32.mrf.mxu0 }
 0x3bb   : > { %15319 = vst [vmem:[#allocation37_spill] sm:$0xff] %v11760_v14  ;;  %5028 = vmatpush1.bf16.msra.mxu1 %v10027_v53  ;;  %3642 = vmatmul.mubr.bf16.gmra.mxu0 %v11528_v19  ;;  %v10042_v53 = vld [vmem:[#allocation11 + $0x3e0] ss:$16 sps:$4 sm:$0xff]  }
 0x3bc   : > { %v11764_v13 = vpop.f32.mrf.mxu1  ;;  %5029 = vmatprep.subr.bf16.mxu1 %v10032_v6  ;;  %v11777_v0 = vpop.f32.mrf.mxu0 }
 0x3bd   : > { %15320 = vst [vmem:[#allocation38_spill] sm:$0xff] %v11764_v13 }
 0x3be   : > { %v11768_v30 = vpop.f32.mrf.mxu1  ;;  %3705 = vmatmul.mubr.bf16.gmra.mxu1 %v11576_v57  ;;  %v11781_v26 = vpop.f32.mrf.mxu0  ;;  %v10036_v57 = vld [vmem:[#allocation11 + $0x220] ss:$16 sps:$4 sm:$0xff]  }
 0x3bf   : > { %15321 = vst [vmem:[#allocation39_spill] sm:$0xff] %v11768_v30  ;;  %3714 = vmatprep.mubr.bf16.mxu1 %v11580_v9  ;;  %5030 = vmatpush1.bf16.msra.mxu1 %v10030_v12  ;;  %v10041_v9 = vld [vmem:[#allocation11 + $0x204] ss:$16 sps:$4 sm:$0xff]  }
 0x3c0   : > { %v11774_v18 = vpop.f32.mrf.mxu1  ;;  %5031 = vmatprep.subr.bf16.mxu1 %v10035_v11  ;;  %v11785_v46 = vpop.f32.mrf.mxu0  ;;  %v10051_v11 = vld [vmem:[#allocation11 + $0x3c0] ss:$16 sps:$4 sm:$0xff]  }
 0x3c1   : > { %15322 = vst [vmem:[#allocation40_spill] sm:$0xff] %v11774_v18 }
 0x3c2   : > { %v11779_v35 = vpop.f32.mrf.mxu1  ;;  %v11791_v19 = vpop.f32.mrf.mxu0 }
 0x3c3   : > { %15323 = vst [vmem:[#allocation41_spill] sm:$0xff] %v11779_v35  ;;  %5032 = vmatpush1.bf16.msra.mxu1 %v10033_v59 }
 0x3c4   : > { %v11783_v42 = vpop.f32.mrf.mxu1  ;;  %5033 = vmatprep.subr.bf16.mxu1 %v10038_v37  ;;  %v11795_v29 = vpop.f32.mrf.mxu0  ;;  %v10062_v37 = vld [vmem:[#allocation11 + $0x3a4] ss:$16 sps:$4 sm:$0xff]  }
 0x3c5   : > { %15324 = vst [vmem:[#allocation42_spill] sm:$0xff] %v11783_v42 }
 0x3c6   : > { %v11787_v10 = vpop.f32.mrf.mxu1  ;;  %3715 = vmatmul.mubr.bf16.gmra.mxu1 %v11585_v34  ;;  %v11799_v16 = vpop.f32.mrf.mxu0  ;;  %v10053_v34 = vld [vmem:[#allocation11 + $0x3c4] ss:$16 sps:$4 sm:$0xff]  }
 0x3c7   : > { %15325 = vst [vmem:[#allocation43_spill] sm:$0xff] %v11787_v10  ;;  %3724 = vmatprep.mubr.bf16.mxu1 %v11588_v51  ;;  %5034 = vmatpush1.bf16.msra.mxu1 %v10036_v57 }
 0x3c8   : > { %v11793_v43 = vpop.f32.mrf.mxu1  ;;  %5035 = vmatprep.subr.bf16.mxu1 %v10041_v9  ;;  %v11803_v51 = vpop.f32.mrf.mxu0 }
 0x3c9   : > { %15326 = vst [vmem:[#allocation44_spill] sm:$0xff] %v11793_v43 }
 0x3ca   : > { %v11797_v28 = vpop.f32.mrf.mxu1  ;;  %v11809_v12 = vpop.f32.mrf.mxu0 }
 0x3cb   : > { %15327 = vst [vmem:[#allocation45_spill] sm:$0xff] %v11797_v28  ;;  %5036 = vmatpush1.bf16.msra.mxu1 %v10039_v55  ;;  %v10089_v28 = vld [vmem:[#allocation11 + $0x344] ss:$16 sps:$4 sm:$0xff]  }
 0x3cc   : > { %v11801_v6 = vpop.f32.mrf.mxu1  ;;  %5037 = vmatprep.subr.bf16.mxu1 %v10044_v20  ;;  %v11813_v57 = vpop.f32.mrf.mxu0  ;;  %v10060_v20 = vld [vmem:[#allocation11 + $0x3a0] ss:$16 sps:$4 sm:$0xff]  }
 0x3cd   : > { %15328 = vst [vmem:[#allocation46_spill] sm:$0xff] %v11801_v6 }
 0x3ce   : > { %v11805_v41 = vpop.f32.mrf.mxu1  ;;  %3725 = vmatmul.mubr.bf16.gmra.mxu1 %v11597_v17  ;;  %v11817_v55 = vpop.f32.mrf.mxu0 }
 0x3cf   : > { %15329 = vst [vmem:[#allocation47_spill] sm:$0xff] %v11805_v41  ;;  %3734 = vmatprep.mubr.bf16.mxu1 %v11600_v3  ;;  %5038 = vmatpush2.bf16.msra.mxu1 %v10042_v53 }
 0x3d0   : > { %v11811_v59 = vpop.f32.mrf.mxu1  ;;  %5039 = vmatprep.subr.bf16.mxu1 %v10053_v34  ;;  %v11821_v17 = vpop.f32.mrf.mxu0  ;;  %v10069_v34 = vld [vmem:[#allocation11 + $0x380] ss:$16 sps:$4 sm:$0xff]  }
 0x3d1   : > { %15330 = vst [vmem:[#allocation48_spill] sm:$0xff] %v11811_v59 }
 0x3d2   : > { %v11815_v9 = vpop.f32.mrf.mxu1  ;;  %v11827_v53 = vpop.f32.mrf.mxu0 }
 0x3d3   : > { %15331 = vst [vmem:[#allocation49_spill] sm:$0xff] %v11815_v9  ;;  %5040 = vmatpush2.bf16.msra.mxu1 %v10051_v11  ;;  %v10071_v9 = vld [vmem:[#allocation11 + $0x384] ss:$16 sps:$4 sm:$0xff]  }
 0x3d4   : > { %v11819_v41 = vpop.f32.mrf.mxu1  ;;  %5041 = vmatprep.subr.bf16.mxu1 %v10062_v37  ;;  %v11831_v11 = vpop.f32.mrf.mxu0 }
 0x3d5   : > { %15332 = vst [vmem:[#allocation50_spill] sm:$0xff] %v11819_v41 }
 0x3d6   : > { %v11823_v3 = vpop.f32.mrf.mxu1  ;;  %3735 = vmatmul.mubr.bf16.gmra.mxu1 %v11609_v61 }
 0x3d7   : > { %15333 = vst [vmem:[#allocation51_spill] sm:$0xff] %v11823_v3  ;;  %3744 = vmatprep.mubr.bf16.mxu1 %v11612_v5  ;;  %5042 = vmatpush2.bf16.msra.mxu1 %v10060_v20  ;;  %v10078_v20 = vld [vmem:[#allocation11 + $0x360] ss:$16 sps:$4 sm:$0xff]  }
 0x3d8   : > { %v11829_v59 = vpop.f32.mrf.mxu1  ;;  %5043 = vmatprep.subr.bf16.mxu1 %v10071_v9  ;;  %v11837_v3 = vpop.f32.mrf.mxu0  ;;  %v2413_v9 = vlaneseq }
 0x3d9   : > { %15334 = vst [vmem:[#allocation52_spill] sm:$0xff] %v11829_v59  ;;  %v10080_v59 = vld [vmem:[#allocation11 + $0x364] ss:$16 sps:$4 sm:$0xff]  }
 0x3da   : > { %v11833_v41 = vpop.f32.mrf.mxu1  ;;  %v11842_v5 = vpop.f32.mrf.mxu0 }
 0x3db   : > { %15335 = vst [vmem:[#allocation53_spill] sm:$0xff] %v11833_v41  ;;  %5044 = vmatpush2.bf16.msra.mxu1 %v10069_v34 }
 0x3dc   : > { %v11835_v37 = vpop.f32.mrf.mxu1  ;;  %5045 = vmatprep.subr.bf16.mxu1 %v10080_v59  ;;  %v11849_v34 = vpop.f32.mrf.mxu0 }
 0x3dd   : > { %15336 = vst [vmem:[#allocation54_spill] sm:$0xff] %v11835_v37 }
 0x3de   : > { %v11839_v61 = vpop.f32.mrf.mxu1  ;;  %3745 = vmatmul.mubr.bf16.gmra.mxu1 %v11622_v56 }
 0x3df   : > { %15337 = vst [vmem:[#allocation55_spill] sm:$0xff] %v11839_v61  ;;  %3754 = vmatprep.mubr.bf16.mxu1 %v11626_v8  ;;  %5046 = vmatpush2.bf16.msra.mxu1 %v10078_v20  ;;  %v11853_v61 = vshrl.u32 %v2413_v9, 7  ;;  %v11858_v8 = vpop.f32.mrf.mxu0  ;;  %v11869_v9 = vld [vmem:[#allocation15] ss:$8 sm:$0xf] }
 0x3e0   : > { %v11845_v6 = vpop.f32.mrf.mxu1  ;;  %5047 = vmatprep.subr.bf16.mxu1 %v10089_v28  ;;  %15346 = vst [vmem:[#allocation64_spill] sm:$0xff] %v11869_v9 }
 0x3e1   : > { %15338 = vst [vmem:[#allocation56_spill] sm:$0xff] %v11845_v6  ;;  %15341 = vst [vmem:[#allocation59_spill] sm:$0xff] %v11853_v61  ;;  %v10087_v6 = vld [vmem:[#allocation11 + $0x340] ss:$16 sps:$4 sm:$0xff]   ;;  %v11867_v20 = vsub.s32 1, %v11853_v61 }
 0x3e2   : > { %v11847_v41 = vpop.f32.mrf.mxu1 }
 0x3e3   : > { %15339 = vst [vmem:[#allocation57_spill] sm:$0xff] %v11847_v41  ;;  %v11864_v41 = vsub.s32 0, %v11853_v61  ;;  %15345 = vst [vmem:[#allocation63_spill] sm:$0xff] %v11867_v20  ;;  %5048 = vmatpush2.bf16.msra.mxu1 %v10087_v6 }
 0x3e4   : > { %v11851_v37 = vpop.f32.mrf.mxu1 }
 0x3e5   : > { %15340 = vst [vmem:[#allocation58_spill] sm:$0xff] %v11851_v37  ;;  %15344 = vst [vmem:[#allocation62_spill] sm:$0xff] %v11864_v41 }
 0x3e6   : > { %v11855_v56 = vpop.f32.mrf.mxu1  ;;  %3755 = vmatmul.mubr.bf16.gmra.mxu1 %v11634_v31  ;;  %v11873_v31 = vpop.f32.mrf.mxu0 }
 0x3e7   : > { %15342 = vst [vmem:[#allocation60_spill] sm:$0xff] %v11855_v56  ;;  %3764 = vmatprep.mubr.bf16.mxu1 %v11638_v62  ;;  %v11879_v62 = vrot.slane %v11869_v9, %v11864_v41  ;;  %v10098_v41 = vld [vmem:[#allocation11 + $0x324] ss:$16 sps:$4 sm:$0xff]  }
 0x3e8   : > { %v11861_v59 = vpop.f32.mrf.mxu1  ;;  %v11886_v28 = vpop.f32.mrf.mxu0  ;;  %5049 = vmatprep.subr.bf16.mxu1 %v10098_v41 }
 0x3e9   : > { %15343 = vst [vmem:[#allocation61_spill] sm:$0xff] %v11861_v59  ;;  %v11883_v59 = vrot.slane %v11869_v9, %v11867_v20  ;;  %v3112_v6 = vadd.f32 %v11752_v49, %v11879_v62  ;;  %v3108_v43 = vadd.f32 %v11742_v7, %v11879_v62  ;;  %v10107_v7 = vld [vmem:[#allocation11 + $0x304] ss:$16 sps:$4 sm:$0xff]   ;;  %v3122_v41 = vadd.f32 %v11772_v39, %v11879_v62 }
 0x3ea   : > { %v11871_v56 = vpop.f32.mrf.mxu1  ;;  %v11897_v10 = vpop.f32.mrf.mxu0 }
 0x3eb   : > { %15347 = vst [vmem:[#allocation65_spill] sm:$0xff] %v11871_v56  ;;  %v3110_v56 = vadd.f32 %v11746_v25, %v11883_v59  ;;  %v3114_v9 = vadd.f32 %v11757_v38, %v11883_v59  ;;  %v3120_v38 = vadd.f32 %v11766_v21, %v11883_v59 }
 0x3ec   : > { %v11875_v37 = vpop.f32.mrf.mxu1  ;;  %v11900_v13 = vpop.f32.mrf.mxu0 }
 0x3ed   : > { %15348 = vst [vmem:[#allocation66_spill] sm:$0xff] %v11875_v37  ;;  %v10096_v37 = vld [vmem:[#allocation11 + $0x320] ss:$16 sps:$4 sm:$0xff]  }
 0x3ee   : > { %v3300_v61 = vpop.f32.mrf.mxu1  ;;  %3765 = vmatmul.mubr.bf16.gmra.mxu1 %v11646_v32  ;;  %v11915_v39 = vpop.f32.mrf.mxu0 }
 0x3ef   : > { %3774 = vmatprep.mubr.bf16.mxu1 %v11650_v44  ;;  %5050 = vmatpush2.bf16.msra.mxu1 %v10096_v37  ;;  %v3301_v35 = vadd.f32 %v3300_v61, %v3108_v43  ;;  %v10105_v43 = vld [vmem:[#allocation11 + $0x300] ss:$16 sps:$4 sm:$0xff]  }
 0x3f0   : > { %v3302_v20 = vpop.f32.mrf.mxu1  ;;  %5051 = vmatprep.subr.bf16.mxu1 %v10107_v7 }
 0x3f1   : > { %v3303_v25 = vadd.f32 %v3302_v20, %v3110_v56  ;;  %v3845_v37 = vmax.f32 %v3301_v35, 0.0 }
 0x3f2   : > { %v3304_v32 = vpop.f32.mrf.mxu1 }
 0x3f3   : > { %v3305_v42 = vadd.f32 %v3304_v32, %v3112_v6  ;;  %v3846_v14 = vmax.f32 %v3303_v25, 0.0  ;;  %5052 = vmatpush2.bf16.msra.mxu1 %v10105_v43  ;;  %v11920_v25 = vpop.f32.mrf.mxu0 }
 0x3f4   : > { %v3306_v49 = vpop.f32.mrf.mxu1 }
 0x3f5   : > { %v3307_v18 = vadd.f32 %v3306_v49, %v3114_v9  ;;  %v3849_v44 = vmax.f32 %v3305_v42, 0.0  ;;  %v3118_v42 = vadd.f32 %v11762_v4, %v11879_v62  ;;  %v10056_v49 = vld [vmem:[#allocation11 + $0xac] ss:$16 sps:$4 sm:$0xff]  }
 0x3f6   : > { %v3310_v30 = vpop.f32.mrf.mxu1  ;;  %3775 = vmatmul.mubr.bf16.gmra.mxu1 %v11658_v15  ;;  %v3124_v15 = vadd.f32 %v11777_v0, %v11883_v59 }
 0x3f7   : > { %v3850_v58 = vmax.f32 %v3307_v18, 0.0  ;;  %3784 = vmatprep.mubr.bf16.mxu1 %v11662_v23  ;;  %v10045_v18 = vld [vmem:[#allocation11 + $0xe8] ss:$16 sps:$4 sm:$0xff]   ;;  %v11913_v21 = vpack.c.bf16 %v3849_v44, %v3845_v37  ;;  %v10050_v23 = vld [vmem:[#allocation11 + $0xcc] ss:$16 sps:$4 sm:$0xff]   ;;  %v3311_v4 = vadd.f32 %v3310_v30, %v3118_v42  ;;  %v3132_v30 = vadd.f32 %v11791_v19, %v11879_v62  ;;  %v11935_v19 = vpop.f32.mrf.mxu0 }
 0x3f8   : > { %v3312_v61 = vpop.f32.mrf.mxu1  ;;  %v3128_v37 = vadd.f32 %v11781_v26, %v11879_v62  ;;  %v3134_v42 = vadd.f32 %v11795_v29, %v11883_v59 }
 0x3f9   : > { %v11911_v56 = vpack.c.bf16 %v3850_v58, %v3846_v14  ;;  %v3313_v9 = vadd.f32 %v3312_v61, %v3120_v38  ;;  %v10048_v58 = vld [vmem:[#allocation11 + $0xc8] ss:$16 sps:$4 sm:$0xff]   ;;  %v3130_v38 = vadd.f32 %v11785_v46, %v11883_v59  ;;  %v3853_v43 = vmax.f32 %v3311_v4, 0.0 }
 0x3fa   : > { %v3314_v20 = vpop.f32.mrf.mxu1 }
 0x3fb   : > { %v3315_v35 = vadd.f32 %v3314_v20, %v3122_v41  ;;  %4860 = vmatprep.mubr.bf16.mxu0 %v11911_v56  ;;  %v3854_v44 = vmax.f32 %v3313_v9, 0.0  ;;  %v10116_v41 = vld [vmem:[#allocation11 + $0x2ec] ss:$16 sps:$4 sm:$0xff]  }
 0x3fc   : > { %v3316_v6 = vpop.f32.mrf.mxu1  ;;  %4861 = vmatmul.mubr.bf16.vlgmr.msra.gmra.mxu0 %v11913_v21  ;;  %5407 = vmatprep.subr.bf16.mxu1 %v10116_v41  ;;  %v3144_v41 = vadd.f32 %v11813_v57, %v11883_v59 }
 0x3fd   : > { %v3317_v32 = vadd.f32 %v3316_v6, %v3124_v15  ;;  %5215 = vmatpush1.bf16.msra.mxu0 %v10045_v18  ;;  %v3857_v14 = vmax.f32 %v3315_v35, 0.0  ;;  %v10054_v15 = vld [vmem:[#allocation11 + $0xa8] ss:$16 sps:$4 sm:$0xff]  }
 0x3fe   : > { %v3320_v0 = vpop.f32.mrf.mxu1  ;;  %3785 = vmatmul.mubr.bf16.gmra.mxu1 %v11670_v60  ;;  %5216 = vmatprep.subr.bf16.mxu0 %v10050_v23  ;;  %v10057_v35 = vld [vmem:[#allocation11 + $0x88] ss:$16 sps:$4 sm:$0xff]  }
 0x3ff   : > { %v3858_v7 = vmax.f32 %v3317_v32, 0.0  ;;  %3794 = vmatprep.mubr.bf16.mxu1 %v11674_v1  ;;  %v11933_v46 = vpack.c.bf16 %v3857_v14, %v3853_v43  ;;  %v10059_v1 = vld [vmem:[#allocation11 + $0x8c] ss:$16 sps:$4 sm:$0xff]   ;;  %v3321_v26 = vadd.f32 %v3320_v0, %v3128_v37  ;;  %v11940_v32 = vpop.f32.mrf.mxu0  ;;  %v3142_v0 = vadd.f32 %v11809_v12, %v11879_v62  ;;  %v10063_v37 = vld [vmem:[#allocation11 + $0x68] ss:$16 sps:$4 sm:$0xff]  }
 0x400   : > { %v3322_v60 = vpop.f32.mrf.mxu1 }
 0x401   : > { %v11931_v61 = vpack.c.bf16 %v3858_v7, %v3854_v44  ;;  %5217 = vmatpush1.bf16.msra.mxu0 %v10048_v58  ;;  %v3323_v20 = vadd.f32 %v3322_v60, %v3130_v38  ;;  %v10065_v58 = vld [vmem:[#allocation11 + $0x6c] ss:$16 sps:$4 sm:$0xff]   ;;  %v3140_v44 = vadd.f32 %v11803_v51, %v11883_v59  ;;  %v3861_v7 = vmax.f32 %v3321_v26, 0.0 }
 0x402   : > { %v3324_v18 = vpop.f32.mrf.mxu1  ;;  %5218 = vmatprep.subr.bf16.mxu0 %v10056_v49  ;;  %v3138_v38 = vadd.f32 %v11799_v16, %v11879_v62 }
 0x403   : > { %v3325_v23 = vadd.f32 %v3324_v18, %v3132_v30  ;;  %4870 = vmatprep.mubr.bf16.mxu0 %v11931_v61  ;;  %v3862_v14 = vmax.f32 %v3323_v20, 0.0  ;;  %v10066_v20 = vld [vmem:[#allocation11 + $0x48] ss:$16 sps:$4 sm:$0xff]  }
 0x404   : > { %v3326_v9 = vpop.f32.mrf.mxu1  ;;  %4871 = vmatmul.mubr.bf16.gmra.mxu0 %v11933_v46 }
 0x405   : > { %v3327_v29 = vadd.f32 %v3326_v9, %v3134_v42  ;;  %5219 = vmatpush1.bf16.msra.mxu0 %v10054_v15  ;;  %v3865_v4 = vmax.f32 %v3325_v23, 0.0 }
 0x406   : > { %v3330_v6 = vpop.f32.mrf.mxu1  ;;  %3795 = vmatmul.mubr.bf16.gmra.mxu1 %v11682_v40  ;;  %5220 = vmatprep.subr.bf16.mxu0 %v10059_v1  ;;  %v11949_v40 = vpop.f32.mrf.mxu0 }
 0x407   : > { %v3866_v49 = vmax.f32 %v3327_v29, 0.0  ;;  %3804 = vmatprep.mubr.bf16.mxu1 %v11686_v27  ;;  %v11955_v51 = vpack.c.bf16 %v3865_v4, %v3861_v7  ;;  %v10068_v27 = vld [vmem:[#allocation11 + $0x4c] ss:$16 sps:$4 sm:$0xff]   ;;  %v3331_v16 = vadd.f32 %v3330_v6, %v3138_v38  ;;  %v3150_v6 = vadd.f32 %v11821_v17, %v11883_v59  ;;  %v10072_v38 = vld [vmem:[#allocation11 + $0x28] ss:$16 sps:$4 sm:$0xff]  }
 0x408   : > { %v3332_v30 = vpop.f32.mrf.mxu1  ;;  %v11957_v12 = vpop.f32.mrf.mxu0  ;;  %v10074_v29 = vld [vmem:[#allocation11 + $0x2c] ss:$16 sps:$4 sm:$0xff]  }
 0x409   : > { %v11953_v43 = vpack.c.bf16 %v3866_v49, %v3862_v14  ;;  %5221 = vmatpush1.bf16.msra.mxu0 %v10057_v35  ;;  %v3333_v42 = vadd.f32 %v3332_v30, %v3140_v44  ;;  %v3869_v14 = vmax.f32 %v3331_v16, 0.0  ;;  %v3148_v49 = vadd.f32 %v11817_v55, %v11879_v62 }
 0x40a   : > { %v3334_v60 = vpop.f32.mrf.mxu1  ;;  %5222 = vmatprep.subr.bf16.mxu0 %v10065_v58  ;;  %v11961_v57 = vpop.f32.mrf.mxu0  ;;  %v3152_v58 = vadd.f32 %v11827_v53, %v11879_v62 }
 0x40b   : > { %v3335_v15 = vadd.f32 %v3334_v60, %v3142_v0  ;;  %4880 = vmatprep.mubr.bf16.mxu0 %v11953_v43  ;;  %v3870_v35 = vmax.f32 %v3333_v42, 0.0  ;;  %v3154_v0 = vadd.f32 %v11831_v11, %v11883_v59  ;;  %v10075_v42 = vld [vmem:[#allocation11 + $0x8] ss:$16 sps:$4 sm:$0xff]  }
 0x40c   : > { %v3336_v18 = vpop.f32.mrf.mxu1  ;;  %4881 = vmatmul.mubr.bf16.gmra.mxu0 %v11955_v51  ;;  %v11964_v9 = vpop.f32.mrf.mxu0 }
 0x40d   : > { %v3337_v1 = vadd.f32 %v3336_v18, %v3144_v41  ;;  %5223 = vmatpush1.bf16.msra.mxu0 %v10063_v37  ;;  %v3873_v23 = vmax.f32 %v3335_v15, 0.0 }
 0x40e   : > { %v3340_v26 = vpop.f32.mrf.mxu1  ;;  %3805 = vmatmul.mubr.bf16.gmra.mxu1 %v11694_v22  ;;  %5224 = vmatprep.subr.bf16.mxu0 %v10068_v27  ;;  %v11973_v22 = vpop.f32.mrf.mxu0 }
 0x40f   : > { %v3874_v4 = vmax.f32 %v3337_v1, 0.0  ;;  %3814 = vmatprep.mubr.bf16.mxu1 %v11698_v33  ;;  %v11979_v17 = vpack.c.bf16 %v3873_v23, %v3869_v14  ;;  %v10077_v33 = vld [vmem:[#allocation11 + $0xc] ss:$16 sps:$4 sm:$0xff]   ;;  %v3341_v55 = vadd.f32 %v3340_v26, %v3148_v49  ;;  %v3160_v26 = vadd.f32 %v11842_v5, %v11883_v59  ;;  %v10081_v49 = vld [vmem:[#allocation11 + $0x1e8] ss:$16 sps:$4 sm:$0xff]  }
 0x410   : > { %v3342_v44 = vpop.f32.mrf.mxu1  ;;  %v11981_v53 = vpop.f32.mrf.mxu0  ;;  %v10083_v1 = vld [vmem:[#allocation11 + $0x1ec] ss:$16 sps:$4 sm:$0xff]  }
 0x411   : > { %v11977_v7 = vpack.c.bf16 %v3874_v4, %v3870_v35  ;;  %5225 = vmatpush1.bf16.msra.mxu0 %v10066_v20  ;;  %v3343_v41 = vadd.f32 %v3342_v44, %v3150_v6  ;;  %v3877_v35 = vmax.f32 %v3341_v55, 0.0  ;;  %v3158_v4 = vadd.f32 %v11837_v3, %v11879_v62 }
 0x412   : > { %v3344_v30 = vpop.f32.mrf.mxu1  ;;  %5226 = vmatprep.subr.bf16.mxu0 %v10074_v29  ;;  %v11985_v11 = vpop.f32.mrf.mxu0  ;;  %v3162_v29 = vadd.f32 %v11849_v34, %v11879_v62 }
 0x413   : > { %v3345_v37 = vadd.f32 %v3344_v30, %v3152_v58  ;;  %4890 = vmatprep.mubr.bf16.mxu0 %v11977_v7  ;;  %v3878_v20 = vmax.f32 %v3343_v41, 0.0  ;;  %v3164_v58 = vadd.f32 %v11858_v8, %v11883_v59  ;;  %v10084_v41 = vld [vmem:[#allocation11 + $0x1c8] ss:$16 sps:$4 sm:$0xff]  }
 0x414   : > { %v3346_v60 = vpop.f32.mrf.mxu1  ;;  %4891 = vmatmul.mubr.bf16.gmra.mxu0 %v11979_v17  ;;  %v11988_v18 = vpop.f32.mrf.mxu0 }
 0x415   : > { %v3347_v27 = vadd.f32 %v3346_v60, %v3154_v0  ;;  %5227 = vmatpush1.bf16.msra.mxu0 %v10072_v38  ;;  %v3881_v15 = vmax.f32 %v3345_v37, 0.0 }
 0x416   : > { %v3350_v16 = vpop.f32.mrf.mxu1  ;;  %3815 = vmatmul.mubr.bf16.gmra.mxu1 %v11706_v2  ;;  %5228 = vmatprep.subr.bf16.mxu0 %v10077_v33  ;;  %v11997_v2 = vpop.f32.mrf.mxu0 }
 0x417   : > { %v3882_v23 = vmax.f32 %v3347_v27, 0.0  ;;  %3824 = vmatprep.mubr.bf16.mxu1 %v11710_v45  ;;  %v12003_v5 = vpack.c.bf16 %v3881_v15, %v3877_v35  ;;  %v10086_v45 = vld [vmem:[#allocation11 + $0x1cc] ss:$16 sps:$4 sm:$0xff]   ;;  %v3351_v3 = vadd.f32 %v3350_v16, %v3158_v4  ;;  %v3170_v16 = vadd.f32 %v11886_v28, %v11883_v59  ;;  %v10090_v4 = vld [vmem:[#allocation11 + $0x1a8] ss:$16 sps:$4 sm:$0xff]  }
 0x418   : > { %v3352_v6 = vpop.f32.mrf.mxu1  ;;  %v12005_v34 = vpop.f32.mrf.mxu0  ;;  %v10092_v27 = vld [vmem:[#allocation11 + $0x1ac] ss:$16 sps:$4 sm:$0xff]  }
 0x419   : > { %v12001_v14 = vpack.c.bf16 %v3882_v23, %v3878_v20  ;;  %5229 = vmatpush1.bf16.msra.mxu0 %v10075_v42  ;;  %v3353_v0 = vadd.f32 %v3352_v6, %v3160_v26  ;;  %v3885_v20 = vmax.f32 %v3351_v3, 0.0  ;;  %v3168_v23 = vadd.f32 %v11873_v31, %v11879_v62 }
 0x41a   : > { %v3354_v44 = vpop.f32.mrf.mxu1  ;;  %5230 = vmatprep.subr.bf16.mxu0 %v10083_v1  ;;  %v12009_v8 = vpop.f32.mrf.mxu0  ;;  %v3172_v1 = vadd.f32 %v11897_v10, %v11879_v62 }
 0x41b   : > { %v3355_v38 = vadd.f32 %v3354_v44, %v3162_v29  ;;  %4900 = vmatprep.mubr.bf16.mxu0 %v12001_v14  ;;  %v3886_v42 = vmax.f32 %v3353_v0, 0.0  ;;  %v3174_v29 = vadd.f32 %v11900_v13, %v11883_v59  ;;  %v10093_v0 = vld [vmem:[#allocation11 + $0x188] ss:$16 sps:$4 sm:$0xff]  }
 0x41c   : > { %v3356_v30 = vpop.f32.mrf.mxu1  ;;  %4901 = vmatmul.mubr.bf16.gmra.mxu0 %v12003_v5  ;;  %v12012_v60 = vpop.f32.mrf.mxu0 }
 0x41d   : > { %v3357_v33 = vadd.f32 %v3356_v30, %v3164_v58  ;;  %5231 = vmatpush2.bf16.msra.mxu0 %v10081_v49  ;;  %v3889_v37 = vmax.f32 %v3355_v38, 0.0 }
 0x41e   : > { %v3360_v55 = vpop.f32.mrf.mxu1  ;;  %3825 = vmatmul.mubr.bf16.gmra.mxu1 %v11718_v24  ;;  %5232 = vmatprep.subr.bf16.mxu0 %v10086_v45  ;;  %v12021_v24 = vpop.f32.mrf.mxu0 }
 0x41f   : > { %v3890_v15 = vmax.f32 %v3357_v33, 0.0  ;;  %3834 = vmatprep.mubr.bf16.mxu1 %v11720_v36  ;;  %v12027_v28 = vpack.c.bf16 %v3889_v37, %v3885_v20  ;;  %v10095_v36 = vld [vmem:[#allocation11 + $0x18c] ss:$16 sps:$4 sm:$0xff]   ;;  %v3361_v31 = vadd.f32 %v3360_v55, %v3168_v23  ;;  %v3180_v55 = vadd.f32 %v11920_v25, %v11883_v59  ;;  %v10099_v23 = vld [vmem:[#allocation11 + $0x168] ss:$16 sps:$4 sm:$0xff]  }
 0x420   : > { %v3362_v26 = vpop.f32.mrf.mxu1  ;;  %v12029_v10 = vpop.f32.mrf.mxu0  ;;  %v10101_v33 = vld [vmem:[#allocation11 + $0x16c] ss:$16 sps:$4 sm:$0xff]  }
 0x421   : > { %v12025_v35 = vpack.c.bf16 %v3890_v15, %v3886_v42  ;;  %5233 = vmatpush2.bf16.msra.mxu0 %v10084_v41  ;;  %v3363_v58 = vadd.f32 %v3362_v26, %v3170_v16  ;;  %v3893_v42 = vmax.f32 %v3361_v31, 0.0  ;;  %v3178_v15 = vadd.f32 %v11915_v39, %v11879_v62 }
 0x422   : > { %v3364_v6 = vpop.f32.mrf.mxu1  ;;  %5234 = vmatprep.subr.bf16.mxu0 %v10092_v27  ;;  %v12033_v13 = vpop.f32.mrf.mxu0  ;;  %v3182_v27 = vadd.f32 %v11935_v19, %v11879_v62  ;;  %v10104_v19 = vld [vmem:[#allocation11 + $0x14c] ss:$16 sps:$4 sm:$0xff]  }
 0x423   : > { %v3365_v49 = vadd.f32 %v3364_v6, %v3172_v1  ;;  %4910 = vmatprep.mubr.bf16.mxu0 %v12025_v35  ;;  %v3894_v41 = vmax.f32 %v3363_v58, 0.0 }
 0x424   : > { %v3366_v44 = vpop.f32.mrf.mxu1  ;;  %4911 = vmatmul.mubr.bf16.gmra.mxu0 %v12027_v28  ;;  %v12036_v30 = vpop.f32.mrf.mxu0 }
 0x425   : > { %v3367_v45 = vadd.f32 %v3366_v44, %v3174_v29  ;;  %5235 = vmatpush2.bf16.msra.mxu0 %v10090_v4  ;;  %v3897_v38 = vmax.f32 %v3365_v49, 0.0  ;;  %v10102_v49 = vld [vmem:[#allocation11 + $0x148] ss:$16 sps:$4 sm:$0xff]  }
 0x426   : > { %v3370_v3 = vpop.f32.mrf.mxu1  ;;  %3835 = vmatmul.mubr.bf16.gmra.mxu1 %v11726_v47  ;;  %5236 = vmatprep.subr.bf16.mxu0 %v10095_v36  ;;  %v12044_v1 = vpop.f32.mrf.mxu0  ;;  %v3184_v47 = vadd.f32 %v11940_v32, %v11883_v59 }
 0x427   : > { %v3898_v37 = vmax.f32 %v3367_v45, 0.0  ;;  %v12050_v26 = vpack.c.bf16 %v3897_v38, %v3893_v42  ;;  %v3371_v39 = vadd.f32 %v3370_v3, %v3178_v15  ;;  %v3188_v38 = vadd.f32 %v11732_v48, %v11879_v62 }
 0x428   : > { %v3372_v16 = vpop.f32.mrf.mxu1  ;;  %v12052_v29 = vpop.f32.mrf.mxu0  ;;  %v3192_v42 = vadd.f32 %v11740_v63, %v11879_v62 }
 0x429   : > { %v12048_v20 = vpack.c.bf16 %v3898_v37, %v3894_v41  ;;  %5237 = vmatpush2.bf16.msra.mxu0 %v10093_v0  ;;  %15350 = vst [vmem:[#allocation68_spill] sm:$0xff] %v12050_v26  ;;  %v3373_v4 = vadd.f32 %v3372_v16, %v3180_v55  ;;  %v10110_v0 = vld [vmem:[#allocation11 + $0x12c] ss:$16 sps:$4 sm:$0xff]   ;;  %v3901_v3 = vmax.f32 %v3371_v39, 0.0 }
 0x42a   : > { %v3374_v25 = vpop.f32.mrf.mxu1  ;;  %5238 = vmatprep.subr.bf16.mxu0 %v10101_v33  ;;  %v12056_v32 = vpop.f32.mrf.mxu0 }
 0x42b   : > { %15349 = vst [vmem:[#allocation67_spill] sm:$0xff] %v12048_v20  ;;  %v3375_v6 = vadd.f32 %v3374_v25, %v3182_v27  ;;  %4920 = vmatprep.mubr.bf16.mxu0 %v12048_v20  ;;  %v3902_v33 = vmax.f32 %v3373_v4, 0.0  ;;  %v3190_v27 = vadd.f32 %v11736_v54, %v11883_v59  ;;  %v3194_v4 = vadd.f32 %v11744_v50, %v11883_v59 }
 0x42c   : > { %v3376_v36 = vpop.f32.mrf.mxu1  ;;  %4921 = vmatmul.mubr.bf16.gmra.mxu0 %v12050_v26  ;;  %v12058_v45 = vpop.f32.mrf.mxu0  ;;  %v3198_v50 = vadd.f32 %v11748_v52, %v11879_v62  ;;  %v15357_v52 = vld [vmem:[#allocation38_spill] sm:$0xff] }
 0x42d   : > { %v3377_v58 = vadd.f32 %v3376_v36, %v3184_v47  ;;  %5239 = vmatpush2.bf16.msra.mxu0 %v10099_v23  ;;  %v3905_v31 = vmax.f32 %v3375_v6, 0.0  ;;  %v10108_v47 = vld [vmem:[#allocation11 + $0x128] ss:$16 sps:$4 sm:$0xff]  }
 0x42e   : > { %v3380_v44 = vpop.f32.mrf.mxu1  ;;  %5240 = vmatprep.subr.bf16.mxu0 %v10104_v19  ;;  %v12062_v55 = vpop.f32.mrf.mxu0  ;;  %v10113_v19 = vld [vmem:[#allocation11 + $0x10c] ss:$16 sps:$4 sm:$0xff]  }
 0x42f   : > { %v3906_v41 = vmax.f32 %v3377_v58, 0.0  ;;  %v3381_v15 = vadd.f32 %v3380_v44, %v3188_v38  ;;  %v12070_v23 = vpack.c.bf16 %v3905_v31, %v3901_v3  ;;  %v10111_v31 = vld [vmem:[#allocation11 + $0x108] ss:$16 sps:$4 sm:$0xff]  }
 0x430   : > { %v3382_v37 = vpop.f32.mrf.mxu1  ;;  %v12072_v25 = vpop.f32.mrf.mxu0 }
 0x431   : > { %v12068_v16 = vpack.c.bf16 %v3906_v41, %v3902_v33  ;;  %5241 = vmatpush2.bf16.msra.mxu0 %v10102_v49  ;;  %15352 = vst [vmem:[#allocation70_spill] sm:$0xff] %v12070_v23  ;;  %v3383_v6 = vadd.f32 %v3382_v37, %v3190_v27  ;;  %v3909_v36 = vmax.f32 %v3381_v15, 0.0  ;;  %v15354_v27 = vld [vmem:[#allocation36_spill] sm:$0xff]  ;;  %v15355_v15 = vld [vmem:[#allocation37_spill] sm:$0xff] }
 0x432   : > { %v3384_v48 = vpop.f32.mrf.mxu1  ;;  %5242 = vmatprep.subr.bf16.mxu0 %v10110_v0  ;;  %v12078_v39 = vpop.f32.mrf.mxu0 }
 0x433   : > { %15351 = vst [vmem:[#allocation69_spill] sm:$0xff] %v12068_v16  ;;  %v3385_v54 = vadd.f32 %v3384_v48, %v3192_v42  ;;  %4930 = vmatprep.mubr.bf16.mxu0 %v12068_v16  ;;  %v3910_v38 = vmax.f32 %v3383_v6, 0.0  ;;  %v3200_v42 = vadd.f32 %v15354_v27, %v11883_v59  ;;  %v3204_v6 = vadd.f32 %v15357_v52, %v11883_v59 }
 0x434   : > { %v3386_v63 = vpop.f32.mrf.mxu1  ;;  %4931 = vmatmul.mubr.bf16.gmra.mxu0 %v12070_v23  ;;  %v12080_v0 = vpop.f32.mrf.mxu0 }
 0x435   : > { %v3913_v58 = vmax.f32 %v3385_v54, 0.0  ;;  %v3387_v49 = vadd.f32 %v3386_v63, %v3194_v4  ;;  %5243 = vmatpush2.bf16.msra.mxu0 %v10108_v47  ;;  %v3202_v47 = vadd.f32 %v15355_v15, %v11879_v62 }
 0x436   : > { %v3390_v44 = vpop.f32.mrf.mxu1  ;;  %5244 = vmatprep.subr.bf16.mxu0 %v10113_v19  ;;  %v12086_v37 = vpop.f32.mrf.mxu0 }
 0x437   : > { %v12084_v33 = vpack.c.bf16 %v3913_v58, %v3909_v36  ;;  %v3914_v41 = vmax.f32 %v3387_v49, 0.0  ;;  %v3391_v48 = vadd.f32 %v3390_v44, %v3198_v50 }
 0x438   : > { %v3392_v3 = vpop.f32.mrf.mxu1  ;;  %v12094_v54 = vpop.f32.mrf.mxu0 }
 0x439   : > { %15353 = vst [vmem:[#allocation71_spill] sm:$0xff] %v12084_v33  ;;  %v12092_v4 = vpack.c.bf16 %v3914_v41, %v3910_v38  ;;  %5245 = vmatpush2.bf16.msra.mxu0 %v10111_v31  ;;  %v3393_v63 = vadd.f32 %v3392_v3, %v3200_v42  ;;  %v3917_v27 = vmax.f32 %v3391_v48, 0.0  ;;  %v15358_v41 = vld [vmem:[#allocation39_spill] sm:$0xff]  ;;  %v15362_v48 = vld [vmem:[#allocation41_spill] sm:$0xff] }
 0x43a   : > { %v3394_v19 = vpop.f32.mrf.mxu1  ;;  %v12100_v49 = vpop.f32.mrf.mxu0  ;;  %v3208_v15 = vadd.f32 %v15358_v41, %v11879_v62 }
 0x43b   : > { %15356 = vst [vmem:[#allocation36_spill] sm:$0xff] %v12092_v4  ;;  %v3395_v36 = vadd.f32 %v3394_v19, %v3202_v47  ;;  %4940 = vmatprep.mubr.bf16.mxu0 %v12092_v4  ;;  %v3918_v23 = vmax.f32 %v3393_v63, 0.0  ;;  %v15361_v19 = vld [vmem:[#allocation40_spill] sm:$0xff]  ;;  %v15365_v63 = vld [vmem:[#allocation42_spill] sm:$0xff] }
 0x43c   : > { %v3396_v58 = vpop.f32.mrf.mxu1  ;;  %4941 = vmatmul.mubr.bf16.gmra.mxu0 %v12084_v33  ;;  %v12102_v31 = vpop.f32.mrf.mxu0  ;;  %v3210_v33 = vadd.f32 %v15361_v19, %v11883_v59 }
 0x43d   : > { %v3921_v44 = vmax.f32 %v3395_v36, 0.0  ;;  %v3397_v50 = vadd.f32 %v3396_v58, %v3204_v6  ;;  %v3212_v36 = vadd.f32 %v15362_v48, %v11879_v62 }
 0x43e   : > { %v3400_v38 = vpop.f32.mrf.mxu1  ;;  %v12108_v47 = vpop.f32.mrf.mxu0 }
 0x43f   : > { %v12106_v52 = vpack.c.bf16 %v3921_v44, %v3917_v27  ;;  %v3922_v3 = vmax.f32 %v3397_v50, 0.0  ;;  %15360 = vst [vmem:[#allocation38_spill] sm:$0xff] %v12108_v47  ;;  %v3401_v6 = vadd.f32 %v3400_v38, %v3208_v15  ;;  %v3214_v27 = vadd.f32 %v15365_v63, %v11883_v59 }
 0x440   : > { %v3402_v42 = vpop.f32.mrf.mxu1  ;;  %v12116_v16 = vpop.f32.mrf.mxu0 }
 0x441   : > { %15359 = vst [vmem:[#allocation37_spill] sm:$0xff] %v12106_v52  ;;  %v12114_v58 = vpack.c.bf16 %v3922_v3, %v3918_v23  ;;  %15364 = vst [vmem:[#allocation40_spill] sm:$0xff] %v12116_v16  ;;  %v3403_v44 = vadd.f32 %v3402_v42, %v3210_v33  ;;  %v3925_v26 = vmax.f32 %v3401_v6, 0.0  ;;  %v15368_v3 = vld [vmem:[#allocation43_spill] sm:$0xff]  ;;  %v15372_v6 = vld [vmem:[#allocation45_spill] sm:$0xff] }
 0x442   : > { %v3404_v4 = vpop.f32.mrf.mxu1  ;;  %v12122_v19 = vpop.f32.mrf.mxu0  ;;  %v3218_v16 = vadd.f32 %v15368_v3, %v11879_v62 }
 0x443   : > { %15363 = vst [vmem:[#allocation39_spill] sm:$0xff] %v12114_v58  ;;  %v3405_v50 = vadd.f32 %v3404_v4, %v3212_v36  ;;  %4950 = vmatprep.mubr.bf16.mxu0 %v12114_v58  ;;  %15366 = vst [vmem:[#allocation41_spill] sm:$0xff] %v12122_v19  ;;  %v3926_v47 = vmax.f32 %v3403_v44, 0.0  ;;  %v15371_v36 = vld [vmem:[#allocation44_spill] sm:$0xff]  ;;  %v15375_v44 = vld [vmem:[#allocation46_spill] sm:$0xff] }
 0x444   : > { %v3406_v41 = vpop.f32.mrf.mxu1  ;;  %4951 = vmatmul.mubr.bf16.gmra.mxu0 %v12106_v52  ;;  %v12124_v15 = vpop.f32.mrf.mxu0  ;;  %v3220_v52 = vadd.f32 %v15371_v36, %v11883_v59 }
 0x445   : > { %v3929_v48 = vmax.f32 %v3405_v50, 0.0  ;;  %v3407_v38 = vadd.f32 %v3406_v41, %v3214_v27  ;;  %15367 = vst [vmem:[#allocation42_spill] sm:$0xff] %v12124_v15  ;;  %v3222_v50 = vadd.f32 %v15372_v6, %v11879_v62 }
 0x446   : > { %v3410_v23 = vpop.f32.mrf.mxu1  ;;  %v12130_v42 = vpop.f32.mrf.mxu0 }
 0x447   : > { %v12128_v63 = vpack.c.bf16 %v3929_v48, %v3925_v26  ;;  %v3930_v33 = vmax.f32 %v3407_v38, 0.0  ;;  %15370 = vst [vmem:[#allocation72_spill] sm:$0xff] %v12130_v42  ;;  %v3411_v27 = vadd.f32 %v3410_v23, %v3218_v16  ;;  %v3224_v26 = vadd.f32 %v15375_v44, %v11883_v59 }
 0x448   : > { %v3412_v4 = vpop.f32.mrf.mxu1  ;;  %v12138_v15 = vpop.f32.mrf.mxu0 }
 0x449   : > { %15369 = vst [vmem:[#allocation43_spill] sm:$0xff] %v12128_v63  ;;  %v12136_v41 = vpack.c.bf16 %v3930_v33, %v3926_v47  ;;  %15374 = vst [vmem:[#allocation45_spill] sm:$0xff] %v12138_v15  ;;  %v3413_v48 = vadd.f32 %v3412_v4, %v3220_v52  ;;  %v3933_v42 = vmax.f32 %v3411_v27, 0.0  ;;  %v15378_v33 = vld [vmem:[#allocation47_spill] sm:$0xff]  ;;  %v15382_v27 = vld [vmem:[#allocation49_spill] sm:$0xff] }
 0x44a   : > { %v3414_v58 = vpop.f32.mrf.mxu1  ;;  %v12144_v36 = vpop.f32.mrf.mxu0  ;;  %v3228_v15 = vadd.f32 %v15378_v33, %v11879_v62 }
 0x44b   : > { %15373 = vst [vmem:[#allocation44_spill] sm:$0xff] %v12136_v41  ;;  %v3415_v38 = vadd.f32 %v3414_v58, %v3222_v50  ;;  %4960 = vmatprep.mubr.bf16.mxu0 %v12136_v41  ;;  %15376 = vst [vmem:[#allocation46_spill] sm:$0xff] %v12144_v36  ;;  %v3934_v19 = vmax.f32 %v3413_v48, 0.0  ;;  %v15381_v50 = vld [vmem:[#allocation48_spill] sm:$0xff]  ;;  %v15385_v48 = vld [vmem:[#allocation50_spill] sm:$0xff] }
 0x44c   : > { %v3416_v3 = vpop.f32.mrf.mxu1  ;;  %4961 = vmatmul.mubr.bf16.gmra.mxu0 %v12128_v63  ;;  %v12146_v23 = vpop.f32.mrf.mxu0  ;;  %v3230_v63 = vadd.f32 %v15381_v50, %v11883_v59 }
 0x44d   : > { %v3937_v6 = vmax.f32 %v3415_v38, 0.0  ;;  %v3417_v16 = vadd.f32 %v3416_v3, %v3224_v26  ;;  %15377 = vst [vmem:[#allocation73_spill] sm:$0xff] %v12146_v23  ;;  %v3232_v38 = vadd.f32 %v15382_v27, %v11879_v62 }
 0x44e   : > { %v3420_v47 = vpop.f32.mrf.mxu1  ;;  %v12152_v4 = vpop.f32.mrf.mxu0 }
 0x44f   : > { %v12150_v44 = vpack.c.bf16 %v3937_v6, %v3933_v42  ;;  %v3938_v52 = vmax.f32 %v3417_v16, 0.0  ;;  %15380 = vst [vmem:[#allocation74_spill] sm:$0xff] %v12152_v4  ;;  %v3421_v26 = vadd.f32 %v3420_v47, %v3228_v15  ;;  %v3234_v42 = vadd.f32 %v15385_v48, %v11883_v59  ;;  %v15387_v47 = vld [vmem:[#allocation51_spill] sm:$0xff] }
 0x450   : > { %v3422_v58 = vpop.f32.mrf.mxu1  ;;  %v12160_v23 = vpop.f32.mrf.mxu0 }
 0x451   : > { %15379 = vst [vmem:[#allocation47_spill] sm:$0xff] %v12150_v44  ;;  %v12158_v3 = vpack.c.bf16 %v3938_v52, %v3934_v19  ;;  %15384 = vst [vmem:[#allocation49_spill] sm:$0xff] %v12160_v23  ;;  %v3423_v6 = vadd.f32 %v3422_v58, %v3230_v63  ;;  %v3941_v4 = vmax.f32 %v3421_v26, 0.0  ;;  %v3238_v52 = vadd.f32 %v15387_v47, %v11879_v62  ;;  %v15390_v58 = vld [vmem:[#allocation52_spill] sm:$0xff] }
 0x452   : > { %v3424_v41 = vpop.f32.mrf.mxu1  ;;  %v12166_v50 = vpop.f32.mrf.mxu0 }
 0x453   : > { %15383 = vst [vmem:[#allocation48_spill] sm:$0xff] %v12158_v3  ;;  %v3425_v16 = vadd.f32 %v3424_v41, %v3232_v38  ;;  %4970 = vmatprep.mubr.bf16.mxu0 %v12158_v3  ;;  %15386 = vst [vmem:[#allocation50_spill] sm:$0xff] %v12166_v50  ;;  %v3942_v23 = vmax.f32 %v3423_v6, 0.0  ;;  %v3240_v38 = vadd.f32 %v15390_v58, %v11883_v59 }
 0x454   : > { %v3426_v33 = vpop.f32.mrf.mxu1  ;;  %4971 = vmatmul.mubr.bf16.gmra.mxu0 %v12150_v44  ;;  %v12172_v41 = vpop.f32.mrf.mxu0  ;;  %v15391_v44 = vld [vmem:[#allocation53_spill] sm:$0xff] }
 0x455   : > { %v3945_v27 = vmax.f32 %v3425_v16, 0.0  ;;  %v3427_v15 = vadd.f32 %v3426_v33, %v3234_v42  ;;  %15389 = vst [vmem:[#allocation75_spill] sm:$0xff] %v12172_v41  ;;  %v3242_v3 = vadd.f32 %v15391_v44, %v11879_v62  ;;  %v15393_v33 = vld [vmem:[#allocation54_spill] sm:$0xff] }
 0x456   : > { %v3430_v19 = vpop.f32.mrf.mxu1  ;;  %v3244_v47 = vadd.f32 %v15393_v33, %v11883_v59 }
 0x457   : > { %v12170_v36 = vpack.c.bf16 %v3945_v27, %v3941_v4  ;;  %v3946_v48 = vmax.f32 %v3427_v15, 0.0  ;;  %v3431_v26 = vadd.f32 %v3430_v19, %v3238_v52  ;;  %v12184_v15 = vpop.f32.mrf.mxu0 }
 0x458   : > { %v3432_v63 = vpop.f32.mrf.mxu1  ;;  %15394 = vst [vmem:[#allocation53_spill] sm:$0xff] %v12184_v15 }
 0x459   : > { %15388 = vst [vmem:[#allocation51_spill] sm:$0xff] %v12170_v36  ;;  %v12178_v16 = vpack.c.bf16 %v3946_v48, %v3942_v23  ;;  %v3433_v6 = vadd.f32 %v3432_v63, %v3240_v38  ;;  %v3949_v58 = vmax.f32 %v3431_v26, 0.0  ;;  %v15395_v23 = vld [vmem:[#allocation55_spill] sm:$0xff]  ;;  %v15398_v38 = vld [vmem:[#allocation56_spill] sm:$0xff] }
 0x45a   : > { %v3434_v42 = vpop.f32.mrf.mxu1  ;;  %v3248_v19 = vadd.f32 %v15395_v23, %v11879_v62 }
 0x45b   : > { %15392 = vst [vmem:[#allocation52_spill] sm:$0xff] %v12178_v16  ;;  %v3435_v4 = vadd.f32 %v3434_v42, %v3242_v3  ;;  %4980 = vmatprep.mubr.bf16.mxu0 %v12178_v16  ;;  %v3950_v52 = vmax.f32 %v3433_v6, 0.0  ;;  %v12190_v3 = vpop.f32.mrf.mxu0  ;;  %v3250_v42 = vadd.f32 %v15398_v38, %v11883_v59 }
 0x45c   : > { %v3436_v27 = vpop.f32.mrf.mxu1  ;;  %4981 = vmatmul.mubr.bf16.gmra.mxu0 %v12170_v36  ;;  %15397 = vst [vmem:[#allocation55_spill] sm:$0xff] %v12190_v3  ;;  %v15399_v36 = vld [vmem:[#allocation57_spill] sm:$0xff] }
 0x45d   : > { %v3953_v41 = vmax.f32 %v3435_v4, 0.0  ;;  %v3437_v50 = vadd.f32 %v3436_v27, %v3244_v47  ;;  %v3252_v16 = vadd.f32 %v15399_v36, %v11879_v62  ;;  %v15401_v27 = vld [vmem:[#allocation58_spill] sm:$0xff] }
 0x45e   : > { %v3440_v44 = vpop.f32.mrf.mxu1  ;;  %v3254_v23 = vadd.f32 %v15401_v27, %v11883_v59 }
 0x45f   : > { %v12188_v48 = vpack.c.bf16 %v3953_v41, %v3949_v58  ;;  %v3954_v33 = vmax.f32 %v3437_v50, 0.0  ;;  %v3441_v26 = vadd.f32 %v3440_v44, %v3248_v19  ;;  %v12202_v58 = vpop.f32.mrf.mxu0  ;;  %v15403_v44 = vld [vmem:[#allocation60_spill] sm:$0xff] }
 0x460   : > { %v3442_v63 = vpop.f32.mrf.mxu1  ;;  %15402 = vst [vmem:[#allocation57_spill] sm:$0xff] %v12202_v58  ;;  %v3258_v19 = vadd.f32 %v15403_v44, %v11879_v62 }
 0x461   : > { %15396 = vst [vmem:[#allocation54_spill] sm:$0xff] %v12188_v48  ;;  %v12196_v4 = vpack.c.bf16 %v3954_v33, %v3950_v52  ;;  %v3443_v6 = vadd.f32 %v3442_v63, %v3250_v42  ;;  %v3957_v38 = vmax.f32 %v3441_v26, 0.0  ;;  %v15404_v63 = vld [vmem:[#allocation59_spill] sm:$0xff]  ;;  %v15408_v26 = vld [vmem:[#allocation61_spill] sm:$0xff] }
 0x462   : > { %v3444_v47 = vpop.f32.mrf.mxu1  ;;  %v12212_v42 = vsub.s32 3, %v15404_v63 }
 0x463   : > { %15400 = vst [vmem:[#allocation56_spill] sm:$0xff] %v12196_v4  ;;  %v3445_v41 = vadd.f32 %v3444_v47, %v3252_v16  ;;  %4990 = vmatprep.mubr.bf16.mxu0 %v12196_v4  ;;  %v3958_v52 = vmax.f32 %v3443_v6, 0.0  ;;  %v12209_v16 = vsub.s32 2, %v15404_v63  ;;  %v15411_v63 = vld [vmem:[#allocation64_spill] sm:$0xff] }
 0x464   : > { %v3446_v50 = vpop.f32.mrf.mxu1  ;;  %4991 = vmatmul.mubr.bf16.gmra.mxu0 %v12188_v48  ;;  %15406 = vst [vmem:[#allocation60_spill] sm:$0xff] %v12212_v42  ;;  %v12214_v48 = vpop.f32.mrf.mxu0 }
 0x465   : > { %v3961_v3 = vmax.f32 %v3445_v41, 0.0  ;;  %v3447_v15 = vadd.f32 %v3446_v50, %v3254_v23  ;;  %15405 = vst [vmem:[#allocation58_spill] sm:$0xff] %v12209_v16  ;;  %15407 = vst [vmem:[#allocation59_spill] sm:$0xff] %v12214_v48  ;;  %v3260_v23 = vadd.f32 %v15408_v26, %v11883_v59  ;;  %v15409_v41 = vld [vmem:[#allocation65_spill] sm:$0xff]  ;;  %v12227_v48 = vrot.slane %v15411_v63, %v12209_v16 }
 0x466   : > { %v3450_v36 = vpop.f32.mrf.mxu1  ;;  %v3262_v50 = vadd.f32 %v15409_v41, %v11879_v62  ;;  %v12230_v26 = vpop.f32.mrf.mxu0  ;;  %v12234_v62 = vrot.slane %v15411_v63, %v12212_v42  ;;  %v10191_v16 = vld [vmem:[#allocation12 + $0xe4] ss:$8 sps:$4 sm:$0xff]  }
 0x467   : > { %v12206_v33 = vpack.c.bf16 %v3961_v3, %v3957_v38  ;;  %v3962_v27 = vmax.f32 %v3447_v15, 0.0  ;;  %v3451_v44 = vadd.f32 %v3450_v36, %v3258_v19  ;;  %v15410_v15 = vld [vmem:[#allocation66_spill] sm:$0xff]  ;;  %v3494_v41 = vadd.f32 %v11949_v40, %v12227_v48 }
 0x468   : > { %v3452_v47 = vpop.f32.mrf.mxu1  ;;  %v3264_v38 = vadd.f32 %v15410_v15, %v11883_v59  ;;  %v3496_v15 = vadd.f32 %v11957_v12, %v12234_v62  ;;  %v3498_v63 = vadd.f32 %v11961_v57, %v12227_v48 }
 0x469   : > { %v12220_v6 = vpack.c.bf16 %v3962_v27, %v3958_v52  ;;  %v3453_v4 = vadd.f32 %v3452_v47, %v3260_v23  ;;  %v3965_v36 = vmax.f32 %v3451_v44, 0.0 }
 0x46a   : > { %v3454_v3 = vpop.f32.mrf.mxu1 }
 0x46b   : > { %v3455_v58 = vadd.f32 %v3454_v3, %v3262_v50  ;;  %5000 = vmatprep.mubr.bf16.mxu0 %v12220_v6  ;;  %v3966_v27 = vmax.f32 %v3453_v4, 0.0  ;;  %v12240_v3 = vpop.f32.mrf.mxu0  ;;  %v3500_v4 = vadd.f32 %v11964_v9, %v12234_v62  ;;  %v3504_v9 = vadd.f32 %v11973_v22, %v12227_v48 }
 0x46c   : > { %v3456_v20 = vpop.f32.mrf.mxu1  ;;  %5001 = vmatmul.mubr.bf16.gmra.mxu0 %v12206_v33  ;;  %v3510_v22 = vadd.f32 %v11988_v18, %v12234_v62  ;;  %v10122_v18 = vld [vmem:[#allocation11 + $0x2ac] ss:$16 sps:$4 sm:$0xff]  }
 0x46d   : > { %v3969_v19 = vmax.f32 %v3455_v58, 0.0  ;;  %v3457_v59 = vadd.f32 %v3456_v20, %v3264_v38 }
 0x46e   : > { %v3686_v52 = vpop.f32.mrf.mxu1 }
 0x46f   : > { %v12236_v47 = vpack.c.bf16 %v3969_v19, %v3965_v36  ;;  %v3970_v23 = vmax.f32 %v3457_v59, 0.0  ;;  %v3687_v40 = vadd.f32 %v3686_v52, %v3494_v41  ;;  %v12252_v19 = vpop.f32.mrf.mxu0  ;;  %v3506_v52 = vadd.f32 %v11981_v53, %v12234_v62 }
 0x470   : > { %v3688_v50 = vpop.f32.mrf.mxu1  ;;  %v3508_v41 = vadd.f32 %v11985_v11, %v12227_v48 }
 0x471   : > { %v12246_v44 = vpack.c.bf16 %v3970_v23, %v3966_v27  ;;  %v3689_v58 = vadd.f32 %v3688_v50, %v3496_v15  ;;  %v3847_v50 = vmax.f32 %v3687_v40, 0.0 }
 0x472   : > { %v3690_v20 = vpop.f32.mrf.mxu1 }
 0x473   : > { %v3691_v38 = vadd.f32 %v3690_v20, %v3498_v63  ;;  %5010 = vmatprep.mubr.bf16.mxu0 %v12246_v44  ;;  %v3848_v27 = vmax.f32 %v3689_v58, 0.0  ;;  %v12257_v63 = vpop.f32.mrf.mxu0 }
 0x474   : > { %v3692_v36 = vpop.f32.mrf.mxu1  ;;  %5011 = vmatmul.mubr.bf16.gmra.mxu0 %v12236_v47 }
 0x475   : > { %v3693_v12 = vadd.f32 %v3692_v36, %v3500_v4  ;;  %5246 = vmatprep.mubr.bf16.mxu0 %v11911_v56  ;;  %v3851_v57 = vmax.f32 %v3691_v38, 0.0  ;;  %v10114_v56 = vld [vmem:[#allocation11 + $0x2e8] ss:$16 sps:$4 sm:$0xff]   ;;  %v10119_v38 = vld [vmem:[#allocation11 + $0x2cc] ss:$16 sps:$4 sm:$0xff]   ;;  %v12272_v53 = vpop.f32.mrf.mxu0 }
 0x476   : > { %v3696_v59 = vpop.f32.mrf.mxu1 }
 0x477   : > { %v3852_v23 = vmax.f32 %v3693_v12, 0.0  ;;  %v12265_v4 = vpack.c.bf16 %v3851_v57, %v3847_v50  ;;  %v3697_v12 = vadd.f32 %v3696_v59, %v3504_v9  ;;  %v10117_v57 = vld [vmem:[#allocation11 + $0x2c8] ss:$16 sps:$4 sm:$0xff]   ;;  %v3514_v59 = vadd.f32 %v11997_v2, %v12227_v48 }
 0x478   : > { %v3698_v15 = vpop.f32.mrf.mxu1  ;;  %v3520_v2 = vadd.f32 %v12012_v60, %v12234_v62  ;;  %v10128_v60 = vld [vmem:[#allocation11 + $0x26c] ss:$16 sps:$4 sm:$0xff]  }
 0x479   : > { %v12263_v20 = vpack.c.bf16 %v3852_v23, %v3848_v27  ;;  %v3699_v40 = vadd.f32 %v3698_v15, %v3506_v52  ;;  %v3855_v9 = vmax.f32 %v3697_v12, 0.0 }
 0x47a   : > { %v3700_v58 = vpop.f32.mrf.mxu1 }
 0x47b   : > { %v3701_v36 = vadd.f32 %v3700_v58, %v3508_v41  ;;  %5053 = vmatprep.mubr.bf16.mxu1 %v12263_v20  ;;  %v3856_v50 = vmax.f32 %v3699_v40, 0.0  ;;  %v12277_v41 = vpop.f32.mrf.mxu0 }
 0x47c   : > { %v3702_v42 = vpop.f32.mrf.mxu1  ;;  %5054 = vmatmul.mubr.bf16.vlgmr.msra.gmra.mxu1 %v12265_v4  ;;  %5247 = vmatmul.mubr.bf16.vlgmr.msra.gmra.mxu0 %v11913_v21  ;;  %v3516_v21 = vadd.f32 %v12005_v34, %v12234_v62 }
 0x47d   : > { %v3703_v11 = vadd.f32 %v3702_v42, %v3510_v22  ;;  %5256 = vmatprep.mubr.bf16.mxu0 %v11931_v61  ;;  %5408 = vmatpush1.bf16.msra.mxu1 %v10114_v56  ;;  %v3859_v27 = vmax.f32 %v3701_v36, 0.0  ;;  %v3518_v61 = vadd.f32 %v12009_v8, %v12227_v48  ;;  %v10120_v56 = vld [vmem:[#allocation11 + $0x2a8] ss:$16 sps:$4 sm:$0xff]   ;;  %v10125_v22 = vld [vmem:[#allocation11 + $0x28c] ss:$16 sps:$4 sm:$0xff]   ;;  %v12292_v8 = vpop.f32.mrf.mxu0 }
 0x47e   : > { %v3706_v23 = vpop.f32.mrf.mxu1  ;;  %5409 = vmatprep.subr.bf16.mxu1 %v10119_v38 }
 0x47f   : > { %v3860_v15 = vmax.f32 %v3703_v11, 0.0  ;;  %v12285_v58 = vpack.c.bf16 %v3859_v27, %v3855_v9  ;;  %v3707_v34 = vadd.f32 %v3706_v23, %v3514_v59  ;;  %v3524_v23 = vadd.f32 %v12021_v24, %v12227_v48 }
 0x480   : > { %v3708_v52 = vpop.f32.mrf.mxu1  ;;  %v3530_v24 = vadd.f32 %v12036_v30, %v12234_v62  ;;  %v10134_v30 = vld [vmem:[#allocation11 + $0x22c] ss:$16 sps:$4 sm:$0xff]  }
 0x481   : > { %v12283_v42 = vpack.c.bf16 %v3860_v15, %v3856_v50  ;;  %5410 = vmatpush1.bf16.msra.mxu1 %v10117_v57  ;;  %v3709_v40 = vadd.f32 %v3708_v52, %v3516_v21  ;;  %v10123_v57 = vld [vmem:[#allocation11 + $0x288] ss:$16 sps:$4 sm:$0xff]   ;;  %v3863_v59 = vmax.f32 %v3707_v34, 0.0  ;;  %v12297_v52 = vpop.f32.mrf.mxu0 }
 0x482   : > { %v3710_v38 = vpop.f32.mrf.mxu1  ;;  %5411 = vmatprep.subr.bf16.mxu1 %v10122_v18 }
 0x483   : > { %v3711_v36 = vadd.f32 %v3710_v38, %v3518_v61  ;;  %5063 = vmatprep.mubr.bf16.mxu1 %v12283_v42  ;;  %v3864_v50 = vmax.f32 %v3709_v40, 0.0  ;;  %v10126_v61 = vld [vmem:[#allocation11 + $0x268] ss:$16 sps:$4 sm:$0xff]  }
 0x484   : > { %v3712_v12 = vpop.f32.mrf.mxu1  ;;  %5064 = vmatmul.mubr.bf16.gmra.mxu1 %v12285_v58  ;;  %5257 = vmatmul.mubr.bf16.gmra.mxu0 %v11933_v46  ;;  %v3526_v46 = vadd.f32 %v12029_v10, %v12234_v62 }
 0x485   : > { %v3713_v11 = vadd.f32 %v3712_v12, %v3520_v2  ;;  %5266 = vmatprep.mubr.bf16.mxu0 %v11953_v43  ;;  %5412 = vmatpush1.bf16.msra.mxu1 %v10120_v56  ;;  %v3867_v27 = vmax.f32 %v3711_v36, 0.0  ;;  %v3528_v43 = vadd.f32 %v12033_v13, %v12227_v48  ;;  %v12312_v13 = vpop.f32.mrf.mxu0  ;;  %v10129_v12 = vld [vmem:[#allocation11 + $0x248] ss:$16 sps:$4 sm:$0xff]  }
 0x486   : > { %v3716_v18 = vpop.f32.mrf.mxu1  ;;  %5413 = vmatprep.subr.bf16.mxu1 %v10125_v22  ;;  %v10131_v22 = vld [vmem:[#allocation11 + $0x24c] ss:$16 sps:$4 sm:$0xff]  }
 0x487   : > { %v3868_v15 = vmax.f32 %v3713_v11, 0.0  ;;  %v12305_v56 = vpack.c.bf16 %v3867_v27, %v3863_v59  ;;  %v3717_v10 = vadd.f32 %v3716_v18, %v3524_v23  ;;  %v3534_v18 = vadd.f32 %v12044_v1, %v12227_v48  ;;  %v12317_v23 = vpop.f32.mrf.mxu0 }
 0x488   : > { %v3718_v9 = vpop.f32.mrf.mxu1  ;;  %v3540_v1 = vadd.f32 %v12058_v45, %v12234_v62  ;;  %v10140_v45 = vld [vmem:[#allocation11 + $0x3ec] ss:$16 sps:$4 sm:$0xff]  }
 0x489   : > { %v12303_v21 = vpack.c.bf16 %v3868_v15, %v3864_v50  ;;  %5414 = vmatpush1.bf16.msra.mxu1 %v10123_v57  ;;  %v3719_v2 = vadd.f32 %v3718_v9, %v3526_v46  ;;  %v3871_v50 = vmax.f32 %v3717_v10, 0.0  ;;  %v10132_v9 = vld [vmem:[#allocation11 + $0x228] ss:$16 sps:$4 sm:$0xff]  }
 0x48a   : > { %v3720_v38 = vpop.f32.mrf.mxu1  ;;  %5415 = vmatprep.subr.bf16.mxu1 %v10128_v60 }
 0x48b   : > { %v3721_v40 = vadd.f32 %v3720_v38, %v3528_v43  ;;  %5073 = vmatprep.mubr.bf16.mxu1 %v12303_v21  ;;  %v3872_v27 = vmax.f32 %v3719_v2, 0.0 }
 0x48c   : > { %v3722_v36 = vpop.f32.mrf.mxu1  ;;  %5074 = vmatmul.mubr.bf16.gmra.mxu1 %v12305_v56  ;;  %5267 = vmatmul.mubr.bf16.gmra.mxu0 %v11955_v51  ;;  %v3536_v51 = vadd.f32 %v12052_v29, %v12234_v62 }
 0x48d   : > { %v3723_v34 = vadd.f32 %v3722_v36, %v3530_v24  ;;  %5276 = vmatprep.mubr.bf16.mxu0 %v11977_v7  ;;  %5416 = vmatpush1.bf16.msra.mxu1 %v10126_v61  ;;  %v3875_v11 = vmax.f32 %v3721_v40, 0.0  ;;  %v3538_v7 = vadd.f32 %v12056_v32, %v12227_v48  ;;  %v10137_v61 = vld [vmem:[#allocation11 + $0x20c] ss:$16 sps:$4 sm:$0xff]   ;;  %v12332_v32 = vpop.f32.mrf.mxu0  ;;  %v10135_v40 = vld [vmem:[#allocation11 + $0x208] ss:$16 sps:$4 sm:$0xff]  }
 0x48e   : > { %v3726_v57 = vpop.f32.mrf.mxu1  ;;  %5417 = vmatprep.subr.bf16.mxu1 %v10131_v22 }
 0x48f   : > { %v3876_v60 = vmax.f32 %v3723_v34, 0.0  ;;  %v12325_v46 = vpack.c.bf16 %v3875_v11, %v3871_v50  ;;  %v3727_v29 = vadd.f32 %v3726_v57, %v3534_v18  ;;  %v10164_v11 = vld [vmem:[#allocation12 + $0x74] ss:$8 sps:$4 sm:$0xff]   ;;  %v3544_v57 = vadd.f32 %v12062_v55, %v12227_v48 }
 0x490   : > { %v3728_v15 = vpop.f32.mrf.mxu1  ;;  %v3548_v18 = vadd.f32 %v12078_v39, %v12227_v48  ;;  %7771 = vmatprep.subr.bf16.mxu0 %v10164_v11  ;;  %v10143_v55 = vld [vmem:[#allocation11 + $0x3cc] ss:$16 sps:$4 sm:$0xff]  }
 0x491   : > { %v12323_v59 = vpack.c.bf16 %v3876_v60, %v3872_v27  ;;  %5418 = vmatpush1.bf16.msra.mxu1 %v10129_v12  ;;  %v3729_v38 = vadd.f32 %v3728_v15, %v3536_v51  ;;  %v10162_v60 = vld [vmem:[#allocation12 + $0x70] ss:$8 sps:$4 sm:$0xff]  }
 0x492   : > { %v3730_v43 = vpop.f32.mrf.mxu1  ;;  %5419 = vmatprep.subr.bf16.mxu1 %v10134_v30  ;;  %v3879_v30 = vmax.f32 %v3727_v29, 0.0  ;;  %v10138_v15 = vld [vmem:[#allocation11 + $0x3e8] ss:$16 sps:$4 sm:$0xff]   ;;  %7772 = vmatpush1.bf16.msra.mxu0 %v10162_v60 }
 0x493   : > { %v3731_v22 = vadd.f32 %v3730_v43, %v3538_v7  ;;  %5083 = vmatprep.mubr.bf16.mxu1 %v12323_v59  ;;  %v3880_v34 = vmax.f32 %v3729_v38, 0.0  ;;  %v10144_v60 = vld [vmem:[#allocation11 + $0x3a8] ss:$16 sps:$4 sm:$0xff]  }
 0x494   : > { %v3732_v24 = vpop.f32.mrf.mxu1  ;;  %5084 = vmatmul.mubr.bf16.gmra.mxu1 %v12325_v46  ;;  %5277 = vmatmul.mubr.bf16.gmra.mxu0 %v11979_v17  ;;  %v12337_v17 = vpop.f32.mrf.mxu0 }
 0x495   : > { %v3733_v2 = vadd.f32 %v3732_v24, %v3540_v1  ;;  %5286 = vmatprep.mubr.bf16.mxu0 %v12001_v14  ;;  %5420 = vmatpush1.bf16.msra.mxu1 %v10132_v9  ;;  %v3883_v10 = vmax.f32 %v3731_v22, 0.0  ;;  %v3546_v14 = vadd.f32 %v12072_v25, %v12234_v62  ;;  %v3550_v9 = vadd.f32 %v12080_v0, %v12234_v62  ;;  %v10167_v25 = vld [vmem:[#allocation12 + $0x64] ss:$8 sps:$4 sm:$0xff]   ;;  %v10165_v22 = vld [vmem:[#allocation12 + $0x60] ss:$8 sps:$4 sm:$0xff]  }
 0x496   : > { %v3736_v36 = vpop.f32.mrf.mxu1  ;;  %5421 = vmatprep.subr.bf16.mxu1 %v10137_v61  ;;  %v12352_v38 = vpop.f32.mrf.mxu0  ;;  %v10141_v24 = vld [vmem:[#allocation11 + $0x3c8] ss:$16 sps:$4 sm:$0xff]   ;;  %7773 = vmatprep.subr.bf16.mxu0 %v10167_v25 }
 0x497   : > { %v3884_v12 = vmax.f32 %v3733_v2, 0.0  ;;  %v12345_v51 = vpack.c.bf16 %v3883_v10, %v3879_v30  ;;  %v3737_v39 = vadd.f32 %v3736_v36, %v3544_v57  ;;  %7774 = vmatpush1.bf16.msra.mxu0 %v10165_v22  ;;  %v10168_v57 = vld [vmem:[#allocation12 + $0x50] ss:$8 sps:$4 sm:$0xff]   ;;  %v3558_v30 = vadd.f32 %v12100_v49, %v12227_v48 }
 0x498   : > { %v3738_v27 = vpop.f32.mrf.mxu1  ;;  %v12357_v11 = vpop.f32.mrf.mxu0 }
 0x499   : > { %v12343_v50 = vpack.c.bf16 %v3884_v12, %v3880_v34  ;;  %5422 = vmatpush1.bf16.msra.mxu1 %v10135_v40  ;;  %v3739_v43 = vadd.f32 %v3738_v27, %v3546_v14  ;;  %v10146_v40 = vld [vmem:[#allocation11 + $0x3ac] ss:$16 sps:$4 sm:$0xff]   ;;  %v3887_v34 = vmax.f32 %v3737_v39, 0.0 }
 0x49a   : > { %v3740_v7 = vpop.f32.mrf.mxu1  ;;  %5423 = vmatprep.subr.bf16.mxu1 %v10140_v45  ;;  %v10170_v45 = vld [vmem:[#allocation12 + $0x54] ss:$8 sps:$4 sm:$0xff]  }
 0x49b   : > { %v3741_v61 = vadd.f32 %v3740_v7, %v3548_v18  ;;  %5093 = vmatprep.mubr.bf16.mxu1 %v12343_v50  ;;  %v3888_v10 = vmax.f32 %v3739_v43, 0.0  ;;  %7775 = vmatprep.subr.bf16.mxu0 %v10170_v45  ;;  %v12372_v43 = vpop.f32.mrf.mxu0  ;;  %v15412_v39 = vld [vmem:[#allocation67_spill] sm:$0xff] }
 0x49c   : > { %v3742_v1 = vpop.f32.mrf.mxu1  ;;  %5094 = vmatmul.mubr.bf16.gmra.mxu1 %v12345_v51  ;;  %5287 = vmatmul.mubr.bf16.gmra.mxu0 %v12003_v5  ;;  %v3554_v5 = vadd.f32 %v12086_v37, %v12227_v48  ;;  %v10149_v37 = vld [vmem:[#allocation11 + $0x38c] ss:$16 sps:$4 sm:$0xff]  }
 0x49d   : > { %v3743_v29 = vadd.f32 %v3742_v1, %v3550_v9  ;;  %5296 = vmatprep.mubr.bf16.mxu0 %v12025_v35  ;;  %5424 = vmatpush2.bf16.msra.mxu1 %v10138_v15  ;;  %v3891_v0 = vmax.f32 %v3741_v61, 0.0  ;;  %v3556_v35 = vadd.f32 %v12094_v54, %v12234_v62  ;;  %v3560_v15 = vadd.f32 %v12102_v31, %v12234_v62  ;;  %v10173_v54 = vld [vmem:[#allocation12 + $0x44] ss:$8 sps:$4 sm:$0xff]   ;;  %v10171_v61 = vld [vmem:[#allocation12 + $0x40] ss:$8 sps:$4 sm:$0xff]   ;;  %v12377_v45 = vpop.f32.mrf.mxu0 }
 0x49e   : > { %v3746_v2 = vpop.f32.mrf.mxu1  ;;  %5425 = vmatprep.subr.bf16.mxu1 %v10143_v55  ;;  %7776 = vmatpush1.bf16.msra.mxu0 %v10168_v57  ;;  %v10147_v31 = vld [vmem:[#allocation11 + $0x388] ss:$16 sps:$4 sm:$0xff]  }
 0x49f   : > { %v3892_v36 = vmax.f32 %v3743_v29, 0.0  ;;  %v12365_v14 = vpack.c.bf16 %v3891_v0, %v3887_v34  ;;  %v3747_v49 = vadd.f32 %v3746_v2, %v3554_v5  ;;  %v10152_v29 = vld [vmem:[#allocation11 + $0x36c] ss:$16 sps:$4 sm:$0xff]   ;;  %7777 = vmatprep.subr.bf16.mxu0 %v10173_v54  ;;  %v10174_v5 = vld [vmem:[#allocation12 + $0x30] ss:$8 sps:$4 sm:$0xff]   ;;  %v15414_v34 = vld [vmem:[#allocation40_spill] sm:$0xff] }
 0x4a0   : > { %v3748_v12 = vpop.f32.mrf.mxu1  ;;  %v10176_v2 = vld [vmem:[#allocation12 + $0x34] ss:$8 sps:$4 sm:$0xff]   ;;  %v15415_v57 = vld [vmem:[#allocation41_spill] sm:$0xff] }
 0x4a1   : > { %v12363_v27 = vpack.c.bf16 %v3892_v36, %v3888_v10  ;;  %5426 = vmatpush2.bf16.msra.mxu1 %v10141_v24  ;;  %v3749_v7 = vadd.f32 %v3748_v12, %v3556_v35  ;;  %v3895_v10 = vmax.f32 %v3747_v49, 0.0  ;;  %v3566_v12 = vadd.f32 %v15414_v34, %v12234_v62 }
 0x4a2   : > { %v3750_v18 = vpop.f32.mrf.mxu1  ;;  %5427 = vmatprep.subr.bf16.mxu1 %v10146_v40  ;;  %7778 = vmatpush1.bf16.msra.mxu0 %v10171_v61  ;;  %v15413_v40 = vld [vmem:[#allocation38_spill] sm:$0xff]  ;;  %v3568_v35 = vadd.f32 %v15415_v57, %v12227_v48 }
 0x4a3   : > { %v3751_v55 = vadd.f32 %v3750_v18, %v3558_v30  ;;  %5103 = vmatprep.mubr.bf16.mxu1 %v12363_v27  ;;  %v3896_v24 = vmax.f32 %v3749_v7, 0.0  ;;  %7779 = vmatprep.subr.bf16.mxu0 %v10176_v2  ;;  %v15416_v7 = vld [vmem:[#allocation42_spill] sm:$0xff] }
 0x4a4   : > { %v3752_v9 = vpop.f32.mrf.mxu1  ;;  %5104 = vmatmul.mubr.bf16.gmra.mxu1 %v12365_v14  ;;  %5297 = vmatmul.mubr.bf16.gmra.mxu0 %v12027_v28  ;;  %v3564_v28 = vadd.f32 %v15413_v40, %v12227_v48 }
 0x4a5   : > { %v3753_v25 = vadd.f32 %v3752_v9, %v3560_v15  ;;  %5306 = vmatprep.mubr.bf16.mxu0 %v15412_v39  ;;  %5428 = vmatpush2.bf16.msra.mxu1 %v10144_v60  ;;  %v3899_v1 = vmax.f32 %v3751_v55, 0.0  ;;  %v10150_v60 = vld [vmem:[#allocation11 + $0x368] ss:$16 sps:$4 sm:$0xff]   ;;  %v10155_v15 = vld [vmem:[#allocation11 + $0x34c] ss:$16 sps:$4 sm:$0xff]   ;;  %v3570_v55 = vadd.f32 %v15416_v7, %v12234_v62  ;;  %v15417_v39 = vld [vmem:[#allocation68_spill] sm:$0xff] }
 0x4a6   : > { %v3756_v22 = vpop.f32.mrf.mxu1  ;;  %5429 = vmatprep.subr.bf16.mxu1 %v10149_v37  ;;  %7780 = vmatpush1.bf16.msra.mxu0 %v10174_v5  ;;  %v10179_v9 = vld [vmem:[#allocation12 + $0x24] ss:$8 sps:$4 sm:$0xff]  }
 0x4a7   : > { %v3900_v0 = vmax.f32 %v3753_v25, 0.0  ;;  %v12385_v18 = vpack.c.bf16 %v3899_v1, %v3895_v10  ;;  %v3757_v61 = vadd.f32 %v3756_v22, %v3564_v28  ;;  %v10177_v1 = vld [vmem:[#allocation12 + $0x20] ss:$8 sps:$4 sm:$0xff]   ;;  %v10158_v10 = vld [vmem:[#allocation11 + $0x32c] ss:$16 sps:$4 sm:$0xff]   ;;  %7781 = vmatprep.subr.bf16.mxu0 %v10179_v9 }
 0x4a8   : > { %v3758_v36 = vpop.f32.mrf.mxu1  ;;  %v10182_v28 = vld [vmem:[#allocation12 + $0x14] ss:$8 sps:$4 sm:$0xff]   ;;  %v15419_v5 = vld [vmem:[#allocation72_spill] sm:$0xff] }
 0x4a9   : > { %v12383_v30 = vpack.c.bf16 %v3900_v0, %v3896_v24  ;;  %5430 = vmatpush2.bf16.msra.mxu1 %v10147_v31  ;;  %v3759_v54 = vadd.f32 %v3758_v36, %v3566_v12  ;;  %v12392_v31 = vpop.f32.mrf.mxu0  ;;  %v15418_v24 = vld [vmem:[#allocation69_spill] sm:$0xff]  ;;  %v3574_v34 = vadd.f32 %v15419_v5, %v12227_v48  ;;  %v3903_v12 = vmax.f32 %v3757_v61, 0.0 }
 0x4aa   : > { %v3760_v37 = vpop.f32.mrf.mxu1  ;;  %5431 = vmatprep.subr.bf16.mxu1 %v10152_v29  ;;  %v10153_v0 = vld [vmem:[#allocation11 + $0x348] ss:$16 sps:$4 sm:$0xff]   ;;  %7782 = vmatpush1.bf16.msra.mxu0 %v10177_v1  ;;  %v10161_v61 = vld [vmem:[#allocation11 + $0x30c] ss:$16 sps:$4 sm:$0xff]  }
 0x4ab   : > { %v3761_v49 = vadd.f32 %v3760_v37, %v3568_v35  ;;  %5113 = vmatprep.mubr.bf16.mxu1 %v12383_v30  ;;  %v3904_v36 = vmax.f32 %v3759_v54, 0.0  ;;  %v12397_v35 = vpop.f32.mrf.mxu0  ;;  %v10180_v37 = vld [vmem:[#allocation12 + $0x10] ss:$8 sps:$4 sm:$0xff]   ;;  %7783 = vmatprep.subr.bf16.mxu0 %v10182_v28  ;;  %v10185_v5 = vld [vmem:[#allocation12 + $0x4] ss:$8 sps:$4 sm:$0xff]  }
 0x4ac   : > { %v3762_v25 = vpop.f32.mrf.mxu1  ;;  %5114 = vmatmul.mubr.bf16.gmra.mxu1 %v12385_v18  ;;  %5307 = vmatmul.mubr.bf16.gmra.mxu0 %v15417_v39  ;;  %v10156_v54 = vld [vmem:[#allocation11 + $0x328] ss:$16 sps:$4 sm:$0xff]   ;;  %v15426_v28 = vld [vmem:[#allocation36_spill] sm:$0xff] }
 0x4ad   : > { %v3763_v29 = vadd.f32 %v3762_v25, %v3570_v55  ;;  %5316 = vmatprep.mubr.bf16.mxu0 %v15418_v24  ;;  %5432 = vmatpush2.bf16.msra.mxu1 %v10150_v60  ;;  %v3907_v2 = vmax.f32 %v3761_v49, 0.0  ;;  %v15420_v60 = vld [vmem:[#allocation45_spill] sm:$0xff]  ;;  %v15421_v55 = vld [vmem:[#allocation46_spill] sm:$0xff] }
 0x4ae   : > { %v3766_v40 = vpop.f32.mrf.mxu1  ;;  %5433 = vmatprep.subr.bf16.mxu1 %v10155_v15  ;;  %v3576_v7 = vadd.f32 %v15420_v60, %v12234_v62  ;;  %v3578_v15 = vadd.f32 %v15421_v55, %v12227_v48  ;;  %v15424_v39 = vld [vmem:[#allocation73_spill] sm:$0xff]  ;;  %7784 = vmatpush1.bf16.msra.mxu0 %v10180_v37 }
 0x4af   : > { %v3908_v22 = vmax.f32 %v3763_v29, 0.0  ;;  %v12405_v9 = vpack.c.bf16 %v3907_v2, %v3903_v12  ;;  %v3580_v1 = vadd.f32 %v15424_v39, %v12234_v62  ;;  %v3767_v60 = vadd.f32 %v3766_v40, %v3574_v34  ;;  %v12412_v2 = vpop.f32.mrf.mxu0  ;;  %v10159_v12 = vld [vmem:[#allocation11 + $0x308] ss:$16 sps:$4 sm:$0xff]   ;;  %7785 = vmatprep.subr.bf16.mxu0 %v10185_v5  ;;  %v10188_v40 = vld [vmem:[#allocation12 + $0xf4] ss:$8 sps:$4 sm:$0xff]  }
 0x4b0   : > { %v3768_v57 = vpop.f32.mrf.mxu1  ;;  %v15427_v34 = vld [vmem:[#allocation74_spill] sm:$0xff] }
 0x4b1   : > { %v12403_v49 = vpack.c.bf16 %v3908_v22, %v3904_v36  ;;  %5434 = vmatpush2.bf16.msra.mxu1 %v10153_v0  ;;  %15423 = vst [vmem:[#allocation65_spill] sm:$0xff] %v12405_v9  ;;  %v3769_v29 = vadd.f32 %v3768_v57, %v3576_v7  ;;  %v15425_v0 = vld [vmem:[#allocation70_spill] sm:$0xff]  ;;  %v10183_v22 = vld [vmem:[#allocation12] ss:$8 sps:$4 sm:$0xff]  }
 0x4b2   : > { %v3770_v25 = vpop.f32.mrf.mxu1  ;;  %5435 = vmatprep.subr.bf16.mxu1 %v10158_v10  ;;  %7786 = vmatpush1.bf16.msra.mxu0 %v10183_v22  ;;  %v15431_v22 = vld [vmem:[#allocation75_spill] sm:$0xff] }
 0x4b3   : > { %15422 = vst [vmem:[#allocation61_spill] sm:$0xff] %v12403_v49  ;;  %v3771_v24 = vadd.f32 %v3770_v25, %v3578_v15  ;;  %5123 = vmatprep.mubr.bf16.mxu1 %v12403_v49  ;;  %v3912_v37 = vmax.f32 %v3769_v29, 0.0  ;;  %v3584_v15 = vadd.f32 %v15427_v34, %v12227_v48  ;;  %v3911_v25 = vmax.f32 %v3767_v60, 0.0  ;;  %7787 = vmatprep.subr.bf16.mxu0 %v10188_v40 }
 0x4b4   : > { %v3772_v36 = vpop.f32.mrf.mxu1  ;;  %5124 = vmatmul.mubr.bf16.gmra.mxu1 %v12405_v9  ;;  %5317 = vmatmul.mubr.bf16.gmra.mxu0 %v15425_v0  ;;  %v12417_v0 = vpop.f32.mrf.mxu0  ;;  %v3590_v60 = vadd.f32 %v15431_v22, %v12234_v62  ;;  %v10194_v22 = vld [vmem:[#allocation12 + $0xd4] ss:$8 sps:$4 sm:$0xff]  }
 0x4b5   : > { %v3773_v10 = vadd.f32 %v3772_v36, %v3580_v1  ;;  %5326 = vmatprep.mubr.bf16.mxu0 %v15426_v28  ;;  %5436 = vmatpush2.bf16.msra.mxu1 %v10156_v54  ;;  %v3915_v57 = vmax.f32 %v3771_v24, 0.0  ;;  %v10186_v1 = vld [vmem:[#allocation12 + $0xf0] ss:$8 sps:$4 sm:$0xff]   ;;  %v15428_v36 = vld [vmem:[#allocation49_spill] sm:$0xff] }
 0x4b6   : > { %v3776_v7 = vpop.f32.mrf.mxu1  ;;  %5437 = vmatprep.subr.bf16.mxu1 %v10161_v61  ;;  %v3586_v54 = vadd.f32 %v15428_v36, %v12234_v62  ;;  %v15429_v24 = vld [vmem:[#allocation50_spill] sm:$0xff]  ;;  %7788 = vmatpush2.bf16.msra.mxu0 %v10186_v1 }
 0x4b7   : > { %v3916_v55 = vmax.f32 %v3773_v10, 0.0  ;;  %v3588_v28 = vadd.f32 %v15429_v24, %v12227_v48  ;;  %v12425_v29 = vpack.c.bf16 %v3915_v57, %v3911_v25  ;;  %v3777_v36 = vadd.f32 %v3776_v7, %v3584_v15  ;;  %v10189_v57 = vld [vmem:[#allocation12 + $0xe0] ss:$8 sps:$4 sm:$0xff]   ;;  %7789 = vmatprep.subr.bf16.mxu0 %v10191_v16 }
 0x4b8   : > { %v3778_v39 = vpop.f32.mrf.mxu1  ;;  %v15435_v7 = vld [vmem:[#allocation53_spill] sm:$0xff] }
 0x4b9   : > { %v12423_v61 = vpack.c.bf16 %v3916_v55, %v3912_v37  ;;  %5438 = vmatpush2.bf16.msra.mxu1 %v10159_v12  ;;  %15430 = vst [vmem:[#allocation66_spill] sm:$0xff] %v12425_v29  ;;  %v3779_v10 = vadd.f32 %v3778_v39, %v3586_v54  ;;  %v15432_v12 = vld [vmem:[#allocation71_spill] sm:$0xff]  ;;  %v3594_v15 = vadd.f32 %v15435_v7, %v12227_v48  ;;  %v3919_v24 = vmax.f32 %v3777_v36, 0.0  ;;  %v15438_v16 = vld [vmem:[#allocation57_spill] sm:$0xff] }
 0x4ba   : > { %v3780_v5 = vpop.f32.mrf.mxu1  ;;  %v15433_v55 = vld [vmem:[#allocation39_spill] sm:$0xff]  ;;  %7790 = vmatpush2.bf16.msra.mxu0 %v10189_v57 }
 0x4bb   : > { %v3781_v34 = vadd.f32 %v3780_v5, %v3588_v28  ;;  %5133 = vmatprep.mubr.bf16.mxu1 %v12423_v61  ;;  %v3920_v54 = vmax.f32 %v3779_v10, 0.0  ;;  %7791 = vmatprep.subr.bf16.mxu0 %v10194_v22  ;;  %v15442_v36 = vld [vmem:[#allocation59_spill] sm:$0xff] }
 0x4bc   : > { %v3782_v9 = vpop.f32.mrf.mxu1  ;;  %v12430_v49 = vpop.f32.mrf.mxu0  ;;  %5134 = vmatmul.mubr.bf16.gmra.mxu1 %v12425_v29  ;;  %5327 = vmatmul.mubr.bf16.gmra.mxu0 %v15432_v12  ;;  %v3600_v7 = vadd.f32 %v15442_v36, %v12234_v62  ;;  %v10195_v36 = vld [vmem:[#allocation12 + $0xc0] ss:$8 sps:$4 sm:$0xff]  }
 0x4bd   : > { %v3783_v37 = vadd.f32 %v3782_v9, %v3590_v60  ;;  %5336 = vmatprep.mubr.bf16.mxu0 %v15433_v55  ;;  %v3923_v40 = vmax.f32 %v3781_v34, 0.0  ;;  %v15437_v9 = vld [vmem:[#allocation55_spill] sm:$0xff]  ;;  %v3598_v34 = vadd.f32 %v15438_v16, %v12227_v48 }
 0x4be   : > { %v3786_v25 = vpop.f32.mrf.mxu1  ;;  %v12435_v39 = vpop.f32.mrf.mxu0  ;;  %v3596_v60 = vadd.f32 %v15437_v9, %v12234_v62  ;;  %v10192_v55 = vld [vmem:[#allocation12 + $0xd0] ss:$8 sps:$4 sm:$0xff]  }
 0x4bf   : > { %15434 = vst [vmem:[#allocation64_spill] sm:$0xff] %v12435_v39  ;;  %v3924_v1 = vmax.f32 %v3783_v37, 0.0  ;;  %v12447_v10 = vpack.c.bf16 %v3923_v40, %v3919_v24  ;;  %7792 = vmatpush2.bf16.msra.mxu0 %v10192_v55  ;;  %v3787_v9 = vadd.f32 %v3786_v25, %v3594_v15  ;;  %v15443_v40 = vld [vmem:[#allocation37_spill] sm:$0xff]  ;;  %v3604_v25 = vadd.f32 %v12230_v26, %v12227_v48 }
 0x4c0   : > { %v3788_v28 = vpop.f32.mrf.mxu1  ;;  %v12439_v5 = vpop.f32.mrf.mxu0  ;;  %v3610_v26 = vadd.f32 %v12257_v63, %v12234_v62  ;;  %v10200_v63 = vld [vmem:[#allocation12 + $0xb4] ss:$8 sps:$4 sm:$0xff]  }
 0x4c1   : > { %15436 = vst [vmem:[#allocation67_spill] sm:$0xff] %v12439_v5  ;;  %v12445_v12 = vpack.c.bf16 %v3924_v1, %v3920_v54  ;;  %15440 = vst [vmem:[#allocation40_spill] sm:$0xff] %v12447_v10  ;;  %v3789_v29 = vadd.f32 %v3788_v28, %v3596_v60  ;;  %v15444_v1 = vld [vmem:[#allocation44_spill] sm:$0xff]  ;;  %v3927_v15 = vmax.f32 %v3787_v9, 0.0 }
 0x4c2   : > { %v3790_v57 = vpop.f32.mrf.mxu1  ;;  %v12449_v37 = vpop.f32.mrf.mxu0 }
 0x4c3   : > { %15439 = vst [vmem:[#allocation38_spill] sm:$0xff] %v12445_v12  ;;  %15441 = vst [vmem:[#allocation41_spill] sm:$0xff] %v12449_v37  ;;  %v3791_v5 = vadd.f32 %v3790_v57, %v3598_v34  ;;  %5143 = vmatprep.mubr.bf16.mxu1 %v12445_v12  ;;  %v3928_v28 = vmax.f32 %v3789_v29, 0.0  ;;  %v10197_v34 = vld [vmem:[#allocation12 + $0xc4] ss:$8 sps:$4 sm:$0xff]  }
 0x4c4   : > { %v3792_v39 = vpop.f32.mrf.mxu1  ;;  %v12454_v16 = vpop.f32.mrf.mxu0  ;;  %5144 = vmatmul.mubr.bf16.gmra.mxu1 %v12447_v10  ;;  %5337 = vmatmul.mubr.bf16.gmra.mxu0 %v15443_v40 }
 0x4c5   : > { %v3793_v54 = vadd.f32 %v3792_v39, %v3600_v7  ;;  %5346 = vmatprep.mubr.bf16.mxu0 %v15444_v1  ;;  %v3931_v24 = vmax.f32 %v3791_v5, 0.0  ;;  %v3606_v39 = vadd.f32 %v12240_v3, %v12234_v62  ;;  %v3608_v5 = vadd.f32 %v12252_v19, %v12227_v48  ;;  %7793 = vmatprep.subr.bf16.mxu0 %v10197_v34  ;;  %v15447_v19 = vld [vmem:[#allocation43_spill] sm:$0xff] }
 0x4c6   : > { %v3796_v22 = vpop.f32.mrf.mxu1  ;;  %v12459_v37 = vpop.f32.mrf.mxu0  ;;  %7794 = vmatpush2.bf16.msra.mxu0 %v10195_v36 }
 0x4c7   : > { %v3932_v60 = vmax.f32 %v3793_v54, 0.0  ;;  %v12471_v29 = vpack.c.bf16 %v3931_v24, %v3927_v15  ;;  %v3797_v3 = vadd.f32 %v3796_v22, %v3604_v25  ;;  %v3614_v22 = vadd.f32 %v12272_v53, %v12227_v48  ;;  %7795 = vmatprep.subr.bf16.mxu0 %v10200_v63  ;;  %v10203_v53 = vld [vmem:[#allocation12 + $0xa4] ss:$8 sps:$4 sm:$0xff]  }
 0x4c8   : > { %v3798_v55 = vpop.f32.mrf.mxu1  ;;  %v12463_v57 = vpop.f32.mrf.mxu0 }
 0x4c9   : > { %v12469_v7 = vpack.c.bf16 %v3932_v60, %v3928_v28  ;;  %15446 = vst [vmem:[#allocation68_spill] sm:$0xff] %v12471_v29  ;;  %v3799_v9 = vadd.f32 %v3798_v55, %v3606_v39  ;;  %v15448_v28 = vld [vmem:[#allocation48_spill] sm:$0xff]  ;;  %v10198_v39 = vld [vmem:[#allocation12 + $0xb0] ss:$8 sps:$4 sm:$0xff]   ;;  %v3935_v25 = vmax.f32 %v3797_v3, 0.0  ;;  %v3620_v3 = vadd.f32 %v12297_v52, %v12234_v62 }
 0x4ca   : > { %v3800_v40 = vpop.f32.mrf.mxu1  ;;  %v12473_v54 = vpop.f32.mrf.mxu0  ;;  %7796 = vmatpush2.bf16.msra.mxu0 %v10198_v39 }
 0x4cb   : > { %15445 = vst [vmem:[#allocation42_spill] sm:$0xff] %v12469_v7  ;;  %v3801_v1 = vadd.f32 %v3800_v40, %v3608_v5  ;;  %5153 = vmatprep.mubr.bf16.mxu1 %v12469_v7  ;;  %v3936_v55 = vmax.f32 %v3799_v9, 0.0  ;;  %7797 = vmatprep.subr.bf16.mxu0 %v10203_v53  ;;  %v3628_v53 = vadd.f32 %v12332_v32, %v12227_v48  ;;  %v15455_v32 = vld [vmem:[#allocation51_spill] sm:$0xff] }
 0x4cc   : > { %v3802_v10 = vpop.f32.mrf.mxu1  ;;  %v12478_v12 = vpop.f32.mrf.mxu0  ;;  %5154 = vmatmul.mubr.bf16.gmra.mxu1 %v12471_v29  ;;  %5347 = vmatmul.mubr.bf16.gmra.mxu0 %v15447_v19 }
 0x4cd   : > { %v3803_v24 = vadd.f32 %v3802_v10, %v3610_v26  ;;  %5356 = vmatprep.mubr.bf16.mxu0 %v15448_v28  ;;  %v3939_v60 = vmax.f32 %v3801_v1, 0.0  ;;  %v3616_v10 = vadd.f32 %v12277_v41, %v12234_v62  ;;  %v3618_v26 = vadd.f32 %v12292_v8, %v12227_v48  ;;  %v10201_v41 = vld [vmem:[#allocation12 + $0xa0] ss:$8 sps:$4 sm:$0xff]  }
 0x4ce   : > { %v3806_v34 = vpop.f32.mrf.mxu1  ;;  %v12483_v15 = vpop.f32.mrf.mxu0  ;;  %7798 = vmatpush2.bf16.msra.mxu0 %v10201_v41 }
 0x4cf   : > { %v3940_v36 = vmax.f32 %v3803_v24, 0.0  ;;  %v12495_v9 = vpack.c.bf16 %v3939_v60, %v3935_v25  ;;  %v3807_v29 = vadd.f32 %v3806_v34, %v3614_v22  ;;  %v15451_v60 = vld [vmem:[#allocation47_spill] sm:$0xff]  ;;  %v3624_v34 = vadd.f32 %v12312_v13, %v12227_v48 }
 0x4d0   : > { %v3808_v5 = vpop.f32.mrf.mxu1  ;;  %v12487_v40 = vpop.f32.mrf.mxu0  ;;  %v3630_v13 = vadd.f32 %v12337_v17, %v12234_v62 }
 0x4d1   : > { %v12493_v1 = vpack.c.bf16 %v3940_v36, %v3936_v55  ;;  %15450 = vst [vmem:[#allocation72_spill] sm:$0xff] %v12495_v9  ;;  %v3809_v28 = vadd.f32 %v3808_v5, %v3616_v10  ;;  %v15452_v36 = vld [vmem:[#allocation52_spill] sm:$0xff]  ;;  %v3943_v22 = vmax.f32 %v3807_v29, 0.0 }
 0x4d2   : > { %v3810_v19 = vpop.f32.mrf.mxu1  ;;  %v12497_v24 = vpop.f32.mrf.mxu0 }
 0x4d3   : > { %15449 = vst [vmem:[#allocation69_spill] sm:$0xff] %v12493_v1  ;;  %v3811_v63 = vadd.f32 %v3810_v19, %v3618_v26  ;;  %5163 = vmatprep.mubr.bf16.mxu1 %v12493_v1  ;;  %v3944_v5 = vmax.f32 %v3809_v28, 0.0  ;;  %v10206_v26 = vld [vmem:[#allocation12 + $0x94] ss:$8 sps:$4 sm:$0xff]  }
 0x4d4   : > { %v3812_v7 = vpop.f32.mrf.mxu1  ;;  %v12502_v8 = vpop.f32.mrf.mxu0  ;;  %5164 = vmatmul.mubr.bf16.gmra.mxu1 %v12495_v9  ;;  %5357 = vmatmul.mubr.bf16.gmra.mxu0 %v15451_v60  ;;  %v10204_v60 = vld [vmem:[#allocation12 + $0x90] ss:$8 sps:$4 sm:$0xff]  }
 0x4d5   : > { %v3813_v55 = vadd.f32 %v3812_v7, %v3620_v3  ;;  %5366 = vmatprep.mubr.bf16.mxu0 %v15452_v36  ;;  %v3947_v39 = vmax.f32 %v3811_v63, 0.0  ;;  %v3626_v7 = vadd.f32 %v12317_v23, %v12234_v62  ;;  %7799 = vmatprep.subr.bf16.mxu0 %v10206_v26  ;;  %v10207_v26 = vld [vmem:[#allocation12 + $0x80] ss:$8 sps:$4 sm:$0xff]  }
 0x4d6   : > { %v3816_v25 = vpop.f32.mrf.mxu1  ;;  %v12507_v52 = vpop.f32.mrf.mxu0  ;;  %7800 = vmatpush2.bf16.msra.mxu0 %v10204_v60 }
 0x4d7   : > { %v3948_v10 = vmax.f32 %v3813_v55, 0.0  ;;  %v12519_v28 = vpack.c.bf16 %v3947_v39, %v3943_v22  ;;  %v3817_v23 = vadd.f32 %v3816_v25, %v3624_v34  ;;  %v10209_v39 = vld [vmem:[#allocation12 + $0x84] ss:$8 sps:$4 sm:$0xff]   ;;  %v3634_v25 = vadd.f32 %v12352_v38, %v12227_v48 }
 0x4d8   : > { %v3818_v19 = vpop.f32.mrf.mxu1  ;;  %v12511_v9 = vpop.f32.mrf.mxu0  ;;  %7801 = vmatprep.subr.bf16.mxu0 %v10209_v39  ;;  %v3640_v38 = vadd.f32 %v12377_v45, %v12234_v62 }
 0x4d9   : > { %v12517_v3 = vpack.c.bf16 %v3948_v10, %v3944_v5  ;;  %15454 = vst [vmem:[#allocation46_spill] sm:$0xff] %v12519_v28  ;;  %v3819_v29 = vadd.f32 %v3818_v19, %v3626_v7  ;;  %v15456_v10 = vld [vmem:[#allocation56_spill] sm:$0xff]  ;;  %v3951_v34 = vmax.f32 %v3817_v23, 0.0 }
 0x4da   : > { %v3820_v63 = vpop.f32.mrf.mxu1  ;;  %v12521_v41 = vpop.f32.mrf.mxu0  ;;  %7802 = vmatpush2.bf16.msra.mxu0 %v10207_v26 }
 0x4db   : > { %15453 = vst [vmem:[#allocation45_spill] sm:$0xff] %v12517_v3  ;;  %v3821_v55 = vadd.f32 %v3820_v63, %v3628_v53  ;;  %5173 = vmatprep.mubr.bf16.mxu1 %v12517_v3  ;;  %v3952_v19 = vmax.f32 %v3819_v29, 0.0 }
 0x4dc   : > { %v3822_v36 = vpop.f32.mrf.mxu1  ;;  %v12526_v1 = vpop.f32.mrf.mxu0  ;;  %5174 = vmatmul.mubr.bf16.gmra.mxu1 %v12519_v28  ;;  %5367 = vmatmul.mubr.bf16.gmra.mxu0 %v15455_v32  ;;  %v10224_v28 = vld [vmem:[#allocation12 + $0x134] ss:$8 sps:$4 sm:$0xff]  }
 0x4dd   : > { %v3823_v5 = vadd.f32 %v3822_v36, %v3630_v13  ;;  %5376 = vmatprep.mubr.bf16.mxu0 %v15456_v10  ;;  %v3955_v22 = vmax.f32 %v3821_v55, 0.0  ;;  %v3636_v13 = vadd.f32 %v12357_v11, %v12234_v62  ;;  %v3638_v55 = vadd.f32 %v12372_v43, %v12227_v48  ;;  %v15459_v43 = vld [vmem:[#allocation54_spill] sm:$0xff] }
 0x4de   : > { %v3826_v60 = vpop.f32.mrf.mxu1  ;;  %v12531_v17 = vpop.f32.mrf.mxu0 }
 0x4df   : > { %v3956_v7 = vmax.f32 %v3823_v5, 0.0  ;;  %v12543_v32 = vpack.c.bf16 %v3955_v22, %v3951_v34  ;;  %v3827_v10 = vadd.f32 %v3826_v60, %v3634_v25 }
 0x4e0   : > { %v3828_v53 = vpop.f32.mrf.mxu1  ;;  %v12535_v63 = vpop.f32.mrf.mxu0 }
 0x4e1   : > { %v12541_v36 = vpack.c.bf16 %v3956_v7, %v3952_v19  ;;  %15458 = vst [vmem:[#allocation70_spill] sm:$0xff] %v12543_v32  ;;  %v3829_v23 = vadd.f32 %v3828_v53, %v3636_v13  ;;  %v3644_v13 = vadd.f32 %v12392_v31, %v12227_v48  ;;  %v3959_v60 = vmax.f32 %v3827_v10, 0.0 }
 0x4e2   : > { %v3830_v29 = vpop.f32.mrf.mxu1  ;;  %v12545_v39 = vpop.f32.mrf.mxu0  ;;  %v3650_v31 = vadd.f32 %v12417_v0, %v12234_v62 }
 0x4e3   : > { %15457 = vst [vmem:[#allocation73_spill] sm:$0xff] %v12541_v36  ;;  %v3831_v5 = vadd.f32 %v3830_v29, %v3638_v55  ;;  %5183 = vmatprep.mubr.bf16.mxu1 %v12541_v36  ;;  %v3960_v45 = vmax.f32 %v3829_v23, 0.0  ;;  %v3646_v29 = vadd.f32 %v12397_v35, %v12234_v62  ;;  %v10222_v36 = vld [vmem:[#allocation12 + $0x130] ss:$8 sps:$4 sm:$0xff]  }
 0x4e4   : > { %v3832_v26 = vpop.f32.mrf.mxu1  ;;  %v12550_v11 = vpop.f32.mrf.mxu0  ;;  %5184 = vmatmul.mubr.bf16.gmra.mxu1 %v12543_v32  ;;  %5377 = vmatmul.mubr.bf16.gmra.mxu0 %v15459_v43 }
 0x4e5   : > { %v3833_v22 = vadd.f32 %v3832_v26, %v3640_v38  ;;  %5386 = vmatprep.mubr.bf16.mxu0 %v12220_v6  ;;  %v3963_v19 = vmax.f32 %v3831_v5, 0.0  ;;  %v3648_v38 = vadd.f32 %v12412_v2, %v12227_v48 }
 0x4e6   : > { %v3836_v7 = vpop.f32.mrf.mxu1  ;;  %v12555_v34 = vpop.f32.mrf.mxu0 }
 0x4e7   : > { %v3964_v53 = vmax.f32 %v3833_v22, 0.0  ;;  %v12567_v5 = vpack.c.bf16 %v3963_v19, %v3959_v60  ;;  %v3837_v22 = vadd.f32 %v3836_v7, %v3644_v13 }
 0x4e8   : > { %v3838_v25 = vpop.f32.mrf.mxu1  ;;  %v12559_v55 = vpop.f32.mrf.mxu0 }
 0x4e9   : > { %v12565_v6 = vpack.c.bf16 %v3964_v53, %v3960_v45  ;;  %15461 = vst [vmem:[#allocation74_spill] sm:$0xff] %v12567_v5  ;;  %v3839_v10 = vadd.f32 %v3838_v25, %v3646_v29  ;;  %v3967_v0 = vmax.f32 %v3837_v22, 0.0  ;;  %v10212_v25 = vld [vmem:[#allocation12 + $0x174] ss:$8 sps:$4 sm:$0xff]   ;;  %v10210_v29 = vld [vmem:[#allocation12 + $0x170] ss:$8 sps:$4 sm:$0xff]  }
 0x4ea   : > { %v3840_v26 = vpop.f32.mrf.mxu1  ;;  %v12569_v23 = vpop.f32.mrf.mxu0  ;;  %7964 = vmatprep.subr.bf16.mxu1 %v10212_v25 }
 0x4eb   : > { %15460 = vst [vmem:[#allocation36_spill] sm:$0xff] %v12565_v6  ;;  %v3841_v43 = vadd.f32 %v3840_v26, %v3648_v38  ;;  %5193 = vmatprep.mubr.bf16.mxu1 %v12565_v6  ;;  %v3968_v45 = vmax.f32 %v3839_v10, 0.0  ;;  %v10215_v10 = vld [vmem:[#allocation12 + $0x164] ss:$8 sps:$4 sm:$0xff]  }
 0x4ec   : > { %v3842_v32 = vpop.f32.mrf.mxu1  ;;  %v12574_v35 = vpop.f32.mrf.mxu0  ;;  %5194 = vmatmul.mubr.bf16.gmra.mxu1 %v12567_v5  ;;  %5387 = vmatmul.mubr.bf16.gmra.mxu0 %v12206_v33  ;;  %v15474_v6 = vld [vmem:[#allocation61_spill] sm:$0xff] }
 0x4ed   : > { %v3843_v48 = vadd.f32 %v3842_v32, %v3650_v31  ;;  %5396 = vmatprep.mubr.bf16.mxu0 %v12246_v44  ;;  %v3971_v2 = vmax.f32 %v3841_v43, 0.0 }
 0x4ee   : > { %v12579_v19 = vpop.f32.mrf.mxu0 }
 0x4ef   : > { %v3972_v62 = vmax.f32 %v3843_v48, 0.0  ;;  %v12585_v7 = vpack.c.bf16 %v3971_v2, %v3967_v0  ;;  %v10218_v0 = vld [vmem:[#allocation12 + $0x154] ss:$8 sps:$4 sm:$0xff]  }
 0x4f0   : > { %v12581_v53 = vpop.f32.mrf.mxu0 }
 0x4f1   : > { %v12583_v60 = vpack.c.bf16 %v3972_v62, %v3968_v45  ;;  %15463 = vst [vmem:[#allocation50_spill] sm:$0xff] %v12585_v7  ;;  %v10216_v62 = vld [vmem:[#allocation12 + $0x150] ss:$8 sps:$4 sm:$0xff]  }
 0x4f2   : > { %v12587_v13 = vpop.f32.mrf.mxu0 }
 0x4f3   : > { %15462 = vst [vmem:[#allocation49_spill] sm:$0xff] %v12583_v60  ;;  %5203 = vmatprep.mubr.bf16.mxu1 %v12583_v60 }
 0x4f4   : > { %v12590_v33 = vpop.f32.mrf.mxu0  ;;  %5204 = vmatmul.mubr.bf16.gmra.mxu1 %v12585_v7  ;;  %5397 = vmatmul.mubr.bf16.gmra.mxu0 %v12236_v47 }
 0x4f5   : > { %5439 = vmatprep.mubr.bf16.mxu1 %v12263_v20  ;;  %v10213_v20 = vld [vmem:[#allocation12 + $0x160] ss:$8 sps:$4 sm:$0xff]  }
 0x4f6   : > { %v12595_v44 = vpop.f32.mrf.mxu0 }
 0x4f8   : > { %v12597_v32 = vpop.f32.mrf.mxu0 }
 0x4fa   : > { %v12599_v38 = vpop.f32.mrf.mxu0 }
 0x4fc   : > { %v12601_v26 = vpop.f32.mrf.mxu0  ;;  %5440 = vmatmul.mubr.bf16.vlgmr.msra.gmra.mxu1 %v12265_v4 }
 0x4fd   : > { %5449 = vmatprep.mubr.bf16.mxu1 %v12283_v42  ;;  %7965 = vmatpush1.bf16.msra.mxu1 %v10210_v29 }
 0x4fe   : > { %v12605_v31 = vpop.f32.mrf.mxu0  ;;  %7966 = vmatprep.subr.bf16.mxu1 %v10215_v10 }
 0x500   : > { %v12607_v47 = vpop.f32.mrf.mxu0 }
 0x501   : > { %7967 = vmatpush1.bf16.msra.mxu1 %v10213_v20 }
 0x502   : > { %v12609_v43 = vpop.f32.mrf.mxu0  ;;  %7968 = vmatprep.subr.bf16.mxu1 %v10218_v0  ;;  %v10221_v0 = vld [vmem:[#allocation12 + $0x144] ss:$8 sps:$4 sm:$0xff]  }
 0x504   : > { %v12611_v22 = vpop.f32.mrf.mxu0  ;;  %5450 = vmatmul.mubr.bf16.gmra.mxu1 %v12285_v58 }
 0x505   : > { %5459 = vmatprep.mubr.bf16.mxu1 %v12303_v21  ;;  %7969 = vmatpush1.bf16.msra.mxu1 %v10216_v62  ;;  %v10219_v62 = vld [vmem:[#allocation12 + $0x140] ss:$8 sps:$4 sm:$0xff]  }
 0x506   : > { %v12615_v4 = vpop.f32.mrf.mxu0  ;;  %7970 = vmatprep.subr.bf16.mxu1 %v10221_v0  ;;  %v4166_v0 = vld [vmem:[#allocation15 + $0x1] ss:$8 sm:$0xf] }
 0x508   : > { %v12617_v42 = vpop.f32.mrf.mxu0 }
 0x509   : > { %7971 = vmatpush1.bf16.msra.mxu1 %v10219_v62 }
 0x50a   : > { %v12619_v48 = vpop.f32.mrf.mxu0  ;;  %7972 = vmatprep.subr.bf16.mxu1 %v10224_v28  ;;  %v15482_v28 = vld [vmem:[#allocation58_spill] sm:$0xff] }
 0x50c   : > { %v12621_v2 = vpop.f32.mrf.mxu0  ;;  %5460 = vmatmul.mubr.bf16.gmra.mxu1 %v12305_v56 }
 0x50d   : > { %5469 = vmatprep.mubr.bf16.mxu1 %v12323_v59  ;;  %7973 = vmatpush1.bf16.msra.mxu1 %v10222_v36  ;;  %v15483_v36 = vld [vmem:[#allocation64_spill] sm:$0xff] }
 0x50e   : > { %v12625_v45 = vpop.f32.mrf.mxu0 }
 0x510   : > { %v12627_v25 = vpop.f32.mrf.mxu0 }
 0x512   : > { %v12629_v58 = vpop.f32.mrf.mxu0 }
 0x514   : > { %v12631_v21 = vpop.f32.mrf.mxu0  ;;  %5470 = vmatmul.mubr.bf16.gmra.mxu1 %v12325_v46 }
 0x515   : > { %5479 = vmatprep.mubr.bf16.mxu1 %v12343_v50 }
 0x516   : > { %v12635_v29 = vpop.f32.mrf.mxu0 }
 0x518   : > { %v12637_v56 = vpop.f32.mrf.mxu0 }
 0x51a   : > { %v12639_v59 = vpop.f32.mrf.mxu0 }
 0x51b   : > { %15464 = vst [vmem:[#allocation75_spill] sm:$0xff] %v12639_v59 }
 0x51c   : > { %v12641_v20 = vpop.f32.mrf.mxu0  ;;  %5480 = vmatmul.mubr.bf16.gmra.mxu1 %v12345_v51 }
 0x51d   : > { %15465 = vst [vmem:[#allocation71_spill] sm:$0xff] %v12641_v20  ;;  %5489 = vmatprep.mubr.bf16.mxu1 %v12363_v27  ;;  %v15486_v20 = vld [vmem:[#allocation60_spill] sm:$0xff] }
 0x51e   : > { %v12645_v10 = vpop.f32.mrf.mxu0  ;;  %v12697_v59 = vrot.slane %v4166_v0, %v15486_v20 }
 0x51f   : > { %15466 = vst [vmem:[#allocation39_spill] sm:$0xff] %v12645_v10 }
 0x520   : > { %v12647_v7 = vpop.f32.mrf.mxu0 }
 0x521   : > { %15467 = vst [vmem:[#allocation53_spill] sm:$0xff] %v12647_v7  ;;  %v15484_v7 = vld [vmem:[#allocation67_spill] sm:$0xff] }
 0x522   : > { %v12649_v46 = vpop.f32.mrf.mxu0 }
 0x523   : > { %15468 = vst [vmem:[#allocation55_spill] sm:$0xff] %v12649_v46 }
 0x524   : > { %v12651_v50 = vpop.f32.mrf.mxu0  ;;  %5490 = vmatmul.mubr.bf16.gmra.mxu1 %v12365_v14 }
 0x525   : > { %15469 = vst [vmem:[#allocation57_spill] sm:$0xff] %v12651_v50  ;;  %5499 = vmatprep.mubr.bf16.mxu1 %v12383_v30  ;;  %v15477_v30 = vld [vmem:[#allocation62_spill] sm:$0xff] }
 0x526   : > { %v12655_v60 = vpop.f32.mrf.mxu0  ;;  %v12670_v3 = vrot.slane %v4166_v0, %v15477_v30 }
 0x527   : > { %15470 = vst [vmem:[#allocation59_spill] sm:$0xff] %v12655_v60  ;;  %v15481_v60 = vld [vmem:[#allocation65_spill] sm:$0xff] }
 0x528   : > { %v12657_v51 = vpop.f32.mrf.mxu0  ;;  %v4863_v50 = vadd.f32 %v12430_v49, %v12670_v3  ;;  %v12701_v49 = vadd.f32 %v12454_v16, %v12670_v3 }
 0x529   : > { %15471 = vst [vmem:[#allocation37_spill] sm:$0xff] %v12657_v51  ;;  %v15478_v51 = vld [vmem:[#allocation63_spill] sm:$0xff] }
 0x52a   : > { %v12659_v27 = vpop.f32.mrf.mxu0 }
 0x52b   : > { %15472 = vst [vmem:[#allocation44_spill] sm:$0xff] %v12659_v27  ;;  %v12673_v27 = vrot.slane %v4166_v0, %v15478_v51 }
 0x52c   : > { %v12661_v5 = vpop.f32.mrf.mxu0  ;;  %5500 = vmatmul.mubr.bf16.gmra.mxu1 %v12385_v18 }
 0x52d   : > { %15473 = vst [vmem:[#allocation43_spill] sm:$0xff] %v12661_v5  ;;  %5509 = vmatprep.mubr.bf16.mxu1 %v15474_v6  ;;  %v6369_v6 = vld [vmem:[#allocation15 + $0x2] ss:$8 sm:$0xf]  ;;  %v4865_v46 = vadd.f32 %v15483_v36, %v12673_v27  ;;  %v12722_v16 = vadd.f32 %v12473_v54, %v12673_v27  ;;  %v12743_v54 = vadd.f32 %v12497_v24, %v12673_v27 }
 0x52e   : > { %v12665_v62 = vpop.f32.mrf.mxu0  ;;  %v12765_v24 = vadd.f32 %v12526_v1, %v12670_v3  ;;  %v12785_v1 = vadd.f32 %v12555_v34, %v12673_v27  ;;  %v12804_v34 = vadd.f32 %v12579_v19, %v12673_v27  ;;  %v12825_v19 = vadd.f32 %v12597_v32, %v12670_v3 }
 0x52f   : > { %15475 = vst [vmem:[#allocation48_spill] sm:$0xff] %v12665_v62  ;;  %v6520_v62 = vld [vmem:[#allocation15 + $0x3] ss:$8 sm:$0xf]  ;;  %v12843_v32 = vadd.f32 %v12607_v47, %v12670_v3 }
 0x530   : > { %v12667_v14 = vpop.f32.mrf.mxu0  ;;  %v12707_v36 = vrot.slane %v6520_v62, %v15477_v30  ;;  %15493 = vst [vmem:[#allocation64_spill] sm:$0xff] %v12825_v19  ;;  %v12847_v19 = vadd.f32 %v12609_v43, %v12673_v27  ;;  %v12861_v43 = vadd.f32 %v12617_v42, %v12670_v3 }
 0x531   : > { %15476 = vst [vmem:[#allocation47_spill] sm:$0xff] %v12667_v14  ;;  %v12684_v14 = vrot.slane %v4166_v0, %v15482_v28  ;;  %v12718_v0 = vadd.f32 %v12463_v57, %v12670_v3  ;;  %v12739_v57 = vadd.f32 %v12487_v40, %v12670_v3  ;;  %v12759_v40 = vadd.f32 %v12521_v41, %v12673_v27 }
 0x532   : > { %v12675_v5 = vpop.f32.mrf.mxu0  ;;  %v12781_v41 = vadd.f32 %v12550_v11, %v12670_v3  ;;  %v12800_v11 = vadd.f32 %v12574_v35, %v12670_v3  ;;  %v12821_v35 = vadd.f32 %v12595_v44, %v12673_v27 }
 0x533   : > { %15479 = vst [vmem:[#allocation52_spill] sm:$0xff] %v12675_v5  ;;  %v4867_v5 = vadd.f32 %v15484_v7, %v12670_v3  ;;  %v12710_v7 = vrot.slane %v6369_v6, %v15478_v51 }
 0x534   : > { %v12677_v18 = vpop.f32.mrf.mxu0  ;;  %5510 = vmatmul.mubr.bf16.gmra.mxu1 %v15481_v60  ;;  %15492 = vst [vmem:[#allocation65_spill] sm:$0xff] %v12821_v35  ;;  %v12839_v35 = vadd.f32 %v12605_v31, %v12673_v27  ;;  %v12857_v31 = vadd.f32 %v12615_v4, %v12673_v27  ;;  %v12871_v4 = vadd.f32 %v12621_v2, %v12670_v3 }
 0x535   : > { %15480 = vst [vmem:[#allocation51_spill] sm:$0xff] %v12677_v18  ;;  %5519 = vmatprep.mubr.bf16.mxu1 %v12423_v61  ;;  %v15485_v18 = vld [vmem:[#allocation41_spill] sm:$0xff]  ;;  %v12704_v61 = vrot.slane %v6369_v6, %v15477_v30  ;;  %v12727_v30 = vrot.slane %v6520_v62, %v15478_v51  ;;  %v12731_v6 = vadd.f32 %v12478_v12, %v12670_v3 }
 0x536   : > { %v12692_v10 = vadd.f32 %v15485_v18, %v12673_v27  ;;  %v12694_v60 = vpop.f32.mrf.mxu0  ;;  %v12714_v18 = vadd.f32 %v12459_v37, %v12673_v27  ;;  %v12735_v37 = vadd.f32 %v12483_v15, %v12673_v27  ;;  %v12747_v62 = vadd.f32 %v12502_v8, %v12670_v3  ;;  %15499 = vst [vmem:[#allocation77_spill] sm:$0xff] %v12857_v31 }
 0x537   : > { %v12751_v12 = vadd.f32 %v12507_v52, %v12673_v27  ;;  %v12755_v15 = vadd.f32 %v12511_v9, %v12670_v3  ;;  %v12769_v8 = vadd.f32 %v12531_v17, %v12673_v27  ;;  %v12773_v52 = vadd.f32 %v12535_v63, %v12670_v3  ;;  %15501 = vst [vmem:[#allocation79_spill] sm:$0xff] %v12871_v4 }
 0x538   : > { %v12724_v20 = vpop.f32.mrf.mxu0  ;;  %v12777_v9 = vadd.f32 %v12545_v39, %v12673_v27  ;;  %v12789_v17 = vadd.f32 %v12559_v55, %v12670_v3  ;;  %v12793_v63 = vadd.f32 %v12569_v23, %v12673_v27  ;;  %v15490_v39 = vld [vmem:[#allocation66_spill] sm:$0xff]  ;;  %v12808_v55 = vadd.f32 %v12581_v53, %v12670_v3 }
 0x539   : > { %15487 = vst [vmem:[#allocation56_spill] sm:$0xff] %v12773_v52  ;;  %v15491_v23 = vld [vmem:[#allocation38_spill] sm:$0xff]  ;;  %15496 = vst [vmem:[#allocation66_spill] sm:$0xff] %v12839_v35 }
 0x53a   : > { %v12761_v51 = vpop.f32.mrf.mxu0  ;;  %15488 = vst [vmem:[#allocation54_spill] sm:$0xff] %v12789_v17  ;;  %15489 = vst [vmem:[#allocation61_spill] sm:$0xff] %v12793_v63  ;;  %v12813_v63 = vadd.f32 %v12587_v13, %v12673_v27  ;;  %v12831_v13 = vadd.f32 %v12599_v38, %v12673_v27  ;;  %v12851_v38 = vadd.f32 %v12611_v22, %v12670_v3 }
 0x53b   : > { %15497 = vst [vmem:[#allocation38_spill] sm:$0xff] %v12847_v19  ;;  %v12865_v22 = vadd.f32 %v12619_v48, %v12673_v27  ;;  %v12883_v48 = vadd.f32 %v12629_v58, %v12673_v27 }
 0x53c   : > { %v5055_v28 = vpop.f32.mrf.mxu1  ;;  %v12795_v52 = vpop.f32.mrf.mxu0  ;;  %5520 = vmatmul.mubr.bf16.gmra.mxu1 %v15490_v39  ;;  %v12817_v39 = vadd.f32 %v12590_v33, %v12670_v3  ;;  %15494 = vst [vmem:[#allocation67_spill] sm:$0xff] %v12831_v13  ;;  %v12835_v33 = vadd.f32 %v12601_v26, %v12670_v3  ;;  %15498 = vst [vmem:[#allocation76_spill] sm:$0xff] %v12851_v38 }
 0x53d   : > { %v5056_v17 = vadd.f32 %v5055_v28, %v4863_v50  ;;  %5529 = vmatprep.mubr.bf16.mxu1 %v15491_v23  ;;  %v10225_v28 = vld [vmem:[#allocation12 + $0x120] ss:$8 sps:$4 sm:$0xff]   ;;  %v10227_v23 = vld [vmem:[#allocation12 + $0x124] ss:$8 sps:$4 sm:$0xff]   ;;  %15500 = vst [vmem:[#allocation78_spill] sm:$0xff] %v12865_v22  ;;  %15504 = vst [vmem:[#allocation82_spill] sm:$0xff] %v12883_v48 }
 0x53e   : > { %v5057_v53 = vpop.f32.mrf.mxu1  ;;  %v12827_v50 = vpop.f32.mrf.mxu0  ;;  %15495 = vst [vmem:[#allocation41_spill] sm:$0xff] %v12835_v33  ;;  %7974 = vmatprep.subr.bf16.mxu1 %v10227_v23  ;;  %v15508_v48 = vld [vmem:[#allocation42_spill] sm:$0xff] }
 0x53f   : > { %vm5600_vm0 = vcmp.ge.f32.partialorder %v5056_v17, 0.0  ;;  %v5728_v44 = vmul.f32 0.1, %v5056_v17  ;;  %v5058_v13 = vadd.f32 %v5057_v53, %v4865_v46  ;;  %7975 = vmatpush1.bf16.msra.mxu1 %v10225_v28  ;;  %v12879_v46 = vadd.f32 %v12627_v25, %v12670_v3 }
 0x540   : > { %v5059_v26 = vpop.f32.mrf.mxu1  ;;  %v12853_v33 = vpop.f32.mrf.mxu0 }
 0x541   : > { %v5856_v35 = vsel %vm5600_vm0, %v5056_v17, %v5728_v44  ;;  %v5060_v47 = vadd.f32 %v5059_v26, %v4867_v5  ;;  %v12875_v5 = vadd.f32 %v12625_v45, %v12673_v27  ;;  %15503 = vst [vmem:[#allocation81_spill] sm:$0xff] %v12879_v46  ;;  %v12887_v17 = vadd.f32 %v12631_v21, %v12670_v3  ;;  %v15506_v45 = vld [vmem:[#allocation40_spill] sm:$0xff]  ;;  %v15520_v46 = vld [vmem:[#allocation57_spill] sm:$0xff] }
 0x542   : > { %vm5984_vm1 = vcmp.ge.f32.partialorder %v5856_v35, 0.0  ;;  %v6112_v19 = vmul.f32 0.1, %v5856_v35  ;;  %v5061_v38 = vpop.f32.mrf.mxu1  ;;  %v12867_v23 = vpop.f32.mrf.mxu0  ;;  %v12895_v44 = vadd.f32 %v12635_v29, %v12673_v27  ;;  %v5729_v26 = vmul.f32 0.1, %v5058_v13 }
 0x543   : > { %15502 = vst [vmem:[#allocation80_spill] sm:$0xff] %v12875_v5  ;;  %vm5604_vm2 = vcmp.ge.f32.partialorder %v5060_v47, 0.0  ;;  %v5732_v42 = vmul.f32 0.1, %v5060_v47  ;;  %15505 = vst [vmem:[#allocation83_spill] sm:$0xff] %v12887_v17  ;;  %v5062_v2 = vadd.f32 %v5061_v38, %v12692_v10  ;;  %v12901_v21 = vadd.f32 %v12637_v56, %v12670_v3  ;;  %v15516_v56 = vld [vmem:[#allocation53_spill] sm:$0xff] }
 0x544   : > { %v5065_v53 = vpop.f32.mrf.mxu1  ;;  %v12890_v28 = vpop.f32.mrf.mxu0  ;;  %5530 = vmatmul.mubr.bf16.gmra.mxu1 %v15506_v45  ;;  %15507 = vst [vmem:[#allocation40_spill] sm:$0xff] %v12895_v44  ;;  %v6240_v25 = vsel %vm5984_vm1, %v5856_v35, %v6112_v19  ;;  %vm5601_vm3 = vcmp.ge.f32.partialorder %v5058_v13, 0.0  ;;  %v15510_v45 = vld [vmem:[#allocation75_spill] sm:$0xff] }
 0x545   : > { %v5860_v58 = vsel %vm5604_vm2, %v5060_v47, %v5732_v42  ;;  %5539 = vmatprep.mubr.bf16.mxu1 %v15508_v48  ;;  %15509 = vst [vmem:[#allocation42_spill] sm:$0xff] %v12901_v21  ;;  %v12907_v29 = vadd.f32 %v15510_v45, %v12673_v27  ;;  %v15512_v35 = vld [vmem:[#allocation71_spill] sm:$0xff]  ;;  %v12919_v48 = vadd.f32 %v15516_v56, %v12670_v3  ;;  %vm5605_vm5 = vcmp.ge.f32.partialorder %v5062_v2, 0.0 }
 0x546   : > { %vm5988_vm4 = vcmp.ge.f32.partialorder %v5860_v58, 0.0  ;;  %v6116_v10 = vmul.f32 0.1, %v5860_v58  ;;  %v5067_v38 = vpop.f32.mrf.mxu1  ;;  %v12903_v17 = vpop.f32.mrf.mxu0  ;;  %v12911_v19 = vadd.f32 %v15512_v35, %v12670_v3  ;;  %v15514_v47 = vld [vmem:[#allocation39_spill] sm:$0xff]  ;;  %v12927_v45 = vadd.f32 %v15520_v46, %v12670_v3  ;;  %v15526_v46 = vld [vmem:[#allocation44_spill] sm:$0xff] }
 0x547   : > { %15511 = vst [vmem:[#allocation75_spill] sm:$0xff] %v12907_v29  ;;  %v12915_v42 = vadd.f32 %v15514_v47, %v12673_v27  ;;  %15517 = vst [vmem:[#allocation53_spill] sm:$0xff] %v12919_v48  ;;  %v15518_v21 = vld [vmem:[#allocation55_spill] sm:$0xff]  ;;  %v6391_v29 = vmul.f32 %v12704_v61, %v6240_v25  ;;  %v5733_v35 = vmul.f32 0.1, %v5062_v2  ;;  %v5857_v5 = vsel %vm5601_vm3, %v5058_v13, %v5729_v26 }
 0x548   : > { %15513 = vst [vmem:[#allocation71_spill] sm:$0xff] %v12911_v19  ;;  %v12923_v44 = vadd.f32 %v15518_v21, %v12673_v27  ;;  %15521 = vst [vmem:[#allocation57_spill] sm:$0xff] %v12927_v45  ;;  %v5069_v19 = vpop.f32.mrf.mxu1  ;;  %v6244_v4 = vsel %vm5988_vm4, %v5860_v58, %v6116_v10  ;;  %v5066_v47 = vadd.f32 %v5065_v53, %v12701_v49  ;;  %v15522_v56 = vld [vmem:[#allocation59_spill] sm:$0xff]  ;;  %v15524_v21 = vld [vmem:[#allocation37_spill] sm:$0xff]  ;;  %vm5985_vm6 = vcmp.ge.f32.partialorder %v5857_v5, 0.0 }
 0x549   : > { %15515 = vst [vmem:[#allocation39_spill] sm:$0xff] %v12915_v42  ;;  %v12933_v48 = vadd.f32 %v15522_v56, %v12673_v27  ;;  %v12941_v45 = vadd.f32 %v15526_v46, %v12673_v27  ;;  %v5068_v25 = vadd.f32 %v5067_v38, %v12714_v18  ;;  %v12944_v42 = vpop.f32.mrf.mxu0  ;;  %v15528_v26 = vld [vmem:[#allocation43_spill] sm:$0xff]  ;;  %v15530_v53 = vld [vmem:[#allocation48_spill] sm:$0xff]  ;;  %v6542_v18 = vadd.f32 %v12707_v36, %v6391_v29 }
 0x54a   : > { %15519 = vst [vmem:[#allocation55_spill] sm:$0xff] %v12923_v44  ;;  %v12937_v44 = vadd.f32 %v15524_v21, %v12670_v3  ;;  %v5071_v13 = vpop.f32.mrf.mxu1  ;;  %v12948_v49 = vadd.f32 %v15528_v26, %v12670_v3  ;;  %v12952_v58 = vadd.f32 %v15530_v53, %v12673_v27  ;;  %v15532_v10 = vld [vmem:[#allocation47_spill] sm:$0xff]  ;;  %v15534_v21 = vld [vmem:[#allocation52_spill] sm:$0xff]  ;;  %v6113_v38 = vmul.f32 0.1, %v5857_v5 }
 0x54b   : > { %15523 = vst [vmem:[#allocation59_spill] sm:$0xff] %v12933_v48  ;;  %15527 = vst [vmem:[#allocation44_spill] sm:$0xff] %v12941_v45  ;;  %v12956_v56 = vadd.f32 %v15532_v10, %v12670_v3  ;;  %v12960_v46 = vadd.f32 %v15534_v21, %v12673_v27  ;;  %v6395_v45 = vmul.f32 %v12704_v61, %v6244_v4  ;;  %v15537_v53 = vld [vmem:[#allocation51_spill] sm:$0xff]  ;;  %v5736_v10 = vmul.f32 0.1, %v5066_v47  ;;  %v15539_v48 = vld [vmem:[#allocation69_spill] sm:$0xff] }
 0x54c   : > { %15525 = vst [vmem:[#allocation37_spill] sm:$0xff] %v12937_v44  ;;  %15529 = vst [vmem:[#allocation43_spill] sm:$0xff] %v12948_v49  ;;  %v5861_v44 = vsel %vm5605_vm5, %v5062_v2, %v5733_v35  ;;  %v5075_v26 = vpop.f32.mrf.mxu1  ;;  %v15536_v49 = vld [vmem:[#allocation68_spill] sm:$0xff]  ;;  %v10228_v21 = vld [vmem:[#allocation12 + $0x110] ss:$8 sps:$4 sm:$0xff]   ;;  %v12973_v29 = vadd.f32 %v12694_v60, %v12673_v27  ;;  %v12977_v4 = vadd.f32 %v12724_v20, %v12670_v3  ;;  %vm5608_vm7 = vcmp.ge.f32.partialorder %v5066_v47, 0.0  ;;  %v12979_v35 = vpop.f32.mrf.mxu0 }
 0x54d   : > { %15531 = vst [vmem:[#allocation48_spill] sm:$0xff] %v12952_v58  ;;  %15533 = vst [vmem:[#allocation47_spill] sm:$0xff] %v12956_v56  ;;  %5540 = vmatmul.mubr.bf16.gmra.mxu1 %v15536_v49  ;;  %v12967_v58 = vadd.f32 %v15537_v53, %v12670_v3  ;;  %v5070_v56 = vadd.f32 %v5069_v19, %v12718_v0  ;;  %v5737_v2 = vmul.f32 0.1, %v5068_v25  ;;  %v10230_v53 = vld [vmem:[#allocation12 + $0x114] ss:$8 sps:$4 sm:$0xff]  }
 0x54e   : > { %15535 = vst [vmem:[#allocation52_spill] sm:$0xff] %v12960_v46  ;;  %5549 = vmatprep.mubr.bf16.mxu1 %v15539_v48  ;;  %15540 = vst [vmem:[#allocation51_spill] sm:$0xff] %v12973_v29  ;;  %v5077_v49 = vpop.f32.mrf.mxu1  ;;  %v12983_v0 = vadd.f32 %v12761_v51, %v12673_v27  ;;  %v12987_v19 = vadd.f32 %v12795_v52, %v12684_v14  ;;  %v6117_v60 = vmul.f32 0.1, %v5861_v44  ;;  %vm5609_vm8 = vcmp.ge.f32.partialorder %v5068_v25, 0.0 }
 0x54f   : > { %15538 = vst [vmem:[#allocation68_spill] sm:$0xff] %v12967_v58  ;;  %15541 = vst [vmem:[#allocation69_spill] sm:$0xff] %v12977_v4  ;;  %v6798_v48 = vmul.f32 0.1, %v6542_v18  ;;  %v6241_v3 = vsel %vm5985_vm6, %v5857_v5, %v6113_v38  ;;  %v6546_v20 = vadd.f32 %v12707_v36, %v6395_v45  ;;  %vm5989_vm9 = vcmp.ge.f32.partialorder %v5861_v44, 0.0  ;;  %7976 = vmatprep.subr.bf16.mxu1 %v10230_v53  ;;  %v13001_v45 = vpop.f32.mrf.mxu0 }
 0x550   : > { %15542 = vst [vmem:[#allocation84_spill] sm:$0xff] %v12983_v0  ;;  %15543 = vst [vmem:[#allocation85_spill] sm:$0xff] %v12987_v19  ;;  %v5079_v4 = vpop.f32.mrf.mxu1  ;;  %vm6670_vm10 = vcmp.ge.f32.partialorder %v6542_v18, 0.0  ;;  %v5864_v29 = vsel %vm5608_vm7, %v5066_v47, %v5736_v10  ;;  %v5740_v58 = vmul.f32 0.1, %v5070_v56  ;;  %v5072_v51 = vadd.f32 %v5071_v13, %v12722_v16  ;;  %7977 = vmatpush1.bf16.msra.mxu1 %v10228_v21  ;;  %v15548_v0 = vld [vmem:[#allocation45_spill] sm:$0xff] }
 0x551   : > { %v12995_v27 = vadd.f32 %v12827_v50, %v12697_v59  ;;  %v12999_v52 = vadd.f32 %v12853_v33, %v12684_v14  ;;  %v5865_v5 = vsel %vm5609_vm8, %v5068_v25, %v5737_v2  ;;  %vm5612_vm11 = vcmp.ge.f32.partialorder %v5070_v56, 0.0 }
 0x552   : > { %v5081_v38 = vpop.f32.mrf.mxu1  ;;  %v6392_v53 = vmul.f32 %v12710_v7, %v6241_v3  ;;  %v6245_v47 = vsel %vm5989_vm9, %v5861_v44, %v6117_v60  ;;  %v13006_v16 = vadd.f32 %v12867_v23, %v12697_v59  ;;  %v5076_v13 = vadd.f32 %v5075_v26, %v12731_v6  ;;  %v13015_v23 = vpop.f32.mrf.mxu0 }
 0x553   : > { %15544 = vst [vmem:[#allocation86_spill] sm:$0xff] %v12995_v27  ;;  %15545 = vst [vmem:[#allocation87_spill] sm:$0xff] %v12999_v52  ;;  %v6926_v50 = vsel %vm6670_vm10, %v6542_v18, %v6798_v48  ;;  %vm6674_vm12 = vcmp.ge.f32.partialorder %v6546_v20, 0.0  ;;  %v6802_v10 = vmul.f32 0.1, %v6546_v20  ;;  %v15547_v27 = vld [vmem:[#allocation72_spill] sm:$0xff]  ;;  %v5868_v2 = vsel %vm5612_vm11, %v5070_v56, %v5740_v58 }
 0x554   : > { %15546 = vst [vmem:[#allocation88_spill] sm:$0xff] %v13006_v16  ;;  %v6120_v21 = vmul.f32 0.1, %v5864_v29  ;;  %v5085_v33 = vpop.f32.mrf.mxu1  ;;  %vm5992_vm13 = vcmp.ge.f32.partialorder %v5864_v29, 0.0  ;;  %v6121_v25 = vmul.f32 0.1, %v5865_v5  ;;  %v13013_v44 = vadd.f32 %v12890_v28, %v12684_v14 }
 0x555   : > { %5550 = vmatmul.mubr.bf16.gmra.mxu1 %v15547_v27  ;;  %v5741_v52 = vmul.f32 0.1, %v5072_v51  ;;  %vm5993_vm14 = vcmp.ge.f32.partialorder %v5865_v5, 0.0  ;;  %vm5613_vm15 = vcmp.ge.f32.partialorder %v5072_v51, 0.0  ;;  %v5744_v6 = vmul.f32 0.1, %v5076_v13 }
 0x556   : > { %5559 = vmatprep.mubr.bf16.mxu1 %v15548_v0  ;;  %15549 = vst [vmem:[#allocation72_spill] sm:$0xff] %v13013_v44  ;;  %v13017_v18 = vpop.f32.mrf.mxu1  ;;  %v13020_v26 = vadd.f32 %v12727_v30, %v6392_v53  ;;  %v6396_v60 = vmul.f32 %v12710_v7, %v6245_v47  ;;  %vm5616_vm0 = vcmp.ge.f32.partialorder %v5076_v13, 0.0  ;;  %v5080_v58 = vadd.f32 %v5079_v4, %v12739_v57  ;;  %v5272_v4 = vpop.f32.mrf.mxu0 }
 0x557   : > { %v7054_v56 = vmul.f32 0.01, %v6926_v50  ;;  %v6930_v0 = vsel %vm6674_vm12, %v6546_v20, %v6802_v10  ;;  %v6248_v28 = vsel %vm5992_vm13, %v5864_v29, %v6120_v21  ;;  %v6124_v48 = vmul.f32 0.1, %v5868_v2 }
 0x558   : > { %v13026_v3 = vpop.f32.mrf.mxu1  ;;  %v6249_v27 = vsel %vm5993_vm14, %v5865_v5, %v6121_v25  ;;  %vm5996_vm1 = vcmp.ge.f32.partialorder %v5868_v2, 0.0  ;;  %v5869_v16 = vsel %vm5613_vm15, %v5072_v51, %v5741_v52  ;;  %v5078_v44 = vadd.f32 %v5077_v49, %v12735_v37  ;;  %v15551_v5 = vld [vmem:[#allocation46_spill] sm:$0xff] }
 0x559   : > { %v13031_v53 = vadd.f32 %v12903_v17, %v12697_v59  ;;  %v5872_v47 = vsel %vm5616_vm0, %v5076_v13, %v5744_v6  ;;  %v5748_v57 = vmul.f32 0.1, %v5080_v58  ;;  %v5082_v20 = vadd.f32 %v5081_v38, %v12743_v54  ;;  %v10274_v13 = vld [vmem:[%s11153_s27] sm:$0xff]  ;;  %v15552_v6 = vld [vmem:[#allocation73_spill] sm:$0xff] }
 0x55a   : > { %v13034_v50 = vpop.f32.mrf.mxu1  ;;  %v7058_v29 = vmul.f32 0.01, %v6930_v0  ;;  %v13037_v10 = vadd.f32 %v12727_v30, %v6396_v60  ;;  %v6399_v51 = vmul.f32 %v12704_v61, %v6248_v28  ;;  %vm5620_vm2 = vcmp.ge.f32.partialorder %v5080_v58, 0.0  ;;  %v10231_v60 = vld [vmem:[#allocation12 + $0x100] ss:$8 sps:$4 sm:$0xff]   ;;  %v13050_v28 = vpop.f32.mrf.mxu0 }
 0x55b   : > { %15550 = vst [vmem:[#allocation45_spill] sm:$0xff] %v13031_v53  ;;  %v6400_v37 = vmul.f32 %v12710_v7, %v6249_v27  ;;  %v6252_v49 = vsel %vm5996_vm1, %v5868_v2, %v6124_v48  ;;  %vm5997_vm3 = vcmp.ge.f32.partialorder %v5869_v16, 0.0  ;;  %v6125_v17 = vmul.f32 0.1, %v5869_v16  ;;  %v10233_v27 = vld [vmem:[#allocation12 + $0x104] ss:$8 sps:$4 sm:$0xff]  }
 0x55c   : > { %v13041_v52 = vpop.f32.mrf.mxu1  ;;  %v13045_v54 = vadd.f32 %v10274_v13, %v7054_v56  ;;  %v6128_v38 = vmul.f32 0.1, %v5872_v47  ;;  %v5745_v21 = vmul.f32 0.1, %v5078_v44  ;;  %v5086_v25 = vadd.f32 %v5085_v33, %v12747_v62  ;;  %v10275_v33 = vld [vmem:[%s11153_s27 + $0x20] sm:$0xff]  ;;  %7978 = vmatprep.subr.bf16.mxu1 %v10233_v27 }
 0x55d   : > { %5560 = vmatmul.mubr.bf16.gmra.mxu1 %v15551_v5  ;;  %vm6000_vm4 = vcmp.ge.f32.partialorder %v5872_v47, 0.0  ;;  %vm5617_vm5 = vcmp.ge.f32.partialorder %v5078_v44, 0.0  ;;  %v5876_v2 = vsel %vm5620_vm2, %v5080_v58, %v5748_v57  ;;  %v5749_v0 = vmul.f32 0.1, %v5082_v20 }
 0x55e   : > { %5569 = vmatprep.mubr.bf16.mxu1 %v15552_v6  ;;  %v13052_v48 = vpop.f32.mrf.mxu1  ;;  %v13055_v56 = vadd.f32 %v12707_v36, %v6399_v51  ;;  %v6403_v5 = vmul.f32 %v12704_v61, %v6252_v49  ;;  %v13060_v62 = vadd.f32 %v12944_v42, %v12684_v14  ;;  %vm5621_vm6 = vcmp.ge.f32.partialorder %v5082_v20, 0.0  ;;  %7979 = vmatpush1.bf16.msra.mxu1 %v10231_v60 }
 0x55f   : > { %v13063_v13 = vadd.f32 %v10275_v33, %v7058_v29  ;;  %v13066_v58 = vadd.f32 %v12727_v30, %v6400_v37  ;;  %v6253_v57 = vsel %vm5997_vm3, %v5869_v16, %v6125_v17  ;;  %v13071_v6 = vadd.f32 %v12979_v35, %v12697_v59  ;;  %v5278_v37 = vpop.f32.mrf.mxu0 }
 0x560   : > { %15553 = vst [vmem:[#allocation46_spill] sm:$0xff] %v13060_v62  ;;  %v13073_v51 = vpop.f32.mrf.mxu1  ;;  %v6256_v49 = vsel %vm6000_vm4, %v5872_v47, %v6128_v38  ;;  %v5873_v42 = vsel %vm5617_vm5, %v5078_v44, %v5745_v21  ;;  %v6132_v62 = vmul.f32 0.1, %v5876_v2  ;;  %v5752_v53 = vmul.f32 0.1, %v5086_v25  ;;  %v15558_v21 = vld [vmem:[#allocation70_spill] sm:$0xff] }
 0x561   : > { %15554 = vst [vmem:[#allocation73_spill] sm:$0xff] %v13071_v6  ;;  %vm6004_vm7 = vcmp.ge.f32.partialorder %v5876_v2, 0.0  ;;  %v5877_v29 = vsel %vm5621_vm6, %v5082_v20, %v5749_v0  ;;  %vm5624_vm8 = vcmp.ge.f32.partialorder %v5086_v25, 0.0  ;;  %v5088_v16 = vadd.f32 %v13017_v18, %v12751_v12 }
 0x562   : > { %v13079_v17 = vpop.f32.mrf.mxu1  ;;  %v13082_v35 = vmul.f32 0.1, %v13055_v56  ;;  %v13085_v27 = vadd.f32 %v12707_v36, %v6403_v5  ;;  %v13089_v44 = vadd.f32 %v13001_v45, %v12684_v14  ;;  %v13093_v47 = vadd.f32 %v13015_v23, %v12697_v59  ;;  %v15559_v23 = vld [vmem:[#allocation36_spill] sm:$0xff] }
 0x563   : > { %v6404_v20 = vmul.f32 %v12710_v7, %v6253_v57  ;;  %vm6001_vm9 = vcmp.ge.f32.partialorder %v5873_v42, 0.0  ;;  %v6129_v12 = vmul.f32 0.1, %v5873_v42  ;;  %v13097_v18 = vadd.f32 %v5272_v4, %v12684_v14  ;;  %v5280_v57 = vpop.f32.mrf.mxu0 }
 0x564   : > { %15555 = vst [vmem:[#allocation89_spill] sm:$0xff] %v13089_v44  ;;  %15556 = vst [vmem:[#allocation90_spill] sm:$0xff] %v13093_v47  ;;  %v13099_v38 = vpop.f32.mrf.mxu1  ;;  %v6407_v60 = vmul.f32 %v12704_v61, %v6256_v49  ;;  %v6260_v45 = vsel %vm6004_vm7, %v5876_v2, %v6132_v62  ;;  %v6133_v0 = vmul.f32 0.1, %v5877_v29  ;;  %v5880_v5 = vsel %vm5624_vm8, %v5086_v25, %v5752_v53 }
 0x565   : > { %15557 = vst [vmem:[#allocation91_spill] sm:$0xff] %v13097_v18  ;;  %5570 = vmatmul.mubr.bf16.gmra.mxu1 %v15558_v21  ;;  %vm6005_vm10 = vcmp.ge.f32.partialorder %v5877_v29, 0.0  ;;  %v5753_v33 = vmul.f32 0.1, %v5088_v16  ;;  %v5090_v4 = vadd.f32 %v13026_v3, %v12755_v15  ;;  %vm6671_vm11 = vcmp.ge.f32.partialorder %v13020_v26, 0.0 }
 0x566   : > { %5579 = vmatprep.mubr.bf16.mxu1 %v15559_v23  ;;  %v13109_v47 = vpop.f32.mrf.mxu1  ;;  %vm5625_vm12 = vcmp.ge.f32.partialorder %v5088_v16, 0.0  ;;  %vm6675_vm13 = vcmp.ge.f32.partialorder %v13037_v10, 0.0  ;;  %v6799_v2 = vmul.f32 0.1, %v13020_v26  ;;  %v7310_v53 = vpack.c.bf16 %v13063_v13, %v13045_v54  ;;  %v5282_v54 = vpop.f32.mrf.mxu0 }
 0x567   : > { %v6257_v25 = vsel %vm6001_vm9, %v5873_v42, %v6129_v12  ;;  %v6411_v62 = vmul.f32 %v12704_v61, %v6260_v45  ;;  %v6136_v49 = vmul.f32 0.1, %v5880_v5  ;;  %v6803_v21 = vmul.f32 0.1, %v13037_v10 }
 0x568   : > { %v13118_v15 = vpop.f32.mrf.mxu1  ;;  %v13121_v3 = vmul.f32 0.1, %v13085_v27  ;;  %v6261_v23 = vsel %vm6005_vm10, %v5877_v29, %v6133_v0  ;;  %vm6008_vm14 = vcmp.ge.f32.partialorder %v5880_v5, 0.0  ;;  %v6927_v18 = vsel %vm6671_vm11, %v13020_v26, %v6799_v2  ;;  %v10236_v2 = vld [vmem:[#allocation12 + $0x1f4] ss:$8 sps:$4 sm:$0xff]  }
 0x569   : > { %v5881_v44 = vsel %vm5625_vm12, %v5088_v16, %v5753_v33  ;;  %v5756_v6 = vmul.f32 0.1, %v5090_v4  ;;  %v6931_v13 = vsel %vm6675_vm13, %v13037_v10, %v6803_v21  ;;  %v7055_v42 = vmul.f32 0.01, %v6927_v18  ;;  %v15560_v33 = vld [vmem:[#allocation74_spill] sm:$0xff]  ;;  %7980 = vmatprep.subr.bf16.mxu1 %v10236_v2 }
 0x56a   : > { %v13126_v12 = vpop.f32.mrf.mxu1  ;;  %v13129_v45 = vadd.f32 %v12707_v36, %v6407_v60  ;;  %v6408_v19 = vmul.f32 %v12710_v7, %v6257_v25  ;;  %vm5628_vm15 = vcmp.ge.f32.partialorder %v5090_v4, 0.0  ;;  %v7059_v29 = vmul.f32 0.01, %v6931_v13  ;;  %v10234_v60 = vld [vmem:[#allocation12 + $0x1f0] ss:$8 sps:$4 sm:$0xff]   ;;  %v10276_v13 = vld [vmem:[%s11153_s27 + $0x8] sm:$0xff] }
 0x56b   : > { %v6555_v0 = vadd.f32 %v12727_v30, %v6404_v20  ;;  %v13134_v26 = vadd.f32 %v12707_v36, %v6411_v62  ;;  %v13138_v10 = vadd.f32 %v13050_v28, %v12697_v59  ;;  %v6264_v16 = vsel %vm6008_vm14, %v5880_v5, %v6136_v49  ;;  %v10277_v20 = vld [vmem:[%s11153_s27 + $0x28] sm:$0xff]  ;;  %v13151_v5 = vpop.f32.mrf.mxu0  ;;  %7981 = vmatpush2.bf16.msra.mxu1 %v10234_v60 }
 0x56c   : > { %v13140_v18 = vpop.f32.mrf.mxu1  ;;  %v6412_v25 = vmul.f32 %v12710_v7, %v6261_v23  ;;  %v6137_v21 = vmul.f32 0.1, %v5881_v44  ;;  %v7183_v46 = vadd.f32 %v10276_v13, %v7055_v42  ;;  %v7187_v22 = vadd.f32 %v10277_v20, %v7059_v29  ;;  %v15561_v62 = vld [vmem:[#allocation49_spill] sm:$0xff] }
 0x56d   : > { %5580 = vmatmul.mubr.bf16.gmra.mxu1 %v15560_v33  ;;  %v13148_v31 = vadd.f32 %v5278_v37, %v12684_v14  ;;  %vm6009_vm0 = vcmp.ge.f32.partialorder %v5881_v44, 0.0  ;;  %v5884_v28 = vsel %vm5628_vm15, %v5090_v4, %v5756_v6  ;;  %v5096_v49 = vadd.f32 %v13041_v52, %v12765_v24 }
 0x56e   : > { %5589 = vmatprep.mubr.bf16.mxu1 %v15561_v62  ;;  %v13156_v23 = vmul.f32 0.1, %v13129_v45  ;;  %v13159_v42 = vadd.f32 %v12727_v30, %v6408_v19  ;;  %v6415_v29 = vmul.f32 %v12704_v61, %v6264_v16  ;;  %v7311_v33 = vpack.c.bf16 %v7187_v22, %v7183_v46  ;;  %v13172_v4 = vpop.f32.mrf.mxu1  ;;  %v13181_v16 = vpop.f32.mrf.mxu0 }
 0x56f   : > { %v13163_v37 = vadd.f32 %v5280_v57, %v12697_v59  ;;  %v13166_v6 = vadd.f32 %v5282_v54, %v12684_v14  ;;  %v5092_v24 = vadd.f32 %v13034_v50, %v12759_v40  ;;  %v5098_v52 = vadd.f32 %v13052_v48, %v12769_v8  ;;  %v15563_v40 = vld [vmem:[#allocation56_spill] sm:$0xff] }
 0x570   : > { %v13175_v19 = vmul.f32 0.1, %v13134_v26  ;;  %v13178_v22 = vadd.f32 %v12727_v30, %v6412_v25  ;;  %v6265_v46 = vsel %vm6009_vm0, %v5881_v44, %v6137_v21  ;;  %vm6012_vm1 = vcmp.ge.f32.partialorder %v5884_v28, 0.0  ;;  %7803 = vmatprep.mubr.bf16.mxu0 %v7311_v33  ;;  %v13191_v25 = vpop.f32.mrf.mxu1  ;;  %v15564_v21 = vld [vmem:[#allocation50_spill] sm:$0xff]  ;;  %v5290_v20 = vpop.f32.mrf.mxu0 }
 0x571   : > { %15562 = vst [vmem:[#allocation70_spill] sm:$0xff] %v13163_v37  ;;  %v6140_v57 = vmul.f32 0.1, %v5884_v28  ;;  %7804 = vmatmul.mubr.bf16.vlgmr.msra.gmra.mxu0 %v7310_v53  ;;  %v5760_v54 = vmul.f32 0.1, %v5096_v49  ;;  %v5100_v8 = vadd.f32 %v13073_v51, %v15563_v40  ;;  %vm6679_vm2 = vcmp.ge.f32.partialorder %v13066_v58, 0.0 }
 0x572   : > { %v13187_v50 = vadd.f32 %v12707_v36, %v6415_v29  ;;  %vm5632_vm3 = vcmp.ge.f32.partialorder %v5096_v49, 0.0  ;;  %vm6683_vm4 = vcmp.ge.f32.partialorder %v6555_v0, 0.0  ;;  %v6807_v48 = vmul.f32 0.1, %v13066_v58 }
 0x573   : > { %v6416_v44 = vmul.f32 %v12710_v7, %v6265_v46  ;;  %v5757_v60 = vmul.f32 0.1, %v5092_v24  ;;  %v5761_v2 = vmul.f32 0.1, %v5098_v52  ;;  %v6811_v53 = vmul.f32 0.1, %v6555_v0 }
 0x574   : > { %vm5629_vm5 = vcmp.ge.f32.partialorder %v5092_v24, 0.0  ;;  %vm5633_vm6 = vcmp.ge.f32.partialorder %v5098_v52, 0.0  ;;  %v6935_v51 = vsel %vm6679_vm2, %v13066_v58, %v6807_v48  ;;  %vm6678_vm7 = vcmp.ge.f32.partialorder %v13055_v56, 0.0 }
 0x575   : > { %5590 = vmatmul.mubr.bf16.gmra.mxu1 %v15564_v21  ;;  %v5888_v13 = vsel %vm5632_vm3, %v5096_v49, %v5760_v54  ;;  %v5764_v62 = vmul.f32 0.1, %v5100_v8  ;;  %v6939_v29 = vsel %vm6683_vm4, %v6555_v0, %v6811_v53  ;;  %v7063_v33 = vmul.f32 0.01, %v6935_v51  ;;  %v13202_v49 = vpop.f32.mrf.mxu1  ;;  %v10278_v0 = vld [vmem:[%s11153_s27 + $0x48] sm:$0xff] }
 0x576   : > { %v6268_v46 = vsel %vm6012_vm1, %v5884_v28, %v6140_v57  ;;  %vm5636_vm8 = vcmp.ge.f32.partialorder %v5100_v8, 0.0  ;;  %v7067_v40 = vmul.f32 0.01, %v6939_v29  ;;  %vm6682_vm9 = vcmp.ge.f32.partialorder %v13085_v27, 0.0  ;;  %v10279_v28 = vld [vmem:[%s11153_s27 + $0x68] sm:$0xff] }
 0x577   : > { %v5885_v21 = vsel %vm5629_vm5, %v5092_v24, %v5757_v60  ;;  %v5889_v37 = vsel %vm5633_vm6, %v5098_v52, %v5761_v2  ;;  %v6934_v58 = vsel %vm6678_vm7, %v13055_v56, %v13082_v35  ;;  %v6938_v48 = vsel %vm6682_vm9, %v13085_v27, %v13121_v3  ;;  %v13206_v24 = vpop.f32.mrf.mxu0 }
 0x578   : > { %v6144_v54 = vmul.f32 0.1, %v5888_v13  ;;  %v7191_v53 = vadd.f32 %v10278_v0, %v7063_v33  ;;  %v7195_v57 = vadd.f32 %v10279_v28, %v7067_v40  ;;  %v7062_v51 = vmul.f32 0.01, %v6934_v58  ;;  %v10280_v33 = vld [vmem:[%s11153_s27 + $0x40] sm:$0xff] }
 0x579   : > { %vm6016_vm10 = vcmp.ge.f32.partialorder %v5888_v13, 0.0  ;;  %v5892_v29 = vsel %vm5636_vm8, %v5100_v8, %v5764_v62  ;;  %v7066_v52 = vmul.f32 0.01, %v6938_v48  ;;  %v5102_v56 = vadd.f32 %v13079_v17, %v12777_v9  ;;  %v10281_v58 = vld [vmem:[%s11153_s27 + $0x60] sm:$0xff]  ;;  %v13219_v62 = vpop.f32.mrf.mxu1 }
 0x57a   : > { %v6419_v35 = vmul.f32 %v12704_v61, %v6268_v46  ;;  %v6141_v27 = vmul.f32 0.1, %v5885_v21  ;;  %v13213_v3 = vadd.f32 %v13151_v5, %v12697_v59  ;;  %v7315_v60 = vpack.c.bf16 %v7195_v57, %v7191_v53  ;;  %v10237_v48 = vld [vmem:[#allocation12 + $0x1e0] ss:$8 sps:$4 sm:$0xff]   ;;  %v10239_v5 = vld [vmem:[#allocation12 + $0x1e4] ss:$8 sps:$4 sm:$0xff]   ;;  %v13225_v57 = vpop.f32.mrf.mxu0 }
 0x57b   : > { %v6145_v2 = vmul.f32 0.1, %v5889_v37  ;;  %v7190_v40 = vadd.f32 %v10280_v33, %v7062_v51  ;;  %v7194_v0 = vadd.f32 %v10281_v58, %v7066_v52  ;;  %v5106_v8 = vadd.f32 %v13099_v38, %v12781_v41  ;;  %7982 = vmatprep.subr.bf16.mxu1 %v10239_v5  ;;  %v13240_v33 = vpop.f32.mrf.mxu1 }
 0x57c   : > { %15565 = vst [vmem:[#allocation36_spill] sm:$0xff] %v13213_v3  ;;  %vm6013_vm11 = vcmp.ge.f32.partialorder %v5885_v21, 0.0  ;;  %v6272_v9 = vsel %vm6016_vm10, %v5888_v13, %v6144_v54  ;;  %vm6017_vm12 = vcmp.ge.f32.partialorder %v5889_v37, 0.0  ;;  %v6148_v17 = vmul.f32 0.1, %v5892_v29  ;;  %7813 = vmatprep.mubr.bf16.mxu0 %v7315_v60  ;;  %7983 = vmatpush2.bf16.msra.mxu1 %v10237_v48 }
 0x57d   : > { %v13223_v46 = vmul.f32 0.1, %v13187_v50  ;;  %vm6020_vm13 = vcmp.ge.f32.partialorder %v5892_v29, 0.0  ;;  %v7314_v53 = vpack.c.bf16 %v7194_v0, %v7190_v40  ;;  %v5765_v28 = vmul.f32 0.1, %v5102_v56  ;;  %v13263_v0 = vpop.f32.mrf.mxu1 }
 0x57e   : > { %v13228_v41 = vadd.f32 %v12727_v30, %v6416_v44  ;;  %v13231_v38 = vadd.f32 %v12707_v36, %v6419_v35  ;;  %v13235_v13 = vadd.f32 %v13181_v16, %v12684_v14  ;;  %vm5637_vm14 = vcmp.ge.f32.partialorder %v5102_v56, 0.0 }
 0x57f   : > { %v6269_v54 = vsel %vm6013_vm11, %v5885_v21, %v6141_v27  ;;  %v6423_v51 = vmul.f32 %v12704_v61, %v6272_v9  ;;  %v6273_v52 = vsel %vm6017_vm12, %v5889_v37, %v6145_v2  ;;  %7814 = vmatmul.mubr.bf16.gmra.mxu0 %v7314_v53  ;;  %v5768_v60 = vmul.f32 0.1, %v5106_v8  ;;  %v5298_v21 = vpop.f32.mrf.mxu0  ;;  %v15568_v27 = vld [vmem:[#allocation54_spill] sm:$0xff] }
 0x580   : > { %15566 = vst [vmem:[#allocation74_spill] sm:$0xff] %v13235_v13  ;;  %v13243_v44 = vadd.f32 %v5290_v20, %v12697_v59  ;;  %v6276_v35 = vsel %vm6020_vm13, %v5892_v29, %v6148_v17  ;;  %vm5640_vm15 = vcmp.ge.f32.partialorder %v5106_v8, 0.0  ;;  %v5108_v16 = vadd.f32 %v13109_v47, %v12785_v1 }
 0x581   : > { %v5893_v40 = vsel %vm5637_vm14, %v5102_v56, %v5765_v28  ;;  %v5110_v58 = vadd.f32 %v13118_v15, %v15568_v27  ;;  %vm6687_vm0 = vcmp.ge.f32.partialorder %v13159_v42, 0.0  ;;  %v6815_v37 = vmul.f32 0.1, %v13159_v42  ;;  %v5300_v17 = vpop.f32.mrf.mxu0  ;;  %v10283_v27 = vld [vmem:[%s11153_s27 + $0xa8] sm:$0xff] }
 0x582   : > { %15567 = vst [vmem:[#allocation49_spill] sm:$0xff] %v13243_v44  ;;  %v13253_v2 = vmul.f32 0.1, %v13231_v38  ;;  %v6420_v20 = vmul.f32 %v12710_v7, %v6269_v54  ;;  %v6424_v29 = vmul.f32 %v12710_v7, %v6273_v52  ;;  %vm6691_vm1 = vcmp.ge.f32.partialorder %v13178_v22, 0.0 }
 0x583   : > { %v13259_v1 = vadd.f32 %v12707_v36, %v6423_v51  ;;  %v6427_v47 = vmul.f32 %v12704_v61, %v6276_v35  ;;  %v5896_v56 = vsel %vm5640_vm15, %v5106_v8, %v5768_v60  ;;  %v6819_v15 = vmul.f32 0.1, %v13178_v22  ;;  %v13273_v60 = vpop.f32.mrf.mxu1  ;;  %v10282_v35 = vld [vmem:[%s11153_s27 + $0x88] sm:$0xff] }
 0x584   : > { %vm6021_vm2 = vcmp.ge.f32.partialorder %v5893_v40, 0.0  ;;  %v6149_v48 = vmul.f32 0.1, %v5893_v40  ;;  %v6943_v9 = vsel %vm6687_vm0, %v13159_v42, %v6815_v37  ;;  %vm6686_vm3 = vcmp.ge.f32.partialorder %v13129_v45, 0.0 }
 0x585   : > { %vm5641_vm4 = vcmp.ge.f32.partialorder %v5108_v16, 0.0  ;;  %v5772_v5 = vmul.f32 0.1, %v5110_v58  ;;  %v6947_v53 = vsel %vm6691_vm1, %v13178_v22, %v6819_v15  ;;  %v7071_v28 = vmul.f32 0.01, %v6943_v9 }
 0x586   : > { %vm6024_vm5 = vcmp.ge.f32.partialorder %v5896_v56, 0.0  ;;  %vm5644_vm6 = vcmp.ge.f32.partialorder %v5110_v58, 0.0  ;;  %v7075_v8 = vmul.f32 0.01, %v6947_v53  ;;  %vm6690_vm7 = vcmp.ge.f32.partialorder %v13134_v26, 0.0 }
 0x587   : > { %v6152_v54 = vmul.f32 0.1, %v5896_v56  ;;  %v5769_v51 = vmul.f32 0.1, %v5108_v16  ;;  %v6942_v42 = vsel %vm6686_vm3, %v13129_v45, %v13156_v23  ;;  %v6946_v52 = vsel %vm6690_vm7, %v13134_v26, %v13175_v19  ;;  %v5302_v23 = vpop.f32.mrf.mxu0  ;;  %v15569_v26 = vld [vmem:[#allocation61_spill] sm:$0xff] }
 0x588   : > { %v7199_v22 = vadd.f32 %v10282_v35, %v7071_v28  ;;  %v7203_v37 = vadd.f32 %v10283_v27, %v7075_v8  ;;  %v7070_v15 = vmul.f32 0.01, %v6942_v42  ;;  %v7074_v9 = vmul.f32 0.01, %v6946_v52  ;;  %v10284_v8 = vld [vmem:[%s11153_s27 + $0x80] sm:$0xff] }
 0x589   : > { %v13278_v53 = vadd.f32 %v12727_v30, %v6420_v20  ;;  %v13282_v44 = vadd.f32 %v13206_v24, %v12684_v14  ;;  %v5900_v45 = vsel %vm5644_vm6, %v5110_v58, %v5772_v5  ;;  %v5112_v19 = vadd.f32 %v13126_v12, %v15569_v26  ;;  %v10285_v52 = vld [vmem:[%s11153_s27 + $0xa0] sm:$0xff]  ;;  %v10240_v20 = vld [vmem:[#allocation12 + $0x1d0] ss:$8 sps:$4 sm:$0xff]   ;;  %v10242_v27 = vld [vmem:[#allocation12 + $0x1d4] ss:$8 sps:$4 sm:$0xff]   ;;  %v13297_v12 = vpop.f32.mrf.mxu1 }
 0x58a   : > { %v13288_v13 = vadd.f32 %v12707_v36, %v6427_v47  ;;  %v7319_v28 = vpack.c.bf16 %v7203_v37, %v7199_v22  ;;  %v7198_v42 = vadd.f32 %v10284_v8, %v7070_v15  ;;  %v7202_v35 = vadd.f32 %v10285_v52, %v7074_v9  ;;  %7984 = vmatprep.subr.bf16.mxu1 %v10242_v27 }
 0x58b   : > { %v6277_v3 = vsel %vm6021_vm2, %v5893_v40, %v6149_v48  ;;  %v6280_v24 = vsel %vm6024_vm5, %v5896_v56, %v6152_v54  ;;  %v5897_v58 = vsel %vm5641_vm4, %v5108_v16, %v5769_v51  ;;  %v5116_v5 = vadd.f32 %v13140_v18, %v12800_v11  ;;  %v13312_v18 = vpop.f32.mrf.mxu0  ;;  %7985 = vmatpush2.bf16.msra.mxu1 %v10240_v20  ;;  %v13322_v51 = vpop.f32.mrf.mxu1 }
 0x58c   : > { %v13300_v47 = vmul.f32 0.1, %v13259_v1  ;;  %v13303_v22 = vadd.f32 %v12727_v30, %v6424_v29  ;;  %v6156_v37 = vmul.f32 0.1, %v5900_v45  ;;  %7823 = vmatprep.mubr.bf16.mxu0 %v7319_v28  ;;  %v7318_v15 = vpack.c.bf16 %v7202_v35, %v7198_v42 }
 0x58d   : > { %v13307_v40 = vadd.f32 %v13225_v57, %v12697_v59  ;;  %v13310_v16 = vadd.f32 %v5298_v21, %v12684_v14  ;;  %vm6028_vm8 = vcmp.ge.f32.partialorder %v5900_v45, 0.0  ;;  %v5773_v11 = vmul.f32 0.1, %v5112_v19  ;;  %v5308_v8 = vpop.f32.mrf.mxu0 }
 0x58e   : > { %v6428_v56 = vmul.f32 %v12710_v7, %v6277_v3  ;;  %v6431_v29 = vmul.f32 %v12704_v61, %v6280_v24  ;;  %v6153_v48 = vmul.f32 0.1, %v5897_v58  ;;  %7824 = vmatmul.mubr.bf16.gmra.mxu0 %v7318_v15  ;;  %vm5645_vm9 = vcmp.ge.f32.partialorder %v5112_v19, 0.0 }
 0x58f   : > { %v13317_v54 = vmul.f32 0.1, %v13288_v13  ;;  %vm6025_vm10 = vcmp.ge.f32.partialorder %v5897_v58, 0.0  ;;  %v13320_v57 = vadd.f32 %v5300_v17, %v12697_v59  ;;  %v5776_v21 = vmul.f32 0.1, %v5116_v5  ;;  %v5310_v24 = vpop.f32.mrf.mxu0 }
 0x590   : > { %v6284_v9 = vsel %vm6028_vm8, %v5900_v45, %v6156_v37  ;;  %vm5648_vm11 = vcmp.ge.f32.partialorder %v5116_v5, 0.0  ;;  %vm6695_vm12 = vcmp.ge.f32.partialorder %v13228_v41, 0.0  ;;  %v6823_v3 = vmul.f32 0.1, %v13228_v41 }
 0x591   : > { %15570 = vst [vmem:[#allocation56_spill] sm:$0xff] %v13320_v57  ;;  %v13327_v26 = vadd.f32 %v5302_v23, %v12684_v14  ;;  %v5901_v28 = vsel %vm5645_vm9, %v5112_v19, %v5773_v11  ;;  %v5118_v42 = vadd.f32 %v13172_v4, %v12804_v34  ;;  %v5120_v17 = vadd.f32 %v13191_v25, %v12808_v55  ;;  %v13343_v34 = vpop.f32.mrf.mxu1 }
 0x592   : > { %v13334_v52 = vadd.f32 %v12727_v30, %v6428_v56  ;;  %v13337_v45 = vadd.f32 %v12707_v36, %v6431_v29  ;;  %v6281_v35 = vsel %vm6025_vm10, %v5897_v58, %v6153_v48  ;;  %vm6699_vm13 = vcmp.ge.f32.partialorder %v13278_v53, 0.0 }
 0x593   : > { %15571 = vst [vmem:[#allocation50_spill] sm:$0xff] %v13327_v26  ;;  %v6435_v23 = vmul.f32 %v12704_v61, %v6284_v9  ;;  %v5904_v20 = vsel %vm5648_vm11, %v5116_v5, %v5776_v21  ;;  %v6827_v19 = vmul.f32 0.1, %v13278_v53  ;;  %v6951_v27 = vsel %vm6695_vm12, %v13228_v41, %v6823_v3  ;;  %v13356_v48 = vpop.f32.mrf.mxu1  ;;  %v10286_v21 = vld [vmem:[%s11153_s27 + $0xc8] sm:$0xff] }
 0x594   : > { %vm6029_vm14 = vcmp.ge.f32.partialorder %v5901_v28, 0.0  ;;  %v6157_v55 = vmul.f32 0.1, %v5901_v28  ;;  %v7079_v4 = vmul.f32 0.01, %v6951_v27  ;;  %vm6694_vm15 = vcmp.ge.f32.partialorder %v13187_v50, 0.0 }
 0x595   : > { %vm5649_vm0 = vcmp.ge.f32.partialorder %v5118_v42, 0.0  ;;  %v5777_v25 = vmul.f32 0.1, %v5118_v42  ;;  %v5780_v58 = vmul.f32 0.1, %v5120_v17  ;;  %v6955_v37 = vsel %vm6699_vm13, %v13278_v53, %v6827_v19  ;;  %v10287_v3 = vld [vmem:[%s11153_s27 + $0xe8] sm:$0xff] }
 0x596   : > { %vm5652_vm1 = vcmp.ge.f32.partialorder %v5120_v17, 0.0  ;;  %v7083_v5 = vmul.f32 0.01, %v6955_v37  ;;  %vm6698_vm2 = vcmp.ge.f32.partialorder %v13231_v38, 0.0  ;;  %v6950_v41 = vsel %vm6694_vm15, %v13187_v50, %v13223_v46 }
 0x597   : > { %v6432_v15 = vmul.f32 %v12710_v7, %v6281_v35  ;;  %v13352_v11 = vadd.f32 %v12707_v36, %v6435_v23  ;;  %v6954_v56 = vsel %vm6698_vm2, %v13231_v38, %v13253_v2  ;;  %v7078_v29 = vmul.f32 0.01, %v6950_v41  ;;  %v5312_v23 = vpop.f32.mrf.mxu0  ;;  %v10288_v38 = vld [vmem:[%s11153_s27 + $0xc0] sm:$0xff] }
 0x598   : > { %v6160_v53 = vmul.f32 0.1, %v5904_v20  ;;  %v7207_v9 = vadd.f32 %v10286_v21, %v7079_v4  ;;  %v7211_v19 = vadd.f32 %v10287_v3, %v7083_v5  ;;  %v7082_v27 = vmul.f32 0.01, %v6954_v56  ;;  %v10289_v41 = vld [vmem:[%s11153_s27 + $0xe0] sm:$0xff]  ;;  %v15572_v3 = vld [vmem:[#allocation65_spill] sm:$0xff] }
 0x599   : > { %v6285_v50 = vsel %vm6029_vm14, %v5901_v28, %v6157_v55  ;;  %vm6032_vm3 = vcmp.ge.f32.partialorder %v5904_v20, 0.0  ;;  %v5905_v46 = vsel %vm5649_vm0, %v5118_v42, %v5777_v25  ;;  %v5908_v35 = vsel %vm5652_vm1, %v5120_v17, %v5780_v58  ;;  %v10243_v4 = vld [vmem:[#allocation12 + $0x1c0] ss:$8 sps:$4 sm:$0xff]   ;;  %v13380_v55 = vpop.f32.mrf.mxu1  ;;  %v10245_v25 = vld [vmem:[#allocation12 + $0x1c4] ss:$8 sps:$4 sm:$0xff]  }
 0x59a   : > { %v7323_v37 = vpack.c.bf16 %v7211_v19, %v7207_v9  ;;  %v7206_v2 = vadd.f32 %v10288_v38, %v7078_v29  ;;  %v7210_v57 = vadd.f32 %v10289_v41, %v7082_v27  ;;  %v5126_v26 = vadd.f32 %v13219_v62, %v12817_v39  ;;  %7986 = vmatprep.subr.bf16.mxu1 %v10245_v25 }
 0x59b   : > { %v13368_v5 = vmul.f32 0.1, %v13337_v45  ;;  %v13371_v28 = vadd.f32 %v12727_v30, %v6432_v15  ;;  %v13374_v42 = vmul.f32 0.1, %v13352_v11  ;;  %v13378_v17 = vadd.f32 %v13312_v18, %v12697_v59  ;;  %v13389_v18 = vpop.f32.mrf.mxu0  ;;  %7987 = vmatpush2.bf16.msra.mxu1 %v10243_v4  ;;  %v13402_v19 = vpop.f32.mrf.mxu1 }
 0x59c   : > { %v6436_v58 = vmul.f32 %v12710_v7, %v6285_v50  ;;  %v6288_v39 = vsel %vm6032_vm3, %v5904_v20, %v6160_v53  ;;  %7833 = vmatprep.mubr.bf16.mxu0 %v7323_v37  ;;  %v7322_v62 = vpack.c.bf16 %v7210_v57, %v7206_v2  ;;  %v5122_v15 = vadd.f32 %v13202_v49, %v12813_v63  ;;  %v15573_v53 = vld [vmem:[#allocation64_spill] sm:$0xff] }
 0x59d   : > { %v13387_v56 = vadd.f32 %v5308_v8, %v12684_v14  ;;  %vm6033_vm4 = vcmp.ge.f32.partialorder %v5905_v46, 0.0  ;;  %v6161_v29 = vmul.f32 0.1, %v5905_v46  ;;  %v6164_v21 = vmul.f32 0.1, %v5908_v35  ;;  %v13415_v25 = vpop.f32.mrf.mxu1 }
 0x59e   : > { %vm6036_vm5 = vcmp.ge.f32.partialorder %v5908_v35, 0.0  ;;  %7834 = vmatmul.mubr.bf16.gmra.mxu0 %v7322_v62  ;;  %v5784_v9 = vmul.f32 0.1, %v5126_v26  ;;  %v5128_v20 = vadd.f32 %v13240_v33, %v15572_v3  ;;  %v5130_v57 = vadd.f32 %v13263_v0, %v15573_v53  ;;  %v10290_v53 = vld [vmem:[%s11153_s27 + $0x108] sm:$0xff] }
 0x59f   : > { %v6439_v63 = vmul.f32 %v12704_v61, %v6288_v39  ;;  %v13397_v49 = vadd.f32 %v5310_v24, %v12697_v59  ;;  %v13400_v8 = vadd.f32 %v5312_v23, %v12684_v14  ;;  %vm5656_vm6 = vcmp.ge.f32.partialorder %v5126_v26, 0.0  ;;  %v5318_v24 = vpop.f32.mrf.mxu0 }
 0x5a0   : > { %v13405_v27 = vadd.f32 %v12727_v30, %v6436_v58  ;;  %v5781_v50 = vmul.f32 0.1, %v5122_v15  ;;  %vm6703_vm7 = vcmp.ge.f32.partialorder %v13303_v22, 0.0  ;;  %v6831_v33 = vmul.f32 0.1, %v13303_v22 }
 0x5a1   : > { %v6289_v0 = vsel %vm6033_vm4, %v5905_v46, %v6161_v29  ;;  %v6292_v37 = vsel %vm6036_vm5, %v5908_v35, %v6164_v21  ;;  %vm5653_vm8 = vcmp.ge.f32.partialorder %v5122_v15, 0.0  ;;  %vm6707_vm9 = vcmp.ge.f32.partialorder %v13334_v52, 0.0  ;;  %v5320_v62 = vpop.f32.mrf.mxu0 }
 0x5a2   : > { %v5912_v23 = vsel %vm5656_vm6, %v5126_v26, %v5784_v9  ;;  %v5785_v38 = vmul.f32 0.1, %v5128_v20  ;;  %v5788_v2 = vmul.f32 0.1, %v5130_v57  ;;  %v6835_v41 = vmul.f32 0.1, %v13334_v52 }
 0x5a3   : > { %vm5657_vm10 = vcmp.ge.f32.partialorder %v5128_v20, 0.0  ;;  %vm5660_vm11 = vcmp.ge.f32.partialorder %v5130_v57, 0.0  ;;  %v6959_v4 = vsel %vm6703_vm7, %v13303_v22, %v6831_v33  ;;  %vm6702_vm12 = vcmp.ge.f32.partialorder %v13259_v1, 0.0 }
 0x5a4   : > { %v6443_v46 = vmul.f32 %v12704_v61, %v6292_v37  ;;  %v5909_v35 = vsel %vm5653_vm8, %v5122_v15, %v5781_v50  ;;  %v6963_v58 = vsel %vm6707_vm9, %v13334_v52, %v6835_v41  ;;  %v7087_v26 = vmul.f32 0.01, %v6959_v4  ;;  %v10291_v52 = vld [vmem:[%s11153_s27 + $0x128] sm:$0xff]  ;;  %v13426_v41 = vpop.f32.mrf.mxu1 }
 0x5a5   : > { %vm6040_vm13 = vcmp.ge.f32.partialorder %v5912_v23, 0.0  ;;  %v6168_v39 = vmul.f32 0.1, %v5912_v23  ;;  %v7091_v29 = vmul.f32 0.01, %v6963_v58  ;;  %vm6706_vm14 = vcmp.ge.f32.partialorder %v13288_v13, 0.0 }
 0x5a6   : > { %v5913_v21 = vsel %vm5657_vm10, %v5128_v20, %v5785_v38  ;;  %v5916_v22 = vsel %vm5660_vm11, %v5130_v57, %v5788_v2  ;;  %v6958_v9 = vsel %vm6702_vm12, %v13259_v1, %v13300_v47  ;;  %v6962_v3 = vsel %vm6706_vm14, %v13288_v13, %v13317_v54  ;;  %v15574_v47 = vld [vmem:[#allocation67_spill] sm:$0xff]  ;;  %v5322_v57 = vpop.f32.mrf.mxu0  ;;  %v10292_v2 = vld [vmem:[%s11153_s27 + $0x100] sm:$0xff] }
 0x5a7   : > { %v7215_v15 = vadd.f32 %v10290_v53, %v7087_v26  ;;  %v7219_v50 = vadd.f32 %v10291_v52, %v7091_v29  ;;  %v7086_v33 = vmul.f32 0.01, %v6958_v9  ;;  %v7090_v37 = vmul.f32 0.01, %v6962_v3  ;;  %v10293_v26 = vld [vmem:[%s11153_s27 + $0x120] sm:$0xff] }
 0x5a8   : > { %v13429_v4 = vadd.f32 %v12707_v36, %v6439_v63  ;;  %v6440_v20 = vmul.f32 %v12710_v7, %v6289_v0  ;;  %v13433_v1 = vadd.f32 %v12707_v36, %v6443_v46  ;;  %v5132_v13 = vadd.f32 %v13273_v60, %v15574_v47  ;;  %v10246_v9 = vld [vmem:[#allocation12 + $0x1b0] ss:$8 sps:$4 sm:$0xff]   ;;  %v10248_v3 = vld [vmem:[#allocation12 + $0x1b4] ss:$8 sps:$4 sm:$0xff]   ;;  %v15575_v0 = vld [vmem:[#allocation41_spill] sm:$0xff]  ;;  %v13442_v47 = vpop.f32.mrf.mxu1 }
 0x5a9   : > { %v6165_v54 = vmul.f32 0.1, %v5909_v35  ;;  %v7327_v38 = vpack.c.bf16 %v7219_v50, %v7215_v15  ;;  %v7214_v58 = vadd.f32 %v10292_v2, %v7086_v33  ;;  %v7218_v29 = vadd.f32 %v10293_v26, %v7090_v37  ;;  %7988 = vmatprep.subr.bf16.mxu1 %v10248_v3  ;;  %v15578_v26 = vld [vmem:[#allocation66_spill] sm:$0xff] }
 0x5aa   : > { %v6296_v63 = vsel %vm6040_vm13, %v5912_v23, %v6168_v39  ;;  %v6169_v53 = vmul.f32 0.1, %v5913_v21  ;;  %v6172_v52 = vmul.f32 0.1, %v5916_v22  ;;  %v5136_v46 = vadd.f32 %v13297_v12, %v15575_v0  ;;  %7989 = vmatpush2.bf16.msra.mxu1 %v10246_v9  ;;  %v13470_v3 = vpop.f32.mrf.mxu1 }
 0x5ab   : > { %vm6037_vm15 = vcmp.ge.f32.partialorder %v5909_v35, 0.0  ;;  %vm6041_vm0 = vcmp.ge.f32.partialorder %v5913_v21, 0.0  ;;  %vm6044_vm1 = vcmp.ge.f32.partialorder %v5916_v22, 0.0  ;;  %7843 = vmatprep.mubr.bf16.mxu0 %v7327_v38  ;;  %v7326_v60 = vpack.c.bf16 %v7218_v29, %v7214_v58  ;;  %v13461_v38 = vpop.f32.mrf.mxu0 }
 0x5ac   : > { %v13445_v15 = vmul.f32 0.1, %v13429_v4  ;;  %v13448_v50 = vadd.f32 %v12727_v30, %v6440_v20  ;;  %v13452_v23 = vadd.f32 %v13389_v18, %v12697_v59  ;;  %v5789_v39 = vmul.f32 0.1, %v5132_v13 }
 0x5ad   : > { %v13455_v12 = vmul.f32 0.1, %v13433_v1  ;;  %v6447_v33 = vmul.f32 %v12704_v61, %v6296_v63  ;;  %v13459_v37 = vadd.f32 %v5318_v24, %v12684_v14  ;;  %7844 = vmatmul.mubr.bf16.gmra.mxu0 %v7326_v60  ;;  %vm5661_vm2 = vcmp.ge.f32.partialorder %v5132_v13, 0.0 }
 0x5ae   : > { %15576 = vst [vmem:[#allocation54_spill] sm:$0xff] %v13452_v23  ;;  %v6293_v20 = vsel %vm6037_vm15, %v5909_v35, %v6165_v54  ;;  %v6297_v18 = vsel %vm6041_vm0, %v5913_v21, %v6169_v53  ;;  %v6300_v2 = vsel %vm6044_vm1, %v5916_v22, %v6172_v52  ;;  %v5792_v58 = vmul.f32 0.1, %v5136_v46  ;;  %v5328_v53 = vpop.f32.mrf.mxu0 }
 0x5af   : > { %15577 = vst [vmem:[#allocation61_spill] sm:$0xff] %v13459_v37  ;;  %vm5664_vm3 = vcmp.ge.f32.partialorder %v5136_v46, 0.0  ;;  %v5138_v29 = vadd.f32 %v13322_v51, %v15578_v26  ;;  %vm6711_vm4 = vcmp.ge.f32.partialorder %v13371_v28, 0.0  ;;  %v6839_v24 = vmul.f32 0.1, %v13371_v28  ;;  %v15581_v37 = vld [vmem:[#allocation76_spill] sm:$0xff] }
 0x5b0   : > { %v13473_v63 = vadd.f32 %v5320_v62, %v12697_v59  ;;  %v13476_v35 = vadd.f32 %v5322_v57, %v12684_v14  ;;  %v5917_v21 = vsel %vm5661_vm2, %v5132_v13, %v5789_v39  ;;  %v5140_v22 = vadd.f32 %v13343_v34, %v12843_v32  ;;  %v13490_v34 = vpop.f32.mrf.mxu1 }
 0x5b1   : > { %v6444_v54 = vmul.f32 %v12710_v7, %v6293_v20  ;;  %v13482_v51 = vadd.f32 %v12707_v36, %v6447_v33  ;;  %v6448_v9 = vmul.f32 %v12710_v7, %v6297_v18  ;;  %vm6715_vm5 = vcmp.ge.f32.partialorder %v13405_v27, 0.0  ;;  %v5330_v20 = vpop.f32.mrf.mxu0 }
 0x5b2   : > { %15579 = vst [vmem:[#allocation65_spill] sm:$0xff] %v13473_v63  ;;  %15580 = vst [vmem:[#allocation64_spill] sm:$0xff] %v13476_v35  ;;  %v6451_v62 = vmul.f32 %v12704_v61, %v6300_v2  ;;  %v5920_v52 = vsel %vm5664_vm3, %v5136_v46, %v5792_v58  ;;  %v6843_v57 = vmul.f32 0.1, %v13405_v27  ;;  %v6967_v13 = vsel %vm6711_vm4, %v13371_v28, %v6839_v24  ;;  %v10294_v24 = vld [vmem:[%s11153_s27 + $0x148] sm:$0xff] }
 0x5b3   : > { %vm6045_vm6 = vcmp.ge.f32.partialorder %v5917_v21, 0.0  ;;  %v5793_v0 = vmul.f32 0.1, %v5138_v29  ;;  %v7095_v32 = vmul.f32 0.01, %v6967_v13  ;;  %vm6710_vm7 = vcmp.ge.f32.partialorder %v13337_v45, 0.0 }
 0x5b4   : > { %v6173_v60 = vmul.f32 0.1, %v5917_v21  ;;  %vm5665_vm8 = vcmp.ge.f32.partialorder %v5138_v29, 0.0  ;;  %v5796_v39 = vmul.f32 0.1, %v5140_v22  ;;  %v6971_v33 = vsel %vm6715_vm5, %v13405_v27, %v6843_v57  ;;  %v10295_v27 = vld [vmem:[%s11153_s27 + $0x168] sm:$0xff] }
 0x5b5   : > { %vm5668_vm9 = vcmp.ge.f32.partialorder %v5140_v22, 0.0  ;;  %v7099_v46 = vmul.f32 0.01, %v6971_v33  ;;  %vm6714_vm10 = vcmp.ge.f32.partialorder %v13352_v11, 0.0  ;;  %v6966_v28 = vsel %vm6710_vm7, %v13337_v45, %v13368_v5  ;;  %v13500_v33 = vpop.f32.mrf.mxu1 }
 0x5b6   : > { %vm6048_vm11 = vcmp.ge.f32.partialorder %v5920_v52, 0.0  ;;  %v6176_v18 = vmul.f32 0.1, %v5920_v52  ;;  %v6970_v2 = vsel %vm6714_vm10, %v13352_v11, %v13374_v42  ;;  %v7094_v58 = vmul.f32 0.01, %v6966_v28  ;;  %v10297_v28 = vld [vmem:[%s11153_s27 + $0x160] sm:$0xff] }
 0x5b7   : > { %v5921_v26 = vsel %vm5665_vm8, %v5138_v29, %v5793_v0  ;;  %v7223_v13 = vadd.f32 %v10294_v24, %v7095_v32  ;;  %v7227_v57 = vadd.f32 %v10295_v27, %v7099_v46  ;;  %v7098_v35 = vmul.f32 0.01, %v6970_v2  ;;  %v5332_v29 = vpop.f32.mrf.mxu0  ;;  %v10296_v32 = vld [vmem:[%s11153_s27 + $0x140] sm:$0xff] }
 0x5b8   : > { %v6595_v63 = vadd.f32 %v12727_v30, %v6444_v54  ;;  %v13504_v45 = vmul.f32 0.1, %v13482_v51  ;;  %v5924_v5 = vsel %vm5668_vm9, %v5140_v22, %v5796_v39  ;;  %v5146_v11 = vadd.f32 %v13380_v55, %v15581_v37  ;;  %v10249_v39 = vld [vmem:[#allocation12 + $0x1a0] ss:$8 sps:$4 sm:$0xff]  }
 0x5b9   : > { %v13510_v42 = vadd.f32 %v12707_v36, %v6451_v62  ;;  %v7331_v0 = vpack.c.bf16 %v7227_v57, %v7223_v13  ;;  %v7222_v46 = vadd.f32 %v10296_v32, %v7094_v58  ;;  %v7226_v2 = vadd.f32 %v10297_v28, %v7098_v35  ;;  %v15582_v62 = vld [vmem:[#allocation38_spill] sm:$0xff]  ;;  %v13521_v57 = vpop.f32.mrf.mxu1  ;;  %v10251_v58 = vld [vmem:[#allocation12 + $0x1a4] ss:$8 sps:$4 sm:$0xff]  }
 0x5ba   : > { %v13515_v24 = vadd.f32 %v12727_v30, %v6448_v9  ;;  %v6301_v54 = vsel %vm6045_vm6, %v5917_v21, %v6173_v60  ;;  %v6304_v27 = vsel %vm6048_vm11, %v5920_v52, %v6176_v18  ;;  %v6177_v22 = vmul.f32 0.1, %v5921_v26  ;;  %v13534_v18 = vpop.f32.mrf.mxu0  ;;  %7990 = vmatprep.subr.bf16.mxu1 %v10251_v58 }
 0x5bb   : > { %vm6049_vm12 = vcmp.ge.f32.partialorder %v5921_v26, 0.0  ;;  %v6180_v55 = vmul.f32 0.1, %v5924_v5  ;;  %7853 = vmatprep.mubr.bf16.mxu0 %v7331_v0  ;;  %v7330_v37 = vpack.c.bf16 %v7226_v2, %v7222_v46  ;;  %v5142_v13 = vadd.f32 %v13356_v48, %v15582_v62  ;;  %7991 = vmatpush2.bf16.msra.mxu1 %v10249_v39 }
 0x5bc   : > { %v13525_v35 = vadd.f32 %v13461_v38, %v12697_v59  ;;  %v13528_v21 = vadd.f32 %v5328_v53, %v12684_v14  ;;  %vm6052_vm13 = vcmp.ge.f32.partialorder %v5924_v5, 0.0  ;;  %v5800_v9 = vmul.f32 0.1, %v5146_v11 }
 0x5bd   : > { %v13531_v52 = vmul.f32 0.1, %v13510_v42  ;;  %v6455_v60 = vmul.f32 %v12704_v61, %v6304_v27  ;;  %7854 = vmatmul.mubr.bf16.gmra.mxu0 %v7330_v37  ;;  %vm5672_vm14 = vcmp.ge.f32.partialorder %v5146_v11, 0.0  ;;  %v5150_v48 = vadd.f32 %v13415_v25, %v12861_v43  ;;  %v13548_v27 = vpop.f32.mrf.mxu1  ;;  %v15587_v25 = vld [vmem:[#allocation77_spill] sm:$0xff] }
 0x5be   : > { %15583 = vst [vmem:[#allocation67_spill] sm:$0xff] %v13525_v35  ;;  %15584 = vst [vmem:[#allocation41_spill] sm:$0xff] %v13528_v21  ;;  %v6452_v38 = vmul.f32 %v12710_v7, %v6301_v54  ;;  %v6305_v53 = vsel %vm6049_vm12, %v5921_v26, %v6177_v22  ;;  %v13541_v0 = vadd.f32 %v5330_v20, %v12697_v59  ;;  %v5797_v28 = vmul.f32 0.1, %v5142_v13  ;;  %v5338_v54 = vpop.f32.mrf.mxu0  ;;  %v10257_v35 = vld [vmem:[#allocation12 + $0x184] ss:$8 sps:$4 sm:$0xff]  }
 0x5bf   : > { %v13544_v32 = vadd.f32 %v5332_v29, %v12684_v14  ;;  %v6308_v46 = vsel %vm6052_vm13, %v5924_v5, %v6180_v55  ;;  %vm6719_vm15 = vcmp.ge.f32.partialorder %v13448_v50, 0.0  ;;  %v6847_v2 = vmul.f32 0.1, %v13448_v50  ;;  %v13559_v58 = vpop.f32.mrf.mxu1 }
 0x5c0   : > { %15585 = vst [vmem:[#allocation66_spill] sm:$0xff] %v13541_v0  ;;  %vm5669_vm0 = vcmp.ge.f32.partialorder %v5142_v13, 0.0  ;;  %v5928_v43 = vsel %vm5672_vm14, %v5146_v11, %v5800_v9  ;;  %v5148_v26 = vadd.f32 %v13402_v19, %v15587_v25  ;;  %vm6723_vm1 = vcmp.ge.f32.partialorder %v6595_v63, 0.0  ;;  %v10300_v0 = vld [vmem:[%s11153_s27 + $0x180] sm:$0xff] }
 0x5c1   : > { %15586 = vst [vmem:[#allocation76_spill] sm:$0xff] %v13544_v32  ;;  %v13553_v20 = vadd.f32 %v12707_v36, %v6455_v60  ;;  %v6456_v29 = vmul.f32 %v12710_v7, %v6305_v53  ;;  %v5804_v5 = vmul.f32 0.1, %v5150_v48  ;;  %v6851_v22 = vmul.f32 0.1, %v6595_v63  ;;  %v5340_v53 = vpop.f32.mrf.mxu0 }
 0x5c2   : > { %v6459_v39 = vmul.f32 %v12704_v61, %v6308_v46  ;;  %vm5676_vm2 = vcmp.ge.f32.partialorder %v5150_v48, 0.0  ;;  %v6975_v55 = vsel %vm6719_vm15, %v13448_v50, %v6847_v2  ;;  %vm6718_vm3 = vcmp.ge.f32.partialorder %v13429_v4, 0.0  ;;  %v10299_v2 = vld [vmem:[%s11153_s27 + $0x1a8] sm:$0xff] }
 0x5c3   : > { %v5925_v11 = vsel %vm5669_vm0, %v5142_v13, %v5797_v28  ;;  %v6184_v19 = vmul.f32 0.1, %v5928_v43  ;;  %v6979_v37 = vsel %vm6723_vm1, %v6595_v63, %v6851_v22  ;;  %v7103_v62 = vmul.f32 0.01, %v6975_v55  ;;  %v10298_v63 = vld [vmem:[%s11153_s27 + $0x188] sm:$0xff] }
 0x5c4   : > { %vm6056_vm4 = vcmp.ge.f32.partialorder %v5928_v43, 0.0  ;;  %vm5673_vm5 = vcmp.ge.f32.partialorder %v5148_v26, 0.0  ;;  %v7107_v9 = vmul.f32 0.01, %v6979_v37  ;;  %vm6722_vm6 = vcmp.ge.f32.partialorder %v13433_v1, 0.0 }
 0x5c5   : > { %v5801_v60 = vmul.f32 0.1, %v5148_v26  ;;  %v5932_v46 = vsel %vm5676_vm2, %v5150_v48, %v5804_v5  ;;  %v6974_v50 = vsel %vm6718_vm3, %v13429_v4, %v13445_v15  ;;  %v6978_v13 = vsel %vm6722_vm6, %v13433_v1, %v13455_v12  ;;  %v13575_v4 = vpop.f32.mrf.mxu1  ;;  %v10301_v12 = vld [vmem:[%s11153_s27 + $0x1a0] sm:$0xff] }
 0x5c6   : > { %v7231_v28 = vadd.f32 %v10298_v63, %v7103_v62  ;;  %v7235_v25 = vadd.f32 %v10299_v2, %v7107_v9  ;;  %v7102_v22 = vmul.f32 0.01, %v6974_v50  ;;  %v7106_v55 = vmul.f32 0.01, %v6978_v13  ;;  %v15588_v63 = vld [vmem:[#allocation78_spill] sm:$0xff]  ;;  %v5342_v2 = vpop.f32.mrf.mxu0 }
 0x5c7   : > { %v13569_v37 = vmul.f32 0.1, %v13553_v20  ;;  %v13572_v32 = vadd.f32 %v12707_v36, %v6459_v39  ;;  %v6181_v48 = vmul.f32 0.1, %v5925_v11  ;;  %v6312_v5 = vsel %vm6056_vm4, %v5928_v43, %v6184_v19  ;;  %v15589_v39 = vld [vmem:[#allocation79_spill] sm:$0xff] }
 0x5c8   : > { %v7335_v15 = vpack.c.bf16 %v7235_v25, %v7231_v28  ;;  %v7230_v1 = vadd.f32 %v10300_v0, %v7102_v22  ;;  %v7234_v62 = vadd.f32 %v10301_v12, %v7106_v55  ;;  %v5152_v9 = vadd.f32 %v13426_v41, %v15588_v63  ;;  %v10252_v28 = vld [vmem:[#allocation12 + $0x190] ss:$8 sps:$4 sm:$0xff]   ;;  %v10254_v25 = vld [vmem:[#allocation12 + $0x194] ss:$8 sps:$4 sm:$0xff]   ;;  %v15592_v12 = vld [vmem:[#allocation80_spill] sm:$0xff] }
 0x5c9   : > { %vm6053_vm7 = vcmp.ge.f32.partialorder %v5925_v11, 0.0  ;;  %v5929_v50 = vsel %vm5673_vm5, %v5148_v26, %v5801_v60  ;;  %v6188_v13 = vmul.f32 0.1, %v5932_v46  ;;  %v5156_v21 = vadd.f32 %v13442_v47, %v15589_v39  ;;  %7992 = vmatprep.subr.bf16.mxu1 %v10254_v25 }
 0x5ca   : > { %v6603_v43 = vadd.f32 %v12727_v30, %v6452_v38  ;;  %v13586_v19 = vadd.f32 %v12727_v30, %v6456_v29  ;;  %vm6060_vm8 = vcmp.ge.f32.partialorder %v5932_v46, 0.0  ;;  %7863 = vmatprep.mubr.bf16.mxu0 %v7335_v15  ;;  %v7334_v0 = vpack.c.bf16 %v7234_v62, %v7230_v1  ;;  %v13599_v38 = vpop.f32.mrf.mxu1  ;;  %v13603_v1 = vpop.f32.mrf.mxu0  ;;  %7993 = vmatpush2.bf16.msra.mxu1 %v10252_v28 }
 0x5cb   : > { %v13589_v41 = vmul.f32 0.1, %v13572_v32  ;;  %v13593_v26 = vadd.f32 %v13534_v18, %v12697_v59  ;;  %v6463_v60 = vmul.f32 %v12704_v61, %v6312_v5  ;;  %v13597_v47 = vadd.f32 %v5338_v54, %v12684_v14  ;;  %v15593_v54 = vld [vmem:[#allocation81_spill] sm:$0xff]  ;;  %7994 = vmatprep.subr.bf16.mxu1 %v10257_v35 }
 0x5cc   : > { %v6309_v29 = vsel %vm6053_vm7, %v5925_v11, %v6181_v48  ;;  %vm6057_vm9 = vcmp.ge.f32.partialorder %v5929_v50, 0.0  ;;  %v6185_v22 = vmul.f32 0.1, %v5929_v50  ;;  %7864 = vmatmul.mubr.bf16.gmra.mxu0 %v7334_v0  ;;  %v5805_v55 = vmul.f32 0.1, %v5152_v9  ;;  %v5348_v25 = vpop.f32.mrf.mxu0 }
 0x5cd   : > { %15590 = vst [vmem:[#allocation38_spill] sm:$0xff] %v13593_v26  ;;  %15591 = vst [vmem:[#allocation77_spill] sm:$0xff] %v13597_v47  ;;  %v6316_v15 = vsel %vm6060_vm8, %v5932_v46, %v6188_v13  ;;  %vm5677_vm10 = vcmp.ge.f32.partialorder %v5152_v9, 0.0  ;;  %v5808_v18 = vmul.f32 0.1, %v5156_v21  ;;  %v5158_v5 = vadd.f32 %v13470_v3, %v15592_v12  ;;  %v13621_v3 = vpop.f32.mrf.mxu1 }
 0x5ce   : > { %vm5680_vm11 = vcmp.ge.f32.partialorder %v5156_v21, 0.0  ;;  %v5160_v62 = vadd.f32 %v13490_v34, %v15593_v54  ;;  %vm6727_vm12 = vcmp.ge.f32.partialorder %v13515_v24, 0.0  ;;  %v6855_v11 = vmul.f32 0.1, %v13515_v24 }
 0x5cf   : > { %v6460_v48 = vmul.f32 %v12710_v7, %v6309_v29  ;;  %v13613_v46 = vadd.f32 %v12707_v36, %v6463_v60  ;;  %v13616_v63 = vadd.f32 %v5340_v53, %v12697_v59  ;;  %v13619_v13 = vadd.f32 %v5342_v2, %v12684_v14 }
 0x5d0   : > { %v6313_v39 = vsel %vm6057_vm9, %v5929_v50, %v6185_v22  ;;  %v6467_v34 = vmul.f32 %v12704_v61, %v6316_v15  ;;  %v5933_v0 = vsel %vm5677_vm10, %v5152_v9, %v5805_v55  ;;  %vm6731_vm13 = vcmp.ge.f32.partialorder %v6603_v43, 0.0  ;;  %v13628_v22 = vpop.f32.mrf.mxu1  ;;  %v5350_v15 = vpop.f32.mrf.mxu0 }
 0x5d1   : > { %15594 = vst [vmem:[#allocation78_spill] sm:$0xff] %v13616_v63  ;;  %15595 = vst [vmem:[#allocation79_spill] sm:$0xff] %v13619_v13  ;;  %v5936_v28 = vsel %vm5680_vm11, %v5156_v21, %v5808_v18  ;;  %v5809_v29 = vmul.f32 0.1, %v5158_v5  ;;  %v6859_v60 = vmul.f32 0.1, %v6603_v43  ;;  %v6983_v12 = vsel %vm6727_vm12, %v13515_v24, %v6855_v11 }
 0x5d2   : > { %vm5681_vm14 = vcmp.ge.f32.partialorder %v5158_v5, 0.0  ;;  %v5812_v53 = vmul.f32 0.1, %v5160_v62  ;;  %v7111_v54 = vmul.f32 0.01, %v6983_v12  ;;  %vm6726_vm15 = vcmp.ge.f32.partialorder %v13482_v51, 0.0 }
 0x5d3   : > { %vm6061_vm0 = vcmp.ge.f32.partialorder %v5933_v0, 0.0  ;;  %v6189_v2 = vmul.f32 0.1, %v5933_v0  ;;  %vm5684_vm1 = vcmp.ge.f32.partialorder %v5160_v62, 0.0  ;;  %v6987_v50 = vsel %vm6731_vm13, %v6603_v43, %v6859_v60  ;;  %v10302_v43 = vld [vmem:[%s11153_s27 + $0x1c8] sm:$0xff] }
 0x5d4   : > { %vm6064_vm2 = vcmp.ge.f32.partialorder %v5936_v28, 0.0  ;;  %v7115_v21 = vmul.f32 0.01, %v6987_v50  ;;  %vm6730_vm3 = vcmp.ge.f32.partialorder %v13510_v42, 0.0  ;;  %v6982_v24 = vsel %vm6726_vm15, %v13482_v51, %v13504_v45  ;;  %v10303_v13 = vld [vmem:[%s11153_s27 + $0x1e8] sm:$0xff]  ;;  %v15596_v45 = vld [vmem:[#allocation83_spill] sm:$0xff] }
 0x5d5   : > { %v6192_v9 = vmul.f32 0.1, %v5936_v28  ;;  %v5937_v55 = vsel %vm5681_vm14, %v5158_v5, %v5809_v29  ;;  %v6986_v18 = vsel %vm6730_vm3, %v13510_v42, %v13531_v52  ;;  %v7110_v11 = vmul.f32 0.01, %v6982_v24  ;;  %v13644_v29 = vpop.f32.mrf.mxu1 }
 0x5d6   : > { %v5940_v12 = vsel %vm5684_vm1, %v5160_v62, %v5812_v53  ;;  %v7239_v60 = vadd.f32 %v10302_v43, %v7111_v54  ;;  %v7243_v63 = vadd.f32 %v10303_v13, %v7115_v21  ;;  %v7114_v50 = vmul.f32 0.01, %v6986_v18  ;;  %v10304_v62 = vld [vmem:[%s11153_s27 + $0x1c0] sm:$0xff]  ;;  %v5352_v18 = vpop.f32.mrf.mxu0 }
 0x5d7   : > { %v6611_v47 = vadd.f32 %v12727_v30, %v6460_v48  ;;  %v6464_v26 = vmul.f32 %v12710_v7, %v6313_v39  ;;  %v13640_v51 = vadd.f32 %v12707_v36, %v6467_v34  ;;  %v5166_v5 = vadd.f32 %v13521_v57, %v15596_v45  ;;  %v10305_v54 = vld [vmem:[%s11153_s27 + $0x1e0] sm:$0xff]  ;;  %v15597_v34 = vld [vmem:[#allocation82_spill] sm:$0xff] }
 0x5d8   : > { %v6317_v42 = vsel %vm6061_vm0, %v5933_v0, %v6189_v2  ;;  %v7339_v52 = vpack.c.bf16 %v7243_v63, %v7239_v60  ;;  %v7238_v53 = vadd.f32 %v10304_v62, %v7110_v11  ;;  %v7242_v13 = vadd.f32 %v10305_v54, %v7114_v50  ;;  %v10255_v21 = vld [vmem:[#allocation12 + $0x180] ss:$8 sps:$4 sm:$0xff]   ;;  %v13663_v11 = vpop.f32.mrf.mxu1  ;;  %v5354_v35 = vpop.f32.mrf.mxu0 }
 0x5d9   : > { %v6320_v48 = vsel %vm6064_vm2, %v5936_v28, %v6192_v9  ;;  %v6193_v24 = vmul.f32 0.1, %v5937_v55  ;;  %v6196_v39 = vmul.f32 0.1, %v5940_v12  ;;  %v5162_v43 = vadd.f32 %v13500_v33, %v15597_v34  ;;  %7995 = vmatpush2.bf16.msra.mxu1 %v10255_v21 }
 0x5da   : > { %v13653_v57 = vmul.f32 0.1, %v13613_v46  ;;  %vm6065_vm4 = vcmp.ge.f32.partialorder %v5937_v55, 0.0  ;;  %vm6068_vm5 = vcmp.ge.f32.partialorder %v5940_v12, 0.0  ;;  %7873 = vmatprep.mubr.bf16.mxu0 %v7339_v52  ;;  %v7338_v63 = vpack.c.bf16 %v7242_v13, %v7238_v53  ;;  %v15601_v52 = vld [vmem:[#allocation40_spill] sm:$0xff]  ;;  %v13687_v54 = vpop.f32.mrf.mxu1  ;;  %v5358_v34 = vpop.f32.mrf.mxu0 }
 0x5db   : > { %v13656_v0 = vadd.f32 %v12727_v30, %v6464_v26  ;;  %v6468_v2 = vmul.f32 %v12710_v7, %v6317_v42  ;;  %v13661_v28 = vadd.f32 %v13603_v1, %v12697_v59  ;;  %v5816_v9 = vmul.f32 0.1, %v5166_v5 }
 0x5dc   : > { %v13666_v33 = vmul.f32 0.1, %v13640_v51  ;;  %v6471_v60 = vmul.f32 %v12704_v61, %v6320_v48  ;;  %v13670_v50 = vadd.f32 %v5348_v25, %v12684_v14  ;;  %7874 = vmatmul.mubr.bf16.gmra.mxu0 %v7338_v63  ;;  %vm5688_vm6 = vcmp.ge.f32.partialorder %v5166_v5, 0.0 }
 0x5dd   : > { %15598 = vst [vmem:[#allocation80_spill] sm:$0xff] %v13661_v28  ;;  %v6321_v26 = vsel %vm6065_vm4, %v5937_v55, %v6193_v24  ;;  %v13674_v1 = vadd.f32 %v5350_v15, %v12697_v59  ;;  %v6324_v45 = vsel %vm6068_vm5, %v5940_v12, %v6196_v39  ;;  %v5813_v42 = vmul.f32 0.1, %v5162_v43 }
 0x5de   : > { %15599 = vst [vmem:[#allocation81_spill] sm:$0xff] %v13670_v50  ;;  %vm5685_vm7 = vcmp.ge.f32.partialorder %v5162_v43, 0.0  ;;  %v5168_v62 = vadd.f32 %v13548_v27, %v15601_v52  ;;  %vm6735_vm8 = vcmp.ge.f32.partialorder %v13586_v19, 0.0  ;;  %v6863_v25 = vmul.f32 0.1, %v13586_v19  ;;  %v15603_v27 = vld [vmem:[#allocation42_spill] sm:$0xff] }
 0x5df   : > { %15600 = vst [vmem:[#allocation83_spill] sm:$0xff] %v13674_v1  ;;  %v13682_v53 = vadd.f32 %v12727_v30, %v6468_v2  ;;  %v13685_v55 = vadd.f32 %v5352_v18, %v12684_v14  ;;  %v5944_v15 = vsel %vm5688_vm6, %v5166_v5, %v5816_v9  ;;  %vm6739_vm9 = vcmp.ge.f32.partialorder %v6611_v47, 0.0  ;;  %v10307_v52 = vld [vmem:[%s11153_s27 + $0x228] sm:$0xff]  ;;  %v15605_v50 = vld [vmem:[#allocation71_spill] sm:$0xff] }
 0x5e0   : > { %v13690_v12 = vadd.f32 %v12707_v36, %v6471_v60  ;;  %v6472_v13 = vmul.f32 %v12710_v7, %v6321_v26  ;;  %v5170_v21 = vadd.f32 %v13559_v58, %v15603_v27  ;;  %v6867_v48 = vmul.f32 0.1, %v6611_v47  ;;  %v13699_v58 = vpop.f32.mrf.mxu1 }
 0x5e1   : > { %15602 = vst [vmem:[#allocation82_spill] sm:$0xff] %v13685_v55  ;;  %v6475_v24 = vmul.f32 %v12704_v61, %v6324_v45  ;;  %v5941_v39 = vsel %vm5685_vm7, %v5162_v43, %v5813_v42  ;;  %v6991_v18 = vsel %vm6735_vm8, %v13586_v19, %v6863_v25  ;;  %vm6734_vm10 = vcmp.ge.f32.partialorder %v13553_v20, 0.0  ;;  %v5360_v45 = vpop.f32.mrf.mxu0  ;;  %v15604_v55 = vld [vmem:[#allocation75_spill] sm:$0xff] }
 0x5e2   : > { %v6200_v5 = vmul.f32 0.1, %v5944_v15  ;;  %vm5689_vm11 = vcmp.ge.f32.partialorder %v5168_v62, 0.0  ;;  %v6995_v63 = vsel %vm6739_vm9, %v6611_v47, %v6867_v48  ;;  %v7119_v2 = vmul.f32 0.01, %v6991_v18  ;;  %v10306_v47 = vld [vmem:[%s11153_s27 + $0x208] sm:$0xff] }
 0x5e3   : > { %vm6072_vm12 = vcmp.ge.f32.partialorder %v5944_v15, 0.0  ;;  %v5817_v9 = vmul.f32 0.1, %v5168_v62  ;;  %v7123_v60 = vmul.f32 0.01, %v6995_v63  ;;  %vm6738_vm13 = vcmp.ge.f32.partialorder %v13572_v32, 0.0 }
 0x5e4   : > { %vm5692_vm14 = vcmp.ge.f32.partialorder %v5170_v21, 0.0  ;;  %v5820_v43 = vmul.f32 0.1, %v5170_v21  ;;  %v6990_v19 = vsel %vm6734_vm10, %v13553_v20, %v13569_v37  ;;  %v6994_v26 = vsel %vm6738_vm13, %v13572_v32, %v13589_v41  ;;  %v10308_v41 = vld [vmem:[%s11153_s27 + $0x200] sm:$0xff] }
 0x5e5   : > { %v7247_v42 = vadd.f32 %v10306_v47, %v7119_v2  ;;  %v7251_v25 = vadd.f32 %v10307_v52, %v7123_v60  ;;  %v7118_v27 = vmul.f32 0.01, %v6990_v19  ;;  %v7122_v48 = vmul.f32 0.01, %v6994_v26  ;;  %v10309_v2 = vld [vmem:[%s11153_s27 + $0x220] sm:$0xff]  ;;  %v13717_v60 = vpop.f32.mrf.mxu1 }
 0x5e6   : > { %v13708_v18 = vadd.f32 %v12707_v36, %v6475_v24  ;;  %v6197_v63 = vmul.f32 0.1, %v5941_v39  ;;  %v5172_v1 = vadd.f32 %v13575_v4, %v15604_v55  ;;  %v5176_v20 = vadd.f32 %v13599_v38, %v15605_v50  ;;  %v13724_v55 = vpop.f32.mrf.mxu0 }
 0x5e7   : > { %v6328_v32 = vsel %vm6072_vm12, %v5944_v15, %v6200_v5  ;;  %v7343_v37 = vpack.c.bf16 %v7251_v25, %v7247_v42  ;;  %v7246_v28 = vadd.f32 %v10308_v41, %v7118_v27  ;;  %v7250_v47 = vadd.f32 %v10309_v2, %v7122_v48  ;;  %v13736_v52 = vpop.f32.mrf.mxu1  ;;  %v15608_v27 = vld [vmem:[#allocation39_spill] sm:$0xff] }
 0x5e8   : > { %vm6069_vm15 = vcmp.ge.f32.partialorder %v5941_v39, 0.0  ;;  %v5945_v24 = vsel %vm5689_vm11, %v5168_v62, %v5817_v9  ;;  %v5948_v19 = vsel %vm5692_vm14, %v5170_v21, %v5820_v43  ;;  %v5824_v26 = vmul.f32 0.1, %v5176_v20  ;;  %v13741_v25 = vpop.f32.mrf.mxu0 }
 0x5e9   : > { %v13722_v4 = vmul.f32 0.1, %v13690_v12  ;;  %7883 = vmatprep.mubr.bf16.mxu0 %v7343_v37  ;;  %v7342_v38 = vpack.c.bf16 %v7250_v47, %v7246_v28  ;;  %v5821_v50 = vmul.f32 0.1, %v5172_v1  ;;  %vm5696_vm0 = vcmp.ge.f32.partialorder %v5176_v20, 0.0  ;;  %v15610_v37 = vld [vmem:[#allocation53_spill] sm:$0xff] }
 0x5ea   : > { %v13727_v15 = vadd.f32 %v12727_v30, %v6472_v13  ;;  %v13730_v5 = vadd.f32 %v5354_v35, %v12697_v59  ;;  %v6479_v62 = vmul.f32 %v12704_v61, %v6328_v32  ;;  %vm5693_vm1 = vcmp.ge.f32.partialorder %v5172_v1, 0.0 }
 0x5eb   : > { %v13734_v21 = vmul.f32 0.1, %v13708_v18  ;;  %v6325_v9 = vsel %vm6069_vm15, %v5941_v39, %v6197_v63  ;;  %v6201_v43 = vmul.f32 0.1, %v5945_v24  ;;  %v6204_v42 = vmul.f32 0.1, %v5948_v19  ;;  %7884 = vmatmul.mubr.bf16.gmra.mxu0 %v7342_v38 }
 0x5ec   : > { %15606 = vst [vmem:[#allocation40_spill] sm:$0xff] %v13730_v5  ;;  %v13739_v28 = vadd.f32 %v5358_v34, %v12684_v14  ;;  %vm6073_vm2 = vcmp.ge.f32.partialorder %v5945_v24, 0.0  ;;  %vm6076_vm3 = vcmp.ge.f32.partialorder %v5948_v19, 0.0  ;;  %v5952_v13 = vsel %vm5696_vm0, %v5176_v20, %v5824_v26  ;;  %v10313_v5 = vld [vmem:[%s11153_s27 + $0x260] sm:$0xff] }
 0x5ed   : > { %v5949_v35 = vsel %vm5693_vm1, %v5172_v1, %v5821_v50  ;;  %v5178_v48 = vadd.f32 %v13621_v3, %v15608_v27  ;;  %vm6743_vm4 = vcmp.ge.f32.partialorder %v13656_v0, 0.0  ;;  %v6871_v39 = vmul.f32 0.1, %v13656_v0  ;;  %v13757_v3 = vpop.f32.mrf.mxu1  ;;  %v5368_v50 = vpop.f32.mrf.mxu0 }
 0x5ee   : > { %15607 = vst [vmem:[#allocation42_spill] sm:$0xff] %v13739_v28  ;;  %v6476_v63 = vmul.f32 %v12710_v7, %v6325_v9  ;;  %v13749_v32 = vadd.f32 %v12707_v36, %v6479_v62  ;;  %v13752_v34 = vadd.f32 %v5360_v45, %v12697_v59  ;;  %v5180_v1 = vadd.f32 %v13628_v22, %v15610_v37 }
 0x5ef   : > { %v6329_v20 = vsel %vm6073_vm2, %v5945_v24, %v6201_v43  ;;  %v6332_v41 = vsel %vm6076_vm3, %v5948_v19, %v6204_v42  ;;  %v6208_v2 = vmul.f32 0.1, %v5952_v13  ;;  %vm6747_vm5 = vcmp.ge.f32.partialorder %v13682_v53, 0.0  ;;  %v13766_v43 = vpop.f32.mrf.mxu1 }
 0x5f0   : > { %15609 = vst [vmem:[#allocation75_spill] sm:$0xff] %v13752_v34  ;;  %vm6077_vm6 = vcmp.ge.f32.partialorder %v5949_v35, 0.0  ;;  %vm6080_vm7 = vcmp.ge.f32.partialorder %v5952_v13, 0.0  ;;  %v6875_v47 = vmul.f32 0.1, %v13682_v53  ;;  %v6999_v26 = vsel %vm6743_vm4, %v13656_v0, %v6871_v39 }
 0x5f1   : > { %v6205_v38 = vmul.f32 0.1, %v5949_v35  ;;  %vm5697_vm8 = vcmp.ge.f32.partialorder %v5178_v48, 0.0  ;;  %v7127_v45 = vmul.f32 0.01, %v6999_v26  ;;  %vm6742_vm9 = vcmp.ge.f32.partialorder %v13613_v46, 0.0 }
 0x5f2   : > { %v5825_v22 = vmul.f32 0.1, %v5178_v48  ;;  %vm5700_vm10 = vcmp.ge.f32.partialorder %v5180_v1, 0.0  ;;  %v5828_v24 = vmul.f32 0.1, %v5180_v1  ;;  %v7003_v19 = vsel %vm6747_vm5, %v13682_v53, %v6875_v47  ;;  %v10311_v26 = vld [vmem:[%s11153_s27 + $0x268] sm:$0xff] }
 0x5f3   : > { %v6336_v62 = vsel %vm6080_vm7, %v5952_v13, %v6208_v2  ;;  %v7131_v9 = vmul.f32 0.01, %v7003_v19  ;;  %vm6746_vm11 = vcmp.ge.f32.partialorder %v13640_v51, 0.0  ;;  %v6998_v0 = vsel %vm6742_vm9, %v13613_v46, %v13653_v57  ;;  %v5370_v13 = vpop.f32.mrf.mxu0  ;;  %v10310_v2 = vld [vmem:[%s11153_s27 + $0x248] sm:$0xff] }
 0x5f4   : > { %v6480_v42 = vmul.f32 %v12710_v7, %v6329_v20  ;;  %v6483_v27 = vmul.f32 %v12704_v61, %v6332_v41  ;;  %v7002_v39 = vsel %vm6746_vm11, %v13640_v51, %v13666_v33  ;;  %v7126_v37 = vmul.f32 0.01, %v6998_v0  ;;  %v15611_v41 = vld [vmem:[#allocation55_spill] sm:$0xff]  ;;  %v10312_v33 = vld [vmem:[%s11153_s27 + $0x240] sm:$0xff] }
 0x5f5   : > { %v6333_v53 = vsel %vm6077_vm6, %v5949_v35, %v6205_v38  ;;  %v7255_v47 = vadd.f32 %v10310_v2, %v7127_v45  ;;  %v7259_v19 = vadd.f32 %v10311_v26, %v7131_v9  ;;  %v7130_v46 = vmul.f32 0.01, %v7002_v39  ;;  %v15612_v38 = vld [vmem:[#allocation57_spill] sm:$0xff]  ;;  %v13784_v2 = vpop.f32.mrf.mxu1 }
 0x5f6   : > { %v6487_v57 = vmul.f32 %v12704_v61, %v6336_v62  ;;  %v5953_v20 = vsel %vm5697_vm8, %v5178_v48, %v5825_v22  ;;  %v5956_v34 = vsel %vm5700_vm10, %v5180_v1, %v5828_v24  ;;  %v5182_v28 = vadd.f32 %v13644_v29, %v15611_v41 }
 0x5f7   : > { %v7347_v51 = vpack.c.bf16 %v7259_v19, %v7255_v47  ;;  %v7254_v0 = vadd.f32 %v10312_v33, %v7126_v37  ;;  %v7258_v35 = vadd.f32 %v10313_v5, %v7130_v46  ;;  %v5186_v45 = vadd.f32 %v13663_v11, %v15612_v38  ;;  %v5372_v11 = vpop.f32.mrf.mxu0  ;;  %v13808_v37 = vpop.f32.mrf.mxu1 }
 0x5f8   : > { %v6627_v9 = vadd.f32 %v12727_v30, %v6476_v63  ;;  %v13788_v62 = vmul.f32 0.1, %v13749_v32  ;;  %v13791_v48 = vadd.f32 %v12707_v36, %v6483_v27  ;;  %v13795_v29 = vadd.f32 %v13724_v55, %v12684_v14 }
 0x5f9   : > { %v13798_v1 = vadd.f32 %v12727_v30, %v6480_v42  ;;  %v6209_v5 = vmul.f32 0.1, %v5953_v20  ;;  %v6212_v22 = vmul.f32 0.1, %v5956_v34  ;;  %7893 = vmatprep.mubr.bf16.mxu0 %v7347_v51  ;;  %v7346_v24 = vpack.c.bf16 %v7258_v35, %v7254_v0  ;;  %v5374_v46 = vpop.f32.mrf.mxu0  ;;  %v15618_v0 = vld [vmem:[#allocation59_spill] sm:$0xff]  ;;  %v13832_v35 = vpop.f32.mrf.mxu1 }
 0x5fa   : > { %15613 = vst [vmem:[#allocation71_spill] sm:$0xff] %v13795_v29  ;;  %v6484_v63 = vmul.f32 %v12710_v7, %v6333_v53  ;;  %vm6081_vm12 = vcmp.ge.f32.partialorder %v5953_v20, 0.0  ;;  %vm6084_vm13 = vcmp.ge.f32.partialorder %v5956_v34, 0.0  ;;  %v5829_v39 = vmul.f32 0.1, %v5182_v28  ;;  %v10317_v29 = vld [vmem:[%s11153_s27 + $0x2a0] sm:$0xff] }
 0x5fb   : > { %v13803_v27 = vadd.f32 %v13741_v25, %v12697_v59  ;;  %v13806_v55 = vadd.f32 %v12707_v36, %v6487_v57  ;;  %7894 = vmatmul.mubr.bf16.gmra.mxu0 %v7346_v24  ;;  %vm5701_vm14 = vcmp.ge.f32.partialorder %v5182_v28, 0.0  ;;  %v5832_v42 = vmul.f32 0.1, %v5186_v45 }
 0x5fc   : > { %v13811_v47 = vmul.f32 0.1, %v13791_v48  ;;  %v13814_v53 = vadd.f32 %v5368_v50, %v12684_v14  ;;  %v13817_v26 = vadd.f32 %v5370_v13, %v12697_v59  ;;  %vm5704_vm15 = vcmp.ge.f32.partialorder %v5186_v45, 0.0 }
 0x5fd   : > { %15614 = vst [vmem:[#allocation39_spill] sm:$0xff] %v13803_v27  ;;  %v6337_v25 = vsel %vm6081_vm12, %v5953_v20, %v6209_v5  ;;  %v6340_v19 = vsel %vm6084_vm13, %v5956_v34, %v6212_v22  ;;  %vm6751_vm0 = vcmp.ge.f32.partialorder %v13727_v15, 0.0  ;;  %v6879_v57 = vmul.f32 0.1, %v13727_v15 }
 0x5fe   : > { %15615 = vst [vmem:[#allocation53_spill] sm:$0xff] %v13814_v53  ;;  %15616 = vst [vmem:[#allocation55_spill] sm:$0xff] %v13817_v26  ;;  %v13822_v41 = vadd.f32 %v12727_v30, %v6484_v63  ;;  %v13825_v51 = vadd.f32 %v5372_v11, %v12684_v14  ;;  %v5957_v33 = vsel %vm5701_vm14, %v5182_v28, %v5829_v39  ;;  %vm6755_vm1 = vcmp.ge.f32.partialorder %v6627_v9, 0.0  ;;  %v13838_v28 = vpop.f32.mrf.mxu0  ;;  %v15620_v26 = vld [vmem:[#allocation44_spill] sm:$0xff] }
 0x5ff   : > { %v13828_v50 = vmul.f32 0.1, %v13806_v55  ;;  %v5960_v13 = vsel %vm5704_vm15, %v5186_v45, %v5832_v42  ;;  %v5188_v34 = vadd.f32 %v13687_v54, %v15618_v0  ;;  %v6883_v20 = vmul.f32 0.1, %v6627_v9  ;;  %v15619_v45 = vld [vmem:[#allocation37_spill] sm:$0xff] }
 0x600   : > { %15617 = vst [vmem:[#allocation57_spill] sm:$0xff] %v13825_v51  ;;  %v6488_v38 = vmul.f32 %v12710_v7, %v6337_v25  ;;  %v6491_v5 = vmul.f32 %v12704_v61, %v6340_v19  ;;  %v7007_v22 = vsel %vm6751_vm0, %v13727_v15, %v6879_v57  ;;  %vm6750_vm2 = vcmp.ge.f32.partialorder %v13690_v12, 0.0  ;;  %v13847_v57 = vpop.f32.mrf.mxu1  ;;  %v10315_v0 = vld [vmem:[%s11153_s27 + $0x2a8] sm:$0xff] }
 0x601   : > { %vm6085_vm3 = vcmp.ge.f32.partialorder %v5957_v33, 0.0  ;;  %v5190_v11 = vadd.f32 %v13699_v58, %v15619_v45  ;;  %v7011_v54 = vsel %vm6755_vm1, %v6627_v9, %v6883_v20  ;;  %v7135_v24 = vmul.f32 0.01, %v7007_v22  ;;  %v10314_v58 = vld [vmem:[%s11153_s27 + $0x288] sm:$0xff] }
 0x602   : > { %v6213_v63 = vmul.f32 0.1, %v5957_v33  ;;  %vm6088_vm4 = vcmp.ge.f32.partialorder %v5960_v13, 0.0  ;;  %v7139_v39 = vmul.f32 0.01, %v7011_v54  ;;  %vm6754_vm5 = vcmp.ge.f32.partialorder %v13708_v18, 0.0  ;;  %v13851_v54 = vpop.f32.mrf.mxu0 }
 0x603   : > { %v6216_v42 = vmul.f32 0.1, %v5960_v13  ;;  %v5833_v25 = vmul.f32 0.1, %v5188_v34  ;;  %v7006_v15 = vsel %vm6750_vm2, %v13690_v12, %v13722_v4  ;;  %v7010_v19 = vsel %vm6754_vm5, %v13708_v18, %v13734_v21  ;;  %v15621_v4 = vld [vmem:[#allocation43_spill] sm:$0xff]  ;;  %v10316_v21 = vld [vmem:[%s11153_s27 + $0x280] sm:$0xff] }
 0x604   : > { %v7263_v9 = vadd.f32 %v10314_v58, %v7135_v24  ;;  %v7267_v20 = vadd.f32 %v10315_v0, %v7139_v39  ;;  %v7134_v22 = vmul.f32 0.01, %v7006_v15  ;;  %v7138_v45 = vmul.f32 0.01, %v7010_v19  ;;  %v13863_v58 = vpop.f32.mrf.mxu1 }
 0x605   : > { %vm5705_vm6 = vcmp.ge.f32.partialorder %v5188_v34, 0.0  ;;  %v5836_v51 = vmul.f32 0.1, %v5190_v11  ;;  %v5192_v12 = vadd.f32 %v13717_v60, %v15620_v26  ;;  %v5196_v53 = vadd.f32 %v13736_v52, %v15621_v4 }
 0x606   : > { %vm5708_vm7 = vcmp.ge.f32.partialorder %v5190_v11, 0.0  ;;  %v7351_v18 = vpack.c.bf16 %v7267_v20, %v7263_v9  ;;  %v7262_v27 = vadd.f32 %v10316_v21, %v7134_v22  ;;  %v7266_v24 = vadd.f32 %v10317_v29, %v7138_v45  ;;  %v15622_v9 = vld [vmem:[#allocation47_spill] sm:$0xff]  ;;  %v13873_v20 = vpop.f32.mrf.mxu0 }
 0x607   : > { %v13860_v39 = vadd.f32 %v12727_v30, %v6488_v38  ;;  %v6344_v15 = vsel %vm6088_vm4, %v5960_v13, %v6216_v42  ;;  %vm5712_vm8 = vcmp.ge.f32.partialorder %v5196_v53, 0.0  ;;  %v5840_v19 = vmul.f32 0.1, %v5196_v53  ;;  %v15623_v42 = vld [vmem:[#allocation48_spill] sm:$0xff] }
 0x608   : > { %v6341_v60 = vsel %vm6085_vm3, %v5957_v33, %v6213_v63  ;;  %v5961_v26 = vsel %vm5705_vm6, %v5188_v34, %v5833_v25  ;;  %7903 = vmatprep.mubr.bf16.mxu0 %v7351_v18  ;;  %v7350_v52 = vpack.c.bf16 %v7266_v24, %v7262_v27  ;;  %v5200_v0 = vadd.f32 %v13766_v43, %v15622_v9  ;;  %v13889_v25 = vpop.f32.mrf.mxu0 }
 0x609   : > { %v13870_v29 = vadd.f32 %v12707_v36, %v6491_v5  ;;  %v5964_v38 = vsel %vm5708_vm7, %v5190_v11, %v5836_v51  ;;  %v5837_v13 = vmul.f32 0.1, %v5192_v12  ;;  %v5198_v22 = vadd.f32 %v13757_v3, %v15623_v42  ;;  %v13885_v11 = vpop.f32.mrf.mxu1 }
 0x60a   : > { %v13878_v33 = vadd.f32 %v5374_v46, %v12697_v59  ;;  %v6495_v34 = vmul.f32 %v12704_v61, %v6344_v15  ;;  %7904 = vmatmul.mubr.bf16.gmra.mxu0 %v7350_v52  ;;  %vm5709_vm9 = vcmp.ge.f32.partialorder %v5192_v12, 0.0  ;;  %v5968_v43 = vsel %vm5712_vm8, %v5196_v53, %v5840_v19 }
 0x60b   : > { %v13883_v27 = vmul.f32 %v12710_v7, %v6341_v60  ;;  %vm6089_vm10 = vcmp.ge.f32.partialorder %v5961_v26, 0.0  ;;  %v6217_v51 = vmul.f32 0.1, %v5961_v26  ;;  %v5844_v5 = vmul.f32 0.1, %v5200_v0  ;;  %v13898_v19 = vpop.f32.mrf.mxu1 }
 0x60c   : > { %15624 = vst [vmem:[#allocation59_spill] sm:$0xff] %v13878_v33  ;;  %v6220_v63 = vmul.f32 0.1, %v5964_v38  ;;  %vm5716_vm11 = vcmp.ge.f32.partialorder %v5200_v0, 0.0  ;;  %vm6759_vm12 = vcmp.ge.f32.partialorder %v13798_v1, 0.0  ;;  %vm6092_vm13 = vcmp.ge.f32.partialorder %v5964_v38, 0.0 }
 0x60d   : > { %v6887_v3 = vmul.f32 0.1, %v13798_v1  ;;  %v5965_v46 = vsel %vm5709_vm9, %v5192_v12, %v5837_v13  ;;  %v6224_v45 = vmul.f32 0.1, %v5968_v43  ;;  %v5841_v53 = vmul.f32 0.1, %v5198_v22  ;;  %v5388_v13 = vpop.f32.mrf.mxu0 }
 0x60e   : > { %v13892_v4 = vadd.f32 %v12707_v36, %v6495_v34  ;;  %vm6096_vm14 = vcmp.ge.f32.partialorder %v5968_v43, 0.0  ;;  %vm5713_vm15 = vcmp.ge.f32.partialorder %v5198_v22, 0.0  ;;  %vm6763_vm0 = vcmp.ge.f32.partialorder %v13822_v41, 0.0 }
 0x60f   : > { %v6345_v18 = vsel %vm6089_vm10, %v5961_v26, %v6217_v51  ;;  %v5972_v21 = vsel %vm5716_vm11, %v5200_v0, %v5844_v5  ;;  %v6891_v24 = vmul.f32 0.1, %v13822_v41  ;;  %v7015_v15 = vsel %vm6759_vm12, %v13798_v1, %v6887_v3  ;;  %v13908_v5 = vpop.f32.mrf.mxu1  ;;  %v10319_v3 = vld [vmem:[%s11153_s27 + $0x2e8] sm:$0xff] }
 0x610   : > { %v6348_v12 = vsel %vm6092_vm13, %v5964_v38, %v6220_v63  ;;  %vm6093_vm1 = vcmp.ge.f32.partialorder %v5965_v46, 0.0  ;;  %v7143_v60 = vmul.f32 0.01, %v7015_v15  ;;  %vm6758_vm2 = vcmp.ge.f32.partialorder %v13749_v32, 0.0  ;;  %v5390_v15 = vpop.f32.mrf.mxu0 }
 0x611   : > { %v6221_v52 = vmul.f32 0.1, %v5965_v46  ;;  %v6352_v9 = vsel %vm6096_vm14, %v5968_v43, %v6224_v45  ;;  %v5969_v42 = vsel %vm5713_vm15, %v5198_v22, %v5841_v53  ;;  %v7019_v26 = vsel %vm6763_vm0, %v13822_v41, %v6891_v24  ;;  %v10318_v41 = vld [vmem:[%s11153_s27 + $0x2c8] sm:$0xff] }
 0x612   : > { %v6228_v0 = vmul.f32 0.1, %v5972_v21  ;;  %v7147_v34 = vmul.f32 0.01, %v7019_v26  ;;  %vm6762_vm3 = vcmp.ge.f32.partialorder %v13791_v48, 0.0  ;;  %v7014_v1 = vsel %vm6758_vm2, %v13749_v32, %v13788_v62 }
 0x613   : > { %v6499_v38 = vmul.f32 %v12704_v61, %v6348_v12  ;;  %vm6100_vm4 = vcmp.ge.f32.partialorder %v5972_v21, 0.0  ;;  %v7018_v51 = vsel %vm6762_vm3, %v13791_v48, %v13811_v47  ;;  %v7142_v43 = vmul.f32 0.01, %v7014_v1  ;;  %v10320_v12 = vld [vmem:[%s11153_s27 + $0x2c0] sm:$0xff] }
 0x614   : > { %v6225_v22 = vmul.f32 0.1, %v5969_v42  ;;  %v7271_v63 = vadd.f32 %v10318_v41, %v7143_v60  ;;  %v7275_v45 = vadd.f32 %v10319_v3, %v7147_v34  ;;  %v7146_v53 = vmul.f32 0.01, %v7018_v51  ;;  %v10321_v1 = vld [vmem:[%s11153_s27 + $0x2e0] sm:$0xff]  ;;  %v5392_v51 = vpop.f32.mrf.mxu0 }
 0x615   : > { %v6496_v24 = vmul.f32 %v12710_v7, %v6345_v18  ;;  %v6349_v32 = vsel %vm6093_vm1, %v5965_v46, %v6221_v52  ;;  %v6503_v62 = vmul.f32 %v12704_v61, %v6352_v9  ;;  %vm6097_vm5 = vcmp.ge.f32.partialorder %v5969_v42, 0.0  ;;  %v13929_v52 = vpop.f32.mrf.mxu1 }
 0x616   : > { %v6356_v48 = vsel %vm6100_vm4, %v5972_v21, %v6228_v0  ;;  %v7355_v47 = vpack.c.bf16 %v7275_v45, %v7271_v63  ;;  %v7270_v26 = vadd.f32 %v10320_v12, %v7142_v43  ;;  %v7274_v33 = vadd.f32 %v10321_v1, %v7146_v53  ;;  %v15627_v43 = vld [vmem:[#allocation52_spill] sm:$0xff] }
 0x617   : > { %v6898_v23 = vmul.f32 0.1, %v13870_v29  ;;  %v13920_v60 = vadd.f32 %v13838_v28, %v12684_v14  ;;  %v13924_v18 = vadd.f32 %v13851_v54, %v12697_v59  ;;  %v13927_v46 = vadd.f32 %v12707_v36, %v6499_v38  ;;  %v13966_v53 = vpop.f32.mrf.mxu1 }
 0x618   : > { %v13933_v21 = vadd.f32 %v13873_v20, %v12684_v14  ;;  %v6500_v9 = vmul.f32 %v12710_v7, %v6349_v32  ;;  %v6353_v0 = vsel %vm6097_vm5, %v5969_v42, %v6225_v22  ;;  %7913 = vmatprep.mubr.bf16.mxu0 %v7355_v47  ;;  %v7354_v34 = vpack.c.bf16 %v7274_v33, %v7270_v26  ;;  %v15633_v47 = vld [vmem:[#allocation51_spill] sm:$0xff] }
 0x619   : > { %15625 = vst [vmem:[#allocation37_spill] sm:$0xff] %v13924_v18  ;;  %v6643_v28 = vadd.f32 %v12727_v30, %v13883_v27  ;;  %v13939_v54 = vadd.f32 %v12707_v36, %v6503_v62  ;;  %v6507_v38 = vmul.f32 %v12704_v61, %v6356_v48  ;;  %v5202_v41 = vadd.f32 %v13784_v2, %v15627_v43  ;;  %v15629_v27 = vld [vmem:[#allocation68_spill] sm:$0xff] }
 0x61a   : > { %15626 = vst [vmem:[#allocation44_spill] sm:$0xff] %v13933_v21  ;;  %v13945_v20 = vmul.f32 0.1, %v13892_v4  ;;  %v13948_v63 = vadd.f32 %v12727_v30, %v6496_v24  ;;  %v13952_v33 = vadd.f32 %v13889_v25, %v12697_v59  ;;  %7914 = vmatmul.mubr.bf16.gmra.mxu0 %v7354_v34  ;;  %v5206_v42 = vadd.f32 %v13808_v37, %v15629_v27 }
 0x61b   : > { %v13957_v22 = vmul.f32 0.1, %v13927_v46  ;;  %v13960_v3 = vadd.f32 %v5388_v13, %v12684_v14  ;;  %v6504_v2 = vmul.f32 %v12710_v7, %v6353_v0  ;;  %v13964_v45 = vadd.f32 %v5390_v15, %v12697_v59  ;;  %v5394_v15 = vpop.f32.mrf.mxu0  ;;  %v13989_v0 = vpop.f32.mrf.mxu1 }
 0x61c   : > { %15628 = vst [vmem:[#allocation43_spill] sm:$0xff] %v13952_v33  ;;  %v13969_v25 = vadd.f32 %v12727_v30, %v6500_v9  ;;  %v13972_v24 = vadd.f32 %v5392_v51, %v12684_v14  ;;  %vm6767_vm6 = vcmp.ge.f32.partialorder %v13860_v39, 0.0  ;;  %v6895_v37 = vmul.f32 0.1, %v13860_v39 }
 0x61d   : > { %15630 = vst [vmem:[#allocation47_spill] sm:$0xff] %v13960_v3  ;;  %15631 = vst [vmem:[#allocation48_spill] sm:$0xff] %v13964_v45  ;;  %v13977_v13 = vmul.f32 0.1, %v13939_v54  ;;  %v13980_v32 = vadd.f32 %v12707_v36, %v6507_v38  ;;  %v5845_v62 = vmul.f32 0.1, %v5202_v41  ;;  %v5208_v12 = vadd.f32 %v13832_v35, %v15633_v47 }
 0x61e   : > { %15632 = vst [vmem:[#allocation52_spill] sm:$0xff] %v13972_v24  ;;  %vm6771_vm7 = vcmp.ge.f32.partialorder %v6643_v28, 0.0  ;;  %vm5717_vm8 = vcmp.ge.f32.partialorder %v5202_v41, 0.0  ;;  %v5848_v48 = vmul.f32 0.1, %v5206_v42  ;;  %v13985_v1 = vadd.f32 %v12727_v30, %v6504_v2  ;;  %v15635_v38 = vld [vmem:[#allocation69_spill] sm:$0xff] }
 0x61f   : > { %v6899_v26 = vmul.f32 0.1, %v6643_v28  ;;  %vm5720_vm9 = vcmp.ge.f32.partialorder %v5206_v42, 0.0  ;;  %v7023_v9 = vsel %vm6767_vm6, %v13860_v39, %v6895_v37  ;;  %vm6766_vm10 = vcmp.ge.f32.partialorder %v13806_v55, 0.0  ;;  %v5398_v37 = vpop.f32.mrf.mxu0 }
 0x620   : > { %v13992_v34 = vadd.f32 %v5394_v15, %v12697_v59  ;;  %v5210_v51 = vadd.f32 %v13847_v57, %v15635_v38  ;;  %v7151_v43 = vmul.f32 0.01, %v7023_v9  ;;  %v13997_v27 = vmul.f32 0.1, %v13980_v32  ;;  %v10322_v57 = vld [vmem:[%s11153_s27 + $0x308] sm:$0xff] }
 0x621   : > { %v7027_v35 = vsel %vm6771_vm7, %v6643_v28, %v6899_v26  ;;  %v5973_v2 = vsel %vm5717_vm8, %v5202_v41, %v5845_v62  ;;  %vm6770_vm11 = vcmp.ge.f32.partialorder %v13870_v29, 0.0  ;;  %v5976_v39 = vsel %vm5720_vm9, %v5206_v42, %v5848_v48  ;;  %v10323_v26 = vld [vmem:[%s11153_s27 + $0x328] sm:$0xff]  ;;  %v14005_v41 = vpop.f32.mrf.mxu1 }
 0x622   : > { %15634 = vst [vmem:[#allocation68_spill] sm:$0xff] %v13992_v34  ;;  %v7155_v47 = vmul.f32 0.01, %v7027_v35  ;;  %v5849_v24 = vmul.f32 0.1, %v5208_v12  ;;  %v7022_v15 = vsel %vm6766_vm10, %v13806_v55, %v13828_v50  ;;  %v7026_v34 = vsel %vm6770_vm11, %v13870_v29, %v6898_v23  ;;  %v15636_v48 = vld [vmem:[#allocation85_spill] sm:$0xff] }
 0x623   : > { %v7279_v28 = vadd.f32 %v10322_v57, %v7151_v43  ;;  %v7150_v38 = vmul.f32 0.01, %v7022_v15  ;;  %v7154_v45 = vmul.f32 0.01, %v7026_v34  ;;  %v6229_v62 = vmul.f32 0.1, %v5973_v2  ;;  %v5400_v57 = vpop.f32.mrf.mxu0 }
 0x624   : > { %v7283_v9 = vadd.f32 %v10323_v26, %v7155_v47  ;;  %vm5721_vm12 = vcmp.ge.f32.partialorder %v5208_v12, 0.0  ;;  %v5852_v42 = vmul.f32 0.1, %v5210_v51  ;;  %v5442_v35 = vadd.f32 %v13885_v11, %v15636_v48  ;;  %v10324_v55 = vld [vmem:[%s11153_s27 + $0x300] sm:$0xff]  ;;  %v14015_v11 = vpop.f32.mrf.mxu1  ;;  %v15639_v48 = vld [vmem:[#allocation87_spill] sm:$0xff] }
 0x625   : > { %vm5724_vm13 = vcmp.ge.f32.partialorder %v5210_v51, 0.0  ;;  %v7278_v50 = vadd.f32 %v10324_v55, %v7150_v38  ;;  %v10325_v23 = vld [vmem:[%s11153_s27 + $0x320] sm:$0xff]  ;;  %vm6101_vm14 = vcmp.ge.f32.partialorder %v5973_v2, 0.0  ;;  %v6232_v43 = vmul.f32 0.1, %v5976_v39 }
 0x626   : > { %v7359_v3 = vpack.c.bf16 %v7283_v9, %v7279_v28  ;;  %v7282_v29 = vadd.f32 %v10325_v23, %v7154_v45  ;;  %vm5602_vm15 = vcmp.ge.f32.partialorder %v5442_v35, 0.0  ;;  %v5730_v47 = vmul.f32 0.1, %v5442_v35  ;;  %v15638_v9 = vld [vmem:[#allocation84_spill] sm:$0xff] }
 0x627   : > { %vm6104_vm0 = vcmp.ge.f32.partialorder %v5976_v39, 0.0  ;;  %v14012_v34 = vadd.f32 %v5398_v37, %v12684_v14  ;;  %v5977_v15 = vsel %vm5721_vm12, %v5208_v12, %v5849_v24  ;;  %v5980_v28 = vsel %vm5724_vm13, %v5210_v51, %v5852_v42  ;;  %v15641_v24 = vld [vmem:[#allocation86_spill] sm:$0xff] }
 0x628   : > { %7923 = vmatprep.mubr.bf16.mxu0 %v7359_v3  ;;  %v7358_v26 = vpack.c.bf16 %v7282_v29, %v7278_v50  ;;  %v5212_v45 = vadd.f32 %v13863_v58, %v15638_v9  ;;  %v5858_v38 = vsel %vm5602_vm15, %v5442_v35, %v5730_v47  ;;  %v5446_v55 = vadd.f32 %v13908_v5, %v15639_v48  ;;  %v14027_v35 = vpop.f32.mrf.mxu1 }
 0x629   : > { %15637 = vst [vmem:[#allocation51_spill] sm:$0xff] %v14012_v34  ;;  %v6357_v23 = vsel %vm6101_vm14, %v5973_v2, %v6229_v62  ;;  %v14023_v33 = vadd.f32 %v5400_v57, %v12697_v59  ;;  %v6114_v37 = vmul.f32 0.1, %v5858_v38  ;;  %v5444_v3 = vadd.f32 %v13898_v19, %v15641_v24  ;;  %v10326_v2 = vld [vmem:[#allocation15 + $0x2] ss:$8 sm:$0xf] }
 0x62a   : > { %7924 = vmatmul.mubr.bf16.gmra.mxu0 %v7358_v26  ;;  %v6360_v12 = vsel %vm6104_vm0, %v5976_v39, %v6232_v43  ;;  %vm5986_vm1 = vcmp.ge.f32.partialorder %v5858_v38, 0.0  ;;  %vm5606_vm2 = vcmp.ge.f32.partialorder %v5446_v55, 0.0  ;;  %v5734_v51 = vmul.f32 0.1, %v5446_v55  ;;  %v15642_v62 = vld [vmem:[#allocation58_spill] sm:$0xff]  ;;  %v14039_v9 = vpop.f32.mrf.mxu1 }
 0x62b   : > { %15640 = vst [vmem:[#allocation69_spill] sm:$0xff] %v14023_v33  ;;  %vm6105_vm3 = vcmp.ge.f32.partialorder %v5977_v15, 0.0  ;;  %v6233_v42 = vmul.f32 0.1, %v5977_v15  ;;  %vm6108_vm4 = vcmp.ge.f32.partialorder %v5980_v28, 0.0  ;;  %vm5725_vm5 = vcmp.ge.f32.partialorder %v5212_v45, 0.0 }
 0x62c   : > { %v6236_v58 = vmul.f32 0.1, %v5980_v28  ;;  %v5853_v5 = vmul.f32 0.1, %v5212_v45  ;;  %v14030_v50 = vrot.slane %v10326_v2, %v15642_v62  ;;  %v5862_v29 = vsel %vm5606_vm2, %v5446_v55, %v5734_v51 }
 0x62d   : > { %v6242_v57 = vsel %vm5986_vm1, %v5858_v38, %v6114_v37  ;;  %v5731_v47 = vmul.f32 0.1, %v5444_v3  ;;  %vm5990_vm6 = vcmp.ge.f32.partialorder %v5862_v29, 0.0  ;;  %v6118_v19 = vmul.f32 0.1, %v5862_v29 }
 0x62e   : > { %vm6775_vm7 = vcmp.ge.f32.partialorder %v13948_v63, 0.0  ;;  %vm6779_vm8 = vcmp.ge.f32.partialorder %v13969_v25, 0.0  ;;  %v6903_v39 = vmul.f32 0.1, %v13948_v63  ;;  %v6907_v43 = vmul.f32 0.1, %v13969_v25 }
 0x62f   : > { %v6361_v26 = vsel %vm6105_vm3, %v5977_v15, %v6233_v42  ;;  %vm5603_vm9 = vcmp.ge.f32.partialorder %v5444_v3, 0.0  ;;  %vm6774_vm10 = vcmp.ge.f32.partialorder %v13892_v4, 0.0  ;;  %vm6778_vm11 = vcmp.ge.f32.partialorder %v13927_v46, 0.0  ;;  %v10327_v55 = vld [vmem:[#allocation15 + $0x3] ss:$8 sm:$0xf] }
 0x630   : > { %v5981_v38 = vsel %vm5725_vm5, %v5212_v45, %v5853_v5  ;;  %v6393_v48 = vmul.f32 %v14030_v50, %v6242_v57  ;;  %v14044_v37 = vrot.slane %v10327_v55, %v15642_v62  ;;  %v6246_v24 = vsel %vm5990_vm6, %v5862_v29, %v6118_v19 }
 0x631   : > { %v7031_v51 = vsel %vm6775_vm7, %v13948_v63, %v6903_v39  ;;  %v7035_v15 = vsel %vm6779_vm8, %v13969_v25, %v6907_v43  ;;  %v7030_v42 = vsel %vm6774_vm10, %v13892_v4, %v13945_v20  ;;  %v7034_v33 = vsel %vm6778_vm11, %v13927_v46, %v13957_v22  ;;  %v14056_v4 = vpop.f32.mrf.mxu1  ;;  %v5402_v20 = vpop.f32.mrf.mxu0  ;;  %v10329_v39 = vld [vmem:[%s11153_s27 + $0x368] sm:$0xff] }
 0x632   : > { %v6508_v34 = vmul.f32 %v12710_v7, %v6357_v23  ;;  %v6511_v45 = vmul.f32 %v12704_v61, %v6360_v12  ;;  %v5859_v5 = vsel %vm5603_vm9, %v5444_v3, %v5731_v47  ;;  %v7159_v62 = vmul.f32 0.01, %v7031_v51  ;;  %v10328_v47 = vld [vmem:[%s11153_s27 + $0x348] sm:$0xff] }
 0x633   : > { %v6512_v29 = vmul.f32 %v12710_v7, %v6361_v26  ;;  %v6364_v63 = vsel %vm6108_vm4, %v5980_v28, %v6236_v58  ;;  %v7163_v25 = vmul.f32 0.01, %v7035_v15  ;;  %v7158_v57 = vmul.f32 0.01, %v7030_v42  ;;  %v10330_v28 = vld [vmem:[%s11153_s27 + $0x340] sm:$0xff]  ;;  %v14071_v18 = vpop.f32.mrf.mxu1 }
 0x634   : > { %vm6109_vm12 = vcmp.ge.f32.partialorder %v5981_v38, 0.0  ;;  %v6544_v46 = vadd.f32 %v14044_v37, %v6393_v48  ;;  %v6397_v22 = vmul.f32 %v14030_v50, %v6246_v24  ;;  %v7162_v23 = vmul.f32 0.01, %v7034_v33  ;;  %v10331_v26 = vld [vmem:[%s11153_s27 + $0x360] sm:$0xff] }
 0x635   : > { %v6237_v3 = vmul.f32 0.1, %v5981_v38  ;;  %v6115_v12 = vmul.f32 0.1, %v5859_v5  ;;  %v7287_v19 = vadd.f32 %v10328_v47, %v7159_v62  ;;  %v7291_v43 = vadd.f32 %v10329_v39, %v7163_v25  ;;  %v15643_v15 = vld [vmem:[#allocation72_spill] sm:$0xff] }
 0x636   : > { %vm5987_vm13 = vcmp.ge.f32.partialorder %v5859_v5, 0.0  ;;  %v7286_v58 = vadd.f32 %v10330_v28, %v7158_v57  ;;  %v7290_v51 = vadd.f32 %v10331_v26, %v7162_v23  ;;  %v5452_v42 = vadd.f32 %v13966_v53, %v15643_v15  ;;  %v15644_v25 = vld [vmem:[#allocation60_spill] sm:$0xff] }
 0x637   : > { %v6659_v21 = vadd.f32 %v12727_v30, %v6508_v34  ;;  %v6515_v48 = vmul.f32 %v12704_v61, %v6364_v63  ;;  %v14069_v33 = vadd.f32 %v5402_v20, %v12684_v14  ;;  %v7363_v24 = vpack.c.bf16 %v7291_v43, %v7287_v19  ;;  %v15645_v61 = vld [vmem:[#allocation88_spill] sm:$0xff]  ;;  %v15646_v20 = vld [vmem:[#allocation45_spill] sm:$0xff] }
 0x638   : > { %v6800_v62 = vmul.f32 0.1, %v6544_v46  ;;  %v14074_v47 = vrot.slane %v10326_v2, %v15644_v25  ;;  %v6548_v57 = vadd.f32 %v14044_v37, %v6397_v22  ;;  %v7362_v23 = vpack.c.bf16 %v7290_v51, %v7286_v58 }
 0x639   : > { %v6365_v39 = vsel %vm6109_vm12, %v5981_v38, %v6237_v3  ;;  %vm6672_vm14 = vcmp.ge.f32.partialorder %v6544_v46, 0.0  ;;  %v6243_v53 = vsel %vm5987_vm13, %v5859_v5, %v6115_v12  ;;  %7933 = vmatprep.mubr.bf16.mxu0 %v7363_v24  ;;  %v5448_v14 = vadd.f32 %v13929_v52, %v15645_v61  ;;  %v15647_v3 = vld [vmem:[#allocation46_spill] sm:$0xff] }
 0x63a   : > { %v14082_v34 = vadd.f32 %v12707_v36, %v6511_v45  ;;  %v14085_v63 = vadd.f32 %v12727_v30, %v6512_v29  ;;  %7934 = vmatmul.mubr.bf16.gmra.mxu0 %v7362_v23  ;;  %v5738_v2 = vmul.f32 0.1, %v5452_v42  ;;  %v5454_v22 = vadd.f32 %v13989_v0, %v15646_v20  ;;  %v14097_v45 = vpop.f32.mrf.mxu1 }
 0x63b   : > { %v14090_v38 = vadd.f32 %v12707_v36, %v6515_v48  ;;  %v14093_v5 = vrot.slane %v10327_v55, %v15644_v25  ;;  %vm5610_vm15 = vcmp.ge.f32.partialorder %v5452_v42, 0.0  ;;  %v5456_v52 = vadd.f32 %v14005_v41, %v15647_v3 }
 0x63c   : > { %v6516_v29 = vmul.f32 %v12710_v7, %v6365_v39  ;;  %v6928_v12 = vsel %vm6672_vm14, %v6544_v46, %v6800_v62  ;;  %v6394_v19 = vmul.f32 %v14074_v47, %v6243_v53  ;;  %v6804_v43 = vmul.f32 0.1, %v6548_v57  ;;  %v14105_v7 = vpop.f32.mrf.mxu1 }
 0x63d   : > { %vm6676_vm0 = vcmp.ge.f32.partialorder %v6548_v57, 0.0  ;;  %vm5607_vm1 = vcmp.ge.f32.partialorder %v5448_v14, 0.0  ;;  %v5735_v0 = vmul.f32 0.1, %v5448_v14  ;;  %vm6783_vm2 = vcmp.ge.f32.partialorder %v13985_v1, 0.0 }
 0x63e   : > { %v5866_v36 = vsel %vm5610_vm15, %v5452_v42, %v5738_v2  ;;  %v5739_v55 = vmul.f32 0.1, %v5454_v22  ;;  %vm6787_vm3 = vcmp.ge.f32.partialorder %v6659_v21, 0.0  ;;  %v6911_v28 = vmul.f32 0.1, %v13985_v1  ;;  %v14113_v53 = vpop.f32.mrf.mxu1  ;;  %v10332_v2 = vld [vmem:[%s11153_s27 + $0x388] sm:$0xff] }
 0x63f   : > { %v5742_v58 = vmul.f32 0.1, %v5456_v52  ;;  %v6915_v41 = vmul.f32 0.1, %v6659_v21  ;;  %vm6782_vm4 = vcmp.ge.f32.partialorder %v13939_v54, 0.0  ;;  %vm6786_vm5 = vcmp.ge.f32.partialorder %v13980_v32, 0.0 }
 0x640   : > { %v6932_v46 = vsel %vm6676_vm0, %v6548_v57, %v6804_v43  ;;  %vm5611_vm6 = vcmp.ge.f32.partialorder %v5454_v22, 0.0  ;;  %vm5614_vm7 = vcmp.ge.f32.partialorder %v5456_v52, 0.0  ;;  %v7039_v26 = vsel %vm6783_vm2, %v13985_v1, %v6911_v28 }
 0x641   : > { %v6122_v51 = vmul.f32 0.1, %v5866_v36  ;;  %v7043_v15 = vsel %vm6787_vm3, %v6659_v21, %v6915_v41  ;;  %v7167_v42 = vmul.f32 0.01, %v7039_v26  ;;  %v7038_v48 = vsel %vm6782_vm4, %v13939_v54, %v13977_v13  ;;  %v10333_v54 = vld [vmem:[%s11153_s27 + $0x3a8] sm:$0xff] }
 0x642   : > { %v5863_v24 = vsel %vm5607_vm1, %v5448_v14, %v5735_v0  ;;  %vm5994_vm8 = vcmp.ge.f32.partialorder %v5866_v36, 0.0  ;;  %v7171_v62 = vmul.f32 0.01, %v7043_v15  ;;  %v7042_v25 = vsel %vm6786_vm5, %v13980_v32, %v13997_v27  ;;  %v5404_v14 = vpop.f32.mrf.mxu0  ;;  %v10334_v0 = vld [vmem:[%s11153_s27 + $0x380] sm:$0xff] }
 0x643   : > { %v5867_v57 = vsel %vm5611_vm6, %v5454_v22, %v5739_v55  ;;  %v5870_v23 = vsel %vm5614_vm7, %v5456_v52, %v5742_v58  ;;  %v7166_v1 = vmul.f32 0.01, %v7038_v48  ;;  %v7170_v39 = vmul.f32 0.01, %v7042_v25  ;;  %v10335_v32 = vld [vmem:[%s11153_s27 + $0x3a0] sm:$0xff]  ;;  %v15648_v58 = vld [vmem:[#allocation73_spill] sm:$0xff] }
 0x644   : > { %v7056_v21 = vmul.f32 0.01, %v6928_v12  ;;  %v7060_v61 = vmul.f32 0.01, %v6932_v46  ;;  %v7295_v20 = vadd.f32 %v10332_v2, %v7167_v42  ;;  %v7299_v13 = vadd.f32 %v10333_v54, %v7171_v62  ;;  %v14122_v46 = vpop.f32.mrf.mxu1  ;;  %v10336_v48 = vld [vmem:[%s11153_s27 + $0x10] sm:$0xff]  ;;  %v15650_v54 = vld [vmem:[#allocation91_spill] sm:$0xff] }
 0x645   : > { %v6119_v3 = vmul.f32 0.1, %v5863_v24  ;;  %v6250_v43 = vsel %vm5994_vm8, %v5866_v36, %v6122_v51  ;;  %v7294_v28 = vadd.f32 %v10334_v0, %v7166_v1  ;;  %v7298_v27 = vadd.f32 %v10335_v32, %v7170_v39  ;;  %v10337_v1 = vld [vmem:[%s11153_s27 + $0x30] sm:$0xff] }
 0x646   : > { %vm5991_vm9 = vcmp.ge.f32.partialorder %v5863_v24, 0.0  ;;  %v6123_v22 = vmul.f32 0.1, %v5867_v57  ;;  %v6126_v52 = vmul.f32 0.1, %v5870_v23  ;;  %v7367_v55 = vpack.c.bf16 %v7299_v13, %v7295_v20 }
 0x647   : > { %vm5995_vm10 = vcmp.ge.f32.partialorder %v5867_v57, 0.0  ;;  %vm5998_vm11 = vcmp.ge.f32.partialorder %v5870_v23, 0.0  ;;  %v7366_v12 = vpack.c.bf16 %v7298_v27, %v7294_v28  ;;  %v5458_v41 = vadd.f32 %v14015_v11, %v15648_v58  ;;  %v10338_v58 = vld [vmem:[%s11153_s27 + $0x3c8] sm:$0xff] }
 0x648   : > { %v6918_v36 = vmul.f32 0.1, %v14082_v34  ;;  %v6667_v26 = vadd.f32 %v12727_v30, %v6516_v29  ;;  %v14127_v51 = vadd.f32 %v5404_v14, %v12697_v59  ;;  %v6401_v15 = vmul.f32 %v14030_v50, %v6250_v43  ;;  %7943 = vmatprep.mubr.bf16.mxu0 %v7367_v55  ;;  %v15649_v29 = vld [vmem:[#allocation89_spill] sm:$0xff] }
 0x649   : > { %v6922_v42 = vmul.f32 0.1, %v14090_v38  ;;  %v14132_v62 = vadd.f32 %v10336_v48, %v7056_v21  ;;  %v14135_v25 = vadd.f32 %v14093_v5, %v6394_v19  ;;  %v6247_v11 = vsel %vm5991_vm9, %v5863_v24, %v6119_v3  ;;  %7944 = vmatmul.mubr.bf16.gmra.mxu0 %v7366_v12  ;;  %v14149_v24 = vpop.f32.mrf.mxu1 }
 0x64a   : > { %v14139_v39 = vadd.f32 %v10337_v1, %v7060_v61  ;;  %v6251_v59 = vsel %vm5995_vm10, %v5867_v57, %v6123_v22  ;;  %v6254_v30 = vsel %vm5998_vm11, %v5870_v23, %v6126_v52  ;;  %v5462_v2 = vadd.f32 %v14027_v35, %v15649_v29  ;;  %v15651_v23 = vld [vmem:[#allocation90_spill] sm:$0xff]  ;;  %v10341_v29 = vld [vmem:[%s11153_s27 + $0x3e0] sm:$0xff] }
 0x64b   : > { %v5743_v20 = vmul.f32 0.1, %v5458_v41  ;;  %v5466_v21 = vadd.f32 %v14056_v4, %v15650_v54  ;;  %vm6791_vm12 = vcmp.ge.f32.partialorder %v14085_v63, 0.0  ;;  %v6919_v19 = vmul.f32 0.1, %v14085_v63  ;;  %v14162_v27 = vpop.f32.mrf.mxu1 }
 0x64c   : > { %v6398_v61 = vmul.f32 %v14074_v47, %v6247_v11  ;;  %v14153_v13 = vadd.f32 %v14044_v37, %v6401_v15  ;;  %vm5615_vm13 = vcmp.ge.f32.partialorder %v5458_v41, 0.0  ;;  %vm6795_vm14 = vcmp.ge.f32.partialorder %v6667_v26, 0.0  ;;  %v10339_v15 = vld [vmem:[%s11153_s27 + $0x3e8] sm:$0xff] }
 0x64d   : > { %v6402_v57 = vmul.f32 %v14074_v47, %v6251_v59  ;;  %v6405_v35 = vmul.f32 %v14030_v50, %v6254_v30  ;;  %v5464_v4 = vadd.f32 %v14039_v9, %v15651_v23  ;;  %v6923_v14 = vmul.f32 0.1, %v6667_v26 }
 0x64e   : > { %vm5618_vm15 = vcmp.ge.f32.partialorder %v5462_v2, 0.0  ;;  %v7047_v3 = vsel %vm6791_vm12, %v14085_v63, %v6919_v19  ;;  %vm6790_vm0 = vcmp.ge.f32.partialorder %v14082_v34, 0.0  ;;  %vm6794_vm1 = vcmp.ge.f32.partialorder %v14090_v38, 0.0 }
 0x64f   : > { %v5871_v43 = vsel %vm5615_vm13, %v5458_v41, %v5743_v20  ;;  %v5746_v0 = vmul.f32 0.1, %v5462_v2  ;;  %v5750_v28 = vmul.f32 0.1, %v5466_v21  ;;  %v7051_v32 = vsel %vm6795_vm14, %v6667_v26, %v6923_v14 }
 0x650   : > { %vm5622_vm2 = vcmp.ge.f32.partialorder %v5466_v21, 0.0  ;;  %v7175_v22 = vmul.f32 0.01, %v7047_v3  ;;  %v7179_v52 = vmul.f32 0.01, %v7051_v32  ;;  %v7046_v9 = vsel %vm6790_vm0, %v14082_v34, %v6918_v36  ;;  %v14172_v36 = vpop.f32.mrf.mxu1 }
 0x651   : > { %vm5619_vm3 = vcmp.ge.f32.partialorder %v5464_v4, 0.0  ;;  %v5747_v63 = vmul.f32 0.1, %v5464_v4  ;;  %v7050_v55 = vsel %vm6794_vm1, %v14090_v38, %v6922_v42  ;;  %v7174_v12 = vmul.f32 0.01, %v7046_v9  ;;  %v10340_v38 = vld [vmem:[%s11153_s27 + $0x3c0] sm:$0xff] }
 0x652   : > { %vm5999_vm4 = vcmp.ge.f32.partialorder %v5871_v43, 0.0  ;;  %v7303_v41 = vadd.f32 %v10338_v58, %v7175_v22  ;;  %v7307_v48 = vadd.f32 %v10339_v15, %v7179_v52  ;;  %v7178_v26 = vmul.f32 0.01, %v7050_v55 }
 0x653   : > { %v6127_v11 = vmul.f32 0.1, %v5871_v43  ;;  %v5874_v1 = vsel %vm5618_vm15, %v5462_v2, %v5746_v0  ;;  %v5878_v59 = vsel %vm5622_vm2, %v5466_v21, %v5750_v28  ;;  %v5472_v34 = vadd.f32 %v14097_v45, %v13148_v31 }
 0x654   : > { %v7371_v30 = vpack.c.bf16 %v7307_v48, %v7303_v41  ;;  %v7302_v42 = vadd.f32 %v10340_v38, %v7174_v12  ;;  %v7306_v20 = vadd.f32 %v10341_v29, %v7178_v26  ;;  %v5468_v54 = vadd.f32 %v14071_v18, %v13138_v10  ;;  %v14189_v18 = vpop.f32.mrf.mxu1 }
 0x655   : > { %v6549_v19 = vadd.f32 %v14093_v5, %v6398_v61  ;;  %v14180_v23 = vmul.f32 0.1, %v14153_v13  ;;  %v14183_v2 = vadd.f32 %v14044_v37, %v6405_v35  ;;  %v5875_v31 = vsel %vm5619_vm3, %v5464_v4, %v5747_v63 }
 0x656   : > { %vm6002_vm5 = vcmp.ge.f32.partialorder %v5874_v1, 0.0  ;;  %v6130_v45 = vmul.f32 0.1, %v5874_v1  ;;  %v6134_v21 = vmul.f32 0.1, %v5878_v59  ;;  %7953 = vmatprep.mubr.bf16.mxu0 %v7371_v30  ;;  %v7370_v14 = vpack.c.bf16 %v7306_v20, %v7302_v42  ;;  %v14203_v63 = vpop.f32.mrf.mxu1  ;;  %v15653_v20 = vld [vmem:[#allocation36_spill] sm:$0xff] }
 0x657   : > { %v6255_v3 = vsel %vm5999_vm4, %v5871_v43, %v6127_v11  ;;  %vm6006_vm6 = vcmp.ge.f32.partialorder %v5878_v59, 0.0  ;;  %v5754_v0 = vmul.f32 0.1, %v5472_v34  ;;  %v5476_v10 = vadd.f32 %v14113_v53, %v13166_v6  ;;  %v15652_v43 = vld [vmem:[#allocation70_spill] sm:$0xff] }
 0x658   : > { %v14192_v61 = vadd.f32 %v14093_v5, %v6402_v57  ;;  %v6131_v35 = vmul.f32 0.1, %v5875_v31  ;;  %7954 = vmatmul.mubr.bf16.gmra.mxu0 %v7370_v14  ;;  %v5751_v4 = vmul.f32 0.1, %v5468_v54  ;;  %vm5626_vm7 = vcmp.ge.f32.partialorder %v5472_v34, 0.0  ;;  %v14208_v38 = vpop.f32.mrf.mxu1 }
 0x659   : > { %v14195_v28 = vmul.f32 0.1, %v14183_v2  ;;  %vm6003_vm8 = vcmp.ge.f32.partialorder %v5875_v31, 0.0  ;;  %vm5623_vm9 = vcmp.ge.f32.partialorder %v5468_v54, 0.0  ;;  %v5474_v32 = vadd.f32 %v14105_v7, %v15652_v43 }
 0x65a   : > { %v6406_v22 = vmul.f32 %v14074_v47, %v6255_v3  ;;  %v6258_v6 = vsel %vm6002_vm5, %v5874_v1, %v6130_v45  ;;  %v6262_v53 = vsel %vm6006_vm6, %v5878_v59, %v6134_v21  ;;  %vm6673_vm10 = vcmp.ge.f32.partialorder %v14135_v25, 0.0  ;;  %v10343_v21 = vld [vmem:[%s11153_s27 + $0x38] sm:$0xff] }
 0x65b   : > { %v5882_v57 = vsel %vm5626_vm7, %v5472_v34, %v5754_v0  ;;  %v5758_v52 = vmul.f32 0.1, %v5476_v10  ;;  %vm6677_vm11 = vcmp.ge.f32.partialorder %v6549_v19, 0.0  ;;  %v6801_v9 = vmul.f32 0.1, %v14135_v25 }
 0x65c   : > { %v6259_v55 = vsel %vm6003_vm8, %v5875_v31, %v6131_v35  ;;  %v5879_v12 = vsel %vm5623_vm9, %v5468_v54, %v5751_v4  ;;  %vm5630_vm12 = vcmp.ge.f32.partialorder %v5476_v10, 0.0  ;;  %v6805_v58 = vmul.f32 0.1, %v6549_v19  ;;  %v10342_v31 = vld [vmem:[%s11153_s27 + $0x18] sm:$0xff]  ;;  %v15654_v35 = vld [vmem:[#allocation74_spill] sm:$0xff] }
 0x65d   : > { %v6409_v7 = vmul.f32 %v14030_v50, %v6258_v6  ;;  %v6413_v41 = vmul.f32 %v14030_v50, %v6262_v53  ;;  %v5755_v15 = vmul.f32 0.1, %v5474_v32  ;;  %v6929_v48 = vsel %vm6673_vm10, %v14135_v25, %v6801_v9  ;;  %v14228_v53 = vpop.f32.mrf.mxu1 }
 0x65e   : > { %v6138_v26 = vmul.f32 0.1, %v5882_v57  ;;  %vm5627_vm13 = vcmp.ge.f32.partialorder %v5474_v32, 0.0  ;;  %v6933_v11 = vsel %vm6677_vm11, %v6549_v19, %v6805_v58  ;;  %v7057_v1 = vmul.f32 0.01, %v6929_v48 }
 0x65f   : > { %v6135_v59 = vmul.f32 0.1, %v5879_v12  ;;  %vm6010_vm14 = vcmp.ge.f32.partialorder %v5882_v57, 0.0  ;;  %v5886_v34 = vsel %vm5630_vm12, %v5476_v10, %v5758_v52  ;;  %v7061_v30 = vmul.f32 0.01, %v6933_v11 }
 0x660   : > { %v6557_v42 = vadd.f32 %v14093_v5, %v6406_v22  ;;  %v14212_v29 = vmul.f32 %v14074_v47, %v6259_v55  ;;  %vm6007_vm15 = vcmp.ge.f32.partialorder %v5879_v12, 0.0  ;;  %v5478_v25 = vadd.f32 %v14122_v46, %v15653_v20  ;;  %v15655_v46 = vld [vmem:[#allocation49_spill] sm:$0xff] }
 0x661   : > { %v14217_v54 = vadd.f32 %v14044_v37, %v6409_v7  ;;  %v5883_v19 = vsel %vm5627_vm13, %v5474_v32, %v5755_v15  ;;  %v7185_v45 = vadd.f32 %v10342_v31, %v7057_v1  ;;  %v7189_v14 = vadd.f32 %v10343_v21, %v7061_v30  ;;  %v14238_v7 = vpop.f32.mrf.mxu1  ;;  %v10345_v31 = vld [vmem:[%s11153_s27 + $0x78] sm:$0xff] }
 0x662   : > { %v14222_v3 = vadd.f32 %v14044_v37, %v6413_v41  ;;  %v6266_v0 = vsel %vm6010_vm14, %v5882_v57, %v6138_v26  ;;  %v6142_v10 = vmul.f32 0.1, %v5886_v34  ;;  %v5482_v4 = vadd.f32 %v14149_v24, %v15654_v35 }
 0x663   : > { %v6263_v43 = vsel %vm6007_vm15, %v5879_v12, %v6135_v59  ;;  %vm6014_vm0 = vcmp.ge.f32.partialorder %v5886_v34, 0.0  ;;  %v7313_v22 = vpack.c.bf16 %v7189_v14, %v7185_v45  ;;  %v5484_v6 = vadd.f32 %v14162_v27, %v15655_v46  ;;  %v14247_v20 = vpop.f32.mrf.mxu1  ;;  %v10346_v46 = vld [vmem:[%s11153_s27 + $0x50] sm:$0xff] }
 0x664   : > { %v6139_v32 = vmul.f32 0.1, %v5883_v19  ;;  %v7312_v52 = vpack.c.bf16 %v14139_v39, %v14132_v62  ;;  %v5759_v9 = vmul.f32 0.1, %v5478_v25  ;;  %vm6681_vm1 = vcmp.ge.f32.partialorder %v14192_v61, 0.0 }
 0x665   : > { %v6417_v57 = vmul.f32 %v14030_v50, %v6266_v0  ;;  %vm6011_vm2 = vcmp.ge.f32.partialorder %v5883_v19, 0.0  ;;  %7996 = vmatprep.mubr.bf16.mxu1 %v7313_v22  ;;  %vm5631_vm3 = vcmp.ge.f32.partialorder %v5478_v25, 0.0  ;;  %v6809_v24 = vmul.f32 0.1, %v14192_v61 }
 0x666   : > { %v6270_v55 = vsel %vm6014_vm0, %v5886_v34, %v6142_v10  ;;  %7997 = vmatmul.mubr.bf16.vlgmr.msra.gmra.mxu1 %v7312_v52  ;;  %v5762_v12 = vmul.f32 0.1, %v5482_v4  ;;  %v5486_v27 = vadd.f32 %v14172_v36, %v13282_v44  ;;  %vm6685_vm4 = vcmp.ge.f32.partialorder %v6557_v42, 0.0 }
 0x667   : > { %vm5634_vm5 = vcmp.ge.f32.partialorder %v5482_v4, 0.0  ;;  %v5763_v58 = vmul.f32 0.1, %v5484_v6  ;;  %v6813_v62 = vmul.f32 0.1, %v6557_v42  ;;  %v6937_v39 = vsel %vm6681_vm1, %v14192_v61, %v6809_v24 }
 0x668   : > { %v6414_v41 = vmul.f32 %v14074_v47, %v6263_v43  ;;  %v6267_v15 = vsel %vm6011_vm2, %v5883_v19, %v6139_v32  ;;  %v5887_v48 = vsel %vm5631_vm3, %v5478_v25, %v5759_v9  ;;  %vm5635_vm6 = vcmp.ge.f32.partialorder %v5484_v6, 0.0  ;;  %v10344_v25 = vld [vmem:[%s11153_s27 + $0x58] sm:$0xff]  ;;  %v10347_v32 = vld [vmem:[%s11153_s27 + $0x70] sm:$0xff] }
 0x669   : > { %v14242_v26 = vadd.f32 %v14044_v37, %v6417_v57  ;;  %v6421_v44 = vmul.f32 %v14030_v50, %v6270_v55  ;;  %v6941_v36 = vsel %vm6685_vm4, %v6557_v42, %v6813_v62  ;;  %v7065_v11 = vmul.f32 0.01, %v6937_v39 }
 0x66a   : > { %v5890_v1 = vsel %vm5634_vm5, %v5482_v4, %v5762_v12  ;;  %v7069_v59 = vmul.f32 0.01, %v6941_v36  ;;  %vm6680_vm7 = vcmp.ge.f32.partialorder %v14153_v13, 0.0  ;;  %vm6684_vm8 = vcmp.ge.f32.partialorder %v14183_v2, 0.0 }
 0x66b   : > { %vm6015_vm9 = vcmp.ge.f32.partialorder %v5887_v48, 0.0  ;;  %v6143_v61 = vmul.f32 0.1, %v5887_v48  ;;  %v5891_v34 = vsel %vm5635_vm6, %v5484_v6, %v5763_v58  ;;  %v5766_v30 = vmul.f32 0.1, %v5486_v27 }
 0x66c   : > { %v7193_v19 = vadd.f32 %v10344_v25, %v7065_v11  ;;  %v7197_v45 = vadd.f32 %v10345_v31, %v7069_v59  ;;  %v6936_v42 = vsel %vm6680_vm7, %v14153_v13, %v14180_v23  ;;  %v6940_v21 = vsel %vm6684_vm8, %v14183_v2, %v14195_v28  ;;  %v14261_v23 = vpop.f32.mrf.mxu1  ;;  %v10258_v59 = vld [vmem:[#allocation14 + $0x78] sm:$0xff]  }
 0x66d   : > { %v6418_v14 = vmul.f32 %v14074_v47, %v6267_v15  ;;  %v6146_v0 = vmul.f32 0.1, %v5890_v1  ;;  %v7064_v10 = vmul.f32 0.01, %v6936_v42  ;;  %v7068_v35 = vmul.f32 0.01, %v6940_v21  ;;  %9340 = vmatprep.subr.bf16.mxu0 %v10258_v59 }
 0x66e   : > { %vm6018_vm10 = vcmp.ge.f32.partialorder %v5890_v1, 0.0  ;;  %v6147_v4 = vmul.f32 0.1, %v5891_v34  ;;  %vm5638_vm11 = vcmp.ge.f32.partialorder %v5486_v27, 0.0  ;;  %v7317_v43 = vpack.c.bf16 %v7197_v45, %v7193_v19 }
 0x66f   : > { %v14257_v22 = vadd.f32 %v14044_v37, %v6421_v44  ;;  %vm6019_vm12 = vcmp.ge.f32.partialorder %v5891_v34, 0.0  ;;  %v7192_v6 = vadd.f32 %v10346_v46, %v7064_v10  ;;  %v7196_v13 = vadd.f32 %v10347_v32, %v7068_v35 }
 0x670   : > { %v6816_v2 = vmul.f32 0.1, %v14217_v54  ;;  %v6561_v28 = vadd.f32 %v14093_v5, %v14212_v29  ;;  %v6271_v52 = vsel %vm6015_vm9, %v5887_v48, %v6143_v61  ;;  %8006 = vmatprep.mubr.bf16.mxu1 %v7317_v43  ;;  %v5488_v9 = vadd.f32 %v14189_v18, %v13307_v40  ;;  %v14288_v48 = vpop.f32.mrf.mxu1 }
 0x671   : > { %v6820_v57 = vmul.f32 0.1, %v14222_v3  ;;  %v6274_v24 = vsel %vm6018_vm10, %v5890_v1, %v6146_v0  ;;  %v5894_v55 = vsel %vm5638_vm11, %v5486_v27, %v5766_v30  ;;  %v7316_v12 = vpack.c.bf16 %v7196_v13, %v7192_v6  ;;  %v15656_v27 = vld [vmem:[#allocation50_spill] sm:$0xff]  ;;  %v10259_v0 = vld [vmem:[#allocation14 + $0x38] sm:$0xff]  }
 0x672   : > { %v6565_v58 = vadd.f32 %v14093_v5, %v6414_v41  ;;  %v14274_v62 = vmul.f32 0.1, %v14242_v26  ;;  %v6275_v29 = vsel %vm6019_vm12, %v5891_v34, %v6147_v4  ;;  %v5492_v39 = vadd.f32 %v14203_v63, %v13310_v16  ;;  %v15657_v63 = vld [vmem:[#allocation56_spill] sm:$0xff]  ;;  %v14296_v25 = vpop.f32.mrf.mxu1  ;;  %9341 = vmatpush3.bf16.msra.mxu0 %v10259_v0 }
 0x673   : > { %v14280_v15 = vadd.f32 %v14093_v5, %v6418_v14  ;;  %v14283_v40 = vmul.f32 0.1, %v14257_v22  ;;  %v6422_v18 = vmul.f32 %v14074_v47, %v6271_v52  ;;  %8007 = vmatmul.mubr.bf16.gmra.mxu1 %v7316_v12  ;;  %v5496_v41 = vadd.f32 %v14228_v53, %v15656_v27  ;;  %v10348_v52 = vld [vmem:[%s11153_s27 + $0x98] sm:$0xff] }
 0x674   : > { %v6425_v44 = vmul.f32 %v14030_v50, %v6274_v24  ;;  %vm6022_vm13 = vcmp.ge.f32.partialorder %v5894_v55, 0.0  ;;  %v6150_v36 = vmul.f32 0.1, %v5894_v55  ;;  %v5767_v11 = vmul.f32 0.1, %v5488_v9  ;;  %v14303_v13 = vpop.f32.mrf.mxu1 }
 0x675   : > { %v6426_v16 = vmul.f32 %v14074_v47, %v6275_v29  ;;  %vm5639_vm14 = vcmp.ge.f32.partialorder %v5488_v9, 0.0  ;;  %v5494_v1 = vadd.f32 %v14208_v38, %v15657_v63  ;;  %vm6689_vm15 = vcmp.ge.f32.partialorder %v6561_v28, 0.0 }
 0x676   : > { %vm5642_vm0 = vcmp.ge.f32.partialorder %v5492_v39, 0.0  ;;  %v5770_v61 = vmul.f32 0.1, %v5492_v39  ;;  %vm6693_vm1 = vcmp.ge.f32.partialorder %v6565_v58, 0.0  ;;  %v6817_v34 = vmul.f32 0.1, %v6561_v28  ;;  %v14315_v63 = vpop.f32.mrf.mxu1 }
 0x677   : > { %v5774_v53 = vmul.f32 0.1, %v5496_v41  ;;  %v6821_v30 = vmul.f32 0.1, %v6565_v58  ;;  %vm6688_vm2 = vcmp.ge.f32.partialorder %v14217_v54, 0.0  ;;  %vm6692_vm3 = vcmp.ge.f32.partialorder %v14222_v3, 0.0 }
 0x678   : > { %v6278_v19 = vsel %vm6022_vm13, %v5894_v55, %v6150_v36  ;;  %v5895_v31 = vsel %vm5639_vm14, %v5488_v9, %v5767_v11  ;;  %vm5646_vm4 = vcmp.ge.f32.partialorder %v5496_v41, 0.0  ;;  %v6945_v38 = vsel %vm6689_vm15, %v6561_v28, %v6817_v34 }
 0x679   : > { %v5771_v45 = vmul.f32 0.1, %v5494_v1  ;;  %v6949_v42 = vsel %vm6693_vm1, %v6565_v58, %v6821_v30  ;;  %v7073_v21 = vmul.f32 0.01, %v6945_v38  ;;  %v6944_v14 = vsel %vm6688_vm2, %v14217_v54, %v6816_v2  ;;  %v10349_v2 = vld [vmem:[%s11153_s27 + $0xb8] sm:$0xff]  ;;  %v10351_v58 = vld [vmem:[%s11153_s27 + $0xb0] sm:$0xff]  ;;  %v14332_v30 = vpop.f32.mrf.mxu1 }
 0x67a   : > { %v5898_v10 = vsel %vm5642_vm0, %v5492_v39, %v5770_v61  ;;  %vm5643_vm5 = vcmp.ge.f32.partialorder %v5494_v1, 0.0  ;;  %v7077_v35 = vmul.f32 0.01, %v6949_v42  ;;  %v6948_v4 = vsel %vm6692_vm3, %v14222_v3, %v6820_v57  ;;  %v10350_v57 = vld [vmem:[%s11153_s27 + $0x90] sm:$0xff] }
 0x67b   : > { %v6429_v43 = vmul.f32 %v14030_v50, %v6278_v19  ;;  %v5902_v46 = vsel %vm5646_vm4, %v5496_v41, %v5774_v53  ;;  %v7072_v6 = vmul.f32 0.01, %v6944_v14  ;;  %v7076_v32 = vmul.f32 0.01, %v6948_v4  ;;  %v14339_v14 = vpop.f32.mrf.mxu1 }
 0x67c   : > { %v6151_v28 = vmul.f32 0.1, %v5895_v31  ;;  %v7201_v54 = vadd.f32 %v10348_v52, %v7073_v21  ;;  %v7205_v9 = vadd.f32 %v10349_v2, %v7077_v35  ;;  %v5498_v24 = vadd.f32 %v14238_v7, %v13378_v17  ;;  %v10353_v52 = vld [vmem:[%s11153_s27 + $0xf8] sm:$0xff] }
 0x67d   : > { %v6154_v55 = vmul.f32 0.1, %v5898_v10  ;;  %v5899_v3 = vsel %vm5643_vm5, %v5494_v1, %v5771_v45  ;;  %v7200_v12 = vadd.f32 %v10350_v57, %v7072_v6  ;;  %v7204_v29 = vadd.f32 %v10351_v58, %v7076_v32  ;;  %v10352_v32 = vld [vmem:[%s11153_s27 + $0xd8] sm:$0xff]  ;;  %v10354_v57 = vld [vmem:[%s11153_s27 + $0xd0] sm:$0xff] }
 0x67e   : > { %vm6026_vm6 = vcmp.ge.f32.partialorder %v5898_v10, 0.0  ;;  %v6158_v39 = vmul.f32 0.1, %v5902_v46  ;;  %v7321_v27 = vpack.c.bf16 %v7205_v9, %v7201_v54  ;;  %v5502_v41 = vadd.f32 %v14247_v20, %v13387_v56  ;;  %v15658_v9 = vld [vmem:[#allocation54_spill] sm:$0xff] }
 0x67f   : > { %v6573_v36 = vadd.f32 %v14093_v5, %v6422_v18  ;;  %vm6023_vm7 = vcmp.ge.f32.partialorder %v5895_v31, 0.0  ;;  %vm6030_vm8 = vcmp.ge.f32.partialorder %v5902_v46, 0.0  ;;  %v7320_v11 = vpack.c.bf16 %v7204_v29, %v7200_v12  ;;  %v10355_v58 = vld [vmem:[%s11153_s27 + $0xf0] sm:$0xff] }
 0x680   : > { %v14318_v17 = vadd.f32 %v14044_v37, %v6425_v44  ;;  %v14321_v7 = vadd.f32 %v14093_v5, %v6426_v16  ;;  %v6155_v1 = vmul.f32 0.1, %v5899_v3  ;;  %8016 = vmatprep.mubr.bf16.mxu1 %v7321_v27  ;;  %v5775_v59 = vmul.f32 0.1, %v5498_v24 }
 0x681   : > { %v6282_v61 = vsel %vm6026_vm6, %v5898_v10, %v6154_v55  ;;  %vm6027_vm9 = vcmp.ge.f32.partialorder %v5899_v3, 0.0  ;;  %8017 = vmatmul.mubr.bf16.gmra.mxu1 %v7320_v11  ;;  %vm5647_vm10 = vcmp.ge.f32.partialorder %v5498_v24, 0.0  ;;  %v5504_v56 = vadd.f32 %v14261_v23, %v13397_v49 }
 0x682   : > { %v14326_v20 = vadd.f32 %v14044_v37, %v6429_v43  ;;  %v6279_v18 = vsel %vm6023_vm7, %v5895_v31, %v6151_v28  ;;  %v6286_v34 = vsel %vm6030_vm8, %v5902_v46, %v6158_v39  ;;  %v5778_v44 = vmul.f32 0.1, %v5502_v41 }
 0x683   : > { %vm5650_vm11 = vcmp.ge.f32.partialorder %v5502_v41, 0.0  ;;  %v5506_v16 = vadd.f32 %v14288_v48, %v13400_v8  ;;  %vm6697_vm12 = vcmp.ge.f32.partialorder %v14280_v15, 0.0  ;;  %v6825_v53 = vmul.f32 0.1, %v14280_v15 }
 0x684   : > { %v6433_v19 = vmul.f32 %v14030_v50, %v6282_v61  ;;  %v6283_v38 = vsel %vm6027_vm9, %v5899_v3, %v6155_v1  ;;  %v5903_v49 = vsel %vm5647_vm10, %v5498_v24, %v5775_v59  ;;  %vm6701_vm13 = vcmp.ge.f32.partialorder %v6573_v36, 0.0  ;;  %v14355_v3 = vpop.f32.mrf.mxu1  ;;  %v15659_v1 = vld [vmem:[#allocation61_spill] sm:$0xff] }
 0x685   : > { %v6437_v23 = vmul.f32 %v14030_v50, %v6286_v34  ;;  %vm5651_vm14 = vcmp.ge.f32.partialorder %v5504_v56, 0.0  ;;  %v5779_v31 = vmul.f32 0.1, %v5504_v56  ;;  %v6829_v45 = vmul.f32 0.1, %v6573_v36 }
 0x686   : > { %v5906_v42 = vsel %vm5650_vm11, %v5502_v41, %v5778_v44  ;;  %v6953_v21 = vsel %vm6697_vm12, %v14280_v15, %v6825_v53  ;;  %vm6696_vm15 = vcmp.ge.f32.partialorder %v14242_v26, 0.0  ;;  %vm6700_vm0 = vcmp.ge.f32.partialorder %v14257_v22, 0.0  ;;  %v14369_v34 = vpop.f32.mrf.mxu1 }
 0x687   : > { %vm6031_vm1 = vcmp.ge.f32.partialorder %v5903_v49, 0.0  ;;  %vm5654_vm2 = vcmp.ge.f32.partialorder %v5506_v16, 0.0  ;;  %v5782_v8 = vmul.f32 0.1, %v5506_v16  ;;  %v6957_v48 = vsel %vm6701_vm13, %v6573_v36, %v6829_v45  ;;  %v15660_v45 = vld [vmem:[#allocation65_spill] sm:$0xff] }
 0x688   : > { %v6159_v0 = vmul.f32 0.1, %v5903_v49  ;;  %v7081_v10 = vmul.f32 0.01, %v6953_v21  ;;  %v7085_v35 = vmul.f32 0.01, %v6957_v48  ;;  %v6952_v4 = vsel %vm6696_vm15, %v14242_v26, %v14274_v62 }
 0x689   : > { %v6162_v43 = vmul.f32 0.1, %v5906_v42  ;;  %v5907_v15 = vsel %vm5651_vm14, %v5504_v56, %v5779_v31  ;;  %v6956_v46 = vsel %vm6700_vm0, %v14257_v22, %v14283_v40  ;;  %v7080_v6 = vmul.f32 0.01, %v6952_v4  ;;  %v15661_v21 = vld [vmem:[#allocation64_spill] sm:$0xff]  ;;  %v10260_v4 = vld [vmem:[#allocation14 + $0x70] sm:$0xff]  }
 0x68a   : > { %v7209_v28 = vadd.f32 %v10352_v32, %v7081_v10  ;;  %v7213_v54 = vadd.f32 %v10353_v52, %v7085_v35  ;;  %v7084_v2 = vmul.f32 0.01, %v6956_v46  ;;  %v5508_v24 = vadd.f32 %v14296_v25, %v15658_v9  ;;  %9342 = vmatprep.subr.bf16.mxu0 %v10260_v4 }
 0x68b   : > { %v6430_v55 = vmul.f32 %v14074_v47, %v6279_v18  ;;  %v14352_v26 = vadd.f32 %v14044_v37, %v6433_v19  ;;  %v6434_v62 = vmul.f32 %v14074_v47, %v6283_v38  ;;  %vm6034_vm3 = vcmp.ge.f32.partialorder %v5906_v42, 0.0 }
 0x68c   : > { %v14358_v22 = vadd.f32 %v14044_v37, %v6437_v23  ;;  %v7325_v40 = vpack.c.bf16 %v7213_v54, %v7209_v28  ;;  %v7208_v12 = vadd.f32 %v10354_v57, %v7080_v6  ;;  %v7212_v29 = vadd.f32 %v10355_v58, %v7084_v2  ;;  %v15662_v58 = vld [vmem:[#allocation67_spill] sm:$0xff] }
 0x68d   : > { %v6287_v25 = vsel %vm6031_vm1, %v5903_v49, %v6159_v0  ;;  %vm6035_vm4 = vcmp.ge.f32.partialorder %v5907_v15, 0.0  ;;  %v6163_v39 = vmul.f32 0.1, %v5907_v15  ;;  %v5910_v27 = vsel %vm5654_vm2, %v5506_v16, %v5782_v8  ;;  %v5525_v0 = vpop.f32.mrf.mxu1 }
 0x68e   : > { %v6290_v41 = vsel %vm6034_vm3, %v5906_v42, %v6162_v43  ;;  %8026 = vmatprep.mubr.bf16.mxu1 %v7325_v40  ;;  %v7324_v36 = vpack.c.bf16 %v7212_v29, %v7208_v12  ;;  %v5783_v11 = vmul.f32 0.1, %v5508_v24  ;;  %v5512_v59 = vadd.f32 %v14303_v13, %v15659_v1  ;;  %v10356_v40 = vld [vmem:[%s11153_s27 + $0x118] sm:$0xff] }
 0x68f   : > { %v6832_v61 = vmul.f32 0.1, %v14318_v17  ;;  %v6836_v56 = vmul.f32 0.1, %v14326_v20  ;;  %v6581_v18 = vadd.f32 %v14093_v5, %v6430_v55  ;;  %vm5655_vm5 = vcmp.ge.f32.partialorder %v5508_v24, 0.0  ;;  %v14396_v9 = vpop.f32.mrf.mxu1 }
 0x690   : > { %v14372_v44 = vmul.f32 0.1, %v14352_v26  ;;  %v14375_v16 = vadd.f32 %v14093_v5, %v6434_v62  ;;  %v14378_v53 = vmul.f32 0.1, %v14358_v22  ;;  %v6438_v13 = vmul.f32 %v14074_v47, %v6287_v25  ;;  %8027 = vmatmul.mubr.bf16.gmra.mxu1 %v7324_v36  ;;  %v10261_v62 = vld [vmem:[#allocation14 + $0x30] sm:$0xff]  }
 0x691   : > { %v6441_v19 = vmul.f32 %v14030_v50, %v6290_v41  ;;  %v6291_v38 = vsel %vm6035_vm4, %v5907_v15, %v6163_v39  ;;  %vm6038_vm6 = vcmp.ge.f32.partialorder %v5910_v27, 0.0  ;;  %v6166_v49 = vmul.f32 0.1, %v5910_v27  ;;  %v10358_v39 = vld [vmem:[%s11153_s27 + $0x110] sm:$0xff]  ;;  %9343 = vmatpush3.bf16.msra.mxu0 %v10261_v62 }
 0x692   : > { %v5911_v23 = vsel %vm5655_vm5, %v5508_v24, %v5783_v11  ;;  %v5786_v31 = vmul.f32 0.1, %v5512_v59  ;;  %v5514_v42 = vadd.f32 %v14315_v63, %v15660_v45  ;;  %vm6705_vm7 = vcmp.ge.f32.partialorder %v14321_v7, 0.0  ;;  %v10359_v41 = vld [vmem:[%s11153_s27 + $0x130] sm:$0xff] }
 0x693   : > { %vm5658_vm8 = vcmp.ge.f32.partialorder %v5512_v59, 0.0  ;;  %v5516_v8 = vadd.f32 %v14332_v30, %v15661_v21  ;;  %vm6709_vm9 = vcmp.ge.f32.partialorder %v6581_v18, 0.0  ;;  %v6833_v48 = vmul.f32 0.1, %v14321_v7 }
 0x694   : > { %v6442_v10 = vmul.f32 %v14074_v47, %v6291_v38  ;;  %v6837_v35 = vmul.f32 0.1, %v6581_v18  ;;  %vm6704_vm10 = vcmp.ge.f32.partialorder %v14318_v17, 0.0  ;;  %vm6708_vm11 = vcmp.ge.f32.partialorder %v14326_v20, 0.0 }
 0x695   : > { %v6294_v63 = vsel %vm6038_vm6, %v5910_v27, %v6166_v49  ;;  %vm6039_vm12 = vcmp.ge.f32.partialorder %v5911_v23, 0.0  ;;  %v6167_v43 = vmul.f32 0.1, %v5911_v23  ;;  %v6961_v15 = vsel %vm6705_vm7, %v14321_v7, %v6833_v48 }
 0x696   : > { %v5914_v46 = vsel %vm5658_vm8, %v5512_v59, %v5786_v31  ;;  %v6965_v30 = vsel %vm6709_vm9, %v6581_v18, %v6837_v35  ;;  %v7089_v6 = vmul.f32 0.01, %v6961_v15  ;;  %v6960_v32 = vsel %vm6704_vm10, %v14318_v17, %v6832_v61  ;;  %v10357_v17 = vld [vmem:[%s11153_s27 + $0x138] sm:$0xff]  ;;  %v15663_v59 = vld [vmem:[#allocation41_spill] sm:$0xff] }
 0x697   : > { %v5787_v28 = vmul.f32 0.1, %v5514_v42  ;;  %v5790_v52 = vmul.f32 0.1, %v5516_v8  ;;  %v7093_v54 = vmul.f32 0.01, %v6965_v30  ;;  %v6964_v2 = vsel %vm6708_vm11, %v14326_v20, %v6836_v56  ;;  %v14409_v56 = vpop.f32.mrf.mxu1 }
 0x698   : > { %v6445_v24 = vmul.f32 %v14030_v50, %v6294_v63  ;;  %vm5659_vm13 = vcmp.ge.f32.partialorder %v5514_v42, 0.0  ;;  %v7088_v7 = vmul.f32 0.01, %v6960_v32  ;;  %v7092_v55 = vmul.f32 0.01, %v6964_v2 }
 0x699   : > { %vm5662_vm14 = vcmp.ge.f32.partialorder %v5516_v8, 0.0  ;;  %v7217_v57 = vadd.f32 %v10356_v40, %v7089_v6  ;;  %v7221_v12 = vadd.f32 %v10357_v17, %v7093_v54  ;;  %v5518_v29 = vadd.f32 %v14339_v14, %v15662_v58  ;;  %v14432_v35 = vpop.f32.mrf.mxu1 }
 0x69a   : > { %v6589_v25 = vadd.f32 %v14093_v5, %v6438_v13  ;;  %v6170_v20 = vmul.f32 0.1, %v5914_v46  ;;  %v7216_v27 = vadd.f32 %v10358_v39, %v7088_v7  ;;  %v7220_v36 = vadd.f32 %v10359_v41, %v7092_v55  ;;  %v15666_v39 = vld [vmem:[#allocation38_spill] sm:$0xff] }
 0x69b   : > { %v6295_v11 = vsel %vm6039_vm12, %v5911_v23, %v6167_v43  ;;  %vm6042_vm15 = vcmp.ge.f32.partialorder %v5914_v46, 0.0  ;;  %v7329_v1 = vpack.c.bf16 %v7221_v12, %v7217_v57  ;;  %v5522_v61 = vadd.f32 %v14355_v3, %v15663_v59  ;;  %v15664_v3 = vld [vmem:[#allocation66_spill] sm:$0xff]  ;;  %v14440_v32 = vpop.f32.mrf.mxu1  ;;  %v10360_v12 = vld [vmem:[%s11153_s27 + $0x158] sm:$0xff] }
 0x69c   : > { %v14412_v18 = vadd.f32 %v14044_v37, %v6441_v19  ;;  %v14415_v14 = vsel %vm5659_vm13, %v5514_v42, %v5787_v28  ;;  %v5918_v13 = vsel %vm5662_vm14, %v5516_v8, %v5790_v52  ;;  %v7328_v38 = vpack.c.bf16 %v7220_v36, %v7216_v27  ;;  %v15665_v42 = vld [vmem:[#allocation76_spill] sm:$0xff]  ;;  %v10363_v59 = vld [vmem:[%s11153_s27 + $0x170] sm:$0xff] }
 0x69d   : > { %v14419_v49 = vadd.f32 %v14093_v5, %v6442_v10  ;;  %v14422_v23 = vadd.f32 %v14044_v37, %v6445_v24  ;;  %8036 = vmatprep.mubr.bf16.mxu1 %v7329_v1  ;;  %v5791_v31 = vmul.f32 0.1, %v5518_v29  ;;  %v5524_v45 = vadd.f32 %v14369_v34, %v15664_v3  ;;  %v14452_v41 = vpop.f32.mrf.mxu1 }
 0x69e   : > { %v14427_v19 = vmul.f32 %v14074_v47, %v6295_v11  ;;  %v6298_v21 = vsel %vm6042_vm15, %v5914_v46, %v6170_v20  ;;  %8037 = vmatmul.mubr.bf16.gmra.mxu1 %v7328_v38  ;;  %vm5663_vm0 = vcmp.ge.f32.partialorder %v5518_v29, 0.0  ;;  %v5526_v8 = vadd.f32 %v5525_v0, %v15665_v42  ;;  %v10362_v11 = vld [vmem:[%s11153_s27 + $0x150] sm:$0xff] }
 0x69f   : > { %vm6043_vm1 = vcmp.ge.f32.partialorder %v14415_v14, 0.0  ;;  %v6171_v48 = vmul.f32 0.1, %v14415_v14  ;;  %vm6046_vm2 = vcmp.ge.f32.partialorder %v5918_v13, 0.0  ;;  %v5794_v10 = vmul.f32 0.1, %v5522_v61 }
 0x6a0   : > { %v6174_v4 = vmul.f32 0.1, %v5918_v13  ;;  %vm5666_vm3 = vcmp.ge.f32.partialorder %v5522_v61, 0.0  ;;  %vm6713_vm4 = vcmp.ge.f32.partialorder %v14375_v16, 0.0  ;;  %v6841_v34 = vmul.f32 0.1, %v14375_v16 }
 0x6a1   : > { %v6449_v63 = vmul.f32 %v14030_v50, %v6298_v21  ;;  %v5919_v43 = vsel %vm5663_vm0, %v5518_v29, %v5791_v31  ;;  %v5795_v15 = vmul.f32 0.1, %v5524_v45  ;;  %vm6717_vm5 = vcmp.ge.f32.partialorder %v6589_v25, 0.0  ;;  %v10361_v29 = vld [vmem:[%s11153_s27 + $0x178] sm:$0xff]  ;;  %v15667_v21 = vld [vmem:[#allocation77_spill] sm:$0xff] }
 0x6a2   : > { %vm5667_vm6 = vcmp.ge.f32.partialorder %v5524_v45, 0.0  ;;  %vm5670_vm7 = vcmp.ge.f32.partialorder %v5526_v8, 0.0  ;;  %v5798_v0 = vmul.f32 0.1, %v5526_v8  ;;  %v6845_v46 = vmul.f32 0.1, %v6589_v25 }
 0x6a3   : > { %v5922_v30 = vsel %vm5666_vm3, %v5522_v61, %v5794_v10  ;;  %v6969_v6 = vsel %vm6713_vm4, %v14375_v16, %v6841_v34  ;;  %vm6712_vm8 = vcmp.ge.f32.partialorder %v14352_v26, 0.0  ;;  %vm6716_vm9 = vcmp.ge.f32.partialorder %v14358_v22, 0.0  ;;  %v10262_v16 = vld [vmem:[#allocation14 + $0x68] sm:$0xff]  }
 0x6a4   : > { %v6302_v28 = vsel %vm6046_vm2, %v5918_v13, %v6174_v4  ;;  %vm6047_vm10 = vcmp.ge.f32.partialorder %v5919_v43, 0.0  ;;  %v6175_v52 = vmul.f32 0.1, %v5919_v43  ;;  %v6973_v54 = vsel %vm6717_vm5, %v6589_v25, %v6845_v46  ;;  %9344 = vmatprep.subr.bf16.mxu0 %v10262_v16  ;;  %v10265_v16 = vld [vmem:[#allocation14 + $0x20] sm:$0xff]  }
 0x6a5   : > { %v5923_v2 = vsel %vm5667_vm6, %v5524_v45, %v5795_v15  ;;  %v7097_v24 = vmul.f32 0.01, %v6969_v6  ;;  %v7101_v7 = vmul.f32 0.01, %v6973_v54  ;;  %v6968_v55 = vsel %vm6712_vm8, %v14352_v26, %v14372_v44  ;;  %v10263_v44 = vld [vmem:[#allocation14 + $0x28] sm:$0xff]  }
 0x6a6   : > { %v6178_v62 = vmul.f32 0.1, %v5922_v30  ;;  %v5926_v40 = vsel %vm5670_vm7, %v5526_v8, %v5798_v0  ;;  %v6972_v57 = vsel %vm6716_vm9, %v14358_v22, %v14378_v53  ;;  %v7096_v17 = vmul.f32 0.01, %v6968_v55  ;;  %9345 = vmatpush3.bf16.msra.mxu0 %v10263_v44  ;;  %v14466_v8 = vpop.f32.mrf.mxu1  ;;  %v15668_v0 = vld [vmem:[#allocation78_spill] sm:$0xff]  ;;  %v10264_v55 = vld [vmem:[#allocation14 + $0x60] sm:$0xff]  }
 0x6a7   : > { %v7225_v58 = vadd.f32 %v10360_v12, %v7097_v24  ;;  %v7229_v25 = vadd.f32 %v10361_v29, %v7101_v7  ;;  %v7100_v20 = vmul.f32 0.01, %v6972_v57  ;;  %v5528_v27 = vadd.f32 %v14396_v9, %v15666_v39  ;;  %9346 = vmatprep.subr.bf16.mxu0 %v10264_v55 }
 0x6a8   : > { %v14455_v26 = vadd.f32 %v14044_v37, %v6449_v63  ;;  %vm6050_vm11 = vcmp.ge.f32.partialorder %v5922_v30, 0.0  ;;  %vm6051_vm12 = vcmp.ge.f32.partialorder %v5923_v2, 0.0  ;;  %v6179_v22 = vmul.f32 0.1, %v5923_v2 }
 0x6a9   : > { %v6182_v53 = vmul.f32 0.1, %v5926_v40  ;;  %v7333_v36 = vpack.c.bf16 %v7229_v25, %v7225_v58  ;;  %v7224_v1 = vadd.f32 %v10362_v11, %v7096_v17  ;;  %v7228_v61 = vadd.f32 %v10363_v59, %v7100_v20  ;;  %v10267_v25 = vld [vmem:[#allocation14 + $0x18] sm:$0xff]  }
 0x6aa   : > { %v6299_v9 = vsel %vm6043_vm1, %v14415_v14, %v6171_v48  ;;  %v6453_v13 = vmul.f32 %v14030_v50, %v6302_v28  ;;  %v6303_v38 = vsel %vm6047_vm10, %v5919_v43, %v6175_v52  ;;  %vm6054_vm13 = vcmp.ge.f32.partialorder %v5926_v40, 0.0  ;;  %v14492_v52 = vpop.f32.mrf.mxu1  ;;  %9347 = vmatpush3.bf16.msra.mxu0 %v10265_v16  ;;  %v10271_v16 = vld [vmem:[#allocation14 + $0x8] sm:$0xff]  }
 0x6ab   : > { %v6306_v31 = vsel %vm6050_vm11, %v5922_v30, %v6178_v62  ;;  %8046 = vmatprep.mubr.bf16.mxu1 %v7333_v36  ;;  %v7332_v3 = vpack.c.bf16 %v7228_v61, %v7224_v1  ;;  %v5799_v45 = vmul.f32 0.1, %v5528_v27  ;;  %v5532_v42 = vadd.f32 %v14409_v56, %v15667_v21  ;;  %v10266_v62 = vld [vmem:[#allocation14 + $0x58] sm:$0xff]  }
 0x6ac   : > { %v6848_v10 = vmul.f32 0.1, %v14412_v18  ;;  %v6597_v14 = vadd.f32 %v14093_v5, %v14427_v19  ;;  %v6307_v48 = vsel %vm6051_vm12, %v5923_v2, %v6179_v22  ;;  %vm5671_vm14 = vcmp.ge.f32.partialorder %v5528_v27, 0.0  ;;  %v15669_v2 = vld [vmem:[#allocation79_spill] sm:$0xff]  ;;  %v5545_v29 = vpop.f32.mrf.mxu1  ;;  %9348 = vmatprep.subr.bf16.mxu0 %v10266_v62  ;;  %v10268_v22 = vld [vmem:[#allocation14 + $0x50] sm:$0xff]  }
 0x6ad   : > { %v6852_v4 = vmul.f32 0.1, %v14422_v23  ;;  %v14474_v34 = vmul.f32 0.1, %v14455_v26  ;;  %v14477_v63 = vmul.f32 %v14074_v47, %v6299_v9  ;;  %v6310_v43 = vsel %vm6054_vm13, %v5926_v40, %v6182_v53  ;;  %8047 = vmatmul.mubr.bf16.gmra.mxu1 %v7332_v3  ;;  %v10364_v1 = vld [vmem:[%s11153_s27 + $0x198] sm:$0xff]  ;;  %v10367_v3 = vld [vmem:[%s11153_s27 + $0x1b0] sm:$0xff] }
 0x6ae   : > { %v14480_v56 = vadd.f32 %v14044_v37, %v6453_v13  ;;  %v14483_v15 = vmul.f32 %v14074_v47, %v6303_v38  ;;  %v6457_v19 = vmul.f32 %v14030_v50, %v6306_v31  ;;  %v5534_v46 = vadd.f32 %v14432_v35, %v15668_v0  ;;  %v10365_v61 = vld [vmem:[%s11153_s27 + $0x1b8] sm:$0xff]  ;;  %v10366_v38 = vld [vmem:[%s11153_s27 + $0x190] sm:$0xff]  ;;  %v14520_v21 = vpop.f32.mrf.mxu1  ;;  %9349 = vmatpush3.bf16.msra.mxu0 %v10267_v25 }
 0x6af   : > { %v14489_v30 = vmul.f32 %v14074_v47, %v6307_v48  ;;  %v5927_v6 = vsel %vm5671_vm14, %v5528_v27, %v5799_v45  ;;  %v5802_v28 = vmul.f32 0.1, %v5532_v42  ;;  %vm6721_vm15 = vcmp.ge.f32.partialorder %v14419_v49, 0.0  ;;  %v15670_v48 = vld [vmem:[#allocation80_spill] sm:$0xff]  ;;  %9350 = vmatprep.subr.bf16.mxu0 %v10268_v22  ;;  %v15672_v62 = vld [vmem:[#allocation83_spill] sm:$0xff] }
 0x6b0   : > { %v6461_v54 = vmul.f32 %v14030_v50, %v6310_v43  ;;  %v5536_v24 = vadd.f32 %v14440_v32, %v15669_v2  ;;  %vm6725_vm0 = vcmp.ge.f32.partialorder %v6597_v14, 0.0  ;;  %v6849_v7 = vmul.f32 0.1, %v14419_v49  ;;  %v10270_v43 = vld [vmem:[#allocation14 + $0x48] sm:$0xff]  }
 0x6b1   : > { %vm5674_vm1 = vcmp.ge.f32.partialorder %v5532_v42, 0.0  ;;  %v6853_v35 = vmul.f32 0.1, %v6597_v14  ;;  %vm6720_vm2 = vcmp.ge.f32.partialorder %v14412_v18, 0.0  ;;  %vm6724_vm3 = vcmp.ge.f32.partialorder %v14422_v23, 0.0 }
 0x6b2   : > { %vm6055_vm4 = vcmp.ge.f32.partialorder %v5927_v6, 0.0  ;;  %v6183_v40 = vmul.f32 0.1, %v5927_v6  ;;  %vm5675_vm5 = vcmp.ge.f32.partialorder %v5534_v46, 0.0  ;;  %v6977_v57 = vsel %vm6721_vm15, %v14419_v49, %v6849_v7  ;;  %v15671_v7 = vld [vmem:[#allocation81_spill] sm:$0xff] }
 0x6b3   : > { %v5803_v32 = vmul.f32 0.1, %v5534_v46  ;;  %v6981_v17 = vsel %vm6725_vm0, %v6597_v14, %v6853_v35  ;;  %v7105_v12 = vmul.f32 0.01, %v6977_v57  ;;  %v6976_v58 = vsel %vm6720_vm2, %v14412_v18, %v6848_v10  ;;  %v10272_v57 = vld [vmem:[#allocation14 + $0x40] sm:$0xff]  }
 0x6b4   : > { %v5930_v20 = vsel %vm5674_vm1, %v5532_v42, %v5802_v28  ;;  %v5806_v39 = vmul.f32 0.1, %v5536_v24  ;;  %v7109_v27 = vmul.f32 0.01, %v6981_v17  ;;  %v6980_v49 = vsel %vm6724_vm3, %v14422_v23, %v6852_v4  ;;  %v10269_v42 = vld [vmem:[#allocation14 + $0x10] sm:$0xff]  }
 0x6b5   : > { %v14509_v44 = vadd.f32 %v14044_v37, %v6457_v19  ;;  %vm5678_vm6 = vcmp.ge.f32.partialorder %v5536_v24, 0.0  ;;  %v7104_v18 = vmul.f32 0.01, %v6976_v58  ;;  %v7108_v53 = vmul.f32 0.01, %v6980_v49  ;;  %9351 = vmatpush3.bf16.msra.mxu0 %v10269_v42  ;;  %v10273_v49 = vld [vmem:[#allocation14] sm:$0xff]  }
 0x6b6   : > { %v14512_v36 = vadd.f32 %v14044_v37, %v6461_v54  ;;  %v6311_v11 = vsel %vm6055_vm4, %v5927_v6, %v6183_v40  ;;  %v7233_v59 = vadd.f32 %v10364_v1, %v7105_v12  ;;  %v7237_v9 = vadd.f32 %v10365_v61, %v7109_v27  ;;  %9352 = vmatprep.subr.bf16.mxu0 %v10270_v43  ;;  %v10369_v42 = vld [vmem:[%s11153_s27 + $0x1f8] sm:$0xff] }
 0x6b7   : > { %v6186_v13 = vmul.f32 0.1, %v5930_v20  ;;  %v5931_v23 = vsel %vm5675_vm5, %v5534_v46, %v5803_v32  ;;  %v7232_v31 = vadd.f32 %v10366_v38, %v7104_v18  ;;  %v7236_v45 = vadd.f32 %v10367_v3, %v7108_v53  ;;  %v15673_v32 = vld [vmem:[#allocation82_spill] sm:$0xff]  ;;  %v10368_v3 = vld [vmem:[%s11153_s27 + $0x1d8] sm:$0xff] }
 0x6b8   : > { %vm6058_vm7 = vcmp.ge.f32.partialorder %v5930_v20, 0.0  ;;  %v5934_v10 = vsel %vm5678_vm6, %v5536_v24, %v5806_v39  ;;  %v7337_v14 = vpack.c.bf16 %v7237_v9, %v7233_v59  ;;  %v5538_v4 = vadd.f32 %v14452_v41, %v15670_v48 }
 0x6b9   : > { %v6601_v19 = vadd.f32 %v14093_v5, %v14477_v63  ;;  %v6860_v0 = vmul.f32 0.1, %v14480_v56  ;;  %v6605_v46 = vadd.f32 %v14093_v5, %v14483_v15  ;;  %v7336_v6 = vpack.c.bf16 %v7236_v45, %v7232_v31  ;;  %v5551_v15 = vpop.f32.mrf.mxu1  ;;  %9353 = vmatpush3.bf16.msra.mxu0 %v10271_v16 }
 0x6ba   : > { %v14531_v28 = vmul.f32 0.1, %v14509_v44  ;;  %v14535_v54 = vadd.f32 %v14093_v5, %v14489_v30  ;;  %v6462_v41 = vmul.f32 %v14074_v47, %v6311_v11  ;;  %v6187_v2 = vmul.f32 0.1, %v5931_v23  ;;  %8056 = vmatprep.mubr.bf16.mxu1 %v7337_v14  ;;  %9354 = vmatprep.subr.bf16.mxu0 %v10272_v57 }
 0x6bb   : > { %v6314_v24 = vsel %vm6058_vm7, %v5930_v20, %v6186_v13  ;;  %vm6059_vm8 = vcmp.ge.f32.partialorder %v5931_v23, 0.0  ;;  %v6190_v63 = vmul.f32 0.1, %v5934_v10  ;;  %8057 = vmatmul.mubr.bf16.gmra.mxu1 %v7336_v6  ;;  %v5542_v55 = vadd.f32 %v14466_v8, %v15671_v7 }
 0x6bc   : > { %v14541_v35 = vmul.f32 0.1, %v14512_v36  ;;  %vm6062_vm9 = vcmp.ge.f32.partialorder %v5934_v10, 0.0  ;;  %v5807_v30 = vmul.f32 0.1, %v5538_v4  ;;  %v5544_v40 = vadd.f32 %v14492_v52, %v15672_v62  ;;  %v5553_v52 = vpop.f32.mrf.mxu1 }
 0x6bd   : > { %vm5679_vm10 = vcmp.ge.f32.partialorder %v5538_v4, 0.0  ;;  %v5546_v17 = vadd.f32 %v5545_v29, %v15673_v32  ;;  %vm6729_vm11 = vcmp.ge.f32.partialorder %v6601_v19, 0.0  ;;  %v6857_v12 = vmul.f32 0.1, %v6601_v19  ;;  %9355 = vmatpush3.bf16.msra.mxu0 %v10273_v49  ;;  %v15676_v32 = vld [vmem:[#allocation75_spill] sm:$0xff] }
 0x6be   : > { %v14547_v8 = vadd.f32 %v14093_v5, %v6462_v41  ;;  %v6465_v58 = vmul.f32 %v14030_v50, %v6314_v24  ;;  %v6315_v25 = vsel %vm6059_vm8, %v5931_v23, %v6187_v2  ;;  %vm6733_vm12 = vcmp.ge.f32.partialorder %v6605_v46, 0.0  ;;  %v5555_v38 = vpop.f32.mrf.mxu1  ;;  %v15675_v41 = vld [vmem:[#allocation42_spill] sm:$0xff] }
 0x6bf   : > { %v6318_v20 = vsel %vm6062_vm9, %v5934_v10, %v6190_v63  ;;  %vm5682_vm13 = vcmp.ge.f32.partialorder %v5542_v55, 0.0  ;;  %v5810_v39 = vmul.f32 0.1, %v5542_v55  ;;  %v6861_v27 = vmul.f32 0.1, %v6605_v46 }
 0x6c0   : > { %v5935_v22 = vsel %vm5679_vm10, %v5538_v4, %v5807_v30  ;;  %v6985_v18 = vsel %vm6729_vm11, %v6601_v19, %v6857_v12  ;;  %vm6728_vm14 = vcmp.ge.f32.partialorder %v14455_v26, 0.0  ;;  %vm6732_vm15 = vcmp.ge.f32.partialorder %v14480_v56, 0.0  ;;  %v15674_v4 = vld [vmem:[#allocation40_spill] sm:$0xff]  ;;  %v10370_v19 = vld [vmem:[%s11153_s27 + $0x1d0] sm:$0xff]  ;;  %v15677_v12 = vld [vmem:[#allocation71_spill] sm:$0xff] }
 0x6c1   : > { %vm5683_vm0 = vcmp.ge.f32.partialorder %v5544_v40, 0.0  ;;  %v5811_v29 = vmul.f32 0.1, %v5544_v40  ;;  %v5814_v53 = vmul.f32 0.1, %v5546_v17  ;;  %v6989_v11 = vsel %vm6733_vm12, %v6605_v46, %v6861_v27  ;;  %v10371_v46 = vld [vmem:[%s11153_s27 + $0x1f0] sm:$0xff] }
 0x6c2   : > { %vm5686_vm1 = vcmp.ge.f32.partialorder %v5546_v17, 0.0  ;;  %v7113_v1 = vmul.f32 0.01, %v6985_v18  ;;  %v7117_v59 = vmul.f32 0.01, %v6989_v11  ;;  %v6984_v61 = vsel %vm6728_vm14, %v14455_v26, %v14474_v34 }
 0x6c3   : > { %v6469_v9 = vmul.f32 %v14030_v50, %v6318_v20  ;;  %vm6063_vm2 = vcmp.ge.f32.partialorder %v5935_v22, 0.0  ;;  %v6988_v13 = vsel %vm6732_vm15, %v14480_v56, %v6860_v0  ;;  %v7112_v23 = vmul.f32 0.01, %v6984_v61 }
 0x6c4   : > { %v5938_v31 = vsel %vm5682_vm13, %v5542_v55, %v5810_v39  ;;  %v7241_v45 = vadd.f32 %v10368_v3, %v7113_v1  ;;  %v7245_v10 = vadd.f32 %v10369_v42, %v7117_v59  ;;  %v7116_v14 = vmul.f32 0.01, %v6988_v13  ;;  %v5557_v55 = vpop.f32.mrf.mxu1 }
 0x6c5   : > { %v6191_v48 = vmul.f32 0.1, %v5935_v22  ;;  %v5939_v26 = vsel %vm5683_vm0, %v5544_v40, %v5811_v29  ;;  %v5942_v34 = vsel %vm5686_vm1, %v5546_v17, %v5814_v53  ;;  %v5548_v43 = vadd.f32 %v14520_v21, %v15674_v4 }
 0x6c6   : > { %v7341_v56 = vpack.c.bf16 %v7245_v10, %v7241_v45  ;;  %v7240_v0 = vadd.f32 %v10370_v19, %v7112_v23  ;;  %v7244_v6 = vadd.f32 %v10371_v46, %v7116_v14  ;;  %v5552_v2 = vadd.f32 %v5551_v15, %v15675_v41  ;;  %v5561_v27 = vpop.f32.mrf.mxu1 }
 0x6c7   : > { %v14569_v24 = vadd.f32 %v14044_v37, %v6465_v58  ;;  %v6466_v63 = vmul.f32 %v14074_v47, %v6315_v25  ;;  %v14573_v7 = vadd.f32 %v14044_v37, %v6469_v9  ;;  %vm6066_vm3 = vcmp.ge.f32.partialorder %v5938_v31, 0.0 }
 0x6c8   : > { %v6194_v16 = vmul.f32 0.1, %v5938_v31  ;;  %vm6067_vm4 = vcmp.ge.f32.partialorder %v5939_v26, 0.0  ;;  %v6195_v21 = vmul.f32 0.1, %v5939_v26  ;;  %8066 = vmatprep.mubr.bf16.mxu1 %v7341_v56  ;;  %v7340_v30 = vpack.c.bf16 %v7244_v6, %v7240_v0  ;;  %v5563_v13 = vpop.f32.mrf.mxu1  ;;  %v15678_v6 = vld [vmem:[#allocation39_spill] sm:$0xff] }
 0x6c9   : > { %v6319_v62 = vsel %vm6063_vm2, %v5935_v22, %v6191_v48  ;;  %vm6070_vm5 = vcmp.ge.f32.partialorder %v5942_v34, 0.0  ;;  %v6198_v40 = vmul.f32 0.1, %v5942_v34  ;;  %v5815_v15 = vmul.f32 0.1, %v5548_v43  ;;  %v10372_v48 = vld [vmem:[%s11153_s27 + $0x218] sm:$0xff] }
 0x6ca   : > { %8067 = vmatmul.mubr.bf16.gmra.mxu1 %v7340_v30  ;;  %vm5687_vm6 = vcmp.ge.f32.partialorder %v5548_v43, 0.0  ;;  %v5818_v57 = vmul.f32 0.1, %v5552_v2  ;;  %v5554_v17 = vadd.f32 %v5553_v52, %v15676_v32  ;;  %v5556_v58 = vadd.f32 %v5555_v38, %v15677_v12  ;;  %v5565_v56 = vpop.f32.mrf.mxu1 }
 0x6cb   : > { %v14579_v25 = vmul.f32 0.1, %v14569_v24  ;;  %v14582_v20 = vadd.f32 %v14093_v5, %v6466_v63  ;;  %v14585_v39 = vmul.f32 0.1, %v14573_v7  ;;  %vm5690_vm7 = vcmp.ge.f32.partialorder %v5552_v2, 0.0  ;;  %v10375_v63 = vld [vmem:[%s11153_s27 + $0x230] sm:$0xff] }
 0x6cc   : > { %v6470_v49 = vmul.f32 %v14074_v47, %v6319_v62  ;;  %v6322_v22 = vsel %vm6066_vm3, %v5938_v31, %v6194_v16  ;;  %v6323_v18 = vsel %vm6067_vm4, %v5939_v26, %v6195_v21  ;;  %vm6737_vm8 = vcmp.ge.f32.partialorder %v14535_v54, 0.0 }
 0x6cd   : > { %v6326_v52 = vsel %vm6070_vm5, %v5942_v34, %v6198_v40  ;;  %v5943_v29 = vsel %vm5687_vm6, %v5548_v43, %v5815_v15  ;;  %vm6741_vm9 = vcmp.ge.f32.partialorder %v14547_v8, 0.0  ;;  %v6865_v53 = vmul.f32 0.1, %v14535_v54  ;;  %v10373_v34 = vld [vmem:[%s11153_s27 + $0x238] sm:$0xff] }
 0x6ce   : > { %v5946_v11 = vsel %vm5690_vm7, %v5552_v2, %v5818_v57  ;;  %v5819_v1 = vmul.f32 0.1, %v5554_v17  ;;  %v5822_v59 = vmul.f32 0.1, %v5556_v58  ;;  %v6869_v61 = vmul.f32 0.1, %v14547_v8 }
 0x6cf   : > { %vm5691_vm10 = vcmp.ge.f32.partialorder %v5554_v17, 0.0  ;;  %vm5694_vm11 = vcmp.ge.f32.partialorder %v5556_v58, 0.0  ;;  %v6993_v9 = vsel %vm6737_vm8, %v14535_v54, %v6865_v53  ;;  %vm6736_vm12 = vcmp.ge.f32.partialorder %v14509_v44, 0.0 }
 0x6d0   : > { %vm6071_vm13 = vcmp.ge.f32.partialorder %v5943_v29, 0.0  ;;  %v6199_v23 = vmul.f32 0.1, %v5943_v29  ;;  %v6997_v38 = vsel %vm6741_vm9, %v14547_v8, %v6869_v61  ;;  %v7121_v31 = vmul.f32 0.01, %v6993_v9 }
 0x6d1   : > { %vm6074_vm14 = vcmp.ge.f32.partialorder %v5946_v11, 0.0  ;;  %v6202_v3 = vmul.f32 0.1, %v5946_v11  ;;  %v7125_v45 = vmul.f32 0.01, %v6997_v38  ;;  %vm6740_vm15 = vcmp.ge.f32.partialorder %v14512_v36, 0.0 }
 0x6d2   : > { %v5947_v42 = vsel %vm5691_vm10, %v5554_v17, %v5819_v1  ;;  %v5950_v10 = vsel %vm5694_vm11, %v5556_v58, %v5822_v59  ;;  %v6992_v54 = vsel %vm6736_vm12, %v14509_v44, %v14531_v28  ;;  %v6996_v14 = vsel %vm6740_vm15, %v14512_v36, %v14541_v35  ;;  %v10374_v28 = vld [vmem:[%s11153_s27 + $0x210] sm:$0xff]  ;;  %v15679_v35 = vld [vmem:[#allocation53_spill] sm:$0xff] }
 0x6d3   : > { %v7249_v26 = vadd.f32 %v10372_v48, %v7121_v31  ;;  %v7253_v8 = vadd.f32 %v10373_v34, %v7125_v45  ;;  %v7120_v4 = vmul.f32 0.01, %v6992_v54  ;;  %v7124_v43 = vmul.f32 0.01, %v6996_v14  ;;  %v15681_v38 = vld [vmem:[#allocation57_spill] sm:$0xff] }
 0x6d4   : > { %v6473_v19 = vmul.f32 %v14030_v50, %v6322_v22  ;;  %v6474_v0 = vmul.f32 %v14074_v47, %v6323_v18  ;;  %v6477_v46 = vmul.f32 %v14030_v50, %v6326_v52  ;;  %v5558_v41 = vadd.f32 %v5557_v55, %v15678_v6  ;;  %v5567_v55 = vpop.f32.mrf.mxu1 }
 0x6d5   : > { %v7345_v44 = vpack.c.bf16 %v7253_v8, %v7249_v26  ;;  %v7248_v2 = vadd.f32 %v10374_v28, %v7120_v4  ;;  %v7252_v36 = vadd.f32 %v10375_v63, %v7124_v43  ;;  %v5562_v16 = vadd.f32 %v5561_v27, %v15679_v35 }
 0x6d6   : > { %v6327_v21 = vsel %vm6071_vm13, %v5943_v29, %v6199_v23  ;;  %v6330_v30 = vsel %vm6074_vm14, %v5946_v11, %v6202_v3  ;;  %v6203_v62 = vmul.f32 0.1, %v5947_v42  ;;  %v6206_v40 = vmul.f32 0.1, %v5950_v10  ;;  %v15680_v29 = vld [vmem:[#allocation55_spill] sm:$0xff]  ;;  %v5571_v59 = vpop.f32.mrf.mxu1 }
 0x6d7   : > { %v6621_v15 = vadd.f32 %v14093_v5, %v6470_v49  ;;  %vm6075_vm0 = vcmp.ge.f32.partialorder %v5947_v42, 0.0  ;;  %vm6078_vm1 = vcmp.ge.f32.partialorder %v5950_v10, 0.0  ;;  %8076 = vmatprep.mubr.bf16.mxu1 %v7345_v44  ;;  %v7344_v57 = vpack.c.bf16 %v7252_v36, %v7248_v2  ;;  %v15682_v36 = vld [vmem:[#allocation59_spill] sm:$0xff] }
 0x6d8   : > { %v14616_v32 = vadd.f32 %v14044_v37, %v6473_v19  ;;  %v14619_v17 = vadd.f32 %v14093_v5, %v6474_v0  ;;  %v14622_v12 = vadd.f32 %v14044_v37, %v6477_v46  ;;  %v5823_v58 = vmul.f32 0.1, %v5558_v41  ;;  %v5573_v8 = vpop.f32.mrf.mxu1  ;;  %v10377_v0 = vld [vmem:[%s11153_s27 + $0x278] sm:$0xff] }
 0x6d9   : > { %v6478_v27 = vmul.f32 %v14074_v47, %v6327_v21  ;;  %v6481_v22 = vmul.f32 %v14030_v50, %v6330_v30  ;;  %8077 = vmatmul.mubr.bf16.gmra.mxu1 %v7344_v57  ;;  %vm5695_vm2 = vcmp.ge.f32.partialorder %v5558_v41, 0.0  ;;  %v5826_v49 = vmul.f32 0.1, %v5562_v16 }
 0x6da   : > { %v6331_v18 = vsel %vm6075_vm0, %v5947_v42, %v6203_v62  ;;  %v6334_v52 = vsel %vm6078_vm1, %v5950_v10, %v6206_v40  ;;  %vm5698_vm3 = vcmp.ge.f32.partialorder %v5562_v16, 0.0  ;;  %v5564_v53 = vadd.f32 %v5563_v13, %v15680_v29 }
 0x6db   : > { %vm6745_vm4 = vcmp.ge.f32.partialorder %v14582_v20, 0.0  ;;  %vm6749_vm5 = vcmp.ge.f32.partialorder %v6621_v15, 0.0  ;;  %v6873_v11 = vmul.f32 0.1, %v14582_v20  ;;  %v6877_v1 = vmul.f32 0.1, %v6621_v15 }
 0x6dc   : > { %v14630_v61 = vmul.f32 0.1, %v14616_v32  ;;  %v14633_v9 = vmul.f32 0.1, %v14622_v12  ;;  %v5951_v23 = vsel %vm5695_vm2, %v5558_v41, %v5823_v58  ;;  %v5566_v31 = vadd.f32 %v5565_v56, %v15681_v38  ;;  %v10376_v56 = vld [vmem:[%s11153_s27 + $0x258] sm:$0xff] }
 0x6dd   : > { %v14637_v3 = vadd.f32 %v14093_v5, %v6478_v27  ;;  %v14640_v13 = vadd.f32 %v14044_v37, %v6481_v22  ;;  %v14643_v45 = vmul.f32 %v14074_v47, %v6331_v18  ;;  %v5954_v42 = vsel %vm5698_vm3, %v5562_v16, %v5826_v49  ;;  %v5575_v16 = vpop.f32.mrf.mxu1  ;;  %v15683_v49 = vld [vmem:[#allocation37_spill] sm:$0xff] }
 0x6de   : > { %v14646_v10 = vmul.f32 %v14030_v50, %v6334_v52  ;;  %v5827_v54 = vmul.f32 0.1, %v5564_v53  ;;  %v7001_v14 = vsel %vm6745_vm4, %v14582_v20, %v6873_v11  ;;  %v7005_v48 = vsel %vm6749_vm5, %v6621_v15, %v6877_v1  ;;  %v10379_v15 = vld [vmem:[%s11153_s27 + $0x270] sm:$0xff]  ;;  %v15684_v52 = vld [vmem:[#allocation44_spill] sm:$0xff] }
 0x6df   : > { %vm6079_vm6 = vcmp.ge.f32.partialorder %v5951_v23, 0.0  ;;  %vm5699_vm7 = vcmp.ge.f32.partialorder %v5564_v53, 0.0  ;;  %v7129_v26 = vmul.f32 0.01, %v7001_v14  ;;  %v7133_v34 = vmul.f32 0.01, %v7005_v48 }
 0x6e0   : > { %vm6082_vm8 = vcmp.ge.f32.partialorder %v5954_v42, 0.0  ;;  %v6210_v4 = vmul.f32 0.1, %v5954_v42  ;;  %vm5702_vm9 = vcmp.ge.f32.partialorder %v5566_v31, 0.0  ;;  %v5830_v43 = vmul.f32 0.1, %v5566_v31 }
 0x6e1   : > { %v7257_v19 = vadd.f32 %v10376_v56, %v7129_v26  ;;  %v7261_v46 = vadd.f32 %v10377_v0, %v7133_v34  ;;  %vm6744_vm10 = vcmp.ge.f32.partialorder %v14569_v24, 0.0  ;;  %vm6748_vm11 = vcmp.ge.f32.partialorder %v14573_v7, 0.0 }
 0x6e2   : > { %v6207_v20 = vmul.f32 0.1, %v5951_v23  ;;  %v5955_v6 = vsel %vm5699_vm7, %v5564_v53, %v5827_v54  ;;  %v7000_v41 = vsel %vm6744_vm10, %v14569_v24, %v14579_v25  ;;  %v7004_v44 = vsel %vm6748_vm11, %v14573_v7, %v14585_v39  ;;  %v10378_v24 = vld [vmem:[%s11153_s27 + $0x250] sm:$0xff]  ;;  %v5577_v53 = vpop.f32.mrf.mxu1 }
 0x6e3   : > { %v7349_v28 = vpack.c.bf16 %v7261_v46, %v7257_v19  ;;  %v7128_v2 = vmul.f32 0.01, %v7000_v41  ;;  %v7132_v63 = vmul.f32 0.01, %v7004_v44  ;;  %v5568_v35 = vadd.f32 %v5567_v55, %v15682_v36 }
 0x6e4   : > { %v14659_v21 = vmul.f32 0.1, %v14640_v13  ;;  %v6338_v30 = vsel %vm6082_vm8, %v5954_v42, %v6210_v4  ;;  %v5958_v62 = vsel %vm5702_vm9, %v5566_v31, %v5830_v43  ;;  %v5572_v40 = vadd.f32 %v5571_v59, %v13920_v60  ;;  %v5581_v48 = vpop.f32.mrf.mxu1 }
 0x6e5   : > { %8086 = vmatprep.mubr.bf16.mxu1 %v7349_v28  ;;  %v7256_v25 = vadd.f32 %v10378_v24, %v7128_v2  ;;  %v7260_v7 = vadd.f32 %v10379_v15, %v7132_v63  ;;  %vm5703_vm12 = vcmp.ge.f32.partialorder %v5568_v35, 0.0  ;;  %v5831_v39 = vmul.f32 0.1, %v5568_v35  ;;  %v15685_v24 = vld [vmem:[#allocation43_spill] sm:$0xff] }
 0x6e6   : > { %v6335_v57 = vsel %vm6079_vm6, %v5951_v23, %v6207_v20  ;;  %v6211_v55 = vmul.f32 0.1, %v5955_v6  ;;  %vm5706_vm13 = vcmp.ge.f32.partialorder %v5572_v40, 0.0  ;;  %v5834_v58 = vmul.f32 0.1, %v5572_v40  ;;  %v5583_v28 = vpop.f32.mrf.mxu1 }
 0x6e7   : > { %v7348_v27 = vpack.c.bf16 %v7260_v7, %v7256_v25  ;;  %v5959_v22 = vsel %vm5703_vm12, %v5568_v35, %v5831_v39  ;;  %v5574_v18 = vadd.f32 %v5573_v8, %v15683_v49  ;;  %v5576_v29 = vadd.f32 %v5575_v16, %v15684_v52  ;;  %v10381_v35 = vld [vmem:[%s11153_s27 + $0x2b8] sm:$0xff]  ;;  %v14706_v52 = vpop.f32.mrf.mxu0 }
 0x6e8   : > { %v6489_v60 = vmul.f32 %v14030_v50, %v6338_v30  ;;  %vm6083_vm14 = vcmp.ge.f32.partialorder %v5955_v6, 0.0  ;;  %v6214_v11 = vmul.f32 0.1, %v5958_v62  ;;  %v5962_v1 = vsel %vm5706_vm13, %v5572_v40, %v5834_v58  ;;  %v15686_v39 = vld [vmem:[#allocation47_spill] sm:$0xff] }
 0x6e9   : > { %vm6086_vm15 = vcmp.ge.f32.partialorder %v5958_v62, 0.0  ;;  %8087 = vmatmul.mubr.bf16.gmra.mxu1 %v7348_v27  ;;  %v6215_v59 = vmul.f32 0.1, %v5959_v22  ;;  %v6218_v38 = vmul.f32 0.1, %v5962_v1  ;;  %vm6753_vm0 = vcmp.ge.f32.partialorder %v14619_v17, 0.0 }
 0x6ea   : > { %vm6090_vm1 = vcmp.ge.f32.partialorder %v5962_v1, 0.0  ;;  %vm5710_vm2 = vcmp.ge.f32.partialorder %v5576_v29, 0.0  ;;  %v5838_v23 = vmul.f32 0.1, %v5576_v29  ;;  %v6881_v31 = vmul.f32 0.1, %v14619_v17 }
 0x6eb   : > { %v6339_v42 = vsel %vm6083_vm14, %v5955_v6, %v6211_v55  ;;  %v5835_v54 = vmul.f32 0.1, %v5574_v18  ;;  %vm6757_vm3 = vcmp.ge.f32.partialorder %v14637_v3, 0.0  ;;  %v6885_v14 = vmul.f32 0.1, %v14637_v3  ;;  %v5585_v55 = vpop.f32.mrf.mxu1 }
 0x6ec   : > { %v14676_v26 = vadd.f32 %v14044_v37, %v14646_v10  ;;  %v6342_v34 = vsel %vm6086_vm15, %v5958_v62, %v6214_v11  ;;  %vm6087_vm4 = vcmp.ge.f32.partialorder %v5959_v22, 0.0  ;;  %vm5707_vm5 = vcmp.ge.f32.partialorder %v5574_v18, 0.0 }
 0x6ed   : > { %v6486_v8 = vmul.f32 %v14074_v47, %v6335_v57  ;;  %v6346_v4 = vsel %vm6090_vm1, %v5962_v1, %v6218_v38  ;;  %v5966_v43 = vsel %vm5710_vm2, %v5576_v29, %v5838_v23  ;;  %v7009_v56 = vsel %vm6753_vm0, %v14619_v17, %v6881_v31  ;;  %v10380_v17 = vld [vmem:[%s11153_s27 + $0x298] sm:$0xff]  ;;  %v5587_v31 = vpop.f32.mrf.mxu1 }
 0x6ee   : > { %v14683_v19 = vadd.f32 %v14044_v37, %v6489_v60  ;;  %v6490_v0 = vmul.f32 %v14074_v47, %v6339_v42  ;;  %v7013_v10 = vsel %vm6757_vm3, %v14637_v3, %v6885_v14  ;;  %v7137_v46 = vmul.f32 0.01, %v7009_v56  ;;  %v15687_v60 = vld [vmem:[#allocation48_spill] sm:$0xff]  ;;  %v14723_v56 = vpop.f32.mrf.mxu0 }
 0x6ef   : > { %v6493_v20 = vmul.f32 %v14030_v50, %v6342_v34  ;;  %v6343_v6 = vsel %vm6087_vm4, %v5959_v22, %v6215_v59  ;;  %v5963_v41 = vsel %vm5707_vm5, %v5574_v18, %v5835_v54  ;;  %v7141_v44 = vmul.f32 0.01, %v7013_v10  ;;  %v10383_v22 = vld [vmem:[%s11153_s27 + $0x2b0] sm:$0xff] }
 0x6f0   : > { %v6497_v2 = vmul.f32 %v14030_v50, %v6346_v4  ;;  %vm6094_vm6 = vcmp.ge.f32.partialorder %v5966_v43, 0.0  ;;  %v6222_v63 = vmul.f32 0.1, %v5966_v43  ;;  %vm6752_vm7 = vcmp.ge.f32.partialorder %v14616_v32, 0.0  ;;  %v15688_v4 = vld [vmem:[#allocation52_spill] sm:$0xff] }
 0x6f1   : > { %v7265_v36 = vadd.f32 %v10380_v17, %v7137_v46  ;;  %v7269_v16 = vadd.f32 %v10381_v35, %v7141_v44  ;;  %vm6756_vm8 = vcmp.ge.f32.partialorder %v14622_v12, 0.0  ;;  %v7008_v3 = vsel %vm6752_vm7, %v14616_v32, %v14630_v61  ;;  %v5591_v44 = vpop.f32.mrf.mxu1  ;;  %v14743_v35 = vpop.f32.mrf.mxu0 }
 0x6f2   : > { %v6219_v30 = vmul.f32 0.1, %v5963_v41  ;;  %v7012_v62 = vsel %vm6756_vm8, %v14622_v12, %v14633_v9  ;;  %v7136_v40 = vmul.f32 0.01, %v7008_v3  ;;  %v5578_v25 = vadd.f32 %v5577_v53, %v15685_v24  ;;  %v10382_v12 = vld [vmem:[%s11153_s27 + $0x290] sm:$0xff] }
 0x6f3   : > { %vm6091_vm9 = vcmp.ge.f32.partialorder %v5963_v41, 0.0  ;;  %v7353_v15 = vpack.c.bf16 %v7269_v16, %v7265_v36  ;;  %v7140_v7 = vmul.f32 0.01, %v7012_v62  ;;  %v5582_v57 = vadd.f32 %v5581_v48, %v15686_v39 }
 0x6f4   : > { %v14700_v58 = vadd.f32 %v14044_v37, %v6493_v20  ;;  %v6350_v32 = vsel %vm6094_vm6, %v5966_v43, %v6222_v63  ;;  %vm5711_vm10 = vcmp.ge.f32.partialorder %v5578_v25, 0.0  ;;  %v5839_v61 = vmul.f32 0.1, %v5578_v25 }
 0x6f5   : > { %v6494_v27 = vmul.f32 %v14074_v47, %v6343_v6  ;;  %8096 = vmatprep.mubr.bf16.mxu1 %v7353_v15  ;;  %v7264_v9 = vadd.f32 %v10382_v12, %v7136_v40  ;;  %v7268_v49 = vadd.f32 %v10383_v22, %v7140_v7  ;;  %v5842_v18 = vmul.f32 0.1, %v5582_v57  ;;  %v10384_v12 = vld [vmem:[%s11153_s27 + $0x2d8] sm:$0xff] }
 0x6f6   : > { %v6347_v29 = vsel %vm6091_vm9, %v5963_v41, %v6219_v30  ;;  %v5967_v53 = vsel %vm5711_vm10, %v5578_v25, %v5839_v61  ;;  %vm5714_vm11 = vcmp.ge.f32.partialorder %v5582_v57, 0.0  ;;  %v5584_v11 = vadd.f32 %v5583_v28, %v15687_v60  ;;  %v5593_v25 = vpop.f32.mrf.mxu1  ;;  %v10385_v22 = vld [vmem:[%s11153_s27 + $0x2f8] sm:$0xff] }
 0x6f7   : > { %v6633_v1 = vadd.f32 %v14093_v5, %v14643_v45  ;;  %v14713_v59 = vadd.f32 %v14044_v37, %v6497_v2  ;;  %v6501_v38 = vmul.f32 %v14030_v50, %v6350_v32  ;;  %v7352_v23 = vpack.c.bf16 %v7268_v49, %v7264_v9 }
 0x6f8   : > { %v6892_v42 = vmul.f32 0.1, %v14676_v26  ;;  %v6637_v54 = vadd.f32 %v14093_v5, %v6486_v8  ;;  %v14719_v14 = vmul.f32 0.1, %v14683_v19  ;;  %v6223_v48 = vmul.f32 0.1, %v5967_v53 }
 0x6f9   : > { %v6498_v34 = vmul.f32 %v14074_v47, %v6347_v29  ;;  %8097 = vmatmul.mubr.bf16.gmra.mxu1 %v7352_v23  ;;  %vm6095_vm12 = vcmp.ge.f32.partialorder %v5967_v53, 0.0  ;;  %v5970_v45 = vsel %vm5714_vm11, %v5582_v57, %v5842_v18  ;;  %v5586_v43 = vadd.f32 %v5585_v55, %v15688_v4  ;;  %v15689_v29 = vld [vmem:[#allocation68_spill] sm:$0xff]  ;;  %v10387_v23 = vld [vmem:[%s11153_s27 + $0x2f0] sm:$0xff] }
 0x6fa   : > { %v14726_v10 = vadd.f32 %v14093_v5, %v6490_v0  ;;  %v14729_v46 = vmul.f32 0.1, %v14700_v58  ;;  %v14732_v8 = vadd.f32 %v14093_v5, %v6494_v27  ;;  %v5843_v20 = vmul.f32 0.1, %v5584_v11  ;;  %v14756_v27 = vpop.f32.mrf.mxu0 }
 0x6fb   : > { %v14735_v6 = vmul.f32 0.1, %v14713_v59  ;;  %v14738_v41 = vadd.f32 %v14044_v37, %v6501_v38  ;;  %vm5715_vm13 = vcmp.ge.f32.partialorder %v5584_v11, 0.0  ;;  %vm6761_vm14 = vcmp.ge.f32.partialorder %v6633_v1, 0.0  ;;  %v5595_v38 = vpop.f32.mrf.mxu1 }
 0x6fc   : > { %v6351_v28 = vsel %vm6095_vm12, %v5967_v53, %v6223_v48  ;;  %v6226_v2 = vmul.f32 0.1, %v5970_v45  ;;  %vm6765_vm15 = vcmp.ge.f32.partialorder %v6637_v54, 0.0  ;;  %v6889_v0 = vmul.f32 0.1, %v6633_v1 }
 0x6fd   : > { %v14741_v63 = vadd.f32 %v14093_v5, %v6498_v34  ;;  %vm6098_vm0 = vcmp.ge.f32.partialorder %v5970_v45, 0.0  ;;  %v5846_v17 = vmul.f32 0.1, %v5586_v43  ;;  %v6893_v36 = vmul.f32 0.1, %v6637_v54 }
 0x6fe   : > { %v5971_v16 = vsel %vm5715_vm13, %v5584_v11, %v5843_v20  ;;  %vm5718_vm1 = vcmp.ge.f32.partialorder %v5586_v43, 0.0  ;;  %v7017_v3 = vsel %vm6761_vm14, %v6633_v1, %v6889_v0  ;;  %vm6760_vm2 = vcmp.ge.f32.partialorder %v14640_v13, 0.0  ;;  %v10386_v11 = vld [vmem:[%s11153_s27 + $0x2d0] sm:$0xff] }
 0x6ff   : > { %v14747_v30 = vmul.f32 0.1, %v14738_v41  ;;  %v14750_v62 = vmul.f32 %v14074_v47, %v6351_v28  ;;  %v7021_v40 = vsel %vm6765_vm15, %v6637_v54, %v6893_v36  ;;  %v7145_v24 = vmul.f32 0.01, %v7017_v3 }
 0x700   : > { %v6354_v15 = vsel %vm6098_vm0, %v5970_v45, %v6226_v2  ;;  %v7149_v7 = vmul.f32 0.01, %v7021_v40  ;;  %vm6764_vm3 = vcmp.ge.f32.partialorder %v14676_v26, 0.0  ;;  %v7016_v39 = vsel %vm6760_vm2, %v14640_v13, %v14659_v21  ;;  %v15690_v21 = vld [vmem:[#allocation51_spill] sm:$0xff]  ;;  %v15691_v45 = vld [vmem:[#allocation69_spill] sm:$0xff] }
 0x701   : > { %v6227_v57 = vmul.f32 0.1, %v5971_v16  ;;  %v5974_v55 = vsel %vm5718_vm1, %v5586_v43, %v5846_v17  ;;  %v7020_v32 = vsel %vm6764_vm3, %v14676_v26, %v6892_v42  ;;  %v7144_v61 = vmul.f32 0.01, %v7016_v39  ;;  %v14766_v43 = vpop.f32.mrf.mxu0 }
 0x702   : > { %v7273_v9 = vadd.f32 %v10384_v12, %v7145_v24  ;;  %v7277_v49 = vadd.f32 %v10385_v22, %v7149_v7  ;;  %v7148_v18 = vmul.f32 0.01, %v7020_v32  ;;  %v5588_v53 = vadd.f32 %v5587_v31, %v15689_v29 }
 0x703   : > { %v6505_v60 = vmul.f32 %v14030_v50, %v6354_v15  ;;  %vm6099_vm4 = vcmp.ge.f32.partialorder %v5971_v16, 0.0  ;;  %v7272_v13 = vadd.f32 %v10386_v11, %v7144_v61  ;;  %v5592_v1 = vadd.f32 %v5591_v44, %v15690_v21  ;;  %v14775_v24 = vpop.f32.mrf.mxu0  ;;  %v5597_v11 = vpop.f32.mrf.mxu1  ;;  %v10388_v21 = vld [vmem:[%s11153_s27 + $0x318] sm:$0xff] }
 0x704   : > { %v7357_v26 = vpack.c.bf16 %v7277_v49, %v7273_v9  ;;  %v7276_v42 = vadd.f32 %v10387_v23, %v7148_v18  ;;  %vm5719_vm5 = vcmp.ge.f32.partialorder %v5588_v53, 0.0  ;;  %v5847_v54 = vmul.f32 0.1, %v5588_v53 }
 0x705   : > { %v6230_v48 = vmul.f32 0.1, %v5974_v55  ;;  %vm5722_vm6 = vcmp.ge.f32.partialorder %v5592_v1, 0.0  ;;  %v5850_v34 = vmul.f32 0.1, %v5592_v1  ;;  %v5594_v4 = vadd.f32 %v5593_v25, %v15691_v45  ;;  %v14787_v18 = vpop.f32.mrf.mxu0 }
 0x706   : > { %v6355_v31 = vsel %vm6099_vm4, %v5971_v16, %v6227_v57  ;;  %8106 = vmatprep.mubr.bf16.mxu1 %v7357_v26  ;;  %v7356_v20 = vpack.c.bf16 %v7276_v42, %v7272_v13  ;;  %v5975_v28 = vsel %vm5719_vm5, %v5588_v53, %v5847_v54  ;;  %v5596_v2 = vadd.f32 %v5595_v38, %v14069_v33  ;;  %v10389_v38 = vld [vmem:[%s11153_s27 + $0x338] sm:$0xff] }
 0x707   : > { %v14770_v44 = vadd.f32 %v14044_v37, %v6505_v60  ;;  %vm6102_vm7 = vcmp.ge.f32.partialorder %v5974_v55, 0.0  ;;  %v6231_v0 = vmul.f32 0.1, %v5975_v28  ;;  %vm5723_vm8 = vcmp.ge.f32.partialorder %v5594_v4, 0.0 }
 0x708   : > { %8107 = vmatmul.mubr.bf16.gmra.mxu1 %v7356_v20  ;;  %vm6103_vm9 = vcmp.ge.f32.partialorder %v5975_v28, 0.0  ;;  %v5978_v17 = vsel %vm5722_vm6, %v5592_v1, %v5850_v34  ;;  %v5851_v36 = vmul.f32 0.1, %v5594_v4  ;;  %vm5726_vm10 = vcmp.ge.f32.partialorder %v5596_v2, 0.0  ;;  %v14805_v34 = vpop.f32.mrf.mxu0 }
 0x709   : > { %v6506_v3 = vmul.f32 %v14074_v47, %v6355_v31  ;;  %v5854_v40 = vmul.f32 0.1, %v5596_v2  ;;  %vm6769_vm11 = vcmp.ge.f32.partialorder %v14726_v10, 0.0  ;;  %v6897_v16 = vmul.f32 0.1, %v14726_v10 }
 0x70a   : > { %v6358_v33 = vsel %vm6102_vm7, %v5974_v55, %v6230_v48  ;;  %v5979_v25 = vsel %vm5723_vm8, %v5594_v4, %v5851_v36  ;;  %vm6773_vm12 = vcmp.ge.f32.partialorder %v14732_v8, 0.0  ;;  %v6901_v15 = vmul.f32 0.1, %v14732_v8 }
 0x70b   : > { %v6359_v7 = vsel %vm6103_vm9, %v5975_v28, %v6231_v0  ;;  %v6234_v39 = vmul.f32 0.1, %v5978_v17  ;;  %v6235_v57 = vmul.f32 0.1, %v5979_v25  ;;  %v5982_v32 = vsel %vm5726_vm10, %v5596_v2, %v5854_v40  ;;  %v10390_v2 = vld [vmem:[%s11153_s27 + $0x310] sm:$0xff]  ;;  %v14815_v40 = vpop.f32.mrf.mxu0 }
 0x70c   : > { %v6653_v61 = vadd.f32 %v14093_v5, %v14750_v62  ;;  %vm6106_vm13 = vcmp.ge.f32.partialorder %v5978_v17, 0.0  ;;  %vm6107_vm14 = vcmp.ge.f32.partialorder %v5979_v25, 0.0  ;;  %v7025_v12 = vsel %vm6769_vm11, %v14726_v10, %v6897_v16 }
 0x70d   : > { %v14783_v9 = vmul.f32 0.1, %v14770_v44  ;;  %v6509_v55 = vmul.f32 %v14030_v50, %v6358_v33  ;;  %v7029_v22 = vsel %vm6773_vm12, %v14732_v8, %v6901_v15  ;;  %v7153_v49 = vmul.f32 0.01, %v7025_v12 }
 0x70e   : > { %v14790_v29 = vadd.f32 %v14093_v5, %v6506_v3  ;;  %v6510_v62 = vmul.f32 %v14074_v47, %v6359_v7  ;;  %v6238_v53 = vmul.f32 0.1, %v5982_v32  ;;  %v7157_v60 = vmul.f32 0.01, %v7029_v22  ;;  %v14826_v22 = vpop.f32.mrf.mxu0 }
 0x70f   : > { %v6362_v10 = vsel %vm6106_vm13, %v5978_v17, %v6234_v39  ;;  %v6363_v13 = vsel %vm6107_vm14, %v5979_v25, %v6235_v57  ;;  %vm6110_vm15 = vcmp.ge.f32.partialorder %v5982_v32, 0.0  ;;  %vm6768_vm0 = vcmp.ge.f32.partialorder %v14683_v19, 0.0 }
 0x710   : > { %v7281_v1 = vadd.f32 %v10388_v21, %v7153_v49  ;;  %v7285_v8 = vadd.f32 %v10389_v38, %v7157_v60  ;;  %vm6772_vm1 = vcmp.ge.f32.partialorder %v14700_v58, 0.0  ;;  %v7024_v26 = vsel %vm6768_vm0, %v14683_v19, %v14719_v14 }
 0x711   : > { %v14800_v23 = vadd.f32 %v14044_v37, %v6509_v55  ;;  %v7028_v42 = vsel %vm6772_vm1, %v14700_v58, %v14729_v46  ;;  %v7152_v54 = vmul.f32 0.01, %v7024_v26  ;;  %v5598_v48 = vadd.f32 %v5597_v11, %v14127_v51  ;;  %v10391_v58 = vld [vmem:[%s11153_s27 + $0x330] sm:$0xff] }
 0x712   : > { %v6513_v45 = vmul.f32 %v14030_v50, %v6362_v10  ;;  %v6366_v4 = vsel %vm6110_vm15, %v5982_v32, %v6238_v53  ;;  %v7361_v31 = vpack.c.bf16 %v7285_v8, %v7281_v1  ;;  %v7156_v20 = vmul.f32 0.01, %v7028_v42  ;;  %v10393_v53 = vld [vmem:[%s11153_s27 + $0x378] sm:$0xff]  ;;  %v10394_v10 = vld [vmem:[%s11153_s27 + $0x350] sm:$0xff] }
 0x713   : > { %v6661_v28 = vadd.f32 %v14093_v5, %v6510_v62  ;;  %v6514_v19 = vmul.f32 %v14074_v47, %v6363_v13  ;;  %vm5727_vm2 = vcmp.ge.f32.partialorder %v5598_v48, 0.0  ;;  %v5855_v14 = vmul.f32 0.1, %v5598_v48 }
 0x714   : > { %8116 = vmatprep.mubr.bf16.mxu1 %v7361_v31  ;;  %v7280_v0 = vadd.f32 %v10390_v2, %v7152_v54  ;;  %v7284_v46 = vadd.f32 %v10391_v58, %v7156_v20  ;;  %vm6777_vm3 = vcmp.ge.f32.partialorder %v14741_v63, 0.0  ;;  %vm6781_vm4 = vcmp.ge.f32.partialorder %v6653_v61, 0.0 }
 0x715   : > { %v6517_v51 = vmul.f32 %v14030_v50, %v6366_v4  ;;  %v5983_v17 = vsel %vm5727_vm2, %v5598_v48, %v5855_v14  ;;  %v6905_v36 = vmul.f32 0.1, %v14741_v63  ;;  %v6909_v3 = vmul.f32 0.1, %v6653_v61  ;;  %v10396_v14 = vld [vmem:[%s11153_s27 + $0x398] sm:$0xff] }
 0x716   : > { %v7360_v16 = vpack.c.bf16 %v7284_v46, %v7280_v0  ;;  %vm6111_vm5 = vcmp.ge.f32.partialorder %v5983_v17, 0.0  ;;  %v6239_v33 = vmul.f32 0.1, %v5983_v17  ;;  %vm6776_vm6 = vcmp.ge.f32.partialorder %v14713_v59, 0.0  ;;  %v10397_v0 = vld [vmem:[%s11153_s27 + $0x3b8] sm:$0xff] }
 0x717   : > { %v7033_v25 = vsel %vm6777_vm3, %v14741_v63, %v6905_v36  ;;  %v7037_v15 = vsel %vm6781_vm4, %v6653_v61, %v6909_v3  ;;  %vm6780_vm7 = vcmp.ge.f32.partialorder %v14738_v41, 0.0  ;;  %v7032_v50 = vsel %vm6776_vm6, %v14713_v59, %v14735_v6  ;;  %v10392_v6 = vld [vmem:[%s11153_s27 + $0x358] sm:$0xff] }
 0x718   : > { %8117 = vmatmul.mubr.bf16.gmra.mxu1 %v7360_v16  ;;  %v6367_v7 = vsel %vm6111_vm5, %v5983_v17, %v6239_v33  ;;  %v7161_v39 = vmul.f32 0.01, %v7033_v25  ;;  %v7165_v57 = vmul.f32 0.01, %v7037_v15  ;;  %v7036_v32 = vsel %vm6780_vm7, %v14738_v41, %v14747_v30  ;;  %v10395_v30 = vld [vmem:[%s11153_s27 + $0x370] sm:$0xff] }
 0x719   : > { %v6916_v12 = vmul.f32 0.1, %v14800_v23  ;;  %v6518_v63 = vmul.f32 %v14074_v47, %v6367_v7  ;;  %v7160_v61 = vmul.f32 0.01, %v7032_v50  ;;  %v7164_v55 = vmul.f32 0.01, %v7036_v32 }
 0x71a   : > { %v6664_v49 = vadd.f32 %v14044_v37, %v6513_v45  ;;  %v6665_v59 = vadd.f32 %v14093_v5, %v6514_v19  ;;  %v7289_v62 = vadd.f32 %v10392_v6, %v7161_v39  ;;  %v7293_v60 = vadd.f32 %v10393_v53, %v7165_v57  ;;  %v7439_v32 = vld [vmem:[#allocation15 + $0x4] ss:$8 sm:$0x3]  ;;  %v15692_v53 = vld [vmem:[#allocation62_spill] sm:$0xff] }
 0x71b   : > { %v6668_v11 = vadd.f32 %v14044_v37, %v6517_v51  ;;  %v7288_v41 = vadd.f32 %v10394_v10, %v7160_v61  ;;  %v7292_v13 = vadd.f32 %v10395_v30, %v7164_v55  ;;  %vm6785_vm8 = vcmp.ge.f32.partialorder %v14790_v29, 0.0  ;;  %v14840_v37 = vpop.f32.mrf.mxu0  ;;  %v10399_v51 = vld [vmem:[%s11153_s27 + $0x390] sm:$0xff]  ;;  %v10401_v61 = vld [vmem:[%s11153_s27 + $0x3f8] sm:$0xff] }
 0x71c   : > { %v7365_v47 = vpack.c.bf16 %v7293_v60, %v7289_v62  ;;  %vm6789_vm9 = vcmp.ge.f32.partialorder %v6661_v28, 0.0  ;;  %v6913_v21 = vmul.f32 0.1, %v14790_v29  ;;  %v6917_v1 = vmul.f32 0.1, %v6661_v28 }
 0x71d   : > { %v6669_v38 = vadd.f32 %v14093_v5, %v6518_v63  ;;  %v7364_v8 = vpack.c.bf16 %v7292_v13, %v7288_v41  ;;  %vm6784_vm10 = vcmp.ge.f32.partialorder %v14770_v44, 0.0  ;;  %vm6788_vm11 = vcmp.ge.f32.partialorder %v14800_v23, 0.0  ;;  %v10402_v41 = vld [vmem:[%s11153_s27 + $0x3f0] sm:$0xff] }
 0x71e   : > { %8126 = vmatprep.mubr.bf16.mxu1 %v7365_v47  ;;  %v7041_v26 = vsel %vm6785_vm8, %v14790_v29, %v6913_v21  ;;  %v7045_v42 = vsel %vm6789_vm9, %v6661_v28, %v6917_v1  ;;  %v7040_v54 = vsel %vm6784_vm10, %v14770_v44, %v14783_v9  ;;  %v7044_v48 = vsel %vm6788_vm11, %v14800_v23, %v6916_v12  ;;  %v14848_v29 = vpop.f32.mrf.mxu0  ;;  %v10398_v44 = vld [vmem:[%s11153_s27 + $0x3b0] sm:$0xff]  ;;  %v10400_v12 = vld [vmem:[%s11153_s27 + $0x3d8] sm:$0xff] }
 0x71f   : > { %v6920_v5 = vmul.f32 0.1, %v6664_v49  ;;  %v7169_v45 = vmul.f32 0.01, %v7041_v26  ;;  %v7173_v4 = vmul.f32 0.01, %v7045_v42  ;;  %v14857_v60 = vrot.slane %v7439_v32, %v15692_v53 }
 0x720   : > { %v6924_v31 = vmul.f32 0.1, %v6668_v11  ;;  %8127 = vmatmul.mubr.bf16.gmra.mxu1 %v7364_v8  ;;  %v7168_v20 = vmul.f32 0.01, %v7040_v54  ;;  %v7172_v19 = vmul.f32 0.01, %v7044_v48  ;;  %v14852_v50 = vpop.f32.mrf.mxu0 }
 0x721   : > { %v7297_v2 = vadd.f32 %v10396_v14, %v7169_v45  ;;  %v7301_v58 = vadd.f32 %v10397_v0, %v7173_v4  ;;  %vm6793_vm12 = vcmp.ge.f32.partialorder %v6665_v59, 0.0  ;;  %vm6797_vm13 = vcmp.ge.f32.partialorder %v6669_v38, 0.0  ;;  %v10403_v47 = vld [vmem:[%s11153_s27 + $0x3d0] sm:$0xff] }
 0x722   : > { %v7300_v9 = vadd.f32 %v10398_v44, %v7172_v19  ;;  %v6921_v28 = vmul.f32 0.1, %v6665_v59  ;;  %v6925_v23 = vmul.f32 0.1, %v6669_v38  ;;  %vm6792_vm14 = vcmp.ge.f32.partialorder %v6664_v49, 0.0  ;;  %v14862_v10 = vpop.f32.mrf.mxu0 }
 0x723   : > { %v7369_v46 = vpack.c.bf16 %v7301_v58, %v7297_v2  ;;  %vm6796_vm15 = vcmp.ge.f32.partialorder %v6668_v11, 0.0  ;;  %v7296_v17 = vadd.f32 %v10399_v51, %v7168_v20  ;;  %v7048_v25 = vsel %vm6792_vm14, %v6664_v49, %v6920_v5  ;;  %v15693_v49 = vld [vmem:[#allocation63_spill] sm:$0xff] }
 0x724   : > { %v7049_v36 = vsel %vm6793_vm12, %v6665_v59, %v6921_v28  ;;  %v7053_v3 = vsel %vm6797_vm13, %v6669_v38, %v6925_v23  ;;  %v7052_v15 = vsel %vm6796_vm15, %v6668_v11, %v6924_v31  ;;  %v7176_v59 = vmul.f32 0.01, %v7048_v25  ;;  %v14872_v26 = vpop.f32.mrf.mxu0 }
 0x725   : > { %8136 = vmatprep.mubr.bf16.mxu1 %v7369_v46  ;;  %v7177_v16 = vmul.f32 0.01, %v7049_v36  ;;  %v7181_v33 = vmul.f32 0.01, %v7053_v3  ;;  %v7368_v7 = vpack.c.bf16 %v7300_v9, %v7296_v17  ;;  %v7180_v39 = vmul.f32 0.01, %v7052_v15 }
 0x726   : > { %v7998_v57 = vpop.f32.mrf.mxu1  ;;  %v14860_v11 = vrot.slane %v7439_v32, %v15693_v49  ;;  %v7304_v21 = vadd.f32 %v10403_v47, %v7176_v59  ;;  %v7806_v1 = vadd.f32 %v14706_v52, %v14857_v60  ;;  %v7810_v8 = vadd.f32 %v14743_v35, %v14857_v60  ;;  %v14876_v20 = vpop.f32.mrf.mxu0 }
 0x727   : > { %v7305_v63 = vadd.f32 %v10400_v12, %v7177_v16  ;;  %v7309_v55 = vadd.f32 %v10401_v61, %v7181_v33  ;;  %v7308_v30 = vadd.f32 %v10402_v41, %v7180_v39  ;;  %v7820_v9 = vadd.f32 %v14787_v18, %v14857_v60 }
 0x728   : > { %8137 = vmatmul.mubr.bf16.gmra.mxu1 %v7368_v7  ;;  %v8000_v6 = vpop.f32.mrf.mxu1  ;;  %v7808_v38 = vadd.f32 %v14723_v56, %v14860_v11  ;;  %v7812_v48 = vadd.f32 %v14756_v27, %v14860_v11  ;;  %v7999_v5 = vadd.f32 %v7998_v57, %v7806_v1  ;;  %v7818_v2 = vadd.f32 %v14775_v24, %v14860_v11  ;;  %v14884_v28 = vpop.f32.mrf.mxu0 }
 0x729   : > { %v7373_v62 = vpack.c.bf16 %v7309_v55, %v7305_v63  ;;  %v7372_v42 = vpack.c.bf16 %v7308_v30, %v7304_v21  ;;  %v7816_v27 = vadd.f32 %v14766_v43, %v14857_v60  ;;  %v7822_v24 = vadd.f32 %v14805_v34, %v14860_v11 }
 0x72a   : > { %v8002_v13 = vpop.f32.mrf.mxu1  ;;  %v8001_v45 = vadd.f32 %v8000_v6, %v7808_v38  ;;  %v8221_v52 = vmul.f32 0.1, %v7999_v5  ;;  %vm8157_vm3 = vcmp.ge.f32.partialorder %v7999_v5, 0.0  ;;  %v14889_v25 = vpop.f32.mrf.mxu0  ;;  %v7826_v49 = vadd.f32 %v14815_v40, %v14857_v60 }
 0x72b   : > { %8146 = vmatprep.mubr.bf16.mxu1 %v7373_v62  ;;  %v8003_v4 = vadd.f32 %v8002_v13, %v7810_v8  ;;  %v7828_v62 = vadd.f32 %v14826_v22, %v14860_v11  ;;  %v7830_v30 = vadd.f32 %v14840_v37, %v14857_v60  ;;  %v7832_v1 = vadd.f32 %v14848_v29, %v14860_v11 }
 0x72c   : > { %v8004_v54 = vpop.f32.mrf.mxu1  ;;  %vm8158_vm0 = vcmp.ge.f32.partialorder %v8001_v45, 0.0  ;;  %v8222_v56 = vmul.f32 0.1, %v8001_v45  ;;  %v8285_v51 = vsel %vm8157_vm3, %v7999_v5, %v8221_v52  ;;  %v14891_v12 = vpop.f32.mrf.mxu0 }
 0x72d   : > { %v8005_v31 = vadd.f32 %v8004_v54, %v7812_v48  ;;  %vm8159_vm1 = vcmp.ge.f32.partialorder %v8003_v4, 0.0  ;;  %v8223_v19 = vmul.f32 0.1, %v8003_v4 }
 0x72e   : > { %v8286_v46 = vsel %vm8158_vm0, %v8001_v45, %v8222_v56  ;;  %v14895_v53 = vpop.f32.mrf.mxu0 }
 0x72f   : > { %vm8160_vm2 = vcmp.ge.f32.partialorder %v8005_v31, 0.0  ;;  %v8224_v35 = vmul.f32 0.1, %v8005_v31  ;;  %v8287_v0 = vsel %vm8159_vm1, %v8003_v4, %v8223_v19 }
 0x730   : > { %8147 = vmatmul.mubr.bf16.gmra.mxu1 %v7372_v42  ;;  %v8349_v16 = vpack.c.bf16 %v8287_v0, %v8285_v51  ;;  %v14903_v38 = vpop.f32.mrf.mxu0 }
 0x731   : > { %v8288_v44 = vsel %vm8160_vm2, %v8005_v31, %v8224_v35 }
 0x732   : > { %v8350_v3 = vpack.c.bf16 %v8288_v44, %v8286_v46  ;;  %v14905_v40 = vpop.f32.mrf.mxu0  ;;  %v7842_v46 = vadd.f32 %v14876_v20, %v14860_v11 }
 0x733   : > { %v8008_v14 = vpop.f32.mrf.mxu1 }
 0x734   : > { %v8009_v17 = vadd.f32 %v8008_v14, %v7816_v27  ;;  %8542 = vmatprep.mubr.bf16.mxu0 %v8350_v3  ;;  %v14907_v56 = vpop.f32.mrf.mxu0  ;;  %v7838_v14 = vadd.f32 %v14862_v10, %v14860_v11 }
 0x735   : > { %v8010_v58 = vpop.f32.mrf.mxu1  ;;  %8543 = vmatmul.mubr.bf16.vlgmr.msra.gmra.mxu0 %v8349_v16 }
 0x736   : > { %v8011_v23 = vadd.f32 %v8010_v58, %v7818_v2  ;;  %v8225_v39 = vmul.f32 0.1, %v8009_v17  ;;  %vm8161_vm6 = vcmp.ge.f32.partialorder %v8009_v17, 0.0  ;;  %v7836_v2 = vadd.f32 %v14852_v50, %v14857_v60  ;;  %v14913_v27 = vpop.f32.mrf.mxu0 }
 0x737   : > { %v8012_v36 = vpop.f32.mrf.mxu1  ;;  %v7840_v58 = vadd.f32 %v14872_v26, %v14857_v60 }
 0x738   : > { %v8013_v43 = vadd.f32 %v8012_v36, %v7820_v9  ;;  %v8226_v15 = vmul.f32 0.1, %v8011_v23  ;;  %vm8162_vm5 = vcmp.ge.f32.partialorder %v8011_v23, 0.0  ;;  %v8289_v61 = vsel %vm8161_vm6, %v8009_v17, %v8225_v39  ;;  %v14919_v17 = vpop.f32.mrf.mxu0 }
 0x739   : > { %v8014_v33 = vpop.f32.mrf.mxu1 }
 0x73a   : > { %vm8163_vm4 = vcmp.ge.f32.partialorder %v8013_v43, 0.0  ;;  %v8227_v18 = vmul.f32 0.1, %v8013_v43  ;;  %v8015_v7 = vadd.f32 %v8014_v33, %v7822_v24  ;;  %v8290_v34 = vsel %vm8162_vm5, %v8011_v23, %v8226_v15  ;;  %v14921_v26 = vpop.f32.mrf.mxu0 }
 0x73c   : > { %vm8164_vm7 = vcmp.ge.f32.partialorder %v8015_v7, 0.0  ;;  %v8228_v57 = vmul.f32 0.1, %v8015_v7  ;;  %v8291_v32 = vsel %vm8163_vm4, %v8013_v43, %v8227_v18  ;;  %v14923_v39 = vpop.f32.mrf.mxu0 }
 0x73d   : > { %v8351_v59 = vpack.c.bf16 %v8291_v32, %v8289_v61  ;;  %v7848_v32 = vadd.f32 %v14889_v25, %v14860_v11  ;;  %v7850_v61 = vadd.f32 %v14891_v12, %v14857_v60 }
 0x73e   : > { %v8292_v63 = vsel %vm8164_vm7, %v8015_v7, %v8228_v57 }
 0x73f   : > { %v8352_v55 = vpack.c.bf16 %v8292_v63, %v8290_v34  ;;  %v7846_v34 = vadd.f32 %v14884_v28, %v14857_v60 }
 0x741   : > { %v8018_v6 = vpop.f32.mrf.mxu1  ;;  %8550 = vmatprep.mubr.bf16.mxu0 %v8352_v55 }
 0x742   : > { %8551 = vmatmul.mubr.bf16.gmra.mxu0 %v8351_v59  ;;  %v8019_v47 = vadd.f32 %v8018_v6, %v7826_v49  ;;  %v14931_v59 = vpop.f32.mrf.mxu0  ;;  %v7852_v49 = vadd.f32 %v14895_v53, %v14860_v11 }
 0x743   : > { %v8020_v41 = vpop.f32.mrf.mxu1 }
 0x744   : > { %v8021_v13 = vadd.f32 %v8020_v41, %v7828_v62  ;;  %v8229_v5 = vmul.f32 0.1, %v8019_v47  ;;  %vm8165_vm10 = vcmp.ge.f32.partialorder %v8019_v47, 0.0 }
 0x745   : > { %v8022_v21 = vpop.f32.mrf.mxu1 }
 0x746   : > { %v8023_v8 = vadd.f32 %v8022_v21, %v7830_v30  ;;  %v8230_v42 = vmul.f32 0.1, %v8021_v13  ;;  %vm8166_vm9 = vcmp.ge.f32.partialorder %v8021_v13, 0.0  ;;  %v8293_v52 = vsel %vm8165_vm10, %v8019_v47, %v8229_v5  ;;  %v14935_v21 = vpop.f32.mrf.mxu0 }
 0x747   : > { %v8024_v22 = vpop.f32.mrf.mxu1 }
 0x748   : > { %vm8167_vm8 = vcmp.ge.f32.partialorder %v8023_v8, 0.0  ;;  %v8231_v54 = vmul.f32 0.1, %v8023_v8  ;;  %v8025_v48 = vadd.f32 %v8024_v22, %v7832_v1  ;;  %v8294_v4 = vsel %vm8166_vm9, %v8021_v13, %v8230_v42  ;;  %v14937_v42 = vpop.f32.mrf.mxu0 }
 0x74a   : > { %vm8168_vm11 = vcmp.ge.f32.partialorder %v8025_v48, 0.0  ;;  %v8232_v37 = vmul.f32 0.1, %v8025_v48  ;;  %v8295_v45 = vsel %vm8167_vm8, %v8023_v8, %v8231_v54 }
 0x74b   : > { %v8353_v19 = vpack.c.bf16 %v8295_v45, %v8293_v52  ;;  %v14941_v45 = vpop.f32.mrf.mxu0  ;;  %v7860_v52 = vadd.f32 %v14907_v56, %v14857_v60 }
 0x74c   : > { %v8296_v31 = vsel %vm8168_vm11, %v8025_v48, %v8232_v37  ;;  %v7858_v37 = vadd.f32 %v14905_v40, %v14860_v11 }
 0x74d   : > { %v8354_v29 = vpack.c.bf16 %v8296_v31, %v8294_v4  ;;  %v7856_v4 = vadd.f32 %v14903_v38, %v14857_v60 }
 0x74f   : > { %8558 = vmatprep.mubr.bf16.mxu0 %v8354_v29 }
 0x750   : > { %v8028_v35 = vpop.f32.mrf.mxu1  ;;  %8559 = vmatmul.mubr.bf16.gmra.mxu0 %v8353_v19 }
 0x751   : > { %v8029_v9 = vadd.f32 %v8028_v35, %v7836_v2  ;;  %v14949_v2 = vpop.f32.mrf.mxu0 }
 0x752   : > { %v8030_v0 = vpop.f32.mrf.mxu1 }
 0x753   : > { %v8031_v44 = vadd.f32 %v8030_v0, %v7838_v14  ;;  %v8233_v24 = vmul.f32 0.1, %v8029_v9  ;;  %vm8169_vm14 = vcmp.ge.f32.partialorder %v8029_v9, 0.0  ;;  %v7862_v14 = vadd.f32 %v14913_v27, %v14860_v11  ;;  %v14951_v38 = vpop.f32.mrf.mxu0 }
 0x754   : > { %v8032_v23 = vpop.f32.mrf.mxu1 }
 0x755   : > { %v8033_v51 = vadd.f32 %v8032_v23, %v7840_v58  ;;  %v8234_v10 = vmul.f32 0.1, %v8031_v44  ;;  %vm8170_vm13 = vcmp.ge.f32.partialorder %v8031_v44, 0.0  ;;  %v8297_v18 = vsel %vm8169_vm14, %v8029_v9, %v8233_v24 }
 0x756   : > { %v8034_v36 = vpop.f32.mrf.mxu1 }
 0x757   : > { %vm8171_vm12 = vcmp.ge.f32.partialorder %v8033_v51, 0.0  ;;  %v8235_v3 = vmul.f32 0.1, %v8033_v51  ;;  %v8035_v50 = vadd.f32 %v8034_v36, %v7842_v46  ;;  %v8298_v33 = vsel %vm8170_vm13, %v8031_v44, %v8234_v10 }
 0x759   : > { %vm8172_vm15 = vcmp.ge.f32.partialorder %v8035_v50, 0.0  ;;  %v8236_v16 = vmul.f32 0.1, %v8035_v50  ;;  %v8299_v43 = vsel %vm8171_vm12, %v8033_v51, %v8235_v3  ;;  %v14953_v3 = vpop.f32.mrf.mxu0 }
 0x75a   : > { %v8355_v7 = vpack.c.bf16 %v8299_v43, %v8297_v18  ;;  %v7866_v43 = vadd.f32 %v14919_v17, %v14857_v60 }
 0x75b   : > { %v8300_v15 = vsel %vm8172_vm15, %v8035_v50, %v8236_v16  ;;  %v7868_v16 = vadd.f32 %v14921_v26, %v14860_v11  ;;  %v14961_v18 = vpop.f32.mrf.mxu0 }
 0x75c   : > { %v8356_v20 = vpack.c.bf16 %v8300_v15, %v8298_v33  ;;  %v7870_v15 = vadd.f32 %v14923_v39, %v14857_v60 }
 0x75e   : > { %v8038_v57 = vpop.f32.mrf.mxu1  ;;  %8566 = vmatprep.mubr.bf16.mxu0 %v8356_v20 }
 0x75f   : > { %8567 = vmatmul.mubr.bf16.gmra.mxu0 %v8355_v7  ;;  %v8039_v6 = vadd.f32 %v8038_v57, %v7846_v34 }
 0x760   : > { %v8040_v63 = vpop.f32.mrf.mxu1 }
 0x761   : > { %v8041_v55 = vadd.f32 %v8040_v63, %v7848_v32  ;;  %v8237_v28 = vmul.f32 0.1, %v8039_v6  ;;  %vm8173_vm2 = vcmp.ge.f32.partialorder %v8039_v6, 0.0  ;;  %v7872_v32 = vadd.f32 %v14931_v59, %v14860_v11 }
 0x762   : > { %v8042_v62 = vpop.f32.mrf.mxu1 }
 0x763   : > { %v8043_v41 = vadd.f32 %v8042_v62, %v7850_v61  ;;  %v8238_v13 = vmul.f32 0.1, %v8041_v55  ;;  %vm8174_vm1 = vcmp.ge.f32.partialorder %v8041_v55, 0.0  ;;  %v8301_v54 = vsel %vm8173_vm2, %v8039_v6, %v8237_v28  ;;  %v7891_v61 = vpop.f32.mrf.mxu0 }
 0x764   : > { %v8044_v30 = vpop.f32.mrf.mxu1 }
 0x765   : > { %vm8175_vm0 = vcmp.ge.f32.partialorder %v8043_v41, 0.0  ;;  %v8239_v25 = vmul.f32 0.1, %v8043_v41  ;;  %v8045_v47 = vadd.f32 %v8044_v30, %v7852_v49  ;;  %v8302_v8 = vsel %vm8174_vm1, %v8041_v55, %v8238_v13  ;;  %v14965_v49 = vpop.f32.mrf.mxu0 }
 0x767   : > { %vm8176_vm3 = vcmp.ge.f32.partialorder %v8045_v47, 0.0  ;;  %v8240_v12 = vmul.f32 0.1, %v8045_v47  ;;  %v8303_v1 = vsel %vm8175_vm0, %v8043_v41, %v8239_v25 }
 0x768   : > { %v8357_v48 = vpack.c.bf16 %v8303_v1, %v8301_v54  ;;  %v7876_v1 = vadd.f32 %v14935_v21, %v14857_v60 }
 0x769   : > { %v8304_v22 = vsel %vm8176_vm3, %v8045_v47, %v8240_v12  ;;  %v14967_v47 = vpop.f32.mrf.mxu0  ;;  %v7878_v12 = vadd.f32 %v14937_v42, %v14860_v11 }
 0x76a   : > { %v8358_v53 = vpack.c.bf16 %v8304_v22, %v8302_v8  ;;  %v7880_v22 = vadd.f32 %v14941_v45, %v14857_v60 }
 0x76c   : > { %8574 = vmatprep.mubr.bf16.mxu0 %v8358_v53  ;;  %v7899_v53 = vpop.f32.mrf.mxu0 }
 0x76d   : > { %v8048_v5 = vpop.f32.mrf.mxu1  ;;  %8575 = vmatmul.mubr.bf16.gmra.mxu0 %v8357_v48 }
 0x76e   : > { %v8049_v19 = vadd.f32 %v8048_v5, %v7856_v4 }
 0x76f   : > { %v8050_v31 = vpop.f32.mrf.mxu1 }
 0x770   : > { %v8051_v29 = vadd.f32 %v8050_v31, %v7858_v37  ;;  %v8241_v23 = vmul.f32 0.1, %v8049_v19  ;;  %vm8177_vm6 = vcmp.ge.f32.partialorder %v8049_v19, 0.0  ;;  %v7882_v37 = vadd.f32 %v14949_v2, %v14860_v11 }
 0x771   : > { %v8052_v35 = vpop.f32.mrf.mxu1 }
 0x772   : > { %v8053_v0 = vadd.f32 %v8052_v35, %v7860_v52  ;;  %v8242_v40 = vmul.f32 0.1, %v8051_v29  ;;  %vm8178_vm5 = vcmp.ge.f32.partialorder %v8051_v29, 0.0  ;;  %v8305_v10 = vsel %vm8177_vm6, %v8049_v19, %v8241_v23  ;;  %v7901_v19 = vpop.f32.mrf.mxu0 }
 0x773   : > { %v8054_v58 = vpop.f32.mrf.mxu1  ;;  %v7888_v23 = vadd.f32 %v14953_v3, %v14860_v11 }
 0x774   : > { %vm8179_vm4 = vcmp.ge.f32.partialorder %v8053_v0, 0.0  ;;  %v8243_v44 = vmul.f32 0.1, %v8053_v0  ;;  %v8055_v9 = vadd.f32 %v8054_v58, %v7862_v14  ;;  %v8306_v51 = vsel %vm8178_vm5, %v8051_v29, %v8242_v40  ;;  %v14977_v58 = vpop.f32.mrf.mxu0 }
 0x776   : > { %vm8180_vm7 = vcmp.ge.f32.partialorder %v8055_v9, 0.0  ;;  %v8244_v56 = vmul.f32 0.1, %v8055_v9  ;;  %v8307_v46 = vsel %vm8179_vm4, %v8053_v0, %v8243_v44 }
 0x777   : > { %v8359_v50 = vpack.c.bf16 %v8307_v46, %v8305_v10  ;;  %v7886_v46 = vadd.f32 %v14951_v38, %v14857_v60 }
 0x778   : > { %v8308_v36 = vsel %vm8180_vm7, %v8055_v9, %v8244_v56  ;;  %v14981_v56 = vpop.f32.mrf.mxu0 }
 0x779   : > { %v8360_v27 = vpack.c.bf16 %v8308_v36, %v8306_v51  ;;  %v7890_v36 = vadd.f32 %v14961_v18, %v14857_v60 }
 0x77b   : > { %v8058_v24 = vpop.f32.mrf.mxu1  ;;  %8582 = vmatprep.mubr.bf16.mxu0 %v8360_v27 }
 0x77c   : > { %8583 = vmatmul.mubr.bf16.gmra.mxu0 %v8359_v50  ;;  %v8059_v7 = vadd.f32 %v8058_v24, %v7866_v43  ;;  %v7892_v24 = vadd.f32 %v7891_v61, %v14860_v11 }
 0x77d   : > { %v8060_v33 = vpop.f32.mrf.mxu1 }
 0x77e   : > { %v8061_v20 = vadd.f32 %v8060_v33, %v7868_v16  ;;  %v8245_v17 = vmul.f32 0.1, %v8059_v7  ;;  %vm8181_vm10 = vcmp.ge.f32.partialorder %v8059_v7, 0.0  ;;  %v7909_v16 = vpop.f32.mrf.mxu0 }
 0x77f   : > { %v8062_v57 = vpop.f32.mrf.mxu1 }
 0x780   : > { %v8063_v34 = vadd.f32 %v8062_v57, %v7870_v15  ;;  %v8246_v26 = vmul.f32 0.1, %v8061_v20  ;;  %vm8182_vm9 = vcmp.ge.f32.partialorder %v8061_v20, 0.0  ;;  %v8309_v13 = vsel %vm8181_vm10, %v8059_v7, %v8245_v17  ;;  %v7911_v57 = vpop.f32.mrf.mxu0 }
 0x781   : > { %v8064_v63 = vpop.f32.mrf.mxu1  ;;  %v7898_v17 = vadd.f32 %v14967_v47, %v14860_v11 }
 0x782   : > { %vm8183_vm8 = vcmp.ge.f32.partialorder %v8063_v34, 0.0  ;;  %v8247_v55 = vmul.f32 0.1, %v8063_v34  ;;  %v8065_v6 = vadd.f32 %v8064_v63, %v7872_v32  ;;  %v8310_v41 = vsel %vm8182_vm9, %v8061_v20, %v8246_v26 }
 0x784   : > { %vm8184_vm11 = vcmp.ge.f32.partialorder %v8065_v6, 0.0  ;;  %v8248_v39 = vmul.f32 0.1, %v8065_v6  ;;  %v8311_v62 = vsel %vm8183_vm8, %v8063_v34, %v8247_v55  ;;  %v14988_v55 = vpop.f32.mrf.mxu0 }
 0x785   : > { %v8361_v59 = vpack.c.bf16 %v8311_v62, %v8309_v13  ;;  %v7896_v62 = vadd.f32 %v14965_v49, %v14857_v60 }
 0x786   : > { %v8312_v30 = vsel %vm8184_vm11, %v8065_v6, %v8248_v39  ;;  %v14992_v39 = vpop.f32.mrf.mxu0 }
 0x787   : > { %v8362_v25 = vpack.c.bf16 %v8312_v30, %v8310_v41  ;;  %v7900_v30 = vadd.f32 %v7899_v53, %v14857_v60 }
 0x789   : > { %8590 = vmatprep.mubr.bf16.mxu0 %v8362_v25 }
 0x78a   : > { %v8068_v28 = vpop.f32.mrf.mxu1  ;;  %8591 = vmatmul.mubr.bf16.gmra.mxu0 %v8361_v59 }
 0x78b   : > { %v8069_v48 = vadd.f32 %v8068_v28, %v7876_v1  ;;  %v7902_v28 = vadd.f32 %v7901_v19, %v14860_v11 }
 0x78c   : > { %v8070_v8 = vpop.f32.mrf.mxu1 }
 0x78d   : > { %v8071_v54 = vadd.f32 %v8070_v8, %v7878_v12  ;;  %v8249_v35 = vmul.f32 0.1, %v8069_v48  ;;  %vm8185_vm14 = vcmp.ge.f32.partialorder %v8069_v48, 0.0  ;;  %v7919_v12 = vpop.f32.mrf.mxu0 }
 0x78e   : > { %v8072_v5 = vpop.f32.mrf.mxu1 }
 0x78f   : > { %v8073_v4 = vadd.f32 %v8072_v5, %v7880_v22  ;;  %v8250_v52 = vmul.f32 0.1, %v8071_v54  ;;  %vm8186_vm13 = vcmp.ge.f32.partialorder %v8071_v54, 0.0  ;;  %v8313_v40 = vsel %vm8185_vm14, %v8069_v48, %v8249_v35  ;;  %v7921_v5 = vpop.f32.mrf.mxu0 }
 0x790   : > { %v8074_v31 = vpop.f32.mrf.mxu1  ;;  %v7908_v35 = vadd.f32 %v14981_v56, %v14860_v11 }
 0x791   : > { %vm8187_vm12 = vcmp.ge.f32.partialorder %v8073_v4, 0.0  ;;  %v8251_v29 = vmul.f32 0.1, %v8073_v4  ;;  %v8075_v42 = vadd.f32 %v8074_v31, %v7882_v37  ;;  %v8314_v14 = vsel %vm8186_vm13, %v8071_v54, %v8250_v52 }
 0x793   : > { %vm8188_vm15 = vcmp.ge.f32.partialorder %v8075_v42, 0.0  ;;  %v8252_v21 = vmul.f32 0.1, %v8075_v42  ;;  %v8315_v45 = vsel %vm8187_vm12, %v8073_v4, %v8251_v29  ;;  %v14998_v29 = vpop.f32.mrf.mxu0 }
 0x794   : > { %v8363_v2 = vpack.c.bf16 %v8315_v45, %v8313_v40  ;;  %v7906_v45 = vadd.f32 %v14977_v58, %v14857_v60 }
 0x795   : > { %v8316_v0 = vsel %vm8188_vm15, %v8075_v42, %v8252_v21  ;;  %v15002_v21 = vpop.f32.mrf.mxu0 }
 0x796   : > { %v8364_v44 = vpack.c.bf16 %v8316_v0, %v8314_v14  ;;  %v7910_v0 = vadd.f32 %v7909_v16, %v14857_v60 }
 0x798   : > { %8598 = vmatprep.mubr.bf16.mxu0 %v8364_v44 }
 0x799   : > { %v8078_v9 = vpop.f32.mrf.mxu1  ;;  %8599 = vmatmul.mubr.bf16.gmra.mxu0 %v8363_v2 }
 0x79a   : > { %v8079_v27 = vadd.f32 %v8078_v9, %v7886_v46  ;;  %v7912_v9 = vadd.f32 %v7911_v57, %v14860_v11  ;;  %v7918_v57 = vadd.f32 %v14992_v39, %v14860_v11 }
 0x79b   : > { %v8080_v51 = vpop.f32.mrf.mxu1 }
 0x79c   : > { %v8081_v10 = vadd.f32 %v8080_v51, %v7888_v23  ;;  %v8253_v7 = vmul.f32 0.1, %v8079_v27  ;;  %vm8189_vm2 = vcmp.ge.f32.partialorder %v8079_v27, 0.0  ;;  %v7929_v23 = vpop.f32.mrf.mxu0 }
 0x79d   : > { %v8082_v50 = vpop.f32.mrf.mxu1 }
 0x79e   : > { %v8083_v43 = vadd.f32 %v8082_v50, %v7890_v36  ;;  %v8254_v15 = vmul.f32 0.1, %v8081_v10  ;;  %vm8190_vm1 = vcmp.ge.f32.partialorder %v8081_v10, 0.0  ;;  %v8317_v63 = vsel %vm8189_vm2, %v8079_v27, %v8253_v7  ;;  %v7931_v50 = vpop.f32.mrf.mxu0 }
 0x79f   : > { %v8084_v33 = vpop.f32.mrf.mxu1 }
 0x7a0   : > { %vm8191_vm0 = vcmp.ge.f32.partialorder %v8083_v43, 0.0  ;;  %v8255_v3 = vmul.f32 0.1, %v8083_v43  ;;  %v8085_v20 = vadd.f32 %v8084_v33, %v7892_v24  ;;  %v8318_v18 = vsel %vm8190_vm1, %v8081_v10, %v8254_v15 }
 0x7a2   : > { %vm8192_vm3 = vcmp.ge.f32.partialorder %v8085_v20, 0.0  ;;  %v8256_v38 = vmul.f32 0.1, %v8085_v20  ;;  %v8319_v32 = vsel %vm8191_vm0, %v8083_v43, %v8255_v3  ;;  %v7935_v3 = vpop.f32.mrf.mxu0 }
 0x7a3   : > { %v8365_v61 = vpack.c.bf16 %v8319_v32, %v8317_v63 }
 0x7a4   : > { %v8320_v34 = vsel %vm8192_vm3, %v8085_v20, %v8256_v38  ;;  %v7916_v38 = vadd.f32 %v14988_v55, %v14857_v60  ;;  %v7937_v32 = vpop.f32.mrf.mxu0 }
 0x7a5   : > { %v8366_v26 = vpack.c.bf16 %v8320_v34, %v8318_v18  ;;  %v7920_v34 = vadd.f32 %v7919_v12, %v14857_v60 }
 0x7a7   : > { %8606 = vmatprep.mubr.bf16.mxu0 %v8366_v26 }
 0x7a8   : > { %8607 = vmatmul.mubr.bf16.gmra.mxu0 %v8365_v61 }
 0x7a9   : > { %v8088_v6 = vpop.f32.mrf.mxu1 }
 0x7aa   : > { %v8089_v25 = vadd.f32 %v8088_v6, %v7896_v62  ;;  %v7922_v6 = vadd.f32 %v7921_v5, %v14860_v11  ;;  %v7939_v62 = vpop.f32.mrf.mxu0  ;;  %v7928_v5 = vadd.f32 %v15002_v21, %v14860_v11 }
 0x7ab   : > { %v8090_v41 = vpop.f32.mrf.mxu1 }
 0x7ac   : > { %v8091_v13 = vadd.f32 %v8090_v41, %v7898_v17  ;;  %v8257_v48 = vmul.f32 0.1, %v8089_v25  ;;  %vm8193_vm6 = vcmp.ge.f32.partialorder %v8089_v25, 0.0 }
 0x7ad   : > { %v8092_v59 = vpop.f32.mrf.mxu1 }
 0x7ae   : > { %v8093_v1 = vadd.f32 %v8092_v59, %v7900_v30  ;;  %v8258_v22 = vmul.f32 0.1, %v8091_v13  ;;  %vm8194_vm5 = vcmp.ge.f32.partialorder %v8091_v13, 0.0  ;;  %v8321_v31 = vsel %vm8193_vm6, %v8089_v25, %v8257_v48  ;;  %v7941_v59 = vpop.f32.mrf.mxu0 }
 0x7af   : > { %v8094_v8 = vpop.f32.mrf.mxu1 }
 0x7b0   : > { %vm8195_vm4 = vcmp.ge.f32.partialorder %v8093_v1, 0.0  ;;  %v8259_v54 = vmul.f32 0.1, %v8093_v1  ;;  %v8095_v47 = vadd.f32 %v8094_v8, %v7902_v28  ;;  %v8322_v53 = vsel %vm8194_vm5, %v8091_v13, %v8258_v22 }
 0x7b2   : > { %vm8196_vm7 = vcmp.ge.f32.partialorder %v8095_v47, 0.0  ;;  %v8260_v49 = vmul.f32 0.1, %v8095_v47  ;;  %v8323_v37 = vsel %vm8195_vm4, %v8093_v1, %v8259_v54 }
 0x7b3   : > { %v8367_v42 = vpack.c.bf16 %v8323_v37, %v8321_v31 }
 0x7b4   : > { %v8324_v4 = vsel %vm8196_vm7, %v8095_v47, %v8260_v49  ;;  %v7945_v47 = vpop.f32.mrf.mxu0  ;;  %v7926_v49 = vadd.f32 %v14998_v29, %v14857_v60  ;;  %v7938_v29 = vadd.f32 %v7937_v32, %v14860_v11 }
 0x7b5   : > { %v8368_v52 = vpack.c.bf16 %v8324_v4, %v8322_v53  ;;  %v7930_v4 = vadd.f32 %v7929_v23, %v14857_v60  ;;  %v7936_v23 = vadd.f32 %v7935_v3, %v14857_v60 }
 0x7b6   : > { %v7947_v37 = vpop.f32.mrf.mxu0 }
 0x7b7   : > { %8614 = vmatprep.mubr.bf16.mxu0 %v8368_v52 }
 0x7b8   : > { %8615 = vmatmul.mubr.bf16.gmra.mxu0 %v8367_v42 }
 0x7b9   : > { %v8098_v19 = vpop.f32.mrf.mxu1 }
 0x7ba   : > { %v8099_v44 = vadd.f32 %v8098_v19, %v7906_v45  ;;  %v7932_v19 = vadd.f32 %v7931_v50, %v14860_v11  ;;  %v7949_v45 = vpop.f32.mrf.mxu0 }
 0x7bb   : > { %v8100_v14 = vpop.f32.mrf.mxu1 }
 0x7bc   : > { %v8101_v40 = vadd.f32 %v8100_v14, %v7908_v35  ;;  %v8261_v27 = vmul.f32 0.1, %v8099_v44  ;;  %vm8197_vm10 = vcmp.ge.f32.partialorder %v8099_v44, 0.0 }
 0x7bd   : > { %v8102_v2 = vpop.f32.mrf.mxu1 }
 0x7be   : > { %v8103_v46 = vadd.f32 %v8102_v2, %v7910_v0  ;;  %v8262_v36 = vmul.f32 0.1, %v8101_v40  ;;  %vm8198_vm9 = vcmp.ge.f32.partialorder %v8101_v40, 0.0  ;;  %v8325_v33 = vsel %vm8197_vm10, %v8099_v44, %v8261_v27 }
 0x7bf   : > { %v8104_v51 = vpop.f32.mrf.mxu1 }
 0x7c0   : > { %vm8199_vm8 = vcmp.ge.f32.partialorder %v8103_v46, 0.0  ;;  %v8263_v10 = vmul.f32 0.1, %v8103_v46  ;;  %v8105_v56 = vadd.f32 %v8104_v51, %v7912_v9  ;;  %v8326_v16 = vsel %vm8198_vm9, %v8101_v40, %v8262_v36 }
 0x7c2   : > { %vm8200_vm11 = vcmp.ge.f32.partialorder %v8105_v56, 0.0  ;;  %v8264_v58 = vmul.f32 0.1, %v8105_v56  ;;  %v8327_v24 = vsel %vm8199_vm8, %v8103_v46, %v8263_v10  ;;  %v7951_v46 = vpop.f32.mrf.mxu0  ;;  %v7940_v10 = vadd.f32 %v7939_v62, %v14857_v60 }
 0x7c3   : > { %v8369_v20 = vpack.c.bf16 %v8327_v24, %v8325_v33  ;;  %v7942_v33 = vadd.f32 %v7941_v59, %v14860_v11 }
 0x7c4   : > { %v8328_v43 = vsel %vm8200_vm11, %v8105_v56, %v8264_v58 }
 0x7c5   : > { %v8370_v15 = vpack.c.bf16 %v8328_v43, %v8326_v16 }
 0x7c7   : > { %8622 = vmatprep.mubr.bf16.mxu0 %v8370_v15 }
 0x7c8   : > { %v8108_v7 = vpop.f32.mrf.mxu1  ;;  %8623 = vmatmul.mubr.bf16.gmra.mxu0 %v8369_v20 }
 0x7c9   : > { %v8109_v26 = vadd.f32 %v8108_v7, %v7916_v38  ;;  %v7955_v7 = vpop.f32.mrf.mxu0 }
 0x7ca   : > { %v8110_v18 = vpop.f32.mrf.mxu1 }
 0x7cb   : > { %v8111_v63 = vadd.f32 %v8110_v18, %v7918_v57  ;;  %v8265_v39 = vmul.f32 0.1, %v8109_v26  ;;  %vm8201_vm14 = vcmp.ge.f32.partialorder %v8109_v26, 0.0 }
 0x7cc   : > { %v8112_v61 = vpop.f32.mrf.mxu1 }
 0x7cd   : > { %v8113_v17 = vadd.f32 %v8112_v61, %v7920_v34  ;;  %v8266_v30 = vmul.f32 0.1, %v8111_v63  ;;  %vm8202_vm13 = vcmp.ge.f32.partialorder %v8111_v63, 0.0  ;;  %v8329_v8 = vsel %vm8201_vm14, %v8109_v26, %v8265_v39 }
 0x7ce   : > { %v8114_v41 = vpop.f32.mrf.mxu1  ;;  %v7946_v61 = vadd.f32 %v7945_v47, %v14857_v60 }
 0x7cf   : > { %vm8203_vm12 = vcmp.ge.f32.partialorder %v8113_v17, 0.0  ;;  %v8267_v13 = vmul.f32 0.1, %v8113_v17  ;;  %v8115_v25 = vadd.f32 %v8114_v41, %v7922_v6  ;;  %v8330_v12 = vsel %vm8202_vm13, %v8111_v63, %v8266_v30  ;;  %v7957_v6 = vpop.f32.mrf.mxu0 }
 0x7d0   : > { %v7948_v63 = vadd.f32 %v7947_v37, %v14860_v11  ;;  %v7950_v41 = vadd.f32 %v7949_v45, %v14857_v60 }
 0x7d1   : > { %vm8204_vm15 = vcmp.ge.f32.partialorder %v8115_v25, 0.0  ;;  %v8268_v55 = vmul.f32 0.1, %v8115_v25  ;;  %v8331_v28 = vsel %vm8203_vm12, %v8113_v17, %v8267_v13 }
 0x7d2   : > { %v8371_v54 = vpack.c.bf16 %v8331_v28, %v8329_v8 }
 0x7d3   : > { %v8332_v1 = vsel %vm8204_vm15, %v8115_v25, %v8268_v55 }
 0x7d4   : > { %v8372_v22 = vpack.c.bf16 %v8332_v1, %v8330_v12  ;;  %v7952_v12 = vadd.f32 %v7951_v46, %v14860_v11 }
 0x7d6   : > { %8630 = vmatprep.mubr.bf16.mxu0 %v8372_v22  ;;  %v7959_v22 = vpop.f32.mrf.mxu0 }
 0x7d7   : > { %8631 = vmatmul.mubr.bf16.gmra.mxu0 %v8371_v54 }
 0x7d8   : > { %v8118_v48 = vpop.f32.mrf.mxu1 }
 0x7d9   : > { %v8119_v52 = vadd.f32 %v8118_v48, %v7926_v49 }
 0x7da   : > { %v8120_v53 = vpop.f32.mrf.mxu1 }
 0x7db   : > { %v8121_v31 = vadd.f32 %v8120_v53, %v7928_v5  ;;  %v8269_v21 = vmul.f32 0.1, %v8119_v52  ;;  %vm8205_vm2 = vcmp.ge.f32.partialorder %v8119_v52, 0.0  ;;  %v7958_v53 = vadd.f32 %v7957_v6, %v14860_v11 }
 0x7dc   : > { %v8122_v42 = vpop.f32.mrf.mxu1 }
 0x7dd   : > { %v8123_v35 = vadd.f32 %v8122_v42, %v7930_v4  ;;  %v8270_v0 = vmul.f32 0.1, %v8121_v31  ;;  %vm8206_vm1 = vcmp.ge.f32.partialorder %v8121_v31, 0.0  ;;  %v8333_v58 = vsel %vm8205_vm2, %v8119_v52, %v8269_v21  ;;  %v7961_v52 = vpop.f32.mrf.mxu0 }
 0x7de   : > { %v8124_v14 = vpop.f32.mrf.mxu1 }
 0x7df   : > { %vm8207_vm0 = vcmp.ge.f32.partialorder %v8123_v35, 0.0  ;;  %v8271_v40 = vmul.f32 0.1, %v8123_v35  ;;  %v8125_v44 = vadd.f32 %v8124_v14, %v7932_v19  ;;  %v8334_v27 = vsel %vm8206_vm1, %v8121_v31, %v8270_v0 }
 0x7e0   : > { %v8128_v2 = vpop.f32.mrf.mxu1  ;;  %v7956_v31 = vadd.f32 %v7955_v7, %v14857_v60 }
 0x7e1   : > { %vm8208_vm3 = vcmp.ge.f32.partialorder %v8125_v44, 0.0  ;;  %v8272_v9 = vmul.f32 0.1, %v8125_v44  ;;  %v8335_v51 = vsel %vm8207_vm0, %v8123_v35, %v8271_v40  ;;  %v8129_v24 = vadd.f32 %v8128_v2, %v7936_v23 }
 0x7e2   : > { %v8130_v36 = vpop.f32.mrf.mxu1  ;;  %v8373_v15 = vpack.c.bf16 %v8335_v51, %v8333_v58  ;;  %v7960_v35 = vadd.f32 %v7959_v22, %v14857_v60 }
 0x7e3   : > { %v8131_v56 = vadd.f32 %v8130_v36, %v7938_v29  ;;  %v8336_v50 = vsel %vm8208_vm3, %v8125_v44, %v8272_v9  ;;  %v8273_v18 = vmul.f32 0.1, %v8129_v24  ;;  %vm8209_vm6 = vcmp.ge.f32.partialorder %v8129_v24, 0.0 }
 0x7e4   : > { %v8132_v16 = vpop.f32.mrf.mxu1  ;;  %v8374_v43 = vpack.c.bf16 %v8336_v50, %v8334_v27  ;;  %v7962_v29 = vadd.f32 %v7961_v52, %v14860_v11 }
 0x7e5   : > { %v8133_v20 = vadd.f32 %v8132_v16, %v7940_v10  ;;  %v8274_v3 = vmul.f32 0.1, %v8131_v56  ;;  %vm8210_vm5 = vcmp.ge.f32.partialorder %v8131_v56, 0.0  ;;  %v8337_v39 = vsel %vm8209_vm6, %v8129_v24, %v8273_v18 }
 0x7e6   : > { %v8134_v57 = vpop.f32.mrf.mxu1  ;;  %8638 = vmatprep.mubr.bf16.mxu0 %v8374_v43  ;;  %v15032_v43 = vld [vmem:[#allocation15 + $0x5] ss:$0 sm:$0xff] }
 0x7e7   : > { %vm8211_vm4 = vcmp.ge.f32.partialorder %v8133_v20, 0.0  ;;  %v8275_v38 = vmul.f32 0.1, %v8133_v20  ;;  %v8135_v32 = vadd.f32 %v8134_v57, %v7942_v33  ;;  %8639 = vmatmul.mubr.bf16.gmra.mxu0 %v8373_v15  ;;  %v8338_v13 = vsel %vm8210_vm5, %v8131_v56, %v8274_v3 }
 0x7e8   : > { %v8138_v34 = vpop.f32.mrf.mxu1 }
 0x7e9   : > { %vm8212_vm7 = vcmp.ge.f32.partialorder %v8135_v32, 0.0  ;;  %v8276_v26 = vmul.f32 0.1, %v8135_v32  ;;  %v8339_v17 = vsel %vm8211_vm4, %v8133_v20, %v8275_v38  ;;  %v8139_v55 = vadd.f32 %v8138_v34, %v7946_v61 }
 0x7ea   : > { %v8140_v62 = vpop.f32.mrf.mxu1  ;;  %v8375_v1 = vpack.c.bf16 %v8339_v17, %v8337_v39 }
 0x7eb   : > { %v8141_v30 = vadd.f32 %v8140_v62, %v7948_v63  ;;  %v8340_v25 = vsel %vm8212_vm7, %v8135_v32, %v8276_v26  ;;  %v8277_v49 = vmul.f32 0.1, %v8139_v55  ;;  %vm8213_vm10 = vcmp.ge.f32.partialorder %v8139_v55, 0.0 }
 0x7ec   : > { %v8142_v59 = vpop.f32.mrf.mxu1  ;;  %v8376_v28 = vpack.c.bf16 %v8340_v25, %v8338_v13 }
 0x7ed   : > { %v8143_v8 = vadd.f32 %v8142_v59, %v7950_v41  ;;  %v8278_v47 = vmul.f32 0.1, %v8141_v30  ;;  %vm8214_vm9 = vcmp.ge.f32.partialorder %v8141_v30, 0.0  ;;  %v8341_v40 = vsel %vm8213_vm10, %v8139_v55, %v8277_v49 }
 0x7ee   : > { %v8144_v54 = vpop.f32.mrf.mxu1  ;;  %8646 = vmatprep.mubr.bf16.mxu0 %v8376_v28 }
 0x7ef   : > { %vm8215_vm8 = vcmp.ge.f32.partialorder %v8143_v8, 0.0  ;;  %v8279_v48 = vmul.f32 0.1, %v8143_v8  ;;  %v8145_v5 = vadd.f32 %v8144_v54, %v7952_v12  ;;  %8647 = vmatmul.mubr.bf16.gmra.mxu0 %v8375_v1  ;;  %v8342_v14 = vsel %vm8214_vm9, %v8141_v30, %v8278_v47 }
 0x7f0   : > { %v8148_v37 = vpop.f32.mrf.mxu1 }
 0x7f1   : > { %vm8216_vm11 = vcmp.ge.f32.partialorder %v8145_v5, 0.0  ;;  %v8280_v4 = vmul.f32 0.1, %v8145_v5  ;;  %v8343_v42 = vsel %vm8215_vm8, %v8143_v8, %v8279_v48  ;;  %v8149_v44 = vadd.f32 %v8148_v37, %v7956_v31 }
 0x7f2   : > { %v8150_v19 = vpop.f32.mrf.mxu1  ;;  %v8377_v9 = vpack.c.bf16 %v8343_v42, %v8341_v40 }
 0x7f3   : > { %v8151_v45 = vadd.f32 %v8150_v19, %v7958_v53  ;;  %v8344_v0 = vsel %vm8216_vm11, %v8145_v5, %v8280_v4  ;;  %v8281_v56 = vmul.f32 0.1, %v8149_v44  ;;  %vm8217_vm14 = vcmp.ge.f32.partialorder %v8149_v44, 0.0 }
 0x7f4   : > { %v8152_v21 = vpop.f32.mrf.mxu1  ;;  %v8378_v2 = vpack.c.bf16 %v8344_v0, %v8342_v14 }
 0x7f5   : > { %v8153_v23 = vadd.f32 %v8152_v21, %v7960_v35  ;;  %v8282_v51 = vmul.f32 0.1, %v8151_v45  ;;  %vm8218_vm13 = vcmp.ge.f32.partialorder %v8151_v45, 0.0  ;;  %v9356_v50 = vpop.f32.mrf.mxu0  ;;  %v8345_v11 = vsel %vm8217_vm14, %v8149_v44, %v8281_v56 }
 0x7f6   : > { %v8154_v46 = vpop.f32.mrf.mxu1  ;;  %8654 = vmatprep.mubr.bf16.mxu0 %v8378_v2 }
 0x7f7   : > { %vm8219_vm12 = vcmp.ge.f32.partialorder %v8153_v23, 0.0  ;;  %v8283_v36 = vmul.f32 0.1, %v8153_v23  ;;  %v8155_v10 = vadd.f32 %v8154_v46, %v7962_v29  ;;  %8655 = vmatmul.mubr.bf16.gmra.mxu0 %v8377_v9  ;;  %v8346_v58 = vsel %vm8218_vm13, %v8151_v45, %v8282_v51  ;;  %v9357_v33 = vpop.f32.mrf.mxu0 }
 0x7f8   : > { %v9358_v20 = vadd.f32 %v9357_v33, %v9356_v50 }
 0x7f9   : > { %vm8220_vm15 = vcmp.ge.f32.partialorder %v8155_v10, 0.0  ;;  %v8284_v60 = vmul.f32 0.1, %v8155_v10  ;;  %v8347_v27 = vsel %vm8219_vm12, %v8153_v23, %v8283_v36  ;;  %v9359_v7 = vpop.f32.mrf.mxu0 }
 0x7fa   : > { %v8379_v15 = vpack.c.bf16 %v8347_v27, %v8345_v11  ;;  %v8545_v57 = vadd.f32 %v9358_v20, %v15032_v43 }
 0x7fb   : > { %v8348_v24 = vsel %vm8220_vm15, %v8155_v10, %v8284_v60  ;;  %v9360_v3 = vpop.f32.mrf.mxu0 }
 0x7fc   : > { %v8380_v16 = vpack.c.bf16 %v8348_v24, %v8346_v58  ;;  %8671 = vst [vmem:[%s11172_s30] sm:$0xff] %v8545_v57  ;;  %v9361_v38 = vadd.f32 %v9360_v3, %v9359_v7 }
 0x7fe   : > { %8662 = vmatprep.mubr.bf16.mxu0 %v8380_v16  ;;  %v8548_v18 = vadd.f32 %v9361_v38, %v15032_v43 }
 0x7ff   : > { %8663 = vmatmul.mubr.bf16.gmra.mxu0 %v8379_v15 }
 0x800   : > { %8672 = vst [vmem:[%s11172_s30 + $0x8] sm:$0xff] %v8548_v18 }
 0x802   : > { %v9362_v32 = vpop.f32.mrf.mxu0 }
 0x804   : > { %v9363_v34 = vpop.f32.mrf.mxu0 }
 0x805   : > { %v9364_v63 = vadd.f32 %v9363_v34, %v9362_v32 }
 0x806   : > { %v9365_v26 = vpop.f32.mrf.mxu0 }
 0x807   : > { %v8553_v61 = vadd.f32 %v9364_v63, %v15032_v43 }
 0x808   : > { %v9366_v6 = vpop.f32.mrf.mxu0 }
 0x809   : > { %8673 = vst [vmem:[%s11172_s30 + $0x10] sm:$0xff] %v8553_v61  ;;  %v9367_v17 = vadd.f32 %v9366_v6, %v9365_v26 }
 0x80b   : > { %v8556_v62 = vadd.f32 %v9367_v17, %v15032_v43 }
 0x80d   : > { %8674 = vst [vmem:[%s11172_s30 + $0x18] sm:$0xff] %v8556_v62 }
 0x810   : > { %v9368_v41 = vpop.f32.mrf.mxu0 }
 0x812   : > { %v9369_v30 = vpop.f32.mrf.mxu0 }
 0x813   : > { %v9370_v13 = vadd.f32 %v9369_v30, %v9368_v41 }
 0x814   : > { %v9371_v25 = vpop.f32.mrf.mxu0 }
 0x815   : > { %v8561_v39 = vadd.f32 %v9370_v13, %v15032_v43 }
 0x816   : > { %v9372_v55 = vpop.f32.mrf.mxu0 }
 0x817   : > { %8675 = vst [vmem:[%s11172_s30 + $0x20] sm:$0xff] %v8561_v39  ;;  %v9373_v59 = vadd.f32 %v9372_v55, %v9371_v25 }
 0x819   : > { %v8564_v28 = vadd.f32 %v9373_v59, %v15032_v43 }
 0x81b   : > { %8676 = vst [vmem:[%s11172_s30 + $0x28] sm:$0xff] %v8564_v28 }
 0x81f   : > { %v9374_v12 = vpop.f32.mrf.mxu0 }
 0x821   : > { %v9375_v1 = vpop.f32.mrf.mxu0 }
 0x822   : > { %v9376_v8 = vadd.f32 %v9375_v1, %v9374_v12 }
 0x823   : > { %v9377_v22 = vpop.f32.mrf.mxu0 }
 0x824   : > { %v8569_v54 = vadd.f32 %v9376_v8, %v15032_v43 }
 0x825   : > { %v9378_v47 = vpop.f32.mrf.mxu0 }
 0x826   : > { %8677 = vst [vmem:[%s11172_s30 + $0x30] sm:$0xff] %v8569_v54  ;;  %v9379_v48 = vadd.f32 %v9378_v47, %v9377_v22 }
 0x828   : > { %v8572_v5 = vadd.f32 %v9379_v48, %v15032_v43 }
 0x82a   : > { %8678 = vst [vmem:[%s11172_s30 + $0x38] sm:$0xff] %v8572_v5 }
 0x82d   : > { %v9380_v49 = vpop.f32.mrf.mxu0 }
 0x82f   : > { %v9381_v37 = vpop.f32.mrf.mxu0 }
 0x830   : > { %v9382_v53 = vadd.f32 %v9381_v37, %v9380_v49 }
 0x831   : > { %v9383_v4 = vpop.f32.mrf.mxu0 }
 0x832   : > { %v8577_v31 = vadd.f32 %v9382_v53, %v15032_v43 }
 0x833   : > { %v9384_v52 = vpop.f32.mrf.mxu0 }
 0x834   : > { %8679 = vst [vmem:[%s11172_s30 + $0x40] sm:$0xff] %v8577_v31  ;;  %v9385_v42 = vadd.f32 %v9384_v52, %v9383_v4 }
 0x836   : > { %v8580_v19 = vadd.f32 %v9385_v42, %v15032_v43 }
 0x838   : > { %8680 = vst [vmem:[%s11172_s30 + $0x48] sm:$0xff] %v8580_v19 }
 0x83c   : > { %v9386_v35 = vpop.f32.mrf.mxu0 }
 0x83e   : > { %v9387_v45 = vpop.f32.mrf.mxu0 }
 0x83f   : > { %v9388_v14 = vadd.f32 %v9387_v45, %v9386_v35 }
 0x840   : > { %v9389_v0 = vpop.f32.mrf.mxu0 }
 0x841   : > { %v8585_v40 = vadd.f32 %v9388_v14, %v15032_v43 }
 0x842   : > { %v9390_v44 = vpop.f32.mrf.mxu0 }
 0x843   : > { %8681 = vst [vmem:[%s11172_s30 + $0x50] sm:$0xff] %v8585_v40  ;;  %v9391_v21 = vadd.f32 %v9390_v44, %v9389_v0 }
 0x845   : > { %v8588_v2 = vadd.f32 %v9391_v21, %v15032_v43 }
 0x847   : > { %8682 = vst [vmem:[%s11172_s30 + $0x58] sm:$0xff] %v8588_v2 }
 0x84a   : > { %v9392_v29 = vpop.f32.mrf.mxu0 }
 0x84c   : > { %v9393_v9 = vpop.f32.mrf.mxu0 }
 0x84d   : > { %v9394_v23 = vadd.f32 %v9393_v9, %v9392_v29 }
 0x84e   : > { %v9395_v46 = vpop.f32.mrf.mxu0 }
 0x84f   : > { %v8593_v51 = vadd.f32 %v9394_v23, %v15032_v43 }
 0x850   : > { %v9396_v36 = vpop.f32.mrf.mxu0 }
 0x851   : > { %8683 = vst [vmem:[%s11172_s30 + $0x60] sm:$0xff] %v8593_v51  ;;  %v9397_v10 = vadd.f32 %v9396_v36, %v9395_v46 }
 0x853   : > { %v8596_v56 = vadd.f32 %v9397_v10, %v15032_v43 }
 0x855   : > { %8684 = vst [vmem:[%s11172_s30 + $0x68] sm:$0xff] %v8596_v56 }
 0x859   : > { %v9398_v60 = vpop.f32.mrf.mxu0 }
 0x85b   : > { %v9399_v27 = vpop.f32.mrf.mxu0 }
 0x85c   : > { %v9400_v50 = vadd.f32 %v9399_v27, %v9398_v60 }
 0x85d   : > { %v9401_v58 = vpop.f32.mrf.mxu0 }
 0x85e   : > { %v8601_v24 = vadd.f32 %v9400_v50, %v15032_v43 }
 0x85f   : > { %v9402_v11 = vpop.f32.mrf.mxu0 }
 0x860   : > { %8685 = vst [vmem:[%s11172_s30 + $0x70] sm:$0xff] %v8601_v24  ;;  %v9403_v16 = vadd.f32 %v9402_v11, %v9401_v58 }
 0x862   : > { %v8604_v33 = vadd.f32 %v9403_v16, %v15032_v43 }
 0x864   : > { %8686 = vst [vmem:[%s11172_s30 + $0x78] sm:$0xff] %v8604_v33 }
 0x868   : > { %v9404_v15 = vpop.f32.mrf.mxu0 }
 0x86a   : > { %v9405_v20 = vpop.f32.mrf.mxu0 }
 0x86b   : > { %v9406_v7 = vadd.f32 %v9405_v20, %v9404_v15 }
 0x86c   : > { %v9407_v57 = vpop.f32.mrf.mxu0 }
 0x86d   : > { %v8609_v3 = vadd.f32 %v9406_v7, %v15032_v43 }
 0x86e   : > { %v9408_v38 = vpop.f32.mrf.mxu0 }
 0x86f   : > { %8687 = vst [vmem:[%s11172_s30 + $0x80] sm:$0xff] %v8609_v3  ;;  %v9409_v32 = vadd.f32 %v9408_v38, %v9407_v57 }
 0x871   : > { %v8612_v18 = vadd.f32 %v9409_v32, %v15032_v43 }
 0x873   : > { %8688 = vst [vmem:[%s11172_s30 + $0x88] sm:$0xff] %v8612_v18 }
 0x878   : > { %v9410_v34 = vpop.f32.mrf.mxu0 }
 0x87a   : > { %v9411_v63 = vpop.f32.mrf.mxu0 }
 0x87b   : > { %v9412_v26 = vadd.f32 %v9411_v63, %v9410_v34 }
 0x87c   : > { %v9413_v61 = vpop.f32.mrf.mxu0 }
 0x87d   : > { %v8617_v6 = vadd.f32 %v9412_v26, %v15032_v43 }
 0x87e   : > { %v9414_v17 = vpop.f32.mrf.mxu0 }
 0x87f   : > { %8689 = vst [vmem:[%s11172_s30 + $0x90] sm:$0xff] %v8617_v6  ;;  %v9415_v62 = vadd.f32 %v9414_v17, %v9413_v61 }
 0x881   : > { %v8620_v41 = vadd.f32 %v9415_v62, %v15032_v43 }
 0x883   : > { %8690 = vst [vmem:[%s11172_s30 + $0x98] sm:$0xff] %v8620_v41 }
 0x888   : > { %v9416_v30 = vpop.f32.mrf.mxu0 }
 0x88a   : > { %v9417_v13 = vpop.f32.mrf.mxu0 }
 0x88b   : > { %v9418_v25 = vadd.f32 %v9417_v13, %v9416_v30 }
 0x88c   : > { %v9419_v39 = vpop.f32.mrf.mxu0 }
 0x88d   : > { %v8625_v55 = vadd.f32 %v9418_v25, %v15032_v43 }
 0x88e   : > { %v9420_v59 = vpop.f32.mrf.mxu0 }
 0x88f   : > { %8691 = vst [vmem:[%s11172_s30 + $0xa0] sm:$0xff] %v8625_v55  ;;  %v9421_v28 = vadd.f32 %v9420_v59, %v9419_v39 }
 0x891   : > { %v8628_v12 = vadd.f32 %v9421_v28, %v15032_v43 }
 0x893   : > { %8692 = vst [vmem:[%s11172_s30 + $0xa8] sm:$0xff] %v8628_v12 }
 0x897   : > { %v9422_v1 = vpop.f32.mrf.mxu0 }
 0x899   : > { %v9423_v8 = vpop.f32.mrf.mxu0 }
 0x89a   : > { %v9424_v22 = vadd.f32 %v9423_v8, %v9422_v1 }
 0x89b   : > { %v9425_v54 = vpop.f32.mrf.mxu0 }
 0x89c   : > { %v8633_v47 = vadd.f32 %v9424_v22, %v15032_v43 }
 0x89d   : > { %v9426_v48 = vpop.f32.mrf.mxu0 }
 0x89e   : > { %8693 = vst [vmem:[%s11172_s30 + $0xb0] sm:$0xff] %v8633_v47  ;;  %v9427_v5 = vadd.f32 %v9426_v48, %v9425_v54 }
 0x8a0   : > { %v8636_v49 = vadd.f32 %v9427_v5, %v15032_v43 }
 0x8a2   : > { %8694 = vst [vmem:[%s11172_s30 + $0xb8] sm:$0xff] %v8636_v49 }
 0x8a7   : > { %v9428_v37 = vpop.f32.mrf.mxu0 }
 0x8a9   : > { %v9429_v53 = vpop.f32.mrf.mxu0 }
 0x8aa   : > { %v9430_v4 = vadd.f32 %v9429_v53, %v9428_v37 }
 0x8ab   : > { %v9431_v31 = vpop.f32.mrf.mxu0 }
 0x8ac   : > { %v8641_v52 = vadd.f32 %v9430_v4, %v15032_v43 }
 0x8ad   : > { %v9432_v42 = vpop.f32.mrf.mxu0 }
 0x8ae   : > { %8695 = vst [vmem:[%s11172_s30 + $0xc0] sm:$0xff] %v8641_v52  ;;  %v9433_v19 = vadd.f32 %v9432_v42, %v9431_v31 }
 0x8af   : > { %v9434_v35 = vpop.f32.mrf.mxu0 }
 0x8b0   : > { %v8644_v45 = vadd.f32 %v9433_v19, %v15032_v43 }
 0x8b1   : > { %v9435_v14 = vpop.f32.mrf.mxu0 }
 0x8b2   : > { %8696 = vst [vmem:[%s11172_s30 + $0xc8] sm:$0xff] %v8644_v45  ;;  %v9436_v0 = vadd.f32 %v9435_v14, %v9434_v35 }
 0x8b3   : > { %v9437_v40 = vpop.f32.mrf.mxu0 }
 0x8b4   : > { %v8649_v44 = vadd.f32 %v9436_v0, %v15032_v43 }
 0x8b5   : > { %v9438_v21 = vpop.f32.mrf.mxu0 }
 0x8b6   : > { %8697 = vst [vmem:[%s11172_s30 + $0xd0] sm:$0xff] %v8649_v44  ;;  %v9439_v2 = vadd.f32 %v9438_v21, %v9437_v40 }
 0x8b7   : > { %v9440_v29 = vpop.f32.mrf.mxu0 }
 0x8b8   : > { %v8652_v9 = vadd.f32 %v9439_v2, %v15032_v43 }
 0x8b9   : > { %v9441_v23 = vpop.f32.mrf.mxu0 }
 0x8ba   : > { %8698 = vst [vmem:[%s11172_s30 + $0xd8] sm:$0xff] %v8652_v9  ;;  %v9442_v46 = vadd.f32 %v9441_v23, %v9440_v29 }
 0x8bb   : > { %v9443_v51 = vpop.f32.mrf.mxu0 }
 0x8bc   : > { %v8657_v36 = vadd.f32 %v9442_v46, %v15032_v43 }
 0x8bd   : > { %v9444_v10 = vpop.f32.mrf.mxu0 }
 0x8be   : > { %8699 = vst [vmem:[%s11172_s30 + $0xe0] sm:$0xff] %v8657_v36  ;;  %v9445_v56 = vadd.f32 %v9444_v10, %v9443_v51 }
 0x8bf   : > { %v9446_v60 = vpop.f32.mrf.mxu0 }
 0x8c0   : > { %v8660_v27 = vadd.f32 %v9445_v56, %v15032_v43 }
 0x8c1   : > { %v9447_v50 = vpop.f32.mrf.mxu0 }
 0x8c2   : > { %8700 = vst [vmem:[%s11172_s30 + $0xe8] sm:$0xff] %v8660_v27  ;;  %v9448_v58 = vadd.f32 %v9447_v50, %v9446_v60 }
 0x8c3   : > { %v9449_v24 = vpop.f32.mrf.mxu0 }
 0x8c4   : > { %v8665_v11 = vadd.f32 %v9448_v58, %v15032_v43 }
 0x8c5   : > { %v9450_v16 = vpop.f32.mrf.mxu0 }
 0x8c6   : > { %8701 = vst [vmem:[%s11172_s30 + $0xf0] sm:$0xff] %v8665_v11  ;;  %v9451_v33 = vadd.f32 %v9450_v16, %v9449_v24 }
 0x8c8   : > { %v8668_v15 = vadd.f32 %v9451_v33, %v15032_v43 }
 0x8ca   : > { %8702 = vst [vmem:[%s11172_s30 + $0xf8] sm:$0xff] %v8668_v15 }
 0x8cb PF: > { %s15694_s20 = sld [smem:[#allocation29_spill]]  ;;  %s8717_s8 = sshll.u32 %s11172_s30, 4  ;;  %s15105_s8 = int_to_ptr.vmem [resolvable:$true] %s8717_s8 }
 0x8cc   : > { %s15695_s14 = sld [smem:[#allocation96_spill]]  ;;  %s8704_s11 = scalar_lea.sflag [#allocation5], %s11150_s9 }
 0x8cd   : > { %s10618_s22 = scalar_lea.vmem %s15105_s8, 4096  ;;  %s10801_s27 = smov [#allocation17]  }
 0x8ce   : > { %p10619_p8 = scmp.ne.s32.totalorder %s15105_s8, %s10618_s22  ;;  %s10622_s2 = sshll.u32 %s10801_s27, 4  ;;  %s10623_s2 = int_to_ptr.vmem [resolvable:$false] %s10622_s2 }
 0x8cf   : > { %s10624_s5 = scalar_lea.vmem %s10623_s2, 8192  ;;  %p10625_p9 = scmp.lt.s32.totalorder %s15105_s8, %s10623_s2 }
 0x8d0   : > { %p10620_p1 = pnand %p10619_p8, %p11106_p6  ;;  %p10626_p0 = scmp.lt.s32.totalorder %s10624_s5, %s10618_s22 }
 0x8d1   : > { %s9339_s21 = sshll.u32 %s15694_s20, 12 }
 0x8d2   : > { %s15696_s1 = smov %s15695_s14  ;;  %s15102_s28 = scalar_lea.hbm %s15695_s14, %s9339_s21 }
 0x8d3   : > { %p10621_p3 = pneg %p10620_p1  ;;  %p10627_p10 = por %p10626_p0, %p10625_p9 }
 0x8d5   : > { %p10628_p11 = pnand %p10627_p10, %p10621_p3 }
 0x8d7   : > { %10631 = shalt.err (!%p10628_p11)
}
 0x8d8   : > { %s10632_s30 = scalar_lea.hbm %s15102_s28, 4096  ;;  %s10636_s21 = scalar_lea.hbm %s15696_s1, 8192 }
 0x8d9   : > { %p10633_p13 = scmp.ne.s32.totalorder %s15102_s28, %s10632_s30  ;;  %p10637_p12 = scmp.lt.s32.totalorder %s15102_s28, %s15696_s1 }
 0x8da   : > { %p10638_p7 = scmp.lt.s32.totalorder %s10636_s21, %s10632_s30 }
 0x8db   : > { %p10634_p5 = pnand %p10633_p13, %p11106_p6 }
 0x8dc   : > { %p10639_p8 = por %p10638_p7, %p10637_p12 }
 0x8dd   : > { %p10635_p4 = pneg %p10634_p5 }
 0x8df   : > { %p10640_p1 = pnand %p10639_p8, %p10635_p4 }
 0x8e1   : > { %10643 = shalt.err (!%p10640_p1)
}
 0x8e2   : > { %s10802_s14 = smov 128   ;;  %s10803_s22 = smov 8  }
 0x8e3   : > { %9510 = dma.vmem_to_hbm [thread:$0]  (%p11106_p6), %s15105_s8, 4096, %s15102_s28, %s8704_s11, %s10802_s14, %s10802_s14, %s10803_s22  }
 0x8e4 PF: > { %s15697_s27 = sld [smem:[#allocation25_spill]]  ;;  %p9553_p3 = scmp.ge.s32.totalorder %s10782_s18, 2 }
 0x8e6   : > { %p9539_p9 = pnand %p9553_p3, %p11110_p2 }
 0x8e8   : > { %p9540_p0 = pneg %p9539_p9 }
 0x8ea   : > { %s8732_s2 = sand.u32 1, %s15697_s27  }
 0x8eb   : > { %s8733_s5 = scalar_lea.sflag [#allocation5], %s8732_s2 }
 0x8ec   : > { %10725 = dma.done.wait (%p9540_p0), %s8733_s5, 4096  }
 0x8ed   : > { %10727 = vsyncadd (%p9540_p0), %s8733_s5, 4294963200  ;;  %s30_s18 = sadd.s32 1, %s10782_s18   ;;  %s15699_s27 = sld [smem:[#allocation26_spill]] }
 0x8ee   : > { %p15135_p10 = scmp.ge.s32.totalorder %s30_s18, 6   ;;  %s15700_s3 = sld [smem:[#allocation27_spill]] }
 0x8ef   : > { %s15701_s8 = sld [smem:[#allocation33_spill]]  ;;  %s15705_s28 = smov %s10738_s29 }
 0x8f0   : > { %s15702_s25 = sld [smem:[#allocation31_spill]]  ;;  %s15706_s29 = smov %s11091_s24 }
 0x8f1   : > { %s15703_s19 = sld [smem:[#allocation32_spill]]  ;;  %s15708_s9 = smov %s10750_s10 }
 0x8f2   : > { %s15710_s11 = smov %s10758_s12  ;;  %s15711_s12 = smov %s10762_s13 }
 0x8f3   : > { %s15712_s13 = smov %s11053_s23  ;;  %s15713_s14 = smov %s10774_s16 }
 0x8f4   : > { %s15707_s30 = smov %s15700_s3  ;;  %s15714_s15 = smov %s10778_s17 }
 0x8f5   : > { %s15709_s10 = smov %s15701_s8  ;;  %29 = sbr.rel (!%p15135_p10) target bundleno = 21 (0x15), region = 153 }
 0x8f6   : > { %s15715_s16 = smov %s15702_s25 }
 0x8f7   : > { %s15716_s17 = smov %s15703_s19 }
 0x8fa   :  { %8738 = vsyncpa [#allocation4], 1 }
 0x8fb   :  { %8740 = vsyncpa [#allocation4 + $0x1], 1 }
 0x8fc   :  { %8741 = vsyncpa [#allocation7], 1 }
 0x8fd   :  { %8743 = vsyncpa [#allocation7 + $0x1], 1 }
 0x8fe   :  { %8744 = vsyncpa [#allocation10], 1 }
 0x8ff   :  { %8745 = vsyncpa [#allocation13], 1 }
 0x900   :  { %8746 = vsyncpa [#allocation16], 1 }
 0x901   :  { %8747 = vsyncpa [#allocation5], 1 }
 0x902   :  { %8749 = vsyncpa [#allocation5 + $0x1], 1 }

</bundles_post_ra>
